<compile_context>
chip_gen: v7x
topology: tpu7x:2x2x1
jax: 0.10.0
libtpu: 0.0.40
codegen_flags: <defaults>
</compile_context>

<pallas_src>
import functools

import jax
import jax.numpy as jnp
from jax import lax
from jax.experimental import pallas as pl
from jax.experimental.pallas import tpu as pltpu


def _rcu_kernel(x_ref, xtop_ref, xbot_ref, w1_ref, b1_ref, w2_ref, b2_ref,
                o_ref, im_ref, acc_ref, *, H, W):
    """One (batch, H-band) tile per grid step.

    x_ref   : (1, TH, Wp, Cp)   original x rows [h*TH, (h+1)*TH)
    xtop_ref: (1, 2,  Wp, Cp)   rows [h*TH-2, h*TH)          (halo; junk when h==0, masked)
    xbot_ref: (1, 2,  Wp, Cp)   rows [(h+1)*TH, (h+1)*TH+2)  (halo; junk when h==last, masked)
    w*_ref  : (3, 3*Cp, Cp)     weights; contraction rows ordered [kw=0 | kw=1 | kw=2]
    b*_ref  : (1, Cp) f32       bias
    o_ref   : (1, TH, Wp, Cp)
    im_ref  : (TH+4, Wp, 3*Cp)  shared im2col buffer (lane chunks: w-1 | w | w+1);
                                conv2 reuses rows [0, TH+2) after conv1 consumed them
    acc_ref : ((TH+2)*Wp, Cp)   f32 matmul accumulator (VMEM-resident)
    """
    _, TH, Wp, Cp = x_ref.shape
    mdt = im_ref.dtype
    h = pl.program_id(1)
    r0 = h * TH                                    # first global output row of this band

    relu = lambda v: jnp.maximum(v, 0)

    # ---- conv1 im2col center chunk: relu(x) at global rows [r0-2, r0+TH+2),
    #      zero outside the image.  (Pad columns [W, Wp) of x are already zero.)
    ri2 = lax.broadcasted_iota(jnp.int32, (2, Wp, 1), 0)
    top = jnp.where(ri2 >= 2 - r0, relu(xtop_ref[0]), 0).astype(mdt)        # global row >= 0
    bot = jnp.where(ri2 < H - TH - r0, relu(xbot_ref[0]), 0).astype(mdt)    # global row <  H
    im_ref[0:2, :, Cp:2 * Cp] = top
    im_ref[2:TH + 2, :, Cp:2 * Cp] = relu(x_ref[0]).astype(mdt)
    im_ref[TH + 2:TH + 4, :, Cp:2 * Cp] = bot

    def fill_side_chunks(nrows):
        """(w-1)/(w+1) lane chunks from the center chunk via flattened XLU rolls.
        Wrap sources always land on zeroed pad columns (Wp > W), so no edge masks."""
        M = nrows * Wp
        flat = im_ref[0:nrows, :, Cp:2 * Cp].reshape(M, Cp)
        im_ref[0:nrows, :, 0:Cp] = pltpu.roll(flat, 1, 0).reshape(nrows, Wp, Cp)
        im_ref[0:nrows, :, 2 * Cp:3 * Cp] = (
            pltpu.roll(flat, M - 1, 0).reshape(nrows, Wp, Cp))

    def conv3x3(w_ref, b_ref, nrows_out):
        """3 matmuls (one per kh tap), K = 3*Cp, f32 accumulation in VMEM + bias."""
        M = nrows_out * Wp
        for ki in range(3):
            patch = im_ref[ki:ki + nrows_out, :, :].reshape(M, 3 * Cp)
            contrib = jnp.dot(patch, w_ref[ki], preferred_element_type=jnp.float32)
            if ki == 0:
                acc_ref[0:M, :] = contrib
            else:
                acc_ref[0:M, :] += contrib
        return acc_ref[0:M, :] + b_ref[...].astype(jnp.float32)

    # ---- conv1: outputs at global rows [r0-1, r0+TH+1)
    fill_side_chunks(TH + 4)
    c1 = conv3x3(w1_ref, b1_ref, TH + 2)

    # ---- relu(conv1); zero conv2's H-padding rows (global rows -1 / H) and the W pad
    #      columns (conv1 produced bias/garbage there); write straight into conv2's
    #      im2col center chunk, aliased onto rows [0, TH+2) of the same scratch buffer.
    c1_3d = c1.reshape(TH + 2, Wp, Cp)
    ri = lax.broadcasted_iota(jnp.int32, (TH + 2, Wp, 1), 0)
    ci = lax.broadcasted_iota(jnp.int32, (TH + 2, Wp, 1), 1)
    valid = (ri >= 1 - r0) & (ri < H + 1 - r0) & (ci < W)
    im_ref[0:TH + 2, :, Cp:2 * Cp] = jnp.where(valid, relu(c1_3d), 0.0).astype(mdt)

    # ---- conv2: outputs at global rows [r0, r0+TH)
    fill_side_chunks(TH + 2)
    c2 = conv3x3(w2_ref, b2_ref, TH)

    # ---- residual add with the original (pre-ReLU) x
    # TODO(synk): if a v5e bundle dump shows vreg spills here, chunk this epilogue over rows.
    res = c2 + x_ref[0].reshape(TH * Wp, Cp).astype(jnp.float32)
    o_ref[0] = res.reshape(TH, Wp, Cp).astype(o_ref.dtype)


def _round_up(v, m):
    return ((v + m - 1) // m) * m


def _vmem_capacity_bytes():
    """Physical per-core VMEM (128 MiB on v5e/v6e, 64 MiB on v7x)."""
    try:
        cap = int(pltpu.get_tpu_info().vmem_capacity_bytes)
        if cap > 0:
            return cap
    except Exception:
        pass
    return 64 * 1024 * 1024     # conservative fallback; valid on every generation


def _band_vmem_bytes(TH, Wp, Cp, x_bytes, m_bytes):
    """Rough per-band VMEM footprint used for block-size selection."""
    im = (TH + 4) * Wp * 3 * Cp * m_bytes             # aliased im2col scratch (single buffer)
    acc = (TH + 2) * Wp * Cp * 4                      # f32 accumulator
    xio = 2 * 2 * TH * Wp * Cp * x_bytes              # x tile + out tile, double-buffered
    halo = 2 * 2 * 2 * Wp * Cp * x_bytes              # top/bot halo tiles, double-buffered
    wts = 2 * 3 * 3 * Cp * Cp * m_bytes + 2 * 4 * Cp  # single-buffered weights + biases
    return im + acc + xio + halo + wts


def _pick_block_h(N, H, Wp, Cp, x_bytes, m_bytes, budget_bytes):
    """Largest H-band that fits the VMEM budget; prefers >=2 bands when N == 1."""
    if H % 2 == 1:
        return H                                      # odd H: single band (halos fully masked)
    cands = [d for d in range(2, H + 1, 2) if H % d == 0]
    fitting = [d for d in cands
               if _band_vmem_bytes(d, Wp, Cp, x_bytes, m_bytes) <= budget_bytes]
    if not fitting:
        return cands[0]
    if N == 1:                                        # keep both v7x TensorCores busy
        multi = [d for d in fitting if H // d >= 2]
        if multi:
            return max(multi)
    return max(fitting)


def residual_conv_unit_nhwc(x_nhwc, w1, b1, w2, b2, *, block_h=None, matmul_dtype=None):
    """ResidualConvUnit forward (bn=False, ReLU) on an NHWC tensor.

    x_nhwc: (N, H, W, C);  w*: (C, C, 3, 3) torch OIHW;  b*: (C,)
    block_h: optional H-band override (must divide H; even unless == H)
    matmul_dtype: MXU operand dtype (default: bfloat16 when input is float32)
    """
    N, H, W, C = x_nhwc.shape
    assert H >= 2, "H must be >= 2"
    xdt = x_nhwc.dtype
    if matmul_dtype is None:
        matmul_dtype = jnp.bfloat16 if xdt == jnp.dtype(jnp.float32) else xdt
    mdt = jnp.dtype(matmul_dtype)

    Cp = _round_up(C, 128)                 # lane-pad channels
    Wp = _round_up(W + 1, 8)               # sublane-pad W; >= 1 zero column kills roll wraps

    x_bytes = jnp.dtype(xdt).itemsize
    m_bytes = mdt.itemsize
    vmem_limit = int(_vmem_capacity_bytes() * 0.75)   # ~48 MiB v7x / ~96 MiB v5e,v6e
    if block_h is None:
        TH = _pick_block_h(N, H, Wp, Cp, x_bytes, m_bytes, int(vmem_limit * 0.8))
    else:
        TH = block_h
        assert H % TH == 0, "block_h must divide H"
        assert TH == H or TH % 2 == 0, "block_h must be even (or the full height)"
    n_hb = H // TH
    half = max(TH // 2, 1)

    # Zero-pad to lane/sublane-dense layout; the W pad also serves as the conv zero padding.
    x = jnp.pad(x_nhwc, ((0, 0), (0, 0), (0, Wp - W), (0, Cp - C)))

    def prep_w(w):
        wk = jnp.transpose(w, (2, 3, 1, 0)).astype(mdt)           # OIHW -> (kh, kw, Cin, Cout)
        wk = jnp.pad(wk, ((0, 0), (0, 0), (0, Cp - C), (0, Cp - C)))
        return wk.reshape(3, 3 * Cp, Cp)                          # kw taps stacked on K axis

    def prep_b(b):
        return jnp.pad(b, (0, Cp - C)).reshape(1, Cp).astype(jnp.float32)

    xmain_map = lambda n, hh: (n, hh, 0, 0)
    # halo rows, in 2-row blocks, clamped so reads stay in bounds (junk is masked in-kernel)
    xtop_map = lambda n, hh: (n, jnp.maximum(hh * half - 1, 0), 0, 0)
    xbot_map = lambda n, hh: (n, jnp.minimum((hh + 1) * half, H // 2 - 1), 0, 0)

    scratch = [
        pltpu.VMEM((TH + 4, Wp, 3 * Cp), mdt),         # shared conv1/conv2 im2col buffer
        pltpu.VMEM(((TH + 2) * Wp, Cp), jnp.float32),  # matmul accumulator
    ]

    def build(single_buffer_invariants):
        def inv_spec(shape):
            imap = lambda n, hh, _s=shape: (0,) * len(_s)
            if single_buffer_invariants:
                return pl.BlockSpec(shape, imap, pipeline_mode=pl.Buffered(1))
            return pl.BlockSpec(shape, imap)

        in_specs = [
            pl.BlockSpec((1, TH, Wp, Cp), xmain_map),
            pl.BlockSpec((1, 2, Wp, Cp), xtop_map),
            pl.BlockSpec((1, 2, Wp, Cp), xbot_map),
            inv_spec((3, 3 * Cp, Cp)),
            inv_spec((1, Cp)),
            inv_spec((3, 3 * Cp, Cp)),
            inv_spec((1, Cp)),
        ]
        return pl.pallas_call(
            functools.partial(_rcu_kernel, H=H, W=W),
            out_shape=jax.ShapeDtypeStruct((N, H, Wp, Cp), xdt),
            grid_spec=pltpu.PrefetchScalarGridSpec(
                num_scalar_prefetch=0,
                grid=(N, n_hb),
                in_specs=in_specs,
                out_specs=pl.BlockSpec((1, TH, Wp, Cp), xmain_map),
                scratch_shapes=scratch,
            ),
            compiler_params=pltpu.CompilerParams(
                dimension_semantics=("parallel", "parallel"),
                vmem_limit_bytes=vmem_limit,
            ),
        )

    args = (x, x, x, prep_w(w1), prep_b(b1), prep_w(w2), prep_b(b2))
    try:
        out = build(True)(*args)     # weights/biases single-buffered (pl.Buffered(1))
    except Exception:
        out = build(False)(*args)    # fallback: default double-buffering for invariants
    return out[:, :, :W, :C]


def residual_conv_unit(x_nchw, w1, b1, w2, b2, *, block_h=None, matmul_dtype=None):
    """NCHW entry point.  If neighbouring layers already run NHWC, call
    residual_conv_unit_nhwc directly to avoid the two extra HBM transpose passes."""
    x_nhwc = jnp.transpose(x_nchw, (0, 2, 3, 1))
    out = residual_conv_unit_nhwc(x_nhwc, w1, b1, w2, b2,
                                  block_h=block_h, matmul_dtype=matmul_dtype)
    return jnp.transpose(out, (0, 3, 1, 2))


def _reference_forward(x, w1, b1, w2, b2):
    """Pure-JAX reference matching the PyTorch module (bn=False, ReLU, groups=1)."""
    def conv(inp, w, b):
        o = jax.lax.conv_general_dilated(
            inp, w, window_strides=(1, 1), padding=((1, 1), (1, 1)),
            dimension_numbers=("NCHW", "OIHW", "NCHW"))
        return o + b.reshape(1, -1, 1, 1)
    out = jnp.maximum(x, 0.0)
    out = conv(out, w1, b1)
    out = jnp.maximum(out, 0.0)
    out = conv(out, w2, b2)
    return out + x


if __name__ == "__main__":
    N, C, H, W = 2, 4, 16, 16
    key = jax.random.PRNGKey(0)
    kx, k1, k2, k3, k4 = jax.random.split(key, 5)

    x = jax.random.normal(kx, (N, C, H, W), dtype=jnp.float32)
    w1 = jax.random.normal(k1, (C, C, 3, 3), dtype=jnp.float32) * 0.1
    b1 = jax.random.normal(k2, (C,), dtype=jnp.float32) * 0.1
    w2 = jax.random.normal(k3, (C, C, 3, 3), dtype=jnp.float32) * 0.1
    b2 = jax.random.normal(k4, (C,), dtype=jnp.float32) * 0.1

    ref = _reference_forward(x, w1, b1, w2, b2)

    # Exact-precision path (f32 matmul operands); block_h=8 -> two H-bands, so the
    # halo / boundary-masking path is exercised.
    out_f32 = residual_conv_unit(x, w1, b1, w2, b2, block_h=8, matmul_dtype=jnp.float32)
    jax.block_until_ready(out_f32)
    assert out_f32.shape == ref.shape and out_f32.dtype == ref.dtype
    assert jnp.allclose(out_f32, ref, rtol=1e-4, atol=1e-4), \
        f"f32 path mismatch vs reference: {jnp.max(jnp.abs(out_f32 - ref))}"

    # Default path: VMEM-budget-driven block_h + bf16 matmul operands (f32 accumulation).
    out_def = residual_conv_unit(x, w1, b1, w2, b2)
    jax.block_until_ready(out_def)
    assert out_def.shape == ref.shape and out_def.dtype == ref.dtype
    assert jnp.allclose(out_def, ref, rtol=5e-2, atol=5e-2), \
        f"bf16 path mismatch vs reference: {jnp.max(jnp.abs(out_def - ref))}"

    print("KERNEL_OK")
</pallas_src>

<mosaic_0001>
module attributes {stable_mosaic.version = 11 : i64} {
  func.func @_rcu_kernel(%arg0: i32, %arg1: i32, %arg2: memref<1x8x24x128xf32, #tpu.memory_space<vmem>>, %arg3: memref<1x2x24x128xf32, #tpu.memory_space<vmem>>, %arg4: memref<1x2x24x128xf32, #tpu.memory_space<vmem>>, %arg5: memref<3x384x128xf32, #tpu.memory_space<vmem>>, %arg6: memref<1x128xf32, #tpu.memory_space<vmem>>, %arg7: memref<3x384x128xf32, #tpu.memory_space<vmem>>, %arg8: memref<1x128xf32, #tpu.memory_space<vmem>>, %arg9: memref<1x8x24x128xf32, #tpu.memory_space<vmem>>, %arg10: memref<12x24x384xf32, #tpu.memory_space<vmem>>, %arg11: memref<240x128xf32, #tpu.memory_space<vmem>>) attributes {dimension_semantics = [#tpu.dimension_semantics<parallel>, #tpu.dimension_semantics<parallel>], iteration_bounds = array<i64: 2, 2>, scalar_prefetch = 0 : i64, scratch_operands = 2 : i64, tpu.core_type = #tpu.core_type<tc>, window_params = [{transform_indices = @transform_0, window_bounds = array<i64: 1, 8, 24, 128>}, {transform_indices = @transform_1, window_bounds = array<i64: 1, 2, 24, 128>}, {transform_indices = @transform_2, window_bounds = array<i64: 1, 2, 24, 128>}, {pipeline_mode = #tpu.pipeline_mode<synchronous>, transform_indices = @transform_3, window_bounds = array<i64: 3, 384, 128>}, {pipeline_mode = #tpu.pipeline_mode<synchronous>, transform_indices = @transform_4, window_bounds = array<i64: 1, 128>}, {pipeline_mode = #tpu.pipeline_mode<synchronous>, transform_indices = @transform_5, window_bounds = array<i64: 3, 384, 128>}, {pipeline_mode = #tpu.pipeline_mode<synchronous>, transform_indices = @transform_6, window_bounds = array<i64: 1, 128>}, {transform_indices = @transform_7, window_bounds = array<i64: 1, 8, 24, 128>}]} {
    %c8_i32 = arith.constant 8 : i32
    %0 = arith.muli %arg1, %c8_i32 : i32
    %1 = tpu.iota {dimensions = array<i32: 0>} : vector<2x24x1xi32>
    %c2_i32 = arith.constant 2 : i32
    %2 = arith.subi %c2_i32, %0 : i32
    %3 = vector.broadcast %2 : i32 to vector<2x24x1xi32>
    %4 = arith.cmpi sge, %1, %3 : vector<2x24x1xi32>
    %c0 = arith.constant 0 : index
    %c0_0 = arith.constant 0 : index
    %c0_1 = arith.constant 0 : index
    %c0_2 = arith.constant 0 : index
    %5 = vector.load %arg3[%c0, %c0_0, %c0_1, %c0_2] : memref<1x2x24x128xf32, #tpu.memory_space<vmem>>, vector<1x2x24x128xf32>
    %6 = vector.shape_cast %5 : vector<1x2x24x128xf32> to vector<2x24x128xf32>
    %cst = arith.constant 0.000000e+00 : f32
    %7 = vector.broadcast %cst : f32 to vector<2x24x128xf32>
    %8 = arith.maximumf %6, %7 : vector<2x24x128xf32>
    %c0_i32 = arith.constant 0 : i32
    %9 = arith.sitofp %c0_i32 : i32 to f32
    %10 = vector.shape_cast %4 : vector<2x24x1xi1> to vector<2x24x1xi1>
    %11 = vector.broadcast %10 : vector<2x24x1xi1> to vector<2x24x128xi1>
    %12 = vector.broadcast %9 : f32 to vector<2x24x128xf32>
    %13 = arith.select %11, %8, %12 : vector<2x24x128xi1>, vector<2x24x128xf32>
    %c8_i32_3 = arith.constant 8 : i32
    %14 = arith.subi %c8_i32_3, %0 : i32
    %15 = vector.broadcast %14 : i32 to vector<2x24x1xi32>
    %16 = arith.cmpi slt, %1, %15 : vector<2x24x1xi32>
    %c0_4 = arith.constant 0 : index
    %c0_5 = arith.constant 0 : index
    %c0_6 = arith.constant 0 : index
    %c0_7 = arith.constant 0 : index
    %17 = vector.load %arg4[%c0_4, %c0_5, %c0_6, %c0_7] : memref<1x2x24x128xf32, #tpu.memory_space<vmem>>, vector<1x2x24x128xf32>
    %18 = vector.shape_cast %17 : vector<1x2x24x128xf32> to vector<2x24x128xf32>
    %cst_8 = arith.constant 0.000000e+00 : f32
    %19 = vector.broadcast %cst_8 : f32 to vector<2x24x128xf32>
    %20 = arith.maximumf %18, %19 : vector<2x24x128xf32>
    %c0_i32_9 = arith.constant 0 : i32
    %21 = arith.sitofp %c0_i32_9 : i32 to f32
    %22 = vector.shape_cast %16 : vector<2x24x1xi1> to vector<2x24x1xi1>
    %23 = vector.broadcast %22 : vector<2x24x1xi1> to vector<2x24x128xi1>
    %24 = vector.broadcast %21 : f32 to vector<2x24x128xf32>
    %25 = arith.select %23, %20, %24 : vector<2x24x128xi1>, vector<2x24x128xf32>
    %c0_10 = arith.constant 0 : index
    %c0_11 = arith.constant 0 : index
    %c128 = arith.constant 128 : index
    %26 = vector.load %arg10[%c0_10, %c0_11, %c128] : memref<12x24x384xf32, #tpu.memory_space<vmem>>, vector<2x24x128xf32>
    tpu.vector_store %arg10[%c0_10, %c0_11, %c128], %13 {strides = array<i32>} : memref<12x24x384xf32, #tpu.memory_space<vmem>>, vector<2x24x128xf32>,
    %c0_12 = arith.constant 0 : index
    %c0_13 = arith.constant 0 : index
    %c0_14 = arith.constant 0 : index
    %c0_15 = arith.constant 0 : index
    %27 = vector.load %arg2[%c0_12, %c0_13, %c0_14, %c0_15] : memref<1x8x24x128xf32, #tpu.memory_space<vmem>>, vector<1x8x24x128xf32>
    %28 = vector.shape_cast %27 : vector<1x8x24x128xf32> to vector<8x24x128xf32>
    %cst_16 = arith.constant 0.000000e+00 : f32
    %29 = vector.broadcast %cst_16 : f32 to vector<8x24x128xf32>
    %30 = arith.maximumf %28, %29 : vector<8x24x128xf32>
    %c2 = arith.constant 2 : index
    %c0_17 = arith.constant 0 : index
    %c128_18 = arith.constant 128 : index
    %31 = vector.load %arg10[%c2, %c0_17, %c128_18] : memref<12x24x384xf32, #tpu.memory_space<vmem>>, vector<8x24x128xf32>
    tpu.vector_store %arg10[%c2, %c0_17, %c128_18], %30 {strides = array<i32>} : memref<12x24x384xf32, #tpu.memory_space<vmem>>, vector<8x24x128xf32>,
    %c10 = arith.constant 10 : index
    %c0_19 = arith.constant 0 : index
    %c128_20 = arith.constant 128 : index
    %32 = vector.load %arg10[%c10, %c0_19, %c128_20] : memref<12x24x384xf32, #tpu.memory_space<vmem>>, vector<2x24x128xf32>
    tpu.vector_store %arg10[%c10, %c0_19, %c128_20], %25 {strides = array<i32>} : memref<12x24x384xf32, #tpu.memory_space<vmem>>, vector<2x24x128xf32>,
    %c0_21 = arith.constant 0 : index
    %c0_22 = arith.constant 0 : index
    %c128_23 = arith.constant 128 : index
    %33 = vector.load %arg10[%c0_21, %c0_22, %c128_23] : memref<12x24x384xf32, #tpu.memory_space<vmem>>, vector<12x24x128xf32>
    %34 = vector.shape_cast %33 : vector<12x24x128xf32> to vector<288x128xf32>
    %c1_i32 = arith.constant 1 : i32
    %35 = tpu.dynamic_rotate %34 by %c1_i32 dim 0 : vector<288x128xf32>, i32 -> vector<288x128xf32>
    %36 = vector.shape_cast %35 : vector<288x128xf32> to vector<12x24x128xf32>
    %c0_24 = arith.constant 0 : index
    %c0_25 = arith.constant 0 : index
    %c0_26 = arith.constant 0 : index
    %37 = vector.load %arg10[%c0_24, %c0_25, %c0_26] : memref<12x24x384xf32, #tpu.memory_space<vmem>>, vector<12x24x128xf32>
    tpu.vector_store %arg10[%c0_24, %c0_25, %c0_26], %36 {strides = array<i32>} : memref<12x24x384xf32, #tpu.memory_space<vmem>>, vector<12x24x128xf32>,
    %c287_i32 = arith.constant 287 : i32
    %38 = tpu.dynamic_rotate %34 by %c287_i32 dim 0 : vector<288x128xf32>, i32 -> vector<288x128xf32>
    %39 = vector.shape_cast %38 : vector<288x128xf32> to vector<12x24x128xf32>
    %c0_27 = arith.constant 0 : index
    %c0_28 = arith.constant 0 : index
    %c256 = arith.constant 256 : index
    %40 = vector.load %arg10[%c0_27, %c0_28, %c256] : memref<12x24x384xf32, #tpu.memory_space<vmem>>, vector<12x24x128xf32>
    tpu.vector_store %arg10[%c0_27, %c0_28, %c256], %39 {strides = array<i32>} : memref<12x24x384xf32, #tpu.memory_space<vmem>>, vector<12x24x128xf32>,
    %c0_29 = arith.constant 0 : index
    %c0_30 = arith.constant 0 : index
    %c0_31 = arith.constant 0 : index
    %41 = vector.load %arg10[%c0_29, %c0_30, %c0_31] : memref<12x24x384xf32, #tpu.memory_space<vmem>>, vector<10x24x384xf32>
    %42 = vector.shape_cast %41 : vector<10x24x384xf32> to vector<240x384xf32>
    %c0_32 = arith.constant 0 : index
    %c0_33 = arith.constant 0 : index
    %c0_34 = arith.constant 0 : index
    %43 = vector.load %arg5[%c0_32, %c0_33, %c0_34] : memref<3x384x128xf32, #tpu.memory_space<vmem>>, vector<1x384x128xf32>
    %44 = vector.shape_cast %43 : vector<1x384x128xf32> to vector<384x128xf32>
    %cst_35 = arith.constant dense<0.000000e+00> : vector<240x128xf32>
    %45 = tpu.matmul %42, %44, %cst_35 {dimension_numbers = #tpu.dot_dimension_numbers<[1], [0], [0], [1], [0, 0, 1, 1], [], []>} : vector<240x384xf32>, vector<384x128xf32>, vector<240x128xf32> -> vector<240x128xf32>
    %c0_36 = arith.constant 0 : index
    %c0_37 = arith.constant 0 : index
    %46 = vector.load %arg11[%c0_36, %c0_37] : memref<240x128xf32, #tpu.memory_space<vmem>>, vector<240x128xf32>
    tpu.vector_store %arg11[%c0_36, %c0_37], %45 {strides = array<i32>} : memref<240x128xf32, #tpu.memory_space<vmem>>, vector<240x128xf32>,
    %c1 = arith.constant 1 : index
    %c0_38 = arith.constant 0 : index
    %c0_39 = arith.constant 0 : index
    %47 = vector.load %arg10[%c1, %c0_38, %c0_39] : memref<12x24x384xf32, #tpu.memory_space<vmem>>, vector<10x24x384xf32>
    %48 = vector.shape_cast %47 : vector<10x24x384xf32> to vector<240x384xf32>
    %c1_40 = arith.constant 1 : index
    %c0_41 = arith.constant 0 : index
    %c0_42 = arith.constant 0 : index
    %49 = vector.load %arg5[%c1_40, %c0_41, %c0_42] : memref<3x384x128xf32, #tpu.memory_space<vmem>>, vector<1x384x128xf32>
    %50 = vector.shape_cast %49 : vector<1x384x128xf32> to vector<384x128xf32>
    %cst_43 = arith.constant dense<0.000000e+00> : vector<240x128xf32>
    %51 = tpu.matmul %48, %50, %cst_43 {dimension_numbers = #tpu.dot_dimension_numbers<[1], [0], [0], [1], [0, 0, 1, 1], [], []>} : vector<240x384xf32>, vector<384x128xf32>, vector<240x128xf32> -> vector<240x128xf32>
    %c0_44 = arith.constant 0 : index
    %c0_45 = arith.constant 0 : index
    %52 = vector.load %arg11[%c0_44, %c0_45] : memref<240x128xf32, #tpu.memory_space<vmem>>, vector<240x128xf32>
    %53 = arith.addf %52, %51 : vector<240x128xf32>
    %c0_46 = arith.constant 0 : index
    %c0_47 = arith.constant 0 : index
    %54 = vector.load %arg11[%c0_46, %c0_47] : memref<240x128xf32, #tpu.memory_space<vmem>>, vector<240x128xf32>
    tpu.vector_store %arg11[%c0_46, %c0_47], %53 {strides = array<i32>} : memref<240x128xf32, #tpu.memory_space<vmem>>, vector<240x128xf32>,
    %c2_48 = arith.constant 2 : index
    %c0_49 = arith.constant 0 : index
    %c0_50 = arith.constant 0 : index
    %55 = vector.load %arg10[%c2_48, %c0_49, %c0_50] : memref<12x24x384xf32, #tpu.memory_space<vmem>>, vector<10x24x384xf32>
    %56 = vector.shape_cast %55 : vector<10x24x384xf32> to vector<240x384xf32>
    %c2_51 = arith.constant 2 : index
    %c0_52 = arith.constant 0 : index
    %c0_53 = arith.constant 0 : index
    %57 = vector.load %arg5[%c2_51, %c0_52, %c0_53] : memref<3x384x128xf32, #tpu.memory_space<vmem>>, vector<1x384x128xf32>
    %58 = vector.shape_cast %57 : vector<1x384x128xf32> to vector<384x128xf32>
    %cst_54 = arith.constant dense<0.000000e+00> : vector<240x128xf32>
    %59 = tpu.matmul %56, %58, %cst_54 {dimension_numbers = #tpu.dot_dimension_numbers<[1], [0], [0], [1], [0, 0, 1, 1], [], []>} : vector<240x384xf32>, vector<384x128xf32>, vector<240x128xf32> -> vector<240x128xf32>
    %c0_55 = arith.constant 0 : index
    %c0_56 = arith.constant 0 : index
    %60 = vector.load %arg11[%c0_55, %c0_56] : memref<240x128xf32, #tpu.memory_space<vmem>>, vector<240x128xf32>
    %61 = arith.addf %60, %59 : vector<240x128xf32>
    %c0_57 = arith.constant 0 : index
    %c0_58 = arith.constant 0 : index
    %62 = vector.load %arg11[%c0_57, %c0_58] : memref<240x128xf32, #tpu.memory_space<vmem>>, vector<240x128xf32>
    tpu.vector_store %arg11[%c0_57, %c0_58], %61 {strides = array<i32>} : memref<240x128xf32, #tpu.memory_space<vmem>>, vector<240x128xf32>,
    %c0_59 = arith.constant 0 : index
    %c0_60 = arith.constant 0 : index
    %63 = vector.load %arg11[%c0_59, %c0_60] : memref<240x128xf32, #tpu.memory_space<vmem>>, vector<240x128xf32>
    %c0_61 = arith.constant 0 : index
    %c0_62 = arith.constant 0 : index
    %64 = vector.load %arg6[%c0_61, %c0_62] : memref<1x128xf32, #tpu.memory_space<vmem>>, vector<1x128xf32>
    %65 = vector.broadcast %64 : vector<1x128xf32> to vector<240x128xf32>
    %66 = arith.addf %63, %65 : vector<240x128xf32>
    %67 = vector.shape_cast %66 : vector<240x128xf32> to vector<10x24x128xf32>
    %68 = tpu.iota {dimensions = array<i32: 0>} : vector<10x24x1xi32>
    %69 = tpu.iota {dimensions = array<i32: 1>} : vector<10x24x1xi32>
    %c1_i32_63 = arith.constant 1 : i32
    %70 = arith.subi %c1_i32_63, %0 : i32
    %71 = vector.broadcast %70 : i32 to vector<10x24x1xi32>
    %72 = arith.cmpi sge, %68, %71 : vector<10x24x1xi32>
    %c17_i32 = arith.constant 17 : i32
    %73 = arith.subi %c17_i32, %0 : i32
    %74 = vector.broadcast %73 : i32 to vector<10x24x1xi32>
    %75 = arith.cmpi slt, %68, %74 : vector<10x24x1xi32>
    %76 = arith.andi %72, %75 : vector<10x24x1xi1>
    %c16_i32 = arith.constant 16 : i32
    %77 = vector.broadcast %c16_i32 : i32 to vector<10x24x1xi32>
    %78 = arith.cmpi slt, %69, %77 : vector<10x24x1xi32>
    %79 = arith.andi %76, %78 : vector<10x24x1xi1>
    %cst_64 = arith.constant 0.000000e+00 : f32
    %80 = vector.broadcast %cst_64 : f32 to vector<10x24x128xf32>
    %81 = arith.maximumf %67, %80 : vector<10x24x128xf32>
    %cst_65 = arith.constant 0.000000e+00 : f32
    %82 = vector.shape_cast %79 : vector<10x24x1xi1> to vector<10x24x1xi1>
    %83 = vector.broadcast %82 : vector<10x24x1xi1> to vector<10x24x128xi1>
    %84 = vector.broadcast %cst_65 : f32 to vector<10x24x128xf32>
    %85 = arith.select %83, %81, %84 : vector<10x24x128xi1>, vector<10x24x128xf32>
    %c0_66 = arith.constant 0 : index
    %c0_67 = arith.constant 0 : index
    %c128_68 = arith.constant 128 : index
    %86 = vector.load %arg10[%c0_66, %c0_67, %c128_68] : memref<12x24x384xf32, #tpu.memory_space<vmem>>, vector<10x24x128xf32>
    tpu.vector_store %arg10[%c0_66, %c0_67, %c128_68], %85 {strides = array<i32>} : memref<12x24x384xf32, #tpu.memory_space<vmem>>, vector<10x24x128xf32>,
    %c0_69 = arith.constant 0 : index
    %c0_70 = arith.constant 0 : index
    %c128_71 = arith.constant 128 : index
    %87 = vector.load %arg10[%c0_69, %c0_70, %c128_71] : memref<12x24x384xf32, #tpu.memory_space<vmem>>, vector<10x24x128xf32>
    %88 = vector.shape_cast %87 : vector<10x24x128xf32> to vector<240x128xf32>
    %c1_i32_72 = arith.constant 1 : i32
    %89 = tpu.dynamic_rotate %88 by %c1_i32_72 dim 0 : vector<240x128xf32>, i32 -> vector<240x128xf32>
    %90 = vector.shape_cast %89 : vector<240x128xf32> to vector<10x24x128xf32>
    %c0_73 = arith.constant 0 : index
    %c0_74 = arith.constant 0 : index
    %c0_75 = arith.constant 0 : index
    %91 = vector.load %arg10[%c0_73, %c0_74, %c0_75] : memref<12x24x384xf32, #tpu.memory_space<vmem>>, vector<10x24x128xf32>
    tpu.vector_store %arg10[%c0_73, %c0_74, %c0_75], %90 {strides = array<i32>} : memref<12x24x384xf32, #tpu.memory_space<vmem>>, vector<10x24x128xf32>,
    %c239_i32 = arith.constant 239 : i32
    %92 = tpu.dynamic_rotate %88 by %c239_i32 dim 0 : vector<240x128xf32>, i32 -> vector<240x128xf32>
    %93 = vector.shape_cast %92 : vector<240x128xf32> to vector<10x24x128xf32>
    %c0_76 = arith.constant 0 : index
    %c0_77 = arith.constant 0 : index
    %c256_78 = arith.constant 256 : index
    %94 = vector.load %arg10[%c0_76, %c0_77, %c256_78] : memref<12x24x384xf32, #tpu.memory_space<vmem>>, vector<10x24x128xf32>
    tpu.vector_store %arg10[%c0_76, %c0_77, %c256_78], %93 {strides = array<i32>} : memref<12x24x384xf32, #tpu.memory_space<vmem>>, vector<10x24x128xf32>,
    %c0_79 = arith.constant 0 : index
    %c0_80 = arith.constant 0 : index
    %c0_81 = arith.constant 0 : index
    %95 = vector.load %arg10[%c0_79, %c0_80, %c0_81] : memref<12x24x384xf32, #tpu.memory_space<vmem>>, vector<8x24x384xf32>
    %96 = vector.shape_cast %95 : vector<8x24x384xf32> to vector<192x384xf32>
    %c0_82 = arith.constant 0 : index
    %c0_83 = arith.constant 0 : index
    %c0_84 = arith.constant 0 : index
    %97 = vector.load %arg7[%c0_82, %c0_83, %c0_84] : memref<3x384x128xf32, #tpu.memory_space<vmem>>, vector<1x384x128xf32>
    %98 = vector.shape_cast %97 : vector<1x384x128xf32> to vector<384x128xf32>
    %cst_85 = arith.constant dense<0.000000e+00> : vector<192x128xf32>
    %99 = tpu.matmul %96, %98, %cst_85 {dimension_numbers = #tpu.dot_dimension_numbers<[1], [0], [0], [1], [0, 0, 1, 1], [], []>} : vector<192x384xf32>, vector<384x128xf32>, vector<192x128xf32> -> vector<192x128xf32>
    %c0_86 = arith.constant 0 : index
    %c0_87 = arith.constant 0 : index
    %100 = vector.load %arg11[%c0_86, %c0_87] : memref<240x128xf32, #tpu.memory_space<vmem>>, vector<192x128xf32>
    tpu.vector_store %arg11[%c0_86, %c0_87], %99 {strides = array<i32>} : memref<240x128xf32, #tpu.memory_space<vmem>>, vector<192x128xf32>,
    %c1_88 = arith.constant 1 : index
    %c0_89 = arith.constant 0 : index
    %c0_90 = arith.constant 0 : index
    %101 = vector.load %arg10[%c1_88, %c0_89, %c0_90] : memref<12x24x384xf32, #tpu.memory_space<vmem>>, vector<8x24x384xf32>
    %102 = vector.shape_cast %101 : vector<8x24x384xf32> to vector<192x384xf32>
    %c1_91 = arith.constant 1 : index
    %c0_92 = arith.constant 0 : index
    %c0_93 = arith.constant 0 : index
    %103 = vector.load %arg7[%c1_91, %c0_92, %c0_93] : memref<3x384x128xf32, #tpu.memory_space<vmem>>, vector<1x384x128xf32>
    %104 = vector.shape_cast %103 : vector<1x384x128xf32> to vector<384x128xf32>
    %cst_94 = arith.constant dense<0.000000e+00> : vector<192x128xf32>
    %105 = tpu.matmul %102, %104, %cst_94 {dimension_numbers = #tpu.dot_dimension_numbers<[1], [0], [0], [1], [0, 0, 1, 1], [], []>} : vector<192x384xf32>, vector<384x128xf32>, vector<192x128xf32> -> vector<192x128xf32>
    %c0_95 = arith.constant 0 : index
    %c0_96 = arith.constant 0 : index
    %106 = vector.load %arg11[%c0_95, %c0_96] : memref<240x128xf32, #tpu.memory_space<vmem>>, vector<192x128xf32>
    %107 = arith.addf %106, %105 : vector<192x128xf32>
    %c0_97 = arith.constant 0 : index
    %c0_98 = arith.constant 0 : index
    %108 = vector.load %arg11[%c0_97, %c0_98] : memref<240x128xf32, #tpu.memory_space<vmem>>, vector<192x128xf32>
    tpu.vector_store %arg11[%c0_97, %c0_98], %107 {strides = array<i32>} : memref<240x128xf32, #tpu.memory_space<vmem>>, vector<192x128xf32>,
    %c2_99 = arith.constant 2 : index
    %c0_100 = arith.constant 0 : index
    %c0_101 = arith.constant 0 : index
    %109 = vector.load %arg10[%c2_99, %c0_100, %c0_101] : memref<12x24x384xf32, #tpu.memory_space<vmem>>, vector<8x24x384xf32>
    %110 = vector.shape_cast %109 : vector<8x24x384xf32> to vector<192x384xf32>
    %c2_102 = arith.constant 2 : index
    %c0_103 = arith.constant 0 : index
    %c0_104 = arith.constant 0 : index
    %111 = vector.load %arg7[%c2_102, %c0_103, %c0_104] : memref<3x384x128xf32, #tpu.memory_space<vmem>>, vector<1x384x128xf32>
    %112 = vector.shape_cast %111 : vector<1x384x128xf32> to vector<384x128xf32>
    %cst_105 = arith.constant dense<0.000000e+00> : vector<192x128xf32>
    %113 = tpu.matmul %110, %112, %cst_105 {dimension_numbers = #tpu.dot_dimension_numbers<[1], [0], [0], [1], [0, 0, 1, 1], [], []>} : vector<192x384xf32>, vector<384x128xf32>, vector<192x128xf32> -> vector<192x128xf32>
    %c0_106 = arith.constant 0 : index
    %c0_107 = arith.constant 0 : index
    %114 = vector.load %arg11[%c0_106, %c0_107] : memref<240x128xf32, #tpu.memory_space<vmem>>, vector<192x128xf32>
    %115 = arith.addf %114, %113 : vector<192x128xf32>
    %c0_108 = arith.constant 0 : index
    %c0_109 = arith.constant 0 : index
    %116 = vector.load %arg11[%c0_108, %c0_109] : memref<240x128xf32, #tpu.memory_space<vmem>>, vector<192x128xf32>
    tpu.vector_store %arg11[%c0_108, %c0_109], %115 {strides = array<i32>} : memref<240x128xf32, #tpu.memory_space<vmem>>, vector<192x128xf32>,
    %c0_110 = arith.constant 0 : index
    %c0_111 = arith.constant 0 : index
    %117 = vector.load %arg11[%c0_110, %c0_111] : memref<240x128xf32, #tpu.memory_space<vmem>>, vector<192x128xf32>
    %c0_112 = arith.constant 0 : index
    %c0_113 = arith.constant 0 : index
    %118 = vector.load %arg8[%c0_112, %c0_113] : memref<1x128xf32, #tpu.memory_space<vmem>>, vector<1x128xf32>
    %119 = vector.broadcast %118 : vector<1x128xf32> to vector<192x128xf32>
    %120 = arith.addf %117, %119 : vector<192x128xf32>
    %c0_114 = arith.constant 0 : index
    %c0_115 = arith.constant 0 : index
    %c0_116 = arith.constant 0 : index
    %c0_117 = arith.constant 0 : index
    %121 = vector.load %arg2[%c0_114, %c0_115, %c0_116, %c0_117] : memref<1x8x24x128xf32, #tpu.memory_space<vmem>>, vector<1x8x24x128xf32>
    %122 = vector.shape_cast %121 : vector<1x8x24x128xf32> to vector<8x24x128xf32>
    %123 = vector.shape_cast %122 : vector<8x24x128xf32> to vector<192x128xf32>
    %124 = arith.addf %120, %123 : vector<192x128xf32>
    %125 = vector.shape_cast %124 : vector<192x128xf32> to vector<8x24x128xf32>
    %c0_118 = arith.constant 0 : index
    %c0_119 = arith.constant 0 : index
    %c0_120 = arith.constant 0 : index
    %c0_121 = arith.constant 0 : index
    %126 = vector.load %arg9[%c0_118, %c0_119, %c0_120, %c0_121] : memref<1x8x24x128xf32, #tpu.memory_space<vmem>>, vector<1x8x24x128xf32>
    %127 = vector.shape_cast %126 : vector<1x8x24x128xf32> to vector<8x24x128xf32>
    %128 = vector.shape_cast %125 : vector<8x24x128xf32> to vector<1x8x24x128xf32>
    tpu.vector_store %arg9[%c0_118, %c0_119, %c0_120, %c0_121], %128 {strides = array<i32>} : memref<1x8x24x128xf32, #tpu.memory_space<vmem>>, vector<1x8x24x128xf32>,
    return
  }
  func.func @transform_0(%arg0: i32, %arg1: i32) -> (i32, i32, i32, i32) {
    %c0_i32 = arith.constant 0 : i32
    %c0_i32_0 = arith.constant 0 : i32
    %c0_i32_1 = arith.constant 0 : i32
    return %arg0, %arg1, %c0_i32, %c0_i32_0 : i32, i32, i32, i32
  }
  func.func @transform_1(%arg0: i32, %arg1: i32) -> (i32, i32, i32, i32) {
    %c4_i32 = arith.constant 4 : i32
    %0 = arith.muli %arg1, %c4_i32 : i32
    %c1_i32 = arith.constant 1 : i32
    %1 = arith.subi %0, %c1_i32 : i32
    %c0_i32 = arith.constant 0 : i32
    %2 = arith.maxsi %1, %c0_i32 : i32
    %c0_i32_0 = arith.constant 0 : i32
    %c0_i32_1 = arith.constant 0 : i32
    %c0_i32_2 = arith.constant 0 : i32
    return %arg0, %2, %c0_i32_0, %c0_i32_1 : i32, i32, i32, i32
  }
  func.func @transform_2(%arg0: i32, %arg1: i32) -> (i32, i32, i32, i32) {
    %c1_i32 = arith.constant 1 : i32
    %0 = arith.addi %arg1, %c1_i32 : i32
    %c4_i32 = arith.constant 4 : i32
    %1 = arith.muli %0, %c4_i32 : i32
    %c7_i32 = arith.constant 7 : i32
    %2 = arith.minsi %1, %c7_i32 : i32
    %c0_i32 = arith.constant 0 : i32
    %c0_i32_0 = arith.constant 0 : i32
    %c0_i32_1 = arith.constant 0 : i32
    return %arg0, %2, %c0_i32, %c0_i32_0 : i32, i32, i32, i32
  }
  func.func @transform_3(%arg0: i32, %arg1: i32) -> (i32, i32, i32) {
    %c0_i32 = arith.constant 0 : i32
    %c0_i32_0 = arith.constant 0 : i32
    %c0_i32_1 = arith.constant 0 : i32
    %c0_i32_2 = arith.constant 0 : i32
    return %c0_i32, %c0_i32_0, %c0_i32_1 : i32, i32, i32
  }
  func.func @transform_4(%arg0: i32, %arg1: i32) -> (i32, i32) {
    %c0_i32 = arith.constant 0 : i32
    %c0_i32_0 = arith.constant 0 : i32
    %c0_i32_1 = arith.constant 0 : i32
    return %c0_i32, %c0_i32_0 : i32, i32
  }
  func.func @transform_5(%arg0: i32, %arg1: i32) -> (i32, i32, i32) {
    %c0_i32 = arith.constant 0 : i32
    %c0_i32_0 = arith.constant 0 : i32
    %c0_i32_1 = arith.constant 0 : i32
    %c0_i32_2 = arith.constant 0 : i32
    return %c0_i32, %c0_i32_0, %c0_i32_1 : i32, i32, i32
  }
  func.func @transform_6(%arg0: i32, %arg1: i32) -> (i32, i32) {
    %c0_i32 = arith.constant 0 : i32
    %c0_i32_0 = arith.constant 0 : i32
    %c0_i32_1 = arith.constant 0 : i32
    return %c0_i32, %c0_i32_0 : i32, i32
  }
  func.func @transform_7(%arg0: i32, %arg1: i32) -> (i32, i32, i32, i32) {
    %c0_i32 = arith.constant 0 : i32
    %c0_i32_0 = arith.constant 0 : i32
    %c0_i32_1 = arith.constant 0 : i32
    return %arg0, %arg1, %c0_i32, %c0_i32_0 : i32, i32, i32, i32
  }
}

module attributes {stable_mosaic.version = 11 : i64} {
  func.func @_rcu_kernel(%arg0: i32, %arg1: i32, %arg2: memref<1x8x24x128xf32, #tpu.memory_space<vmem>>, %arg3: memref<1x2x24x128xf32, #tpu.memory_space<vmem>>, %arg4: memref<1x2x24x128xf32, #tpu.memory_space<vmem>>, %arg5: memref<3x384x128xf32, #tpu.memory_space<vmem>>, %arg6: memref<1x128xf32, #tpu.memory_space<vmem>>, %arg7: memref<3x384x128xf32, #tpu.memory_space<vmem>>, %arg8: memref<1x128xf32, #tpu.memory_space<vmem>>, %arg9: memref<1x8x24x128xf32, #tpu.memory_space<vmem>>, %arg10: memref<12x24x384xf32, #tpu.memory_space<vmem>>, %arg11: memref<240x128xf32, #tpu.memory_space<vmem>>) attributes {dimension_semantics = [#tpu.dimension_semantics<parallel>, #tpu.dimension_semantics<parallel>], iteration_bounds = array<i64: 2, 2>, scalar_prefetch = 0 : i64, scratch_operands = 2 : i64, tpu.core_type = #tpu.core_type<tc>, window_params = [{transform_indices = @transform_0, window_bounds = array<i64: 1, 8, 24, 128>}, {transform_indices = @transform_1, window_bounds = array<i64: 1, 2, 24, 128>}, {transform_indices = @transform_2, window_bounds = array<i64: 1, 2, 24, 128>}, {pipeline_mode = #tpu.pipeline_mode<synchronous>, transform_indices = @transform_3, window_bounds = array<i64: 3, 384, 128>}, {pipeline_mode = #tpu.pipeline_mode<synchronous>, transform_indices = @transform_4, window_bounds = array<i64: 1, 128>}, {pipeline_mode = #tpu.pipeline_mode<synchronous>, transform_indices = @transform_5, window_bounds = array<i64: 3, 384, 128>}, {pipeline_mode = #tpu.pipeline_mode<synchronous>, transform_indices = @transform_6, window_bounds = array<i64: 1, 128>}, {transform_indices = @transform_7, window_bounds = array<i64: 1, 8, 24, 128>}]} {
    %c8_i32 = arith.constant 8 : i32
    %0 = arith.muli %arg1, %c8_i32 : i32
    %1 = tpu.iota {dimensions = array<i32: 0>} : vector<2x24x1xi32>
    %c2_i32 = arith.constant 2 : i32
    %2 = arith.subi %c2_i32, %0 : i32
    %3 = vector.broadcast %2 : i32 to vector<2x24x1xi32>
    %4 = arith.cmpi sge, %1, %3 : vector<2x24x1xi32>
    %c0 = arith.constant 0 : index
    %c0_0 = arith.constant 0 : index
    %c0_1 = arith.constant 0 : index
    %c0_2 = arith.constant 0 : index
    %5 = vector.load %arg3[%c0, %c0_0, %c0_1, %c0_2] : memref<1x2x24x128xf32, #tpu.memory_space<vmem>>, vector<1x2x24x128xf32>
    %6 = vector.shape_cast %5 : vector<1x2x24x128xf32> to vector<2x24x128xf32>
    %cst = arith.constant 0.000000e+00 : f32
    %7 = vector.broadcast %cst : f32 to vector<2x24x128xf32>
    %8 = arith.maximumf %6, %7 : vector<2x24x128xf32>
    %c0_i32 = arith.constant 0 : i32
    %9 = arith.sitofp %c0_i32 : i32 to f32
    %10 = vector.shape_cast %4 : vector<2x24x1xi1> to vector<2x24x1xi1>
    %11 = vector.broadcast %10 : vector<2x24x1xi1> to vector<2x24x128xi1>
    %12 = vector.broadcast %9 : f32 to vector<2x24x128xf32>
    %13 = arith.select %11, %8, %12 : vector<2x24x128xi1>, vector<2x24x128xf32>
    %c8_i32_3 = arith.constant 8 : i32
    %14 = arith.subi %c8_i32_3, %0 : i32
    %15 = vector.broadcast %14 : i32 to vector<2x24x1xi32>
    %16 = arith.cmpi slt, %1, %15 : vector<2x24x1xi32>
    %c0_4 = arith.constant 0 : index
    %c0_5 = arith.constant 0 : index
    %c0_6 = arith.constant 0 : index
    %c0_7 = arith.constant 0 : index
    %17 = vector.load %arg4[%c0_4, %c0_5, %c0_6, %c0_7] : memref<1x2x24x128xf32, #tpu.memory_space<vmem>>, vector<1x2x24x128xf32>
    %18 = vector.shape_cast %17 : vector<1x2x24x128xf32> to vector<2x24x128xf32>
    %cst_8 = arith.constant 0.000000e+00 : f32
    %19 = vector.broadcast %cst_8 : f32 to vector<2x24x128xf32>
    %20 = arith.maximumf %18, %19 : vector<2x24x128xf32>
    %c0_i32_9 = arith.constant 0 : i32
    %21 = arith.sitofp %c0_i32_9 : i32 to f32
    %22 = vector.shape_cast %16 : vector<2x24x1xi1> to vector<2x24x1xi1>
    %23 = vector.broadcast %22 : vector<2x24x1xi1> to vector<2x24x128xi1>
    %24 = vector.broadcast %21 : f32 to vector<2x24x128xf32>
    %25 = arith.select %23, %20, %24 : vector<2x24x128xi1>, vector<2x24x128xf32>
    %c0_10 = arith.constant 0 : index
    %c0_11 = arith.constant 0 : index
    %c128 = arith.constant 128 : index
    %26 = vector.load %arg10[%c0_10, %c0_11, %c128] : memref<12x24x384xf32, #tpu.memory_space<vmem>>, vector<2x24x128xf32>
    tpu.vector_store %arg10[%c0_10, %c0_11, %c128], %13 {strides = array<i32>} : memref<12x24x384xf32, #tpu.memory_space<vmem>>, vector<2x24x128xf32>,
    %c0_12 = arith.constant 0 : index
    %c0_13 = arith.constant 0 : index
    %c0_14 = arith.constant 0 : index
    %c0_15 = arith.constant 0 : index
    %27 = vector.load %arg2[%c0_12, %c0_13, %c0_14, %c0_15] : memref<1x8x24x128xf32, #tpu.memory_space<vmem>>, vector<1x8x24x128xf32>
    %28 = vector.shape_cast %27 : vector<1x8x24x128xf32> to vector<8x24x128xf32>
    %cst_16 = arith.constant 0.000000e+00 : f32
    %29 = vector.broadcast %cst_16 : f32 to vector<8x24x128xf32>
    %30 = arith.maximumf %28, %29 : vector<8x24x128xf32>
    %c2 = arith.constant 2 : index
    %c0_17 = arith.constant 0 : index
    %c128_18 = arith.constant 128 : index
    %31 = vector.load %arg10[%c2, %c0_17, %c128_18] : memref<12x24x384xf32, #tpu.memory_space<vmem>>, vector<8x24x128xf32>
    tpu.vector_store %arg10[%c2, %c0_17, %c128_18], %30 {strides = array<i32>} : memref<12x24x384xf32, #tpu.memory_space<vmem>>, vector<8x24x128xf32>,
    %c10 = arith.constant 10 : index
    %c0_19 = arith.constant 0 : index
    %c128_20 = arith.constant 128 : index
    %32 = vector.load %arg10[%c10, %c0_19, %c128_20] : memref<12x24x384xf32, #tpu.memory_space<vmem>>, vector<2x24x128xf32>
    tpu.vector_store %arg10[%c10, %c0_19, %c128_20], %25 {strides = array<i32>} : memref<12x24x384xf32, #tpu.memory_space<vmem>>, vector<2x24x128xf32>,
    %c0_21 = arith.constant 0 : index
    %c0_22 = arith.constant 0 : index
    %c128_23 = arith.constant 128 : index
    %33 = vector.load %arg10[%c0_21, %c0_22, %c128_23] : memref<12x24x384xf32, #tpu.memory_space<vmem>>, vector<12x24x128xf32>
    %34 = vector.shape_cast %33 : vector<12x24x128xf32> to vector<288x128xf32>
    %c1_i32 = arith.constant 1 : i32
    %35 = tpu.dynamic_rotate %34 by %c1_i32 dim 0 : vector<288x128xf32>, i32 -> vector<288x128xf32>
    %36 = vector.shape_cast %35 : vector<288x128xf32> to vector<12x24x128xf32>
    %c0_24 = arith.constant 0 : index
    %c0_25 = arith.constant 0 : index
    %c0_26 = arith.constant 0 : index
    %37 = vector.load %arg10[%c0_24, %c0_25, %c0_26] : memref<12x24x384xf32, #tpu.memory_space<vmem>>, vector<12x24x128xf32>
    tpu.vector_store %arg10[%c0_24, %c0_25, %c0_26], %36 {strides = array<i32>} : memref<12x24x384xf32, #tpu.memory_space<vmem>>, vector<12x24x128xf32>,
    %c287_i32 = arith.constant 287 : i32
    %38 = tpu.dynamic_rotate %34 by %c287_i32 dim 0 : vector<288x128xf32>, i32 -> vector<288x128xf32>
    %39 = vector.shape_cast %38 : vector<288x128xf32> to vector<12x24x128xf32>
    %c0_27 = arith.constant 0 : index
    %c0_28 = arith.constant 0 : index
    %c256 = arith.constant 256 : index
    %40 = vector.load %arg10[%c0_27, %c0_28, %c256] : memref<12x24x384xf32, #tpu.memory_space<vmem>>, vector<12x24x128xf32>
    tpu.vector_store %arg10[%c0_27, %c0_28, %c256], %39 {strides = array<i32>} : memref<12x24x384xf32, #tpu.memory_space<vmem>>, vector<12x24x128xf32>,
    %c0_29 = arith.constant 0 : index
    %c0_30 = arith.constant 0 : index
    %c0_31 = arith.constant 0 : index
    %41 = vector.load %arg10[%c0_29, %c0_30, %c0_31] : memref<12x24x384xf32, #tpu.memory_space<vmem>>, vector<10x24x384xf32>
    %42 = vector.shape_cast %41 : vector<10x24x384xf32> to vector<240x384xf32>
    %c0_32 = arith.constant 0 : index
    %c0_33 = arith.constant 0 : index
    %c0_34 = arith.constant 0 : index
    %43 = vector.load %arg5[%c0_32, %c0_33, %c0_34] : memref<3x384x128xf32, #tpu.memory_space<vmem>>, vector<1x384x128xf32>
    %44 = vector.shape_cast %43 : vector<1x384x128xf32> to vector<384x128xf32>
    %cst_35 = arith.constant dense<0.000000e+00> : vector<240x128xf32>
    %45 = tpu.matmul %42, %44, %cst_35 {dimension_numbers = #tpu.dot_dimension_numbers<[1], [0], [0], [1], [0, 0, 1, 1], [], []>} : vector<240x384xf32>, vector<384x128xf32>, vector<240x128xf32> -> vector<240x128xf32>
    %c0_36 = arith.constant 0 : index
    %c0_37 = arith.constant 0 : index
    %46 = vector.load %arg11[%c0_36, %c0_37] : memref<240x128xf32, #tpu.memory_space<vmem>>, vector<240x128xf32>
    tpu.vector_store %arg11[%c0_36, %c0_37], %45 {strides = array<i32>} : memref<240x128xf32, #tpu.memory_space<vmem>>, vector<240x128xf32>,
    %c1 = arith.constant 1 : index
    %c0_38 = arith.constant 0 : index
    %c0_39 = arith.constant 0 : index
    %47 = vector.load %arg10[%c1, %c0_38, %c0_39] : memref<12x24x384xf32, #tpu.memory_space<vmem>>, vector<10x24x384xf32>
    %48 = vector.shape_cast %47 : vector<10x24x384xf32> to vector<240x384xf32>
    %c1_40 = arith.constant 1 : index
    %c0_41 = arith.constant 0 : index
    %c0_42 = arith.constant 0 : index
    %49 = vector.load %arg5[%c1_40, %c0_41, %c0_42] : memref<3x384x128xf32, #tpu.memory_space<vmem>>, vector<1x384x128xf32>
    %50 = vector.shape_cast %49 : vector<1x384x128xf32> to vector<384x128xf32>
    %cst_43 = arith.constant dense<0.000000e+00> : vector<240x128xf32>
    %51 = tpu.matmul %48, %50, %cst_43 {dimension_numbers = #tpu.dot_dimension_numbers<[1], [0], [0], [1], [0, 0, 1, 1], [], []>} : vector<240x384xf32>, vector<384x128xf32>, vector<240x128xf32> -> vector<240x128xf32>
    %c0_44 = arith.constant 0 : index
    %c0_45 = arith.constant 0 : index
    %52 = vector.load %arg11[%c0_44, %c0_45] : memref<240x128xf32, #tpu.memory_space<vmem>>, vector<240x128xf32>
    %53 = arith.addf %52, %51 : vector<240x128xf32>
    %c0_46 = arith.constant 0 : index
    %c0_47 = arith.constant 0 : index
    %54 = vector.load %arg11[%c0_46, %c0_47] : memref<240x128xf32, #tpu.memory_space<vmem>>, vector<240x128xf32>
    tpu.vector_store %arg11[%c0_46, %c0_47], %53 {strides = array<i32>} : memref<240x128xf32, #tpu.memory_space<vmem>>, vector<240x128xf32>,
    %c2_48 = arith.constant 2 : index
    %c0_49 = arith.constant 0 : index
    %c0_50 = arith.constant 0 : index
    %55 = vector.load %arg10[%c2_48, %c0_49, %c0_50] : memref<12x24x384xf32, #tpu.memory_space<vmem>>, vector<10x24x384xf32>
    %56 = vector.shape_cast %55 : vector<10x24x384xf32> to vector<240x384xf32>
    %c2_51 = arith.constant 2 : index
    %c0_52 = arith.constant 0 : index
    %c0_53 = arith.constant 0 : index
    %57 = vector.load %arg5[%c2_51, %c0_52, %c0_53] : memref<3x384x128xf32, #tpu.memory_space<vmem>>, vector<1x384x128xf32>
    %58 = vector.shape_cast %57 : vector<1x384x128xf32> to vector<384x128xf32>
    %cst_54 = arith.constant dense<0.000000e+00> : vector<240x128xf32>
    %59 = tpu.matmul %56, %58, %cst_54 {dimension_numbers = #tpu.dot_dimension_numbers<[1], [0], [0], [1], [0, 0, 1, 1], [], []>} : vector<240x384xf32>, vector<384x128xf32>, vector<240x128xf32> -> vector<240x128xf32>
    %c0_55 = arith.constant 0 : index
    %c0_56 = arith.constant 0 : index
    %60 = vector.load %arg11[%c0_55, %c0_56] : memref<240x128xf32, #tpu.memory_space<vmem>>, vector<240x128xf32>
    %61 = arith.addf %60, %59 : vector<240x128xf32>
    %c0_57 = arith.constant 0 : index
    %c0_58 = arith.constant 0 : index
    %62 = vector.load %arg11[%c0_57, %c0_58] : memref<240x128xf32, #tpu.memory_space<vmem>>, vector<240x128xf32>
    tpu.vector_store %arg11[%c0_57, %c0_58], %61 {strides = array<i32>} : memref<240x128xf32, #tpu.memory_space<vmem>>, vector<240x128xf32>,
    %c0_59 = arith.constant 0 : index
    %c0_60 = arith.constant 0 : index
    %63 = vector.load %arg11[%c0_59, %c0_60] : memref<240x128xf32, #tpu.memory_space<vmem>>, vector<240x128xf32>
    %c0_61 = arith.constant 0 : index
    %c0_62 = arith.constant 0 : index
    %64 = vector.load %arg6[%c0_61, %c0_62] : memref<1x128xf32, #tpu.memory_space<vmem>>, vector<1x128xf32>
    %65 = vector.broadcast %64 : vector<1x128xf32> to vector<240x128xf32>
    %66 = arith.addf %63, %65 : vector<240x128xf32>
    %67 = vector.shape_cast %66 : vector<240x128xf32> to vector<10x24x128xf32>
    %68 = tpu.iota {dimensions = array<i32: 0>} : vector<10x24x1xi32>
    %69 = tpu.iota {dimensions = array<i32: 1>} : vector<10x24x1xi32>
    %c1_i32_63 = arith.constant 1 : i32
    %70 = arith.subi %c1_i32_63, %0 : i32
    %71 = vector.broadcast %70 : i32 to vector<10x24x1xi32>
    %72 = arith.cmpi sge, %68, %71 : vector<10x24x1xi32>
    %c17_i32 = arith.constant 17 : i32
    %73 = arith.subi %c17_i32, %0 : i32
    %74 = vector.broadcast %73 : i32 to vector<10x24x1xi32>
    %75 = arith.cmpi slt, %68, %74 : vector<10x24x1xi32>
    %76 = arith.andi %72, %75 : vector<10x24x1xi1>
    %c16_i32 = arith.constant 16 : i32
    %77 = vector.broadcast %c16_i32 : i32 to vector<10x24x1xi32>
    %78 = arith.cmpi slt, %69, %77 : vector<10x24x1xi32>
    %79 = arith.andi %76, %78 : vector<10x24x1xi1>
    %cst_64 = arith.constant 0.000000e+00 : f32
    %80 = vector.broadcast %cst_64 : f32 to vector<10x24x128xf32>
    %81 = arith.maximumf %67, %80 : vector<10x24x128xf32>
    %cst_65 = arith.constant 0.000000e+00 : f32
    %82 = vector.shape_cast %79 : vector<10x24x1xi1> to vector<10x24x1xi1>
    %83 = vector.broadcast %82 : vector<10x24x1xi1> to vector<10x24x128xi1>
    %84 = vector.broadcast %cst_65 : f32 to vector<10x24x128xf32>
    %85 = arith.select %83, %81, %84 : vector<10x24x128xi1>, vector<10x24x128xf32>
    %c0_66 = arith.constant 0 : index
    %c0_67 = arith.constant 0 : index
    %c128_68 = arith.constant 128 : index
    %86 = vector.load %arg10[%c0_66, %c0_67, %c128_68] : memref<12x24x384xf32, #tpu.memory_space<vmem>>, vector<10x24x128xf32>
    tpu.vector_store %arg10[%c0_66, %c0_67, %c128_68], %85 {strides = array<i32>} : memref<12x24x384xf32, #tpu.memory_space<vmem>>, vector<10x24x128xf32>,
    %c0_69 = arith.constant 0 : index
    %c0_70 = arith.constant 0 : index
    %c128_71 = arith.constant 128 : index
    %87 = vector.load %arg10[%c0_69, %c0_70, %c128_71] : memref<12x24x384xf32, #tpu.memory_space<vmem>>, vector<10x24x128xf32>
    %88 = vector.shape_cast %87 : vector<10x24x128xf32> to vector<240x128xf32>
    %c1_i32_72 = arith.constant 1 : i32
    %89 = tpu.dynamic_rotate %88 by %c1_i32_72 dim 0 : vector<240x128xf32>, i32 -> vector<240x128xf32>
    %90 = vector.shape_cast %89 : vector<240x128xf32> to vector<10x24x128xf32>
    %c0_73 = arith.constant 0 : index
    %c0_74 = arith.constant 0 : index
    %c0_75 = arith.constant 0 : index
    %91 = vector.load %arg10[%c0_73, %c0_74, %c0_75] : memref<12x24x384xf32, #tpu.memory_space<vmem>>, vector<10x24x128xf32>
    tpu.vector_store %arg10[%c0_73, %c0_74, %c0_75], %90 {strides = array<i32>} : memref<12x24x384xf32, #tpu.memory_space<vmem>>, vector<10x24x128xf32>,
    %c239_i32 = arith.constant 239 : i32
    %92 = tpu.dynamic_rotate %88 by %c239_i32 dim 0 : vector<240x128xf32>, i32 -> vector<240x128xf32>
    %93 = vector.shape_cast %92 : vector<240x128xf32> to vector<10x24x128xf32>
    %c0_76 = arith.constant 0 : index
    %c0_77 = arith.constant 0 : index
    %c256_78 = arith.constant 256 : index
    %94 = vector.load %arg10[%c0_76, %c0_77, %c256_78] : memref<12x24x384xf32, #tpu.memory_space<vmem>>, vector<10x24x128xf32>
    tpu.vector_store %arg10[%c0_76, %c0_77, %c256_78], %93 {strides = array<i32>} : memref<12x24x384xf32, #tpu.memory_space<vmem>>, vector<10x24x128xf32>,
    %c0_79 = arith.constant 0 : index
    %c0_80 = arith.constant 0 : index
    %c0_81 = arith.constant 0 : index
    %95 = vector.load %arg10[%c0_79, %c0_80, %c0_81] : memref<12x24x384xf32, #tpu.memory_space<vmem>>, vector<8x24x384xf32>
    %96 = vector.shape_cast %95 : vector<8x24x384xf32> to vector<192x384xf32>
    %c0_82 = arith.constant 0 : index
    %c0_83 = arith.constant 0 : index
    %c0_84 = arith.constant 0 : index
    %97 = vector.load %arg7[%c0_82, %c0_83, %c0_84] : memref<3x384x128xf32, #tpu.memory_space<vmem>>, vector<1x384x128xf32>
    %98 = vector.shape_cast %97 : vector<1x384x128xf32> to vector<384x128xf32>
    %cst_85 = arith.constant dense<0.000000e+00> : vector<192x128xf32>
    %99 = tpu.matmul %96, %98, %cst_85 {dimension_numbers = #tpu.dot_dimension_numbers<[1], [0], [0], [1], [0, 0, 1, 1], [], []>} : vector<192x384xf32>, vector<384x128xf32>, vector<192x128xf32> -> vector<192x128xf32>
    %c0_86 = arith.constant 0 : index
    %c0_87 = arith.constant 0 : index
    %100 = vector.load %arg11[%c0_86, %c0_87] : memref<240x128xf32, #tpu.memory_space<vmem>>, vector<192x128xf32>
    tpu.vector_store %arg11[%c0_86, %c0_87], %99 {strides = array<i32>} : memref<240x128xf32, #tpu.memory_space<vmem>>, vector<192x128xf32>,
    %c1_88 = arith.constant 1 : index
    %c0_89 = arith.constant 0 : index
    %c0_90 = arith.constant 0 : index
    %101 = vector.load %arg10[%c1_88, %c0_89, %c0_90] : memref<12x24x384xf32, #tpu.memory_space<vmem>>, vector<8x24x384xf32>
    %102 = vector.shape_cast %101 : vector<8x24x384xf32> to vector<192x384xf32>
    %c1_91 = arith.constant 1 : index
    %c0_92 = arith.constant 0 : index
    %c0_93 = arith.constant 0 : index
    %103 = vector.load %arg7[%c1_91, %c0_92, %c0_93] : memref<3x384x128xf32, #tpu.memory_space<vmem>>, vector<1x384x128xf32>
    %104 = vector.shape_cast %103 : vector<1x384x128xf32> to vector<384x128xf32>
    %cst_94 = arith.constant dense<0.000000e+00> : vector<192x128xf32>
    %105 = tpu.matmul %102, %104, %cst_94 {dimension_numbers = #tpu.dot_dimension_numbers<[1], [0], [0], [1], [0, 0, 1, 1], [], []>} : vector<192x384xf32>, vector<384x128xf32>, vector<192x128xf32> -> vector<192x128xf32>
    %c0_95 = arith.constant 0 : index
    %c0_96 = arith.constant 0 : index
    %106 = vector.load %arg11[%c0_95, %c0_96] : memref<240x128xf32, #tpu.memory_space<vmem>>, vector<192x128xf32>
    %107 = arith.addf %106, %105 : vector<192x128xf32>
    %c0_97 = arith.constant 0 : index
    %c0_98 = arith.constant 0 : index
    %108 = vector.load %arg11[%c0_97, %c0_98] : memref<240x128xf32, #tpu.memory_space<vmem>>, vector<192x128xf32>
    tpu.vector_store %arg11[%c0_97, %c0_98], %107 {strides = array<i32>} : memref<240x128xf32, #tpu.memory_space<vmem>>, vector<192x128xf32>,
    %c2_99 = arith.constant 2 : index
    %c0_100 = arith.constant 0 : index
    %c0_101 = arith.constant 0 : index
    %109 = vector.load %arg10[%c2_99, %c0_100, %c0_101] : memref<12x24x384xf32, #tpu.memory_space<vmem>>, vector<8x24x384xf32>
    %110 = vector.shape_cast %109 : vector<8x24x384xf32> to vector<192x384xf32>
    %c2_102 = arith.constant 2 : index
    %c0_103 = arith.constant 0 : index
    %c0_104 = arith.constant 0 : index
    %111 = vector.load %arg7[%c2_102, %c0_103, %c0_104] : memref<3x384x128xf32, #tpu.memory_space<vmem>>, vector<1x384x128xf32>
    %112 = vector.shape_cast %111 : vector<1x384x128xf32> to vector<384x128xf32>
    %cst_105 = arith.constant dense<0.000000e+00> : vector<192x128xf32>
    %113 = tpu.matmul %110, %112, %cst_105 {dimension_numbers = #tpu.dot_dimension_numbers<[1], [0], [0], [1], [0, 0, 1, 1], [], []>} : vector<192x384xf32>, vector<384x128xf32>, vector<192x128xf32> -> vector<192x128xf32>
    %c0_106 = arith.constant 0 : index
    %c0_107 = arith.constant 0 : index
    %114 = vector.load %arg11[%c0_106, %c0_107] : memref<240x128xf32, #tpu.memory_space<vmem>>, vector<192x128xf32>
    %115 = arith.addf %114, %113 : vector<192x128xf32>
    %c0_108 = arith.constant 0 : index
    %c0_109 = arith.constant 0 : index
    %116 = vector.load %arg11[%c0_108, %c0_109] : memref<240x128xf32, #tpu.memory_space<vmem>>, vector<192x128xf32>
    tpu.vector_store %arg11[%c0_108, %c0_109], %115 {strides = array<i32>} : memref<240x128xf32, #tpu.memory_space<vmem>>, vector<192x128xf32>,
    %c0_110 = arith.constant 0 : index
    %c0_111 = arith.constant 0 : index
    %117 = vector.load %arg11[%c0_110, %c0_111] : memref<240x128xf32, #tpu.memory_space<vmem>>, vector<192x128xf32>
    %c0_112 = arith.constant 0 : index
    %c0_113 = arith.constant 0 : index
    %118 = vector.load %arg8[%c0_112, %c0_113] : memref<1x128xf32, #tpu.memory_space<vmem>>, vector<1x128xf32>
    %119 = vector.broadcast %118 : vector<1x128xf32> to vector<192x128xf32>
    %120 = arith.addf %117, %119 : vector<192x128xf32>
    %c0_114 = arith.constant 0 : index
    %c0_115 = arith.constant 0 : index
    %c0_116 = arith.constant 0 : index
    %c0_117 = arith.constant 0 : index
    %121 = vector.load %arg2[%c0_114, %c0_115, %c0_116, %c0_117] : memref<1x8x24x128xf32, #tpu.memory_space<vmem>>, vector<1x8x24x128xf32>
    %122 = vector.shape_cast %121 : vector<1x8x24x128xf32> to vector<8x24x128xf32>
    %123 = vector.shape_cast %122 : vector<8x24x128xf32> to vector<192x128xf32>
    %124 = arith.addf %120, %123 : vector<192x128xf32>
    %125 = vector.shape_cast %124 : vector<192x128xf32> to vector<8x24x128xf32>
    %c0_118 = arith.constant 0 : index
    %c0_119 = arith.constant 0 : index
    %c0_120 = arith.constant 0 : index
    %c0_121 = arith.constant 0 : index
    %126 = vector.load %arg9[%c0_118, %c0_119, %c0_120, %c0_121] : memref<1x8x24x128xf32, #tpu.memory_space<vmem>>, vector<1x8x24x128xf32>
    %127 = vector.shape_cast %126 : vector<1x8x24x128xf32> to vector<8x24x128xf32>
    %128 = vector.shape_cast %125 : vector<8x24x128xf32> to vector<1x8x24x128xf32>
    tpu.vector_store %arg9[%c0_118, %c0_119, %c0_120, %c0_121], %128 {strides = array<i32>} : memref<1x8x24x128xf32, #tpu.memory_space<vmem>>, vector<1x8x24x128xf32>,
    return
  }
  func.func @transform_0(%arg0: i32, %arg1: i32) -> (i32, i32, i32, i32) {
    %c0_i32 = arith.constant 0 : i32
    %c0_i32_0 = arith.constant 0 : i32
    %c0_i32_1 = arith.constant 0 : i32
    return %arg0, %arg1, %c0_i32, %c0_i32_0 : i32, i32, i32, i32
  }
  func.func @transform_1(%arg0: i32, %arg1: i32) -> (i32, i32, i32, i32) {
    %c4_i32 = arith.constant 4 : i32
    %0 = arith.muli %arg1, %c4_i32 : i32
    %c1_i32 = arith.constant 1 : i32
    %1 = arith.subi %0, %c1_i32 : i32
    %c0_i32 = arith.constant 0 : i32
    %2 = arith.maxsi %1, %c0_i32 : i32
    %c0_i32_0 = arith.constant 0 : i32
    %c0_i32_1 = arith.constant 0 : i32
    %c0_i32_2 = arith.constant 0 : i32
    return %arg0, %2, %c0_i32_0, %c0_i32_1 : i32, i32, i32, i32
  }
  func.func @transform_2(%arg0: i32, %arg1: i32) -> (i32, i32, i32, i32) {
    %c1_i32 = arith.constant 1 : i32
    %0 = arith.addi %arg1, %c1_i32 : i32
    %c4_i32 = arith.constant 4 : i32
    %1 = arith.muli %0, %c4_i32 : i32
    %c7_i32 = arith.constant 7 : i32
    %2 = arith.minsi %1, %c7_i32 : i32
    %c0_i32 = arith.constant 0 : i32
    %c0_i32_0 = arith.constant 0 : i32
    %c0_i32_1 = arith.constant 0 : i32
    return %arg0, %2, %c0_i32, %c0_i32_0 : i32, i32, i32, i32
  }
  func.func @transform_3(%arg0: i32, %arg1: i32) -> (i32, i32, i32) {
    %c0_i32 = arith.constant 0 : i32
    %c0_i32_0 = arith.constant 0 : i32
    %c0_i32_1 = arith.constant 0 : i32
    %c0_i32_2 = arith.constant 0 : i32
    return %c0_i32, %c0_i32_0, %c0_i32_1 : i32, i32, i32
  }
  func.func @transform_4(%arg0: i32, %arg1: i32) -> (i32, i32) {
    %c0_i32 = arith.constant 0 : i32
    %c0_i32_0 = arith.constant 0 : i32
    %c0_i32_1 = arith.constant 0 : i32
    return %c0_i32, %c0_i32_0 : i32, i32
  }
  func.func @transform_5(%arg0: i32, %arg1: i32) -> (i32, i32, i32) {
    %c0_i32 = arith.constant 0 : i32
    %c0_i32_0 = arith.constant 0 : i32
    %c0_i32_1 = arith.constant 0 : i32
    %c0_i32_2 = arith.constant 0 : i32
    return %c0_i32, %c0_i32_0, %c0_i32_1 : i32, i32, i32
  }
  func.func @transform_6(%arg0: i32, %arg1: i32) -> (i32, i32) {
    %c0_i32 = arith.constant 0 : i32
    %c0_i32_0 = arith.constant 0 : i32
    %c0_i32_1 = arith.constant 0 : i32
    return %c0_i32, %c0_i32_0 : i32, i32
  }
  func.func @transform_7(%arg0: i32, %arg1: i32) -> (i32, i32, i32, i32) {
    %c0_i32 = arith.constant 0 : i32
    %c0_i32_0 = arith.constant 0 : i32
    %c0_i32_1 = arith.constant 0 : i32
    return %arg0, %arg1, %c0_i32, %c0_i32_0 : i32, i32, i32, i32
  }
}

</mosaic_0001>

<bundles_post_ra>
// kernel: tpu_custom_call.1
= control target key start
LH: loop header
LB: loop body
LE: loop exit
PB: predicated region body
PF: predicated region fallthrough
CT: control target
= control target key end

     0   :  { %s9891_s0 = inlined_call_operand.hbm [shape: f32[2,16,24,128], index: 0, kind: input, shape index: {}]   ;;  %s9892_s1 = inlined_call_operand.hbm [shape: f32[2,16,24,128], index: 1, kind: input, shape index: {}]   ;;  %s9893_s2 = inlined_call_operand.hbm [shape: f32[2,16,24,128], index: 2, kind: input, shape index: {}]   ;;  %s9894_s3 = inlined_call_operand.hbm [shape: f32[3,384,128], index: 3, kind: input, shape index: {}]   ;;  %s9895_s4 = inlined_call_operand.vmem [shape: f32[1,128], index: 4, kind: input, shape index: {}]   ;;  %s9896_s5 = inlined_call_operand.hbm [shape: f32[3,384,128], index: 5, kind: input, shape index: {}]   ;;  %s9897_s6 = inlined_call_operand.vmem [shape: f32[1,128], index: 6, kind: input, shape index: {}]   ;;  %s9898_s7 = inlined_call_operand.hbm [shape: f32[2,16,24,128], index: 7, kind: output, shape index: {}]  }
   0x1   :  { %10058 = sst [smem:[#allocation69_spill]] %s9892_s1 }
   0x2   :  { %10059 = sst [smem:[#allocation70_spill]] %s9893_s2 }
   0x3   :  { %10060 = sst [smem:[#allocation71_spill]] %s9894_s3 }
   0x4   :  { %10061 = sst [smem:[#allocation72_spill]] %s9895_s4 }
   0x5   :  { %10062 = sst [smem:[#allocation73_spill]] %s9896_s5 }
   0x6   :  { %10063 = sst [smem:[#allocation74_spill]] %s9897_s6 }
   0x7   :  { %10064 = sst [smem:[#allocation75_spill]] %s9898_s7 }
   0x8   :  { %12 = vsyncpa [#allocation5], 0 }
   0x9   :  { %14 = vsyncpa [#allocation5 + $0x1], 0 }
   0xa   :  { %15 = vsyncpa [#allocation8], 0 }
   0xb   :  { %17 = vsyncpa [#allocation8 + $0x1], 0 }
   0xc   :  { %18 = vsyncpa [#allocation11], 0 }
   0xd   :  { %19 = vsyncpa [#allocation6], 0 }
   0xe   :  { %21 = vsyncpa [#allocation6 + $0x1], 0  ;;  %s7034_s24 = smov 0   ;;  %s7036_s25 = smov 0  }
   0xf   :  { %s7038_s26 = smov 0   ;;  %s7040_s27 = smov 0  }
  0x10   :  { %s7042_s28 = smov 0   ;;  %s7044_s29 = smov 0  }
  0x11   :  { %s7046_s30 = smov 0   ;;  %s7048_s8 = smov 0  }
  0x12   :  { %s7050_s9 = smov 0   ;;  %s7052_s10 = smov 0  }
  0x13   :  { %s7054_s11 = smov 0   ;;  %s7056_s12 = smov 0  }
  0x14   :  { %s7058_s13 = smov 0   ;;  %s7060_s14 = smov 0  }
  0x15 LB: > { %10065 = sst [smem:[#allocation19_spill]] %s6928_s24  ;;  %s7105_s15 = sadd.s32 4294967295, %s6980_s14   ;;  %s6980_s14 = sphi %s7060_s14, %s27_s14   ;;  %s6976_s13 = sphi %s7058_s13, %s10337_s13   ;;  %s6972_s12 = sphi %s7056_s12, %s10336_s12   ;;  %s6968_s11 = sphi %s7054_s11, %s10326_s11   ;;  %s6964_s10 = sphi %s7052_s10, %s10335_s10   ;;  %s6960_s9 = sphi %s7050_s9, %s10334_s9   ;;  %s6956_s8 = sphi %s7048_s8, %s10333_s8   ;;  %s6952_s30 = sphi %s7046_s30, %s10332_s30   ;;  %s6948_s29 = sphi %s7044_s29, %s10324_s29   ;;  %s6944_s28 = sphi %s7042_s28, %s10323_s28   ;;  %s6940_s27 = sphi %s7040_s27, %s10322_s27   ;;  %s6936_s26 = sphi %s7038_s26, %s10331_s26   ;;  %s6932_s25 = sphi %s7036_s25, %s10330_s25   ;;  %s6928_s24 = sphi %s7034_s24, %s10329_s24  }
  0x16   : > { %10066 = sst [smem:[#allocation20_spill]] %s6944_s28  ;;  %p5226_p0 = scmp.ge.s32.totalorder %s6980_s14, 1 }
  0x17   : > { %10067 = sst [smem:[#allocation21_spill]] %s6948_s29  ;;  %p9900_p1 = scmp.eq.s32.totalorder %s7105_s15, 0 }
  0x18   : > { %10068 = sst [smem:[#allocation22_spill]] %s6964_s10  ;;  %p256_p3 = scmp.lt.s32.totalorder %s6980_s14, 5 }
  0x19   : > { %10069 = sst [smem:[#allocation23_spill]] %s6968_s11  ;;  %s6982_s17 = smov [#allocation10]  }
  0x1a   : > { %10070 = sst [smem:[#allocation24_spill]] %s6976_s13  ;;  %p7111_p4 = pnand %p5226_p0, %p256_p3 }
  0x1b   : > { %s268_s18 = sshll.u32 %s6982_s17, 4  ;;  %s10074_s3 = sld [smem:[#allocation71_spill]]  ;;  %s269_s18 = int_to_ptr.vmem [resolvable:$true] %s268_s18 }
  0x1c   : > { %s10071_s16 = scalar_select %p7111_p4, 1, 0 }
  0x1d   : > { %p6528_p5 = pneg %p7111_p4 }
  0x1e   : > { %10072 = sst [smem:[#allocation25_spill]] %s10071_s16 }
  0x1f   : > { %p7119_p6 = pnand %p6528_p5, %p9900_p1 }
  0x21   : > { %s6676_s22 = scalar_lea.hbm %s10074_s3, 18432  ;;  %p9920_p8 = pneg %p7119_p6 }
  0x22   : > { %p6677_p7 = scmp.ne.s32.totalorder %s10074_s3, %s6676_s22  ;;  %p6683_p11 = scmp.lt.u32.totalorder %s6676_s22, %s10074_s3 }
  0x24   : > { %p6679_p9 = pnand %p9920_p8, %p6677_p7 }
  0x26   : > { %p6680_p10 = pneg %p6679_p9 }
  0x28   : > { %p6685_p12 = pnand %p6683_p11, %p6680_p10 }
  0x2a   : > { %6688 = shalt.err (!%p6685_p12)
}
  0x2b   : > { %s6689_s20 = scalar_lea.vmem %s269_s18, 18432  ;;  %p6697_p5 = scmp.lt.s32.totalorder %s269_s18, %s269_s18 }
  0x2c   : > { %p6690_p13 = scmp.ne.s32.totalorder %s269_s18, %s6689_s20  ;;  %p6698_p2 = scmp.lt.s32.totalorder %s6689_s20, %s6689_s20 }
  0x2e   : > { %p6692_p0 = pnand %p6690_p13, %p9920_p8  ;;  %p6699_p1 = por %p6698_p2, %p6697_p5 }
  0x30   : > { %p6693_p3 = pneg %p6692_p0 }
  0x32   : > { %p6700_p4 = pnand %p6699_p1, %p6693_p3 }
  0x34   : > { %6703 = shalt.err (!%p6700_p4)
}
  0x35   : > { %s9904_s7 = smov 128   ;;  %s9906_s11 = smov 8  }
  0x36   : > { %6531 = dma.hbm_to_vmem [thread:$0]  (!%p7119_p6), %s10074_s3, 18432, %s269_s18, [#allocation11], %s9904_s7, %s9904_s7, %s9906_s11  }
  0x37   : > { %s36_s23 = sadd.s32 1, %s6972_s12  ;;  %s39_s17 = sadd.s32 1, %s6976_s13 }
  0x38   : > { %p37_p1 = scmp.ge.s32.totalorder %s36_s23, 2  ;;  %p9919_p2 = scmp.eq.s32.totalorder %s6980_s14, 0 }
  0x39   : > { %s5220_s20 = sshll.u32 %s6972_s12, 2  ;;  %s84_s6 = sadd.s32 1, %s6948_s29 }
  0x3a   : > { %s10339_s23 = smov (%p37_p1, %s36_s23), 0  ;;  %s10341_s17 = smov (!%p37_p1, %s39_s17), %s6976_s13 }
  0x3b   : > { %10075 = sst [smem:[#allocation26_spill]] %s10339_s23  ;;  %s44_s4 = ssub.s32 %s6972_s12, %s10339_s23 }
  0x3c   : > { %s5221_s10 = sadd.s32 4294967295, %s5220_s20  ;;  %p41_p4 = scmp.ge.s32.totalorder %s10341_s17, 2 }
  0x3d   : > { %p73_p7 = scmp.gt.s32.totalorder %s5221_s10, 0  ;;  %s5222_s18 = sshll.u32 %s10339_s23, 2 }
  0x3e   : > { %p91_p9 = scmp.ne.s32.totalorder %s6948_s29, %s6944_s28  ;;  %s10343_s17 = smov (%p41_p4, %s10341_s17), 0 }
  0x3f   : > { %10076 = sst [smem:[#allocation27_spill]] %s10343_s17  ;;  %s10345_s10 = smov (!%p73_p7, %s5221_s10), 0 }
  0x40   : > { %s7165_s21 = ssub.s32 %s6976_s13, %s10343_s17  ;;  %s5223_s22 = sadd.s32 4294967295, %s5222_s18 }
  0x41   : > { %10077 = sst [smem:[#allocation28_spill]] %s7165_s21  ;;  %s7168_s7 = sor.u32 %s44_s4, %s7165_s21 }
  0x42   : > { %p77_p10 = scmp.gt.s32.totalorder %s5223_s22, 0  ;;  %p7173_p12 = por %p91_p9, %p9919_p2 }
  0x43   : > { %p97_p13 = scmp.ne.s32.totalorder %s6944_s28, %s6940_s27  ;;  %s7179_s3 = sadd.s32 4, %s5220_s20 }
  0x44   : > { %s10347_s22 = smov (!%p77_p10, %s5223_s22), 0  ;;  %p10079_p3 = scmp.eq.s32.totalorder %s7105_s15, 0 }
  0x45   : > { %s80_s4 = ssub.s32 %s10345_s10, %s10347_s22  ;;  %s7189_s16 = sadd.s32 4, %s5222_s18 }
  0x46   : > { %s81_s17 = sor.u32 %s80_s4, %s7165_s21  ;;  %p7185_p5 = por %p97_p13, %p10079_p3 }
  0x47   : > { %p82_p1 = scmp.eq.s32.totalorder %s81_s17, 0  ;;  %p9918_p7 = scmp.lt.s32.totalorder %s6980_s14, 4 }
  0x48   : > { %s10080_s23 = scalar_select %p7185_p5, 1, 0 }
  0x49   : > { %s7194_s2 = scalar_select %p82_p1, %s6948_s29, %s84_s6  }
  0x4a   : > { %10081 = sst [smem:[#allocation29_spill]] %s10080_s23  ;;  %s7197_s27 = smul.u32 48, %s6976_s13 }
  0x4b   : > { %10082 = sst [smem:[#allocation30_spill]] %s7194_s2  ;;  %s325_s20 = sand.u32 1, %s6980_s14  }
  0x4c   : > { %s327_s22 = sand.u32 1, %s6948_s29   ;;  %p7205_p9 = pnand %p9918_p7, %p7173_p12 }
  0x4d   : > { %s6501_s28 = smul.u32 48, %s327_s22  ;;  %s10084_s1 = sld [smem:[#allocation69_spill]] }
  0x4e   : > { %s6502_s17 = smul.u32 6, %s10345_s10  ;;  %s6985_s11 = smov [#allocation12]  }
  0x4f   : > { %s329_s23 = scalar_lea.vmem [#allocation7], %s6501_s28  ;;  %s7217_s22 = sshll.u32 %s6985_s11, 4  ;;  %s285_s22 = int_to_ptr.vmem [resolvable:$true] %s7217_s22 }
  0x50   : > { %s340_s18 = sadd.s32 %s6502_s17, %s7197_s27  ;;  %s343_s21 = sshll.u32 %s329_s23, 4  ;;  %s7210_s21 = int_to_ptr.vmem [resolvable:$true] %s343_s21 }
  0x51   : > { %s5237_s6 = sshll.u32 %s340_s18, 7  ;;  %s7219_s24 = scalar_lea.sflag [#allocation8], %s325_s20 }
  0x52   : > { %p6706_p12 = pneg %p7205_p9 }
  0x53   : > { %s7215_s29 = scalar_lea.hbm %s10084_s1, %s5237_s6  ;;  %s6709_s13 = scalar_lea.hbm %s10084_s1, 12288 }
  0x54   : > { %s6704_s10 = scalar_lea.hbm %s7215_s29, 768  ;;  %p6710_p1 = scmp.lt.u32.totalorder %s7215_s29, %s10084_s1 }
  0x55   : > { %p6705_p10 = scmp.ne.s32.totalorder %s7215_s29, %s6704_s10  ;;  %p6711_p4 = scmp.lt.u32.totalorder %s6709_s13, %s6704_s10 }
  0x56   : > { %p6713_p7 = scmp.lt.u32.totalorder %s6704_s10, %s7215_s29 }
  0x57   : > { %p6707_p13 = pnand %p6706_p12, %p6705_p10  ;;  %p6712_p0 = por %p6711_p4, %p6710_p1 }
  0x59   : > { %p6708_p3 = pneg %p6707_p13  ;;  %p6714_p2 = por %p6713_p7, %p6712_p0 }
  0x5b   : > { %p6715_p11 = pnand %p6714_p2, %p6708_p3 }
  0x5d   : > { %6718 = shalt.err (!%p6715_p11)
}
  0x5e   : > { %s6719_s20 = scalar_lea.vmem %s7210_s21, 768  ;;  %s6986_s18 = smov [#allocation7]  }
  0x5f   : > { %p6720_p10 = scmp.ne.s32.totalorder %s7210_s21, %s6719_s20  ;;  %s6724_s6 = sshll.u32 %s6986_s18, 4  ;;  %s6725_s6 = int_to_ptr.vmem [resolvable:$false] %s6724_s6 }
  0x60   : > { %s6726_s11 = scalar_lea.vmem %s6725_s6, 1536  ;;  %p6727_p5 = scmp.lt.s32.totalorder %s7210_s21, %s6725_s6 }
  0x61   : > { %p6722_p13 = pnand %p6720_p10, %p6706_p12  ;;  %p6728_p4 = scmp.lt.s32.totalorder %s6726_s11, %s6719_s20 }
  0x63   : > { %p6723_p8 = pneg %p6722_p13  ;;  %p6729_p1 = por %p6728_p4, %p6727_p5 }
  0x65   : > { %p6730_p0 = pnand %p6729_p1, %p6723_p8 }
  0x67   : > { %6733 = shalt.err (!%p6730_p0)
}
  0x68   : > { %s10085_s10 = smov 8   ;;  %s10086_s2 = smov 128  }
  0x69   : > { %6541 = dma.hbm_to_vmem [thread:$0]  (!%p7205_p9), %s7215_s29, 768, %s7210_s21, %s7219_s24, %s10086_s2, %s10086_s2, %s10085_s10  }
  0x6a   : > { %s10087_s5 = sld [smem:[#allocation73_spill]]  ;;  %p10088_p2 = pneg %p7119_p6 }
  0x70   : > { %s6734_s23 = scalar_lea.hbm %s10087_s5, 18432 }
  0x71   : > { %p6735_p8 = scmp.ne.s32.totalorder %s10087_s5, %s6734_s23  ;;  %p6741_p7 = scmp.lt.u32.totalorder %s6734_s23, %s10087_s5 }
  0x73   : > { %p6737_p11 = pnand %p6735_p8, %p10088_p2 }
  0x75   : > { %p6738_p5 = pneg %p6737_p11 }
  0x77   : > { %p6743_p12 = pnand %p6741_p7, %p6738_p5 }
  0x79   : > { %6746 = shalt.err (!%p6743_p12)
}
  0x7a   : > { %s6747_s29 = scalar_lea.vmem %s285_s22, 18432  ;;  %p10089_p3 = pmov %p10088_p2 }
  0x7b   : > { %p6748_p9 = scmp.ne.s32.totalorder %s285_s22, %s6747_s29  ;;  %p6755_p4 = scmp.lt.s32.totalorder %s285_s22, %s285_s22 }
  0x7c   : > { %p6756_p1 = scmp.lt.s32.totalorder %s6747_s29, %s6747_s29 }
  0x7d   : > { %p6750_p10 = pnand %p6748_p9, %p10089_p3 }
  0x7e   : > { %p6757_p0 = por %p6756_p1, %p6755_p4 }
  0x7f   : > { %p6751_p13 = pneg %p6750_p10 }
  0x81   : > { %p6758_p2 = pnand %p6757_p0, %p6751_p13 }
  0x83   : > { %6761 = shalt.err (!%p6758_p2)
}
  0x84   : > { %6534 = dma.hbm_to_vmem [thread:$0]  (!%p7119_p6), %s10087_s5, 18432, %s285_s22, [#allocation11], %s10086_s2, %s10086_s2, %s10085_s10  }
  0x85   : > { %s5219_s19 = sadd.s32 4294967294, %s6980_s14   ;;  %s48_s11 = sadd.s32 1, %s6960_s9 }
  0x86   : > { %p55_p8 = scmp.ne.s32.totalorder %s6960_s9, %s6956_s8  ;;  %p10090_p11 = scmp.eq.s32.totalorder %s7168_s7, 0 }
  0x87   : > { %p10092_p5 = scmp.eq.s32.totalorder %s6980_s14, 0  ;;  %p61_p12 = scmp.ne.s32.totalorder %s6956_s8, %s6952_s30 }
  0x88   : > { %s7281_s28 = scalar_select %p10090_p11, %s6960_s9, %s48_s11  }
  0x89   : > { %p57_p7 = por %p10092_p5, %p55_p8  ;;  %p10093_p9 = scmp.eq.s32.totalorder %s7105_s15, 3 }
  0x8a   : > { %10091 = sst [smem:[#allocation31_spill]] %s7281_s28  ;;  %p249_p10 = scmp.eq.s32.totalorder %s5219_s19, 3 }
  0x8b   : > { %p7289_p3 = por %p10093_p9, %p55_p8  ;;  %p10095_p13 = scmp.eq.s32.totalorder %s7105_s15, 0 }
  0x8c   : > { %s301_s22 = sand.u32 1, %s6960_s9   ;;  %p7300_p6 = por %p249_p10, %p61_p12 }
  0x8d   : > { %s10094_s13 = scalar_select %p7289_p3, 1, 0 }
  0x8e   : > { %p7295_p4 = por %p10095_p13, %p61_p12  ;;  %s6498_s7 = smul.u32 192, %s301_s22 }
  0x8f   : > { %s10097_s17 = scalar_select %p7300_p6, 1, 0 }
  0x90   : > { %p10098_p1 = scmp.lt.s32.totalorder %s6980_s14, 4  ;;  %s6499_s4 = smul.u32 24, %s6972_s12 }
  0x91   : > { %s305_s29 = scalar_lea.vmem [#allocation4], %s6498_s7  ;;  %s7319_s5 = scalar_lea.sflag [#allocation5], %s301_s22 }
  0x92   : > { %p7306_p0 = pnand %p10098_p1, %p57_p7  ;;  %s312_s18 = sadd.s32 %s7197_s27, %s6499_s4 }
  0x93   : > { %s315_s21 = sshll.u32 %s305_s29, 4  ;;  %s5232_s6 = sshll.u32 %s312_s18, 7  ;;  %s7312_s21 = int_to_ptr.vmem [resolvable:$true] %s315_s21 }
  0x94   : > { %s7317_s1 = scalar_lea.hbm %s9891_s0, %s5232_s6  ;;  %p6764_p8 = pneg %p7306_p0 }
  0x95   : > { %s6762_s28 = scalar_lea.hbm %s7317_s1, 3072  ;;  %s6767_s18 = scalar_lea.hbm %s9891_s0, 12288 }
  0x96   : > { %p6763_p2 = scmp.ne.s32.totalorder %s7317_s1, %s6762_s28  ;;  %p6768_p7 = scmp.lt.u32.totalorder %s7317_s1, %s9891_s0 }
  0x97   : > { %p6769_p12 = scmp.lt.u32.totalorder %s6767_s18, %s6762_s28  ;;  %p6771_p10 = scmp.lt.u32.totalorder %s6762_s28, %s7317_s1 }
  0x98   : > { %p6765_p11 = pnand %p6764_p8, %p6763_p2 }
  0x99   : > { %p6770_p9 = por %p6769_p12, %p6768_p7 }
  0x9a   : > { %p6766_p5 = pneg %p6765_p11 }
  0x9b   : > { %p6772_p13 = por %p6771_p10, %p6770_p9 }
  0x9d   : > { %p6773_p1 = pnand %p6772_p13, %p6766_p5 }
  0x9f   : > { %6776 = shalt.err (!%p6773_p1)
}
  0xa0   : > { %s6777_s22 = scalar_lea.vmem %s7312_s21, 3072  ;;  %s6987_s19 = smov [#allocation4]  }
  0xa1   : > { %p6778_p2 = scmp.ne.s32.totalorder %s7312_s21, %s6777_s22  ;;  %s6782_s11 = sshll.u32 %s6987_s19, 4  ;;  %s6783_s11 = int_to_ptr.vmem [resolvable:$false] %s6782_s11 }
  0xa2   : > { %s6784_s7 = scalar_lea.vmem %s6783_s11, 6144  ;;  %p6785_p3 = scmp.lt.s32.totalorder %s7312_s21, %s6783_s11 }
  0xa3   : > { %p6780_p11 = pnand %p6778_p2, %p6764_p8  ;;  %p6786_p7 = scmp.lt.s32.totalorder %s6784_s7, %s6777_s22 }
  0xa5   : > { %p6781_p6 = pneg %p6780_p11  ;;  %p6787_p12 = por %p6786_p7, %p6785_p3 }
  0xa7   : > { %p6788_p9 = pnand %p6787_p12, %p6781_p6 }
  0xa9   : > { %6791 = shalt.err (!%p6788_p9)
}
  0xaa   : > { %s10100_s28 = sld [smem:[#allocation19_spill]]  ;;  %s10101_s4 = sld [smem:[#allocation28_spill]] }
  0xab   : > { %6538 = dma.hbm_to_vmem [thread:$0]  (!%p7306_p0), %s7317_s1, 3072, %s7312_s21, %s7319_s5, %s10086_s2, %s10086_s2, %s10085_s10  }
  0xac   : > { %p10102_p3 = scmp.lt.s32.totalorder %s7179_s3, 7  ;;  %p10103_p6 = scmp.lt.s32.totalorder %s7189_s16, 7 }
  0xad   : > { %s120_s20 = sadd.s32 1, %s6936_s26  ;;  %p127_p8 = scmp.ne.s32.totalorder %s6936_s26, %s6932_s25 }
  0xae   : > { %s10349_s3 = smov (!%p10102_p3, %s7179_s3), 7  ;;  %s10351_s16 = smov (!%p10103_p6, %s7189_s16), 7 }
  0xaf   : > { %s116_s18 = ssub.s32 %s10349_s3, %s10351_s16  ;;  %p10104_p10 = scmp.eq.s32.totalorder %s6980_s14, 0 }
  0xb0   : > { %p133_p5 = scmp.ne.s32.totalorder %s6932_s25, %s10100_s28  ;;  %s117_s29 = sor.u32 %s116_s18, %s10101_s4 }
  0xb1   : > { %p129_p13 = por %p127_p8, %p10104_p10  ;;  %p118_p1 = scmp.eq.s32.totalorder %s117_s29, 0 }
  0xb2   : > { %p10105_p2 = scmp.eq.s32.totalorder %s7105_s15, 0  ;;  %s355_s22 = sand.u32 1, %s6936_s26  }
  0xb3   : > { %s6505_s1 = smul.u32 6, %s10349_s3  ;;  %p10107_p0 = scmp.lt.s32.totalorder %s6980_s14, 4 }
  0xb4   : > { %p7366_p11 = por %p133_p5, %p10105_p2  ;;  %s6504_s21 = smul.u32 48, %s355_s22 }
  0xb5   : > { %s7372_s5 = scalar_select %p118_p1, %s6936_s26, %s120_s20  }
  0xb6   : > { %s10106_s6 = scalar_select %p7366_p11, 1, 0 }
  0xb7   : > { %s368_s19 = sadd.s32 %s6505_s1, %s7197_s27  ;;  %p7377_p7 = pnand %p10107_p0, %p129_p13 }
  0xb8   : > { %s5241_s11 = sshll.u32 %s368_s19, 7  ;;  %s10109_s4 = sld [smem:[#allocation70_spill]] }
  0xb9   : > { %s357_s3 = scalar_lea.vmem [#allocation9], %s6504_s21  ;;  %p6794_p9 = pneg %p7377_p7 }
  0xba   : > { %s371_s20 = sshll.u32 %s357_s3, 4  ;;  %s7386_s20 = int_to_ptr.vmem [resolvable:$true] %s371_s20 }
  0xbe   : > { %s7384_s18 = scalar_lea.hbm %s10109_s4, %s5241_s11  ;;  %s6797_s1 = scalar_lea.hbm %s10109_s4, 12288 }
  0xbf   : > { %s6792_s27 = scalar_lea.hbm %s7384_s18, 768  ;;  %p6798_p8 = scmp.lt.u32.totalorder %s7384_s18, %s10109_s4 }
  0xc0   : > { %p6793_p12 = scmp.ne.s32.totalorder %s7384_s18, %s6792_s27  ;;  %p6799_p5 = scmp.lt.u32.totalorder %s6797_s1, %s6792_s27 }
  0xc1   : > { %p6801_p13 = scmp.lt.u32.totalorder %s6792_s27, %s7384_s18 }
  0xc2   : > { %p6795_p3 = pnand %p6794_p9, %p6793_p12  ;;  %p6800_p10 = por %p6799_p5, %p6798_p8 }
  0xc4   : > { %p6796_p6 = pneg %p6795_p3  ;;  %p6802_p1 = por %p6801_p13, %p6800_p10 }
  0xc6   : > { %p6803_p2 = pnand %p6802_p1, %p6796_p6 }
  0xc8   : > { %6806 = shalt.err (!%p6803_p2)
}
  0xc9   : > { %s6807_s21 = scalar_lea.vmem %s7386_s20, 768  ;;  %s6988_s7 = smov [#allocation9]  }
  0xca   : > { %p6808_p0 = scmp.ne.s32.totalorder %s7386_s20, %s6807_s21  ;;  %s6812_s28 = sshll.u32 %s6988_s7, 4  ;;  %s6813_s28 = int_to_ptr.vmem [resolvable:$false] %s6812_s28 }
  0xcb   : > { %s6814_s3 = scalar_lea.vmem %s6813_s28, 1536  ;;  %p6815_p11 = scmp.lt.s32.totalorder %s7386_s20, %s6813_s28 }
  0xcc   : > { %p6810_p12 = pnand %p6808_p0, %p6794_p9  ;;  %p6816_p8 = scmp.lt.s32.totalorder %s6814_s3, %s6807_s21 }
  0xce   : > { %p6811_p3 = pneg %p6810_p12  ;;  %p6817_p5 = por %p6816_p8, %p6815_p11 }
  0xd0   : > { %p6818_p10 = pnand %p6817_p5, %p6811_p3 }
  0xd2   : > { %6821 = shalt.err (!%p6818_p10)
}
  0xd3   : > { %6544 = dma.hbm_to_vmem [thread:$0]  (!%p7377_p7), %s7384_s18, 768, %s7386_s20, %s7219_s24, %s10086_s2, %s10086_s2, %s10085_s10  }
  0xd4   : > { %s10110_s27 = sld [smem:[#allocation25_spill]] }
  0xda   : > { %p10111_p9 = scmp.ne.s32.totalorder %s10110_s27, 0 }
  0xdc   : > { %383 = sbr.rel (%p10111_p9) target bundleno = 1209 (0x4b9), region = 48 }
  0xe3   : > { %s7420_s29 = sand.u32 1, %s6956_s8  }
  0xe4   : > { %s6507_s22 = smul.u32 192, %s7420_s29  ;;  %s386_s1 = scalar_lea.sflag [#allocation5], %s7420_s29 }
  0xe6   : > { %s7426_s16 = scalar_lea.vmem [#allocation4], %s6507_s22 }
  0xe7   : > { %6907 = dma.done.wait (%p7295_p4), %s386_s1, 3072  }
  0xe8   : > { %6909 = vsyncadd (%p7295_p4), %s386_s1, 4294964224  ;;  %s10112_s24 = sld [smem:[#allocation20_spill]]  ;;  %s10113_s10 = sld [smem:[#allocation29_spill]] }
  0xe9   : > { %s394_s2 = sand.u32 1, %s7105_s15  }
  0xea   : > { %s395_s19 = scalar_lea.sflag [#allocation8], %s394_s2 }
  0xee   : > { %s396_s18 = sand.u32 1, %s10112_s24   ;;  %p10114_p11 = scmp.ne.s32.totalorder %s10113_s10, 0 }
  0xef   : > { %s6508_s20 = smul.u32 48, %s396_s18 }
  0xf1   : > { %s7434_s11 = scalar_lea.vmem [#allocation7], %s6508_s20 }
  0xf2   : > { %6911 = dma.done.wait (%p10114_p11), %s395_s19, 768  }
  0xf3   : > { %6913 = vsyncadd (%p10114_p11), %s395_s19, 4294966528  ;;  %s405_s21 = sand.u32 1, %s6932_s25   ;;  %p10115_p4 = scmp.ne.s32.totalorder %s10106_s6, 0 }
  0xf4   : > { %s6509_s7 = smul.u32 48, %s405_s21 }
  0xf6   : > { %s7441_s23 = scalar_lea.vmem [#allocation9], %s6509_s7 }
  0xf7   : > { %6915 = dma.done.wait (%p10115_p4), %s395_s19, 768  }
  0xf8   : > { %6917 = vsyncadd (%p10115_p4), %s395_s19, 4294966528  ;;  %p10116_p7 = scmp.eq.s32.totalorder %s7105_s15, 0 }
  0xfa   : > { %6919 = dma.done.wait (%p10116_p7), [#allocation11], 36864   ;;  %p10117_p6 = pmov %p10116_p7 }
  0xfb   : > { %s10118_s28 = sld [smem:[#allocation22_spill]]  ;;  %v9928_v0 = vmov 0.0|0.0   ;;  %v953_v1 = vld [vmem:[#allocation10] sm:$0xff]  ;;  %v954_v2 = vld [vmem:[#allocation10 + $0x8] sm:$0xff]  ;;  %v955_v6 = vld [vmem:[#allocation10 + $0x10] sm:$0xff]  ;;  %v679_v18 = vlaneseq  ;;  %s10206_s2 = sld [smem:[#allocation72_spill]] }
  0xfc   : > { %6921 = vsyncadd (%p10117_p6), [#allocation11], 4294930432  ;;  %6018 = vmatprep.subr.bf16.mxu0 %v9928_v0  ;;  %v985_v3 = vld [vmem:[#allocation10 + $0x100] sm:$0xff]  ;;  %v6019_v4 = vpack.c.bf16 %v954_v2, %v953_v1  ;;  %v986_v5 = vld [vmem:[#allocation10 + $0x108] sm:$0xff]  ;;  %s10315_s21 = sld [smem:[#allocation74_spill]]  ;;  %s9701_s7 = scalar_lea.vmem [#allocation13], %s6507_s22 }
  0xfd   : > { %v956_v7 = vld [vmem:[#allocation10 + $0x18] sm:$0xff]  ;;  %v6066_v8 = vpack.c.bf16 %v986_v5, %v985_v3  ;;  %v987_v9 = vld [vmem:[#allocation10 + $0x110] sm:$0xff]  ;;  %v989_v13 = vld [vmem:[#allocation10 + $0x120] sm:$0xff]  ;;  %v7460_v27 = vshrl.u32 %v679_v18, 7  ;;  %s10316_s22 = sld [smem:[#allocation23_spill]]  ;;  %s10317_s24 = sld [smem:[#allocation75_spill]] }
  0xfe   : > { %v988_v10 = vld [vmem:[#allocation10 + $0x118] sm:$0xff]  ;;  %6020 = vmatpush1.bf16.msra.mxu0 %v6019_v4  ;;  %v6022_v11 = vpack.c.bf16 %v956_v7, %v955_v6  ;;  %v990_v14 = vld [vmem:[#allocation10 + $0x128] sm:$0xff]  ;;  %v957_v15 = vld [vmem:[#allocation10 + $0x20] sm:$0xff]  ;;  %s5044_s20 = scalar_lea.sflag [#allocation6], %s7420_s29  ;;  %p10319_p1 = scmp.ne.s32.totalorder %s10094_s13, 0 }
  0xff   : > { %v6070_v12 = vpack.c.bf16 %v988_v10, %v987_v9  ;;  %6067 = vmatprep.subr.bf16.mxu1 %v6066_v8  ;;  %6021 = vmatprep.subr.bf16.mxu0 %v9928_v0  ;;  %v958_v16 = vld [vmem:[#allocation10 + $0x28] sm:$0xff]  ;;  %v6074_v17 = vpack.c.bf16 %v990_v14, %v989_v13  ;;  %v991_v20 = vld [vmem:[#allocation10 + $0x130] sm:$0xff]  ;;  %v992_v21 = vld [vmem:[#allocation10 + $0x138] sm:$0xff]  ;;  %vm790_vm1 = vcmp.lt.s32.totalorder %v7460_v27, 7  ;;  %vm681_vm4 = vcmp.lt.s32.totalorder %v7460_v27, 1 }
 0x100   : > { %6069 = vmatpush3.bf16.msra.mxu1 %v6066_v8  ;;  %v6025_v19 = vpack.c.bf16 %v958_v16, %v957_v15  ;;  %v959_v22 = vld [vmem:[#allocation10 + $0x30] sm:$0xff]  ;;  %v960_v23 = vld [vmem:[#allocation10 + $0x38] sm:$0xff]  ;;  %v6078_v25 = vpack.c.bf16 %v992_v21, %v991_v20  ;;  %v993_v26 = vld [vmem:[#allocation10 + $0x140] sm:$0xff] }
 0x101   : > { %s7453_s6 = sshll.u32 %s10118_s28, 3  ;;  %6071 = vmatprep.subr.bf16.mxu1 %v6070_v12  ;;  %v6028_v28 = vpack.c.bf16 %v960_v23, %v959_v22  ;;  %v994_v29 = vld [vmem:[#allocation10 + $0x148] sm:$0xff]  ;;  %v473_v30 = vld [vmem:[%s7434_s11] sm:$0xff]  ;;  %v996_v41 = vld [vmem:[#allocation10 + $0x158] sm:$0xff] }
 0x102   : > { %s469_s15 = ssub.s32 2, %s7453_s6  ;;  %6023 = vmatpush1.bf16.msra.mxu0 %v6022_v11  ;;  %v7465_v31 = vld [vmem:[%s7434_s11 + $0x8] sm:$0xff]  ;;  %v961_v32 = vld [vmem:[#allocation10 + $0x40] sm:$0xff]  ;;  %v479_v34 = vmax.f32 %v473_v30, 0.0  ;;  %v6082_v36 = vpack.c.bf16 %v994_v29, %v993_v26  ;;  %v995_v40 = vld [vmem:[#allocation10 + $0x150] sm:$0xff]  ;;  %s495_s3 = ssub.s32 8, %s7453_s6 }
 0x103   : > { %6024 = vmatprep.subr.bf16.mxu0 %v9928_v0  ;;  %v7458_v24 = vstv %s469_s15  ;;  %v962_v33 = vld [vmem:[#allocation10 + $0x48] sm:$0xff]  ;;  %v9927_v35 = vmax.f32 %v7465_v31, 0.0  ;;  %v963_v44 = vld [vmem:[#allocation10 + $0x50] sm:$0xff]  ;;  %v964_v45 = vld [vmem:[#allocation10 + $0x58] sm:$0xff]  ;;  %v6086_v47 = vpack.c.bf16 %v996_v41, %v995_v40  ;;  %s2849_s27 = ssub.s32 1, %s7453_s6  ;;  %s2861_s1 = ssub.s32 17, %s7453_s6 }
 0x104   : > { %6073 = vmatpush3.bf16.msra.mxu1 %v6070_v12  ;;  %vm471_vm0 = vcmp.le.s32.totalorder %v7458_v24, 0  ;;  %v6031_v39 = vpack.c.bf16 %v962_v33, %v961_v32  ;;  %v6034_v48 = vpack.c.bf16 %v964_v45, %v963_v44  ;;  %v997_v49 = vld [vmem:[#allocation10 + $0x160] sm:$0xff]  ;;  %v998_v50 = vld [vmem:[#allocation10 + $0x168] sm:$0xff]  ;;  %v999_v58 = vld [vmem:[#allocation10 + $0x170] sm:$0xff]  ;;  %vm472_vm2 = vcmp.le.s32.totalorder %v7458_v24, 1  ;;  %s6511_s6 = smul.u32 48, %s10316_s22  ;;  %s10318_s18 = smov %s10317_s24 }
 0x105   : > { %6075 = vmatprep.subr.bf16.mxu1 %v6074_v17  ;;  %v7471_v37 = vsel %vm471_vm0, %v479_v34, 0.0  ;;  %v7477_v38 = vsel %vm471_vm0, %v9927_v35, 0.0  ;;  %5259 = vmatprep.mubr.msk.f32.mxu0 %vm471_vm0, %v479_v34  ;;  %v7490_v51 = vld [vmem:[%s7434_s11 + $0x10] sm:$0xff]  ;;  %v966_v53 = vld [vmem:[#allocation10 + $0x68] sm:$0xff]  ;;  %v6090_v55 = vpack.c.bf16 %v998_v50, %v997_v49  ;;  %v1000_v59 = vld [vmem:[#allocation10 + $0x178] sm:$0xff]  ;;  %s5060_s15 = sshll.u32 %s9701_s7, 4  ;;  %s9807_s15 = int_to_ptr.vmem [resolvable:$true] %s5060_s15 }
 0x106   : > { %6026 = vmatpush1.bf16.msra.mxu0 %v6025_v19  ;;  %10119 = vst [vmem:[#allocation32_spill] sm:$0xff] %v7471_v37  ;;  %v9925_v42 = vrot.slane %v7471_v37, 1  ;;  %v755_v43 = vrot.slane %v7477_v38, 1  ;;  %v965_v52 = vld [vmem:[#allocation10 + $0x60] sm:$0xff]  ;;  %v476_v54 = vld [vmem:[%s7434_s11 + $0x18] sm:$0xff]  ;;  %v9926_v56 = vmax.f32 %v7490_v51, 0.0  ;;  %v6094_v2 = vpack.c.bf16 %v1000_v59, %v999_v58 }
 0x107   : > { %6027 = vmatprep.subr.bf16.mxu0 %v9928_v0  ;;  %v6037_v57 = vpack.c.bf16 %v966_v53, %v965_v52  ;;  %v7495_v60 = vmax.f32 %v476_v54, 0.0  ;;  %v477_v61 = vld [vmem:[%s7434_s11 + $0x20] sm:$0xff]  ;;  %v968_v63 = vld [vmem:[#allocation10 + $0x78] sm:$0xff]  ;;  %v970_v9 = vld [vmem:[#allocation10 + $0x88] sm:$0xff]  ;;  %s6822_s19 = scalar_lea.vmem %s9807_s15, 3072 }
 0x108   : > { %6077 = vmatpush3.bf16.msra.mxu1 %v6074_v17  ;;  %v825_v46 = vsel %vm790_vm1, %v9925_v42, %v755_v43  ;;  %v967_v62 = vld [vmem:[#allocation10 + $0x70] sm:$0xff]  ;;  %v478_v1 = vld [vmem:[%s7434_s11 + $0x28] sm:$0xff]  ;;  %v7505_v3 = vsel %vm471_vm0, %v9926_v56, 0.0  ;;  %v7507_v4 = vmax.f32 %v477_v61, 0.0  ;;  %v969_v8 = vld [vmem:[#allocation10 + $0x80] sm:$0xff]  ;;  %p6823_p13 = scmp.ne.s32.totalorder %s9807_s15, %s6822_s19 }
 0x109   : > { %6079 = vmatprep.subr.bf16.mxu1 %v6078_v25  ;;  %5615 = vmatprep.mubr.f32.mxu1 %v825_v46  ;;  %v6040_v5 = vpack.c.bf16 %v968_v63, %v967_v62  ;;  %v7512_v6 = vsel %vm472_vm2, %v7495_v60, 0.0  ;;  %v7514_v7 = vmax.f32 %v478_v1, 0.0  ;;  %v756_v10 = vrot.slane %v7505_v3, 1  ;;  %v1553_v11 = vld [vmem:[#allocation10 + $0x180] sm:$0xff]  ;;  %v1554_v12 = vld [vmem:[#allocation10 + $0x188] sm:$0xff]  ;;  %v971_v19 = vld [vmem:[#allocation10 + $0x90] sm:$0xff] }
 0x10a   : > { %6029 = vmatpush1.bf16.msra.mxu0 %v6028_v28  ;;  %v757_v13 = vrot.slane %v7512_v6, 1  ;;  %v7522_v14 = vsel %vm472_vm2, %v7507_v4, 0.0  ;;  %v527_v15 = vld [vmem:[%s7426_s16] sm:$0xff]  ;;  %v6043_v16 = vpack.c.bf16 %v970_v9, %v969_v8  ;;  %v528_v18 = vld [vmem:[%s7426_s16 + $0x8] sm:$0xff]  ;;  %v972_v20 = vld [vmem:[#allocation10 + $0x98] sm:$0xff]  ;;  %v6099_v22 = vpack.c.bf16 %v1554_v12, %v1553_v11  ;;  %p6824_p2 = pnand %p6823_p13, %p10319_p1 }
 0x10b   : > { %6030 = vmatprep.subr.bf16.mxu0 %v9928_v0  ;;  %v7528_v17 = vsel %vm472_vm2, %v7514_v7, 0.0  ;;  %v824_v21 = vsel %vm790_vm1, %v755_v43, %v756_v10  ;;  %v758_v23 = vrot.slane %v7522_v14, 1  ;;  %v1555_v26 = vld [vmem:[#allocation10 + $0x190] sm:$0xff]  ;;  %v1556_v28 = vld [vmem:[#allocation10 + $0x198] sm:$0xff]  ;;  %v7541_v32 = vmax.f32 %v528_v18, 0.0  ;;  %v974_v40 = vld [vmem:[#allocation10 + $0xa8] sm:$0xff] }
 0x10c   : > { %6081 = vmatpush3.bf16.msra.mxu1 %v6078_v25  ;;  %v7535_v25 = vmax.f32 %v527_v15, 0.0  ;;  %v823_v29 = vsel %vm790_vm1, %v756_v10, %v757_v13  ;;  %v759_v30 = vrot.slane %v7528_v17, 1  ;;  %v529_v33 = vld [vmem:[%s7426_s16 + $0x10] sm:$0xff]  ;;  %v6046_v34 = vpack.c.bf16 %v972_v20, %v971_v19  ;;  %v1557_v46 = vld [vmem:[#allocation10 + $0x1a0] sm:$0xff]  ;;  %v532_v54 = vld [vmem:[%s7426_s16 + $0x28] sm:$0xff]  ;;  %p6825_p0 = pneg %p6824_p2 }
 0x10d   : > { %6083 = vmatprep.subr.bf16.mxu1 %v6082_v36  ;;  %v6102_v41 = vpack.c.bf16 %v1556_v28, %v1555_v26  ;;  %v7548_v43 = vsel %vm790_vm1, %v757_v13, %v758_v23  ;;  %v7551_v45 = vmax.f32 %v529_v33, 0.0  ;;  %v761_v49 = vrot.slane %v7541_v32, 1  ;;  %v531_v52 = vld [vmem:[%s7426_s16 + $0x20] sm:$0xff]  ;;  %v1559_v63 = vld [vmem:[#allocation10 + $0x1b0] sm:$0xff]  ;;  %v1560_v1 = vld [vmem:[#allocation10 + $0x1b8] sm:$0xff] }
 0x10e   : > { %6032 = vmatpush1.bf16.msra.mxu0 %v6031_v39  ;;  %v973_v39 = vld [vmem:[#allocation10 + $0xa0] sm:$0xff]  ;;  %v760_v44 = vrot.slane %v7535_v25, 1  ;;  %v7571_v62 = vmax.f32 %v531_v52, 0.0  ;;  %v7579_v8 = vmax.f32 %v532_v54, 0.0  ;;  %v533_v9 = vld [vmem:[%s7426_s16 + $0x30] sm:$0xff]  ;;  %v534_v11 = vld [vmem:[%s7426_s16 + $0x38] sm:$0xff]  ;;  %v6108_v15 = vpack.c.bf16 %v1560_v1, %v1559_v63 }
 0x10f   : > { %6033 = vmatprep.subr.bf16.mxu0 %v9928_v0  ;;  %v6049_v53 = vpack.c.bf16 %v974_v40, %v973_v39  ;;  %v762_v61 = vrot.slane %v7551_v45, 1  ;;  %v977_v12 = vld [vmem:[#allocation10 + $0xc0] sm:$0xff]  ;;  %v978_v13 = vld [vmem:[#allocation10 + $0xc8] sm:$0xff]  ;;  %v7591_v19 = vmax.f32 %v533_v9, 0.0  ;;  %v7600_v26 = vmax.f32 %v534_v11, 0.0  ;;  %v979_v33 = vld [vmem:[#allocation10 + $0xd0] sm:$0xff] }
 0x110   : > { %6085 = vmatpush3.bf16.msra.mxu1 %v6082_v36  ;;  %v530_v36 = vld [vmem:[%s7426_s16 + $0x18] sm:$0xff]  ;;  %v7568_v59 = vsel %vm790_vm1, %v759_v30, %v760_v44  ;;  %v764_v18 = vrot.slane %v7571_v62, 1  ;;  %v1561_v20 = vld [vmem:[#allocation10 + $0x1c0] sm:$0xff]  ;;  %v982_v63 = vld [vmem:[#allocation10 + $0xe8] sm:$0xff] }
 0x111   : > { %6087 = vmatprep.subr.bf16.mxu1 %v6086_v47  ;;  %v7559_v50 = vmax.f32 %v530_v36, 0.0  ;;  %10120 = vst [vmem:[#allocation33_spill] sm:$0xff] %v7600_v26  ;;  %v535_v28 = vld [vmem:[%s7426_s16 + $0x40] sm:$0xff]  ;;  %v7606_v36 = vstv %s495_s3  ;;  %v1588_v56 = vld [vmem:[#allocation10 + $0x298] sm:$0xff] }
 0x112   : > { %6035 = vmatpush1.bf16.msra.mxu0 %v6034_v48  ;;  %v7556_v48 = vsel %vm790_vm1, %v758_v23, %v759_v30  ;;  %v765_v23 = vrot.slane %v7579_v8, 1  ;;  %v536_v30 = vld [vmem:[%s7426_s16 + $0x48] sm:$0xff]  ;;  %vm498_vm3 = vcmp.gt.s32.totalorder %v7606_v36, 1  ;;  %v1569_v35 = vld [vmem:[#allocation10 + $0x200] sm:$0xff]  ;;  %vm497_vm5 = vcmp.gt.s32.totalorder %v7606_v36, 0 }
 0x113   : > { %6036 = vmatprep.subr.bf16.mxu0 %v9928_v0  ;;  %v7625_v54 = vmax.f32 %v536_v30, 0.0  ;;  %v984_v30 = vld [vmem:[#allocation10 + $0xf8] sm:$0xff] }
 0x114   : > { %6089 = vmatpush3.bf16.msra.mxu1 %v6086_v47  ;;  %v1558_v47 = vld [vmem:[#allocation10 + $0x1a8] sm:$0xff]  ;;  %v7622_v52 = vsel %vm790_vm1, %v764_v18, %v765_v23 }
 0x115   : > { %6091 = vmatprep.subr.bf16.mxu1 %v6090_v55  ;;  %v6105_v58 = vpack.c.bf16 %v1558_v47, %v1557_v46  ;;  %v7617_v46 = vld [vmem:[%s7441_s23 + $0x28] sm:$0xff]  ;;  %v1563_v47 = vld [vmem:[#allocation10 + $0x1d0] sm:$0xff]  ;;  %10123 = vst [vmem:[#allocation36_spill] sm:$0xff] %v7625_v54 }
 0x116   : > { %6038 = vmatpush1.bf16.msra.mxu0 %v6037_v57  ;;  %v976_v57 = vld [vmem:[#allocation10 + $0xb8] sm:$0xff]  ;;  %10122 = vst [vmem:[#allocation35_spill] sm:$0xff] %v7617_v46  ;;  %v9924_v1 = vmax.f32 %v7617_v46, 0.0 }
 0x117   : > { %6039 = vmatprep.subr.bf16.mxu0 %v9928_v0 }
 0x118   : > { %6093 = vmatpush3.bf16.msra.mxu1 %v6090_v55  ;;  %v975_v55 = vld [vmem:[#allocation10 + $0xb0] sm:$0xff] }
 0x119   : > { %6095 = vmatprep.subr.bf16.mxu1 %v6094_v2  ;;  %v6052_v10 = vpack.c.bf16 %v976_v57, %v975_v55  ;;  %v537_v55 = vld [vmem:[%s7426_s16 + $0x50] sm:$0xff] }
 0x11a   : > { %6041 = vmatpush1.bf16.msra.mxu0 %v6040_v5  ;;  %v763_v5 = vrot.slane %v7559_v50, 1  ;;  %v7639_v11 = vmax.f32 %v537_v55, 0.0 }
 0x11b   : > { %6042 = vmatprep.subr.bf16.mxu0 %v9928_v0 }
 0x11c   : > { %6097 = vmatpush3.bf16.msra.mxu1 %v6094_v2  ;;  %v7576_v2 = vsel %vm790_vm1, %v760_v44, %v761_v49  ;;  %v7611_v40 = vsel %vm790_vm1, %v763_v5, %v764_v18  ;;  %v7614_v44 = vmax.f32 %v535_v28, 0.0  ;;  %10124 = vst [vmem:[#allocation37_spill] sm:$0xff] %v7639_v11  ;;  %v769_v18 = vrot.slane %v7625_v54, 1  ;;  %v540_v28 = vld [vmem:[%s7426_s16 + $0x68] sm:$0xff] }
 0x11d   : > { %6098 = vmatprep.subr.bf16.mxu1 %v9928_v0 }
 0x11e   : > { %6044 = vmatpush1.bf16.msra.mxu0 %v6043_v16  ;;  %v7588_v16 = vsel %vm790_vm1, %v761_v49, %v762_v61  ;;  %10121 = vst [vmem:[#allocation34_spill] sm:$0xff] %v7614_v44  ;;  %v1564_v49 = vld [vmem:[#allocation10 + $0x1d8] sm:$0xff] }
 0x11f   : > { %5616 = vmatmul.mubr.f32.vlgmr.msra.gmra.mrb[0].mxu1 %v824_v21  ;;  %6045 = vmatprep.subr.bf16.mxu0 %v9928_v0  ;;  %v1562_v21 = vld [vmem:[#allocation10 + $0x1c8] sm:$0xff] }
 0x120   : > { %6100 = vmatpush1.bf16.msra.mxu1 %v6099_v22  ;;  %5618 = vmatprep.mubr.f32.mxu1 %v823_v29  ;;  %v7597_v22 = vsel %vm790_vm1, %v762_v61, %v763_v5  ;;  %v6055_v29 = vpack.c.bf16 %v978_v13, %v977_v12  ;;  %v6111_v39 = vpack.c.bf16 %v1562_v21, %v1561_v20  ;;  %v981_v61 = vld [vmem:[#allocation10 + $0xe0] sm:$0xff]  ;;  %v1566_v13 = vld [vmem:[#allocation10 + $0x1e8] sm:$0xff] }
 0x121   : > { %6101 = vmatprep.subr.bf16.mxu1 %v9928_v0  ;;  %v6114_v5 = vpack.c.bf16 %v1564_v49, %v1563_v47  ;;  %v1565_v12 = vld [vmem:[#allocation10 + $0x1e0] sm:$0xff]  ;;  %v1586_v47 = vld [vmem:[#allocation10 + $0x288] sm:$0xff]  ;;  %v770_v49 = vrot.slane %v7639_v11, 1 }
 0x122   : > { %6047 = vmatpush1.bf16.msra.mxu0 %v6046_v34  ;;  %v980_v34 = vld [vmem:[#allocation10 + $0xd8] sm:$0xff]  ;;  %v539_v21 = vld [vmem:[%s7426_s16 + $0x60] sm:$0xff] }
 0x123   : > { %6048 = vmatprep.subr.bf16.mxu0 %v9928_v0  ;;  %5619 = vmatmul.mubr.f32.gmra.mrb[2].mxu1 %v7548_v43  ;;  %v6058_v57 = vpack.c.bf16 %v980_v34, %v979_v33  ;;  %v7657_v33 = vsel %vm498_vm3, %v9924_v1, 0.0  ;;  %v6117_v34 = vpack.c.bf16 %v1566_v13, %v1565_v12  ;;  %v7665_v55 = vmax.f32 %v539_v21, 0.0  ;;  %v542_v1 = vld [vmem:[%s7426_s16 + $0x78] sm:$0xff]  ;;  %v1570_v21 = vld [vmem:[#allocation10 + $0x208] sm:$0xff] }
 0x124   : > { %6103 = vmatpush1.bf16.msra.mxu1 %v6102_v41  ;;  %5621 = vmatprep.mubr.f32.mxu1 %v7556_v48  ;;  %v766_v41 = vrot.slane %v7591_v19, 1  ;;  %10126 = vst [vmem:[#allocation39_spill] sm:$0xff] %v7657_v33  ;;  %v643_v13 = vrot.slane %v7471_v37, 7  ;;  %v1590_v37 = vld [vmem:[#allocation10 + $0x2a8] sm:$0xff] }
 0x125   : > { %6104 = vmatprep.subr.bf16.mxu1 %v9928_v0 }
 0x126   : > { %6050 = vmatpush1.bf16.msra.mxu0 %v6049_v53  ;;  %v767_v53 = vrot.slane %v7600_v26, 1  ;;  %v7636_v9 = vsel %vm790_vm1, %v765_v23, %v766_v41  ;;  %v6061_v23 = vpack.c.bf16 %v982_v63, %v981_v61 }
 0x127   : > { %6051 = vmatprep.subr.bf16.mxu0 %v9928_v0  ;;  %5622 = vmatmul.mubr.f32.gmra.mrb[4].mxu1 %v7568_v59 }
 0x128   : > { %6106 = vmatpush1.bf16.msra.mxu1 %v6105_v58  ;;  %5624 = vmatprep.mubr.f32.mxu1 %v7576_v2  ;;  %v538_v58 = vld [vmem:[%s7426_s16 + $0x58] sm:$0xff] }
 0x129   : > { %6107 = vmatprep.subr.bf16.mxu1 %v9928_v0  ;;  %v7647_v20 = vmax.f32 %v538_v58, 0.0  ;;  %v1568_v58 = vld [vmem:[#allocation10 + $0x1f8] sm:$0xff] }
 0x12a   : > { %6053 = vmatpush1.bf16.msra.mxu0 %v6052_v10  ;;  %v768_v10 = vrot.slane %v7614_v44, 1 }
 0x12b   : > { %6054 = vmatprep.subr.bf16.mxu0 %v9928_v0  ;;  %5625 = vmatmul.mubr.f32.gmra.mrb[6].mxu1 %v7588_v16  ;;  %v771_v63 = vrot.slane %v7647_v20, 1 }
 0x12c   : > { %6109 = vmatpush1.bf16.msra.mxu1 %v6108_v15  ;;  %5627 = vmatprep.mubr.f32.mxu1 %v7597_v22  ;;  %v7644_v15 = vsel %vm790_vm1, %v766_v41, %v767_v53  ;;  %v1585_v41 = vld [vmem:[#allocation10 + $0x280] sm:$0xff]  ;;  %v7670_v61 = vsel %vm790_vm1, %v768_v10, %v769_v18 }
 0x12d   : > { %6110 = vmatprep.subr.bf16.mxu1 %v9928_v0  ;;  %10125 = vst [vmem:[#allocation38_spill] sm:$0xff] %v7644_v15  ;;  %10128 = vst [vmem:[#allocation41_spill] sm:$0xff] %v7670_v61 }
 0x12e   : > { %6056 = vmatpush1.bf16.msra.mxu0 %v6055_v29  ;;  %v983_v29 = vld [vmem:[#allocation10 + $0xf0] sm:$0xff] }
 0x12f   : > { %6057 = vmatprep.subr.bf16.mxu0 %v9928_v0  ;;  %5628 = vmatmul.mubr.f32.gmra.mrb[8].mxu1 %v7611_v40  ;;  %v6064_v12 = vpack.c.bf16 %v984_v30, %v983_v29  ;;  %v1587_v30 = vld [vmem:[#allocation10 + $0x290] sm:$0xff] }
 0x130   : > { %6112 = vmatpush1.bf16.msra.mxu1 %v6111_v39  ;;  %5630 = vmatprep.mubr.f32.mxu1 %v7622_v52  ;;  %v7662_v39 = vsel %vm790_vm1, %v767_v53, %v768_v10  ;;  %v541_v53 = vld [vmem:[%s7426_s16 + $0x70] sm:$0xff]  ;;  %v6146_v10 = vpack.c.bf16 %v1586_v47, %v1585_v41  ;;  %v7696_v47 = vmax.f32 %v542_v1, 0.0  ;;  %v6150_v46 = vpack.c.bf16 %v1588_v56, %v1587_v30  ;;  %v1572_v30 = vld [vmem:[#allocation10 + $0x218] sm:$0xff] }
 0x131   : > { %6113 = vmatprep.subr.bf16.mxu1 %v9928_v0  ;;  %10127 = vst [vmem:[#allocation40_spill] sm:$0xff] %v7662_v39  ;;  %v7688_v29 = vmax.f32 %v541_v53, 0.0  ;;  %v644_v53 = vrot.slane %v7477_v38, 7  ;;  %v1589_v38 = vld [vmem:[#allocation10 + $0x2a0] sm:$0xff]  ;;  %v1571_v56 = vld [vmem:[#allocation10 + $0x210] sm:$0xff] }
 0x132   : > { %6059 = vmatpush1.bf16.msra.mxu0 %v6058_v57  ;;  %v1567_v57 = vld [vmem:[#allocation10 + $0x1f0] sm:$0xff] }
 0x133   : > { %6060 = vmatprep.subr.bf16.mxu0 %v9928_v0  ;;  %5631 = vmatmul.mubr.f32.gmra.mrb[10].mxu1 %v7636_v9  ;;  %v6120_v42 = vpack.c.bf16 %v1568_v58, %v1567_v57  ;;  %v10131_v57 = vrot.slane %v7657_v33, 7  ;;  %v10134_v33 = vmov 0.0|0.0  }
 0x134   : > { %6115 = vmatpush1.bf16.msra.mxu1 %v6114_v5  ;;  %5633 = vmatprep.mubr.f32.mxu1 %v7644_v15  ;;  %v7673_v5 = vmax.f32 %v540_v28, 0.0  ;;  %v772_v28 = vrot.slane %v7665_v55, 1  ;;  %v1596_v15 = vld [vmem:[#allocation10 + $0x2d8] sm:$0xff] }
 0x135   : > { %6116 = vmatprep.subr.bf16.mxu1 %v9928_v0  ;;  %v717_v58 = vsel %vm681_vm4, %v10131_v57, %v643_v13 }
 0x136   : > { %6062 = vmatpush1.bf16.msra.mxu0 %v6061_v23  ;;  %v7685_v23 = vsel %vm790_vm1, %v769_v18, %v770_v49  ;;  %v773_v41 = vrot.slane %v7673_v5, 1  ;;  %v543_v18 = vld [vmem:[%s7426_s16 + $0x80] sm:$0xff]  ;;  %v7709_v1 = vsel %vm790_vm1, %v771_v63, %v772_v28 }
 0x137   : > { %6063 = vmatprep.subr.bf16.mxu0 %v9928_v0  ;;  %5634 = vmatmul.mubr.f32.gmra.mrb[12].mxu1 %v7662_v39  ;;  %10129 = vst [vmem:[#allocation42_spill] sm:$0xff] %v7685_v23  ;;  %10132 = vst [vmem:[#allocation44_spill] sm:$0xff] %v7709_v1  ;;  %v7712_v57 = vmax.f32 %v543_v18, 0.0  ;;  %v10137_v18 = vmax.f32 %v7465_v31, 0.0 }
 0x138   : > { %6118 = vmatpush1.bf16.msra.mxu1 %v6117_v34  ;;  %5636 = vmatprep.mubr.f32.mxu1 %v7670_v61  ;;  %v7693_v34 = vsel %vm790_vm1, %v770_v49, %v771_v63  ;;  %v6123_v49 = vpack.c.bf16 %v1570_v21, %v1569_v35  ;;  %v7717_v35 = vsel %vm790_vm1, %v772_v28, %v773_v41  ;;  %v545_v21 = vld [vmem:[%s7426_s16 + $0x90] sm:$0xff] }
 0x139   : > { %6119 = vmatprep.subr.bf16.mxu1 %v9928_v0  ;;  %10130 = vst [vmem:[#allocation43_spill] sm:$0xff] %v7693_v34  ;;  %v544_v0 = vld [vmem:[%s7426_s16 + $0x88] sm:$0xff]  ;;  %10133 = vst [vmem:[#allocation45_spill] sm:$0xff] %v7712_v57  ;;  %v6154_v28 = vpack.c.bf16 %v1590_v37, %v1589_v38  ;;  %v1573_v37 = vld [vmem:[#allocation10 + $0x220] sm:$0xff] }
 0x13a   : > { %6065 = vmatpush1.bf16.msra.mxu0 %v6064_v12  ;;  %v774_v12 = vrot.slane %v7688_v29, 1  ;;  %10135 = vst [vmem:[#allocation46_spill] sm:$0xff] %v7717_v35  ;;  %v7720_v63 = vmax.f32 %v544_v0, 0.0  ;;  %v6126_v0 = vpack.c.bf16 %v1572_v30, %v1571_v56  ;;  %v1574_v38 = vld [vmem:[#allocation10 + $0x228] sm:$0xff]  ;;  %v547_v30 = vld [vmem:[%s7426_s16 + $0xa0] sm:$0xff] }
 0x13b   : > { %6147 = vmatprep.subr.bf16.mxu0 %v6146_v10  ;;  %5637 = vmatmul.mubr.f32.gmra.mrb[14].mxu1 %v7685_v23  ;;  %v546_v23 = vld [vmem:[%s7426_s16 + $0x98] sm:$0xff] }
 0x13c   : > { %6121 = vmatpush1.bf16.msra.mxu1 %v6120_v42  ;;  %5639 = vmatprep.mubr.f32.mxu1 %v7693_v34  ;;  %v775_v42 = vrot.slane %v7696_v47, 1  ;;  %10136 = vst [vmem:[#allocation47_spill] sm:$0xff] %v7720_v63  ;;  %v645_v34 = vrot.slane %v7505_v3, 7  ;;  %v7735_v31 = vsel %vm790_vm1, %v773_v41, %v774_v12  ;;  %v1591_v3 = vld [vmem:[#allocation10 + $0x2b0] sm:$0xff]  ;;  %v777_v56 = vrot.slane %v7720_v63, 1 }
 0x13d   : > { %1066 = vmatmul.mubr.f32.vlgmr.msra.gmra.mrb[0].mxu0 %v717_v58  ;;  %6122 = vmatprep.subr.bf16.mxu1 %v10134_v33  ;;  %v716_v58 = vsel %vm681_vm4, %v643_v13, %v644_v53  ;;  %10138 = vst [vmem:[#allocation48_spill] sm:$0xff] %v7735_v31  ;;  %v7738_v13 = vmax.f32 %v545_v21, 0.0  ;;  %v7746_v41 = vmax.f32 %v546_v23, 0.0  ;;  %v6129_v23 = vpack.c.bf16 %v1574_v38, %v1573_v37  ;;  %v549_v38 = vld [vmem:[%s7426_s16 + $0xb0] sm:$0xff] }
 0x13e   : > { %6149 = vmatpush3.bf16.msra.mxu0 %v6146_v10  ;;  %5260 = vmatprep.mubr.msk.f32.mxu0 %vm471_vm0, %v10137_v18  ;;  %v776_v10 = vrot.slane %v7712_v57, 1  ;;  %v1592_v18 = vld [vmem:[#allocation10 + $0x2b8] sm:$0xff]  ;;  %v715_v21 = vsel %vm681_vm4, %v644_v53, %v645_v34  ;;  %v7792_v39 = vmax.f32 %v549_v38, 0.0  ;;  %v648_v38 = vrot.slane %v7528_v17, 7  ;;  %v1579_v17 = vld [vmem:[#allocation10 + $0x250] sm:$0xff] }
 0x13f   : > { %5640 = vmatmul.mubr.f32.gmra.mrb[16].mxu1 %v7709_v1  ;;  %6151 = vmatprep.subr.bf16.mxu0 %v6150_v46  ;;  %v548_v1 = vld [vmem:[%s7426_s16 + $0xa8] sm:$0xff]  ;;  %v778_v53 = vrot.slane %v7738_v13, 1 }
 0x140   : > { %6124 = vmatpush1.bf16.msra.mxu1 %v6123_v49  ;;  %5642 = vmatprep.mubr.f32.mxu1 %v7717_v35  ;;  %v7743_v49 = vsel %vm790_vm1, %v774_v12, %v775_v42  ;;  %v10140_v35 = vmax.f32 %v7490_v51, 0.0  ;;  %v6158_v12 = vpack.c.bf16 %v1592_v18, %v1591_v3  ;;  %v7761_v51 = vsel %vm790_vm1, %v775_v42, %v776_v10  ;;  %v1575_v3 = vld [vmem:[#allocation10 + $0x230] sm:$0xff] }
 0x141   : > { %1071 = vmatmul.mubr.f32.gmra.mrb[2].mxu0 %v716_v58  ;;  %6125 = vmatprep.subr.bf16.mxu1 %v10134_v33  ;;  %10139 = vst [vmem:[#allocation49_spill] sm:$0xff] %v7743_v49  ;;  %v646_v58 = vrot.slane %v7512_v6, 7  ;;  %10141 = vst [vmem:[#allocation50_spill] sm:$0xff] %v7761_v51  ;;  %v7764_v6 = vmax.f32 %v547_v30, 0.0  ;;  %v7769_v18 = vsel %vm790_vm1, %v776_v10, %v777_v56  ;;  %v779_v42 = vrot.slane %v7746_v41, 1 }
 0x142   : > { %5261 = vmatprep.mubr.msk.f32.mxu0 %vm471_vm0, %v10140_v35  ;;  %6153 = vmatpush3.bf16.msra.mxu0 %v6150_v46  ;;  %v1593_v46 = vld [vmem:[#allocation10 + $0x2c0] sm:$0xff]  ;;  %v1594_v35 = vld [vmem:[#allocation10 + $0x2c8] sm:$0xff]  ;;  %10143 = vst [vmem:[#allocation52_spill] sm:$0xff] %v7769_v18  ;;  %v7772_v37 = vmax.f32 %v548_v1, 0.0  ;;  %v7789_v61 = vsel %vm790_vm1, %v777_v56, %v778_v53  ;;  %10146 = vst [vmem:[#allocation55_spill] sm:$0xff] %v7792_v39 }
 0x143   : > { %5643 = vmatmul.mubr.f32.gmra.mrb[18].mxu1 %v7735_v31  ;;  %6155 = vmatprep.subr.bf16.mxu0 %v6154_v28  ;;  %10142 = vst [vmem:[#allocation51_spill] sm:$0xff] %v7764_v6  ;;  %v7780_v30 = vsel %vm681_vm4, %v645_v34, %v646_v58  ;;  %v499_v31 = vld [vmem:[%s7441_s23] sm:$0xff]  ;;  %v6162_v10 = vpack.c.bf16 %v1594_v35, %v1593_v46  ;;  %10145 = vst [vmem:[#allocation54_spill] sm:$0xff] %v7789_v61  ;;  %v780_v34 = vrot.slane %v7764_v6, 1  ;;  %v1578_v46 = vld [vmem:[#allocation10 + $0x248] sm:$0xff] }
 0x144   : > { %6127 = vmatpush1.bf16.msra.mxu1 %v6126_v0  ;;  %5645 = vmatprep.mubr.f32.mxu1 %v7743_v49  ;;  %v1576_v0 = vld [vmem:[#allocation10 + $0x238] sm:$0xff]  ;;  %10144 = vst [vmem:[#allocation53_spill] sm:$0xff] %v7772_v37  ;;  %v781_v35 = vrot.slane %v7772_v37, 1 }
 0x145   : > { %1076 = vmatmul.mubr.f32.gmra.mrb[4].mxu0 %v715_v21  ;;  %6128 = vmatprep.subr.bf16.mxu1 %v10134_v33  ;;  %v647_v21 = vrot.slane %v7522_v14, 7  ;;  %v550_v49 = vld [vmem:[%s7426_s16 + $0xb8] sm:$0xff]  ;;  %v6132_v1 = vpack.c.bf16 %v1576_v0, %v1575_v3  ;;  %v1595_v14 = vld [vmem:[#allocation10 + $0x2d0] sm:$0xff]  ;;  %v7803_v3 = vmax.f32 %v499_v31, 0.0 }
 0x146   : > { %5262 = vmatprep.mubr.msk.f32.mxu0 %vm472_vm2, %v7495_v60  ;;  %6157 = vmatpush3.bf16.msra.mxu0 %v6154_v28  ;;  %v1577_v28 = vld [vmem:[#allocation10 + $0x240] sm:$0xff]  ;;  %v7801_v56 = vmax.f32 %v550_v49, 0.0  ;;  %v6166_v49 = vpack.c.bf16 %v1596_v15, %v1595_v14  ;;  %v7825_v15 = vsel %vm790_vm1, %v780_v34, %v781_v35 }
 0x147   : > { %5646 = vmatmul.mubr.f32.gmra.mrb[20].mxu1 %v7761_v51  ;;  %6159 = vmatprep.subr.bf16.mxu0 %v6158_v12  ;;  %10149 = vst [vmem:[#allocation58_spill] sm:$0xff] %v7803_v3  ;;  %v7811_v0 = vsel %vm681_vm4, %v646_v58, %v647_v21  ;;  %v6135_v31 = vpack.c.bf16 %v1578_v46, %v1577_v28  ;;  %v1597_v51 = vld [vmem:[#allocation10 + $0x2e0] sm:$0xff]  ;;  %v1598_v58 = vld [vmem:[#allocation10 + $0x2e8] sm:$0xff]  ;;  %v649_v28 = vrot.slane %v7535_v25, 7 }
 0x148   : > { %6130 = vmatpush1.bf16.msra.mxu1 %v6129_v23  ;;  %5648 = vmatprep.mubr.f32.mxu1 %v7769_v18  ;;  %v7798_v23 = vsel %vm790_vm1, %v778_v53, %v779_v42  ;;  %10148 = vst [vmem:[#allocation57_spill] sm:$0xff] %v7801_v56  ;;  %v7818_v53 = vsel %vm790_vm1, %v779_v42, %v780_v34  ;;  %v782_v18 = vrot.slane %v7792_v39, 1  ;;  %v7831_v42 = vsel %vm497_vm5, %v7803_v3, 0.0  ;;  %v1599_v3 = vld [vmem:[#allocation10 + $0x2f0] sm:$0xff] }
 0x149   : > { %1081 = vmatmul.mubr.f32.gmra.mrb[6].mxu0 %v7780_v30  ;;  %6131 = vmatprep.subr.bf16.mxu1 %v10134_v33  ;;  %10147 = vst [vmem:[#allocation56_spill] sm:$0xff] %v7798_v23  ;;  %10150 = vst [vmem:[#allocation59_spill] sm:$0xff] %v7818_v53  ;;  %v7838_v14 = vsel %vm681_vm4, %v647_v21, %v648_v38  ;;  %v6170_v34 = vpack.c.bf16 %v1598_v58, %v1597_v51  ;;  %v1600_v21 = vld [vmem:[#allocation10 + $0x2f8] sm:$0xff] }
 0x14a   : > { %5263 = vmatprep.mubr.msk.f32.mxu0 %vm472_vm2, %v7507_v4  ;;  %6161 = vmatpush3.bf16.msra.mxu0 %v6158_v12  ;;  %v1580_v12 = vld [vmem:[#allocation10 + $0x258] sm:$0xff]  ;;  %v6174_v58 = vpack.c.bf16 %v1600_v21, %v1599_v3  ;;  %v2213_v21 = vld [vmem:[#allocation10 + $0x308] sm:$0xff] }
 0x14b   : > { %5649 = vmatmul.mubr.f32.gmra.mrb[22].mxu1 %v7789_v61  ;;  %6163 = vmatprep.subr.bf16.mxu0 %v6162_v10  ;;  %v6138_v46 = vpack.c.bf16 %v1580_v12, %v1579_v17  ;;  %v9966_v61 = vrot.slane %v7831_v42, 1  ;;  %v2244_v12 = vld [vmem:[#allocation10 + $0x400] sm:$0xff] }
 0x14c   : > { %6133 = vmatpush1.bf16.msra.mxu1 %v6132_v1  ;;  %5651 = vmatprep.mubr.f32.mxu1 %v7798_v23  ;;  %v783_v1 = vrot.slane %v7801_v56, 1  ;;  %v7845_v23 = vsel %vm790_vm1, %v781_v35, %v782_v18  ;;  %v7857_v35 = vsel %vm681_vm4, %v648_v38, %v649_v28  ;;  %v2245_v38 = vld [vmem:[#allocation10 + $0x408] sm:$0xff] }
 0x14d   : > { %1086 = vmatmul.mubr.f32.gmra.mrb[8].mxu0 %v7811_v0  ;;  %6134 = vmatprep.subr.bf16.mxu1 %v10134_v33  ;;  %10151 = vst [vmem:[#allocation60_spill] sm:$0xff] %v7845_v23 }
 0x14e   : > { %5264 = vmatprep.mubr.msk.f32.mxu0 %vm472_vm2, %v7514_v7  ;;  %6165 = vmatpush3.bf16.msra.mxu0 %v6162_v10  ;;  %v1581_v10 = vld [vmem:[#allocation10 + $0x260] sm:$0xff]  ;;  %v7852_v51 = vsel %vm790_vm1, %v782_v18, %v783_v1  ;;  %v7866_v18 = vsel %vm790_vm1, %v783_v1, %v9966_v61  ;;  %v7877_v1 = vpack.c.bf16 %v2245_v38, %v2244_v12  ;;  %v663_v61 = vrot.slane %v7688_v29, 7 }
 0x14f   : > { %5652 = vmatmul.mubr.f32.gmra.mrb[24].mxu1 %v7818_v53  ;;  %6167 = vmatprep.subr.bf16.mxu0 %v6166_v49  ;;  %v1582_v53 = vld [vmem:[#allocation10 + $0x268] sm:$0xff]  ;;  %v2216_v38 = vld [vmem:[#allocation10 + $0x320] sm:$0xff] }
 0x150   : > { %6136 = vmatpush1.bf16.msra.mxu1 %v6135_v31  ;;  %5654 = vmatprep.mubr.f32.mxu1 %v7825_v15  ;;  %v650_v31 = vrot.slane %v7541_v32, 7  ;;  %v6141_v17 = vpack.c.bf16 %v1582_v53, %v1581_v10  ;;  %v651_v53 = vrot.slane %v7551_v45, 7  ;;  %v652_v10 = vrot.slane %v7559_v50, 7 }
 0x151   : > { %1091 = vmatmul.mubr.f32.gmra.mrb[10].mxu0 %v7838_v14  ;;  %6137 = vmatprep.subr.bf16.mxu1 %v10134_v33 }
 0x152   : > { %1095 = vmatprep.mubr.f32.mxu0 %v7535_v25  ;;  %6169 = vmatpush3.bf16.msra.mxu0 %v6166_v49  ;;  %v1583_v49 = vld [vmem:[#allocation10 + $0x270] sm:$0xff]  ;;  %v7873_v3 = vsel %vm681_vm4, %v649_v28, %v650_v31  ;;  %v2212_v28 = vld [vmem:[#allocation10 + $0x300] sm:$0xff]  ;;  %v7896_v12 = vsel %vm681_vm4, %v651_v53, %v652_v10 }
 0x153   : > { %5655 = vmatmul.mubr.f32.gmra.mrb[26].mxu1 %v7845_v23  ;;  %6171 = vmatprep.subr.bf16.mxu0 %v6170_v34  ;;  %v1584_v23 = vld [vmem:[#allocation10 + $0x278] sm:$0xff] }
 0x154   : > { %6139 = vmatpush1.bf16.msra.mxu1 %v6138_v46  ;;  %5657 = vmatprep.mubr.f32.mxu1 %v7852_v51  ;;  %v6144_v46 = vpack.c.bf16 %v1584_v23, %v1583_v49  ;;  %v6179_v23 = vpack.c.bf16 %v2213_v21, %v2212_v28  ;;  %v2217_v49 = vld [vmem:[#allocation10 + $0x328] sm:$0xff]  ;;  %v2219_v28 = vld [vmem:[#allocation10 + $0x338] sm:$0xff] }
 0x155   : > { %1096 = vmatmul.mubr.f32.gmra.mrb[12].mxu0 %v7857_v35  ;;  %6140 = vmatprep.subr.bf16.mxu1 %v10134_v33 }
 0x156   : > { %1100 = vmatprep.mubr.f32.mxu0 %v7541_v32  ;;  %6173 = vmatpush3.bf16.msra.mxu0 %v6170_v34  ;;  %v7887_v34 = vsel %vm681_vm4, %v650_v31, %v651_v53  ;;  %v653_v31 = vrot.slane %v7571_v62, 7 }
 0x157   : > { %5658 = vmatmul.mubr.f32.gmra.mrb[28].mxu1 %v7866_v18  ;;  %6175 = vmatprep.subr.bf16.mxu0 %v6174_v58 }
 0x158   : > { %6142 = vmatpush1.bf16.msra.mxu1 %v6141_v17  ;;  %5265 = vmatprep.mubr.msk.f32.mxu1 %vm472_vm2, %v7495_v60  ;;  %v2214_v60 = vld [vmem:[#allocation10 + $0x310] sm:$0xff]  ;;  %v2215_v17 = vld [vmem:[#allocation10 + $0x318] sm:$0xff]  ;;  %v7908_v53 = vsel %vm681_vm4, %v652_v10, %v653_v31  ;;  %v2221_v10 = vld [vmem:[#allocation10 + $0x348] sm:$0xff] }
 0x159   : > { %1101 = vmatmul.mubr.f32.gmra.mrb[14].mxu0 %v7873_v3  ;;  %6143 = vmatprep.subr.bf16.mxu1 %v10134_v33 }
 0x15a   : > { %1105 = vmatprep.mubr.f32.mxu0 %v7551_v45  ;;  %6177 = vmatpush3.bf16.msra.mxu0 %v6174_v58  ;;  %v6182_v58 = vpack.c.bf16 %v2215_v17, %v2214_v60  ;;  %v656_v60 = vrot.slane %v7600_v26, 7  ;;  %v2222_v17 = vld [vmem:[#allocation10 + $0x350] sm:$0xff] }
 0x15b   : > { %6227 = vmatprep.subr.bf16.mxu0 %v7877_v1 }
 0x15c   : > { %6145 = vmatpush1.bf16.msra.mxu1 %v6144_v46  ;;  %v2218_v46 = vld [vmem:[#allocation10 + $0x330] sm:$0xff] }
 0x15d   : > { %1106 = vmatmul.mubr.f32.gmra.mrb[16].mxu0 %v7887_v34  ;;  %6178 = vmatprep.subr.bf16.mxu1 %v10134_v33  ;;  %v6188_v24 = vpack.c.bf16 %v2219_v28, %v2218_v46  ;;  %v658_v28 = vrot.slane %v7625_v54, 7 }
 0x15e   : > { %1110 = vmatprep.mubr.f32.mxu0 %v7559_v50 }
 0x15f   : > { %1666 = vmatmul.mubr.f32.vlgmr.msra.gmra.mrb[30].mxu1 %v7780_v30  ;;  %v654_v30 = vrot.slane %v7579_v8, 7 }
 0x160   : > { %5266 = vmatprep.mubr.msk.f32.mxu1 %vm472_vm2, %v7507_v4  ;;  %6180 = vmatpush1.bf16.msra.mxu1 %v6179_v23  ;;  %v6185_v4 = vpack.c.bf16 %v2217_v49, %v2216_v38  ;;  %v657_v38 = vrot.slane %v7614_v44, 7 }
 0x161   : > { %1111 = vmatmul.mubr.f32.gmra.mrb[18].mxu0 %v7896_v12  ;;  %6181 = vmatprep.subr.bf16.mxu1 %v10134_v33  ;;  %v7920_v21 = vsel %vm681_vm4, %v653_v31, %v654_v30  ;;  %v2223_v31 = vld [vmem:[#allocation10 + $0x358] sm:$0xff] }
 0x162   : > { %1115 = vmatprep.mubr.f32.mxu0 %v7571_v62  ;;  %v6194_v49 = vpack.c.bf16 %v2223_v31, %v2222_v17  ;;  %v7950_v46 = vsel %vm681_vm4, %v656_v60, %v657_v38  ;;  %v2228_v17 = vld [vmem:[#allocation10 + $0x380] sm:$0xff]  ;;  %v2229_v31 = vld [vmem:[#allocation10 + $0x388] sm:$0xff] }
 0x163   : > { %1671 = vmatmul.mubr.f32.gmra.mrb[32].mxu1 %v7811_v0  ;;  %v655_v0 = vrot.slane %v7591_v19, 7 }
 0x164   : > { %5267 = vmatprep.mubr.msk.f32.mxu1 %vm472_vm2, %v7514_v7  ;;  %6183 = vmatpush1.bf16.msra.mxu1 %v6182_v58  ;;  %v2220_v7 = vld [vmem:[#allocation10 + $0x340] sm:$0xff] }
 0x165   : > { %1116 = vmatmul.mubr.f32.gmra.mrb[20].mxu0 %v7908_v53  ;;  %6184 = vmatprep.subr.bf16.mxu1 %v10134_v33  ;;  %v7930_v23 = vsel %vm681_vm4, %v654_v30, %v655_v0  ;;  %v7940_v58 = vsel %vm681_vm4, %v655_v0, %v656_v60  ;;  %v2224_v30 = vld [vmem:[#allocation10 + $0x360] sm:$0xff]  ;;  %v659_v60 = vrot.slane %v7639_v11, 7 }
 0x166   : > { %1120 = vmatprep.mubr.f32.mxu0 %v7579_v8 }
 0x167   : > { %1676 = vmatmul.mubr.f32.gmra.mrb[34].mxu1 %v7838_v14  ;;  %v6191_v14 = vpack.c.bf16 %v2221_v10, %v2220_v7  ;;  %v2227_v7 = vld [vmem:[#allocation10 + $0x378] sm:$0xff]  ;;  %v7960_v10 = vsel %vm681_vm4, %v657_v38, %v658_v28  ;;  %v7970_v38 = vsel %vm681_vm4, %v658_v28, %v659_v60 }
 0x168   : > { %1680 = vmatprep.mubr.f32.mxu1 %v7535_v25  ;;  %6186 = vmatpush1.bf16.msra.mxu1 %v6185_v4  ;;  %v2225_v4 = vld [vmem:[#allocation10 + $0x368] sm:$0xff] }
 0x169   : > { %1121 = vmatmul.mubr.f32.gmra.mrb[22].mxu0 %v7920_v21  ;;  %6187 = vmatprep.subr.bf16.mxu1 %v10134_v33  ;;  %v6197_v0 = vpack.c.bf16 %v2225_v4, %v2224_v30  ;;  %v6203_v30 = vpack.c.bf16 %v2229_v31, %v2228_v17  ;;  %v2230_v4 = vld [vmem:[#allocation10 + $0x390] sm:$0xff]  ;;  %v2233_v17 = vld [vmem:[#allocation10 + $0x3a8] sm:$0xff]  ;;  %v662_v31 = vrot.slane %v7673_v5, 7 }
 0x16a   : > { %1125 = vmatprep.mubr.f32.mxu0 %v7591_v19 }
 0x16b   : > { %1681 = vmatmul.mubr.f32.gmra.mrb[36].mxu1 %v7857_v35 }
 0x16c   : > { %1685 = vmatprep.mubr.f32.mxu1 %v7541_v32  ;;  %6189 = vmatpush1.bf16.msra.mxu1 %v6188_v24  ;;  %v2226_v24 = vld [vmem:[#allocation10 + $0x370] sm:$0xff] }
 0x16d   : > { %1126 = vmatmul.mubr.f32.gmra.mrb[24].mxu0 %v7930_v23  ;;  %6190 = vmatprep.subr.bf16.mxu1 %v10134_v33 }
 0x16e   : > { %1130 = vmatprep.mubr.f32.mxu0 %v7600_v26 }
 0x16f   : > { %1686 = vmatmul.mubr.f32.gmra.mrb[38].mxu1 %v7873_v3 }
 0x170   : > { %1690 = vmatprep.mubr.f32.mxu1 %v7551_v45  ;;  %6192 = vmatpush1.bf16.msra.mxu1 %v6191_v14  ;;  %v6200_v14 = vpack.c.bf16 %v2227_v7, %v2226_v24  ;;  %v661_v24 = vrot.slane %v7665_v55, 7 }
 0x171   : > { %1131 = vmatmul.mubr.f32.gmra.mrb[26].mxu0 %v7940_v58  ;;  %6193 = vmatprep.subr.bf16.mxu1 %v10134_v33 }
 0x172   : > { %1135 = vmatprep.mubr.f32.mxu0 %v7614_v44 }
 0x173   : > { %1691 = vmatmul.mubr.f32.gmra.mrb[40].mxu1 %v7887_v34 }
 0x174   : > { %1695 = vmatprep.mubr.f32.mxu1 %v7559_v50  ;;  %6195 = vmatpush1.bf16.msra.mxu1 %v6194_v49  ;;  %v660_v49 = vrot.slane %v7647_v20, 7 }
 0x175   : > { %1136 = vmatmul.mubr.f32.gmra.mrb[28].mxu0 %v7950_v46  ;;  %6196 = vmatprep.subr.bf16.mxu1 %v10134_v33 }
 0x176   : > { %1140 = vmatprep.mubr.f32.mxu0 %v7625_v54  ;;  %v7980_v28 = vsel %vm681_vm4, %v659_v60, %v660_v49  ;;  %v7990_v60 = vsel %vm681_vm4, %v660_v49, %v661_v24  ;;  %v8000_v49 = vsel %vm681_vm4, %v661_v24, %v662_v31  ;;  %v8010_v24 = vsel %vm681_vm4, %v662_v31, %v663_v61 }
 0x177   : > { %1696 = vmatmul.mubr.f32.gmra.mrb[42].mxu1 %v7896_v12 }
 0x178   : > { %1700 = vmatprep.mubr.f32.mxu1 %v7571_v62  ;;  %6198 = vmatpush1.bf16.msra.mxu1 %v6197_v0  ;;  %v2231_v0 = vld [vmem:[#allocation10 + $0x398] sm:$0xff] }
 0x179   : > { %1141 = vmatmul.mubr.f32.gmra.mrb[30].mxu0 %v7960_v10  ;;  %6199 = vmatprep.subr.bf16.mxu1 %v10134_v33  ;;  %v6206_v7 = vpack.c.bf16 %v2231_v0, %v2230_v4  ;;  %v2234_v4 = vld [vmem:[#allocation10 + $0x3b0] sm:$0xff]  ;;  %v2235_v0 = vld [vmem:[#allocation10 + $0x3b8] sm:$0xff] }
 0x17a   : > { %1145 = vmatprep.mubr.f32.mxu0 %v7639_v11 }
 0x17b   : > { %1701 = vmatmul.mubr.f32.gmra.mrb[44].mxu1 %v7908_v53 }
 0x17c   : > { %1705 = vmatprep.mubr.f32.mxu1 %v7579_v8  ;;  %6201 = vmatpush1.bf16.msra.mxu1 %v6200_v14  ;;  %v2232_v14 = vld [vmem:[#allocation10 + $0x3a0] sm:$0xff] }
 0x17d   : > { %1146 = vmatmul.mubr.f32.gmra.mrb[32].mxu0 %v7970_v38  ;;  %6202 = vmatprep.subr.bf16.mxu1 %v10134_v33 }
 0x17e   : > { %1150 = vmatprep.mubr.f32.mxu0 %v7647_v20 }
 0x17f   : > { %1706 = vmatmul.mubr.f32.gmra.mrb[46].mxu1 %v7920_v21 }
 0x180   : > { %1710 = vmatprep.mubr.f32.mxu1 %v7591_v19  ;;  %6204 = vmatpush1.bf16.msra.mxu1 %v6203_v30  ;;  %v6209_v30 = vpack.c.bf16 %v2233_v17, %v2232_v14  ;;  %v2236_v14 = vld [vmem:[#allocation10 + $0x3c0] sm:$0xff]  ;;  %v2237_v17 = vld [vmem:[#allocation10 + $0x3c8] sm:$0xff] }
 0x181   : > { %1151 = vmatmul.mubr.f32.gmra.mrb[34].mxu0 %v7980_v28  ;;  %6205 = vmatprep.subr.bf16.mxu1 %v10134_v33 }
 0x182   : > { %1155 = vmatprep.mubr.f32.mxu0 %v7665_v55 }
 0x183   : > { %1711 = vmatmul.mubr.f32.gmra.mrb[48].mxu1 %v7930_v23 }
 0x184   : > { %1715 = vmatprep.mubr.f32.mxu1 %v7600_v26  ;;  %6207 = vmatpush1.bf16.msra.mxu1 %v6206_v7  ;;  %v6212_v7 = vpack.c.bf16 %v2235_v0, %v2234_v4  ;;  %v664_v26 = vrot.slane %v7696_v47, 7  ;;  %v2238_v4 = vld [vmem:[#allocation10 + $0x3d0] sm:$0xff]  ;;  %v2239_v0 = vld [vmem:[#allocation10 + $0x3d8] sm:$0xff] }
 0x185   : > { %1156 = vmatmul.mubr.f32.gmra.mrb[36].mxu0 %v7990_v60  ;;  %6208 = vmatprep.subr.bf16.mxu1 %v10134_v33 }
 0x186   : > { %1160 = vmatprep.mubr.f32.mxu0 %v7673_v5  ;;  %v8020_v31 = vsel %vm681_vm4, %v663_v61, %v664_v26 }
 0x187   : > { %1716 = vmatmul.mubr.f32.gmra.mrb[50].mxu1 %v7940_v58  ;;  %10152 = vst [vmem:[#allocation61_spill] sm:$0xff] %v8020_v31 }
 0x188   : > { %1720 = vmatprep.mubr.f32.mxu1 %v7614_v44  ;;  %6210 = vmatpush1.bf16.msra.mxu1 %v6209_v30  ;;  %v6215_v30 = vpack.c.bf16 %v2237_v17, %v2236_v14  ;;  %v665_v44 = vrot.slane %v7712_v57, 7  ;;  %v2240_v14 = vld [vmem:[#allocation10 + $0x3e0] sm:$0xff]  ;;  %v2241_v17 = vld [vmem:[#allocation10 + $0x3e8] sm:$0xff] }
 0x189   : > { %1161 = vmatmul.mubr.f32.gmra.mrb[38].mxu0 %v8000_v49  ;;  %6211 = vmatprep.subr.bf16.mxu1 %v10134_v33 }
 0x18a   : > { %1165 = vmatprep.mubr.f32.mxu0 %v7688_v29  ;;  %v8030_v61 = vsel %vm681_vm4, %v664_v26, %v665_v44 }
 0x18b   : > { %1721 = vmatmul.mubr.f32.gmra.mrb[52].mxu1 %v7950_v46  ;;  %10153 = vst [vmem:[#allocation62_spill] sm:$0xff] %v8030_v61 }
 0x18c   : > { %1725 = vmatprep.mubr.f32.mxu1 %v7625_v54  ;;  %6213 = vmatpush1.bf16.msra.mxu1 %v6212_v7  ;;  %v6218_v7 = vpack.c.bf16 %v2239_v0, %v2238_v4  ;;  %v666_v54 = vrot.slane %v7720_v63, 7  ;;  %v2242_v4 = vld [vmem:[#allocation10 + $0x3f0] sm:$0xff]  ;;  %v2243_v0 = vld [vmem:[#allocation10 + $0x3f8] sm:$0xff] }
 0x18d   : > { %1166 = vmatmul.mubr.f32.gmra.mrb[40].mxu0 %v8010_v24  ;;  %6214 = vmatprep.subr.bf16.mxu1 %v10134_v33 }
 0x18e   : > { %1170 = vmatprep.mubr.f32.mxu0 %v7696_v47  ;;  %v8040_v26 = vsel %vm681_vm4, %v665_v44, %v666_v54  ;;  %v668_v44 = vrot.slane %v7746_v41, 7 }
 0x18f   : > { %1726 = vmatmul.mubr.f32.gmra.mrb[54].mxu1 %v7960_v10 }
 0x190   : > { %1730 = vmatprep.mubr.f32.mxu1 %v7639_v11  ;;  %6216 = vmatpush1.bf16.msra.mxu1 %v6215_v30  ;;  %v6221_v30 = vpack.c.bf16 %v2241_v17, %v2240_v14  ;;  %v667_v11 = vrot.slane %v7738_v13, 7 }
 0x191   : > { %1171 = vmatmul.mubr.f32.gmra.mrb[42].mxu0 %v8020_v31  ;;  %6217 = vmatprep.subr.bf16.mxu1 %v10134_v33 }
 0x192   : > { %1175 = vmatprep.mubr.f32.mxu0 %v7712_v57  ;;  %v8050_v14 = vsel %vm681_vm4, %v666_v54, %v667_v11  ;;  %v8059_v17 = vsel %vm681_vm4, %v667_v11, %v668_v44 }
 0x193   : > { %1731 = vmatmul.mubr.f32.gmra.mrb[56].mxu1 %v7970_v38  ;;  %10154 = vst [vmem:[#allocation63_spill] sm:$0xff] %v8059_v17 }
 0x194   : > { %1735 = vmatprep.mubr.f32.mxu1 %v7647_v20  ;;  %6219 = vmatpush1.bf16.msra.mxu1 %v6218_v7  ;;  %v6224_v7 = vpack.c.bf16 %v2243_v0, %v2242_v4  ;;  %v670_v4 = vrot.slane %v7772_v37, 7  ;;  %v671_v0 = vrot.slane %v7792_v39, 7 }
 0x195   : > { %1176 = vmatmul.mubr.f32.gmra.mrb[44].mxu0 %v8030_v61  ;;  %6220 = vmatprep.subr.bf16.mxu1 %v10134_v33 }
 0x196   : > { %1180 = vmatprep.mubr.f32.mxu0 %v7720_v63 }
 0x197   : > { %1736 = vmatmul.mubr.f32.gmra.mrb[58].mxu1 %v7980_v28 }
 0x198   : > { %1740 = vmatprep.mubr.f32.mxu1 %v7665_v55  ;;  %6222 = vmatpush1.bf16.msra.mxu1 %v6221_v30  ;;  %v669_v30 = vrot.slane %v7764_v6, 7 }
 0x199   : > { %1181 = vmatmul.mubr.f32.gmra.mrb[46].mxu0 %v8040_v26  ;;  %6223 = vmatprep.subr.bf16.mxu1 %v10134_v33 }
 0x19a   : > { %1185 = vmatprep.mubr.f32.mxu0 %v7738_v13  ;;  %v8068_v54 = vsel %vm681_vm4, %v668_v44, %v669_v30  ;;  %v8077_v11 = vsel %vm681_vm4, %v669_v30, %v670_v4  ;;  %v9975_v44 = vrot.slane %v7801_v56, 7 }
 0x19b   : > { %1741 = vmatmul.mubr.f32.gmra.mrb[60].mxu1 %v7990_v60  ;;  %10155 = vst [vmem:[#allocation64_spill] sm:$0xff] %v8068_v54  ;;  %10156 = vst [vmem:[#allocation65_spill] sm:$0xff] %v8077_v11 }
 0x19c   : > { %1745 = vmatprep.mubr.f32.mxu1 %v7673_v5  ;;  %6225 = vmatpush1.bf16.msra.mxu1 %v6224_v7  ;;  %v8086_v7 = vsel %vm681_vm4, %v670_v4, %v671_v0  ;;  %v8097_v30 = vsel %vm681_vm4, %v671_v0, %v9975_v44  ;;  %v2246_v4 = vld [vmem:[#allocation10 + $0x410] sm:$0xff]  ;;  %v2251_v44 = vld [vmem:[#allocation10 + $0x438] sm:$0xff] }
 0x19d   : > { %1186 = vmatmul.mubr.f32.gmra.mrb[48].mxu0 %v8050_v14  ;;  %10157 = vst [vmem:[#allocation66_spill] sm:$0xff] %v8086_v7  ;;  %10158 = vst [vmem:[#allocation67_spill] sm:$0xff] %v8097_v30 }
 0x19e   : > { %1190 = vmatprep.mubr.f32.mxu0 %v7746_v41 }
 0x19f   : > { %1746 = vmatmul.mubr.f32.gmra.mrb[62].mxu1 %v8000_v49 }
 0x1a0   : > { %1750 = vmatprep.mubr.f32.mxu1 %v7688_v29 }
 0x1a1   : > { %1191 = vmatmul.mubr.f32.gmra.mrb[50].mxu0 %v8059_v17 }
 0x1a2   : > { %1195 = vmatprep.mubr.f32.mxu0 %v7764_v6 }
 0x1a3   : > { %1751 = vmatmul.mubr.f32.gmra.mrb[64].mxu1 %v8010_v24 }
 0x1a4   : > { %1755 = vmatprep.mubr.f32.mxu1 %v7696_v47 }
 0x1a5   : > { %1196 = vmatmul.mubr.f32.gmra.mrb[52].mxu0 %v8068_v54 }
 0x1a6   : > { %1200 = vmatprep.mubr.f32.mxu0 %v7772_v37 }
 0x1a7   : > { %1756 = vmatmul.mubr.f32.gmra.mrb[66].mxu1 %v8020_v31  ;;  %v2249_v31 = vld [vmem:[#allocation10 + $0x428] sm:$0xff] }
 0x1a8   : > { %1760 = vmatprep.mubr.f32.mxu1 %v7712_v57  ;;  %v2247_v57 = vld [vmem:[#allocation10 + $0x418] sm:$0xff] }
 0x1a9   : > { %1201 = vmatmul.mubr.f32.gmra.mrb[54].mxu0 %v8077_v11 }
 0x1aa   : > { %1205 = vmatprep.mubr.f32.mxu0 %v7792_v39 }
 0x1ab   : > { %1761 = vmatmul.mubr.f32.gmra.mrb[68].mxu1 %v8030_v61  ;;  %v2248_v61 = vld [vmem:[#allocation10 + $0x420] sm:$0xff] }
 0x1ac   : > { %1765 = vmatprep.mubr.f32.mxu1 %v7720_v63  ;;  %v6230_v63 = vpack.c.bf16 %v2247_v57, %v2246_v4  ;;  %v6234_v0 = vpack.c.bf16 %v2249_v31, %v2248_v61  ;;  %v2253_v57 = vld [vmem:[#allocation10 + $0x448] sm:$0xff]  ;;  %v2255_v61 = vld [vmem:[#allocation10 + $0x458] sm:$0xff]  ;;  %v501_v4 = vld [vmem:[%s7441_s23 + $0x10] sm:$0xff] }
 0x1ad   : > { %1206 = vmatmul.mubr.f32.gmra.mrb[56].mxu0 %v8086_v7 }
 0x1ae   : > { %1210 = vmatprep.mubr.f32.mxu0 %v7801_v56 }
 0x1af   : > { %1766 = vmatmul.mubr.f32.gmra.mrb[70].mxu1 %v8040_v26 }
 0x1b0   : > { %1770 = vmatprep.mubr.f32.mxu1 %v7738_v13 }
 0x1b1   : > { %1211 = vmatmul.mubr.f32.gmra.mrb[58].mxu0 %v8097_v30 }
 0x1b2   : > { %5692 = vmatprep.mubr.f32.mxu0 %v7548_v43  ;;  %v2250_v43 = vld [vmem:[#allocation10 + $0x430] sm:$0xff] }
 0x1b3   : > { %1771 = vmatmul.mubr.f32.gmra.mrb[72].mxu1 %v8050_v14 }
 0x1b4   : > { %1775 = vmatprep.mubr.f32.mxu1 %v7746_v41 }
 0x1b5   : > { %5693 = vmatmul.mubr.f32.vlgmr.msra.gmra.mrb[60].mxu0 %v7556_v48  ;;  %v6238_v48 = vpack.c.bf16 %v2251_v44, %v2250_v43  ;;  %v673_v43 = vrot.slane %v7831_v42, 7 }
 0x1b6   : > { %6229 = vmatpush3.bf16.msra.mxu0 %v7877_v1  ;;  %5695 = vmatprep.mubr.f32.mxu0 %v7568_v59  ;;  %v2252_v59 = vld [vmem:[#allocation10 + $0x440] sm:$0xff]  ;;  %v500_v1 = vld [vmem:[%s7441_s23 + $0x8] sm:$0xff] }
 0x1b7   : > { %1776 = vmatmul.mubr.f32.gmra.mrb[74].mxu1 %v8059_v17  ;;  %6231 = vmatprep.subr.bf16.mxu0 %v6230_v63  ;;  %v6242_v31 = vpack.c.bf16 %v2253_v57, %v2252_v59  ;;  %v8120_v44 = vmax.f32 %v500_v1, 0.0  ;;  %v2256_v59 = vld [vmem:[#allocation10 + $0x460] sm:$0xff]  ;;  %v2257_v57 = vld [vmem:[#allocation10 + $0x468] sm:$0xff] }
 0x1b8   : > { %1780 = vmatprep.mubr.f32.mxu1 %v7764_v6  ;;  %v2259_v6 = vld [vmem:[#allocation10 + $0x478] sm:$0xff]  ;;  %v10164_v17 = vld [vmem:[#allocation41_spill] sm:$0xff] }
 0x1b9   : > { %5696 = vmatmul.mubr.f32.gmra.mrb[62].mxu0 %v7576_v2  ;;  %v8131_v1 = vsel %vm497_vm5, %v8120_v44, 0.0 }
 0x1ba   : > { %5698 = vmatprep.mubr.f32.mxu0 %v7588_v16  ;;  %6233 = vmatpush3.bf16.msra.mxu0 %v6230_v63  ;;  %v2254_v63 = vld [vmem:[#allocation10 + $0x450] sm:$0xff] }
 0x1bb   : > { %1781 = vmatmul.mubr.f32.gmra.mrb[76].mxu1 %v8068_v54  ;;  %6235 = vmatprep.subr.bf16.mxu0 %v6234_v0  ;;  %v2258_v54 = vld [vmem:[#allocation10 + $0x470] sm:$0xff] }
 0x1bc   : > { %1785 = vmatprep.mubr.f32.mxu1 %v7772_v37 }
 0x1bd   : > { %5699 = vmatmul.mubr.f32.gmra.mrb[64].mxu0 %v7597_v22 }
 0x1be   : > { %5701 = vmatprep.mubr.f32.mxu0 %v7611_v40  ;;  %6237 = vmatpush3.bf16.msra.mxu0 %v6234_v0  ;;  %v6246_v0 = vpack.c.bf16 %v2255_v61, %v2254_v63  ;;  %v6250_v63 = vpack.c.bf16 %v2257_v57, %v2256_v59  ;;  %v10162_v61 = vld [vmem:[#allocation58_spill] sm:$0xff]  ;;  %v6254_v57 = vpack.c.bf16 %v2259_v6, %v2258_v54 }
 0x1bf   : > { %1786 = vmatmul.mubr.f32.gmra.mrb[78].mxu1 %v8077_v11  ;;  %6239 = vmatprep.subr.bf16.mxu0 %v6238_v48  ;;  %v8133_v11 = vmax.f32 %v501_v4, 0.0  ;;  %v674_v4 = vrot.slane %v8131_v1, 7  ;;  %v10165_v59 = vld [vmem:[#allocation42_spill] sm:$0xff] }
 0x1c0   : > { %1790 = vmatprep.mubr.f32.mxu1 %v7792_v39  ;;  %v10159_v39 = vld [vmem:[#allocation38_spill] sm:$0xff] }
 0x1c1   : > { %5702 = vmatmul.mubr.f32.gmra.mrb[66].mxu0 %v7622_v52  ;;  %10160 = vst [vmem:[#allocation38_spill] sm:$0xff] %v8133_v11  ;;  %v10169_v54 = vld [vmem:[#allocation46_spill] sm:$0xff] }
 0x1c2   : > { %5704 = vmatprep.mubr.f32.mxu0 %v7636_v9  ;;  %6241 = vmatpush3.bf16.msra.mxu0 %v6238_v48  ;;  %v10161_v48 = vld [vmem:[#allocation40_spill] sm:$0xff] }
 0x1c3   : > { %1791 = vmatmul.mubr.f32.gmra.mrb[80].mxu1 %v8086_v7  ;;  %6243 = vmatprep.subr.bf16.mxu0 %v6242_v31  ;;  %v10163_v7 = vrot.slane %v7801_v56, 7 }
 0x1c4   : > { %1795 = vmatprep.mubr.f32.mxu1 %v7801_v56  ;;  %v10167_v56 = vld [vmem:[#allocation44_spill] sm:$0xff] }
 0x1c5   : > { %5705 = vmatmul.mubr.f32.gmra.mrb[68].mxu0 %v10159_v39  ;;  %v8144_v37 = vsel %vm681_vm4, %v10163_v7, %v673_v43  ;;  %v8160_v7 = vsel %vm681_vm4, %v673_v43, %v674_v4  ;;  %v10171_v43 = vld [vmem:[#allocation49_spill] sm:$0xff] }
 0x1c6   : > { %5707 = vmatprep.mubr.f32.mxu0 %v10161_v48  ;;  %6245 = vmatpush3.bf16.msra.mxu0 %v6242_v31  ;;  %v8151_v31 = vsel %vm497_vm5, %v8133_v11, 0.0 }
 0x1c7   : > { %1796 = vmatmul.mubr.f32.gmra.mrb[82].mxu1 %v8097_v30  ;;  %6247 = vmatprep.subr.bf16.mxu0 %v6246_v0  ;;  %v10166_v30 = vld [vmem:[#allocation43_spill] sm:$0xff] }
 0x1c8   : > { %5268 = vmatprep.mubr.msk.f32.mxu1 %vm497_vm5, %v10162_v61  ;;  %v9985_v61 = vrot.slane %v8151_v31, 7 }
 0x1c9   : > { %5708 = vmatmul.mubr.f32.gmra.mrb[70].mxu0 %v10164_v17 }
 0x1ca   : > { %5710 = vmatprep.mubr.f32.mxu0 %v10165_v59  ;;  %6249 = vmatpush3.bf16.msra.mxu0 %v6246_v0  ;;  %v8173_v6 = vsel %vm681_vm4, %v674_v4, %v9985_v61  ;;  %v10170_v0 = vld [vmem:[#allocation48_spill] sm:$0xff]  ;;  %v10174_v61 = vld [vmem:[#allocation54_spill] sm:$0xff] }
 0x1cb   : > { %1801 = vmatmul.mubr.f32.gmra.mrb[84].mxu1 %v8144_v37  ;;  %6251 = vmatprep.subr.bf16.mxu0 %v6250_v63  ;;  %10168 = vst [vmem:[#allocation40_spill] sm:$0xff] %v8173_v6  ;;  %v10173_v4 = vld [vmem:[#allocation52_spill] sm:$0xff] }
 0x1cc   : > { %5269 = vmatprep.mubr.msk.f32.mxu1 %vm497_vm5, %v8120_v44 }
 0x1cd   : > { %5711 = vmatmul.mubr.f32.gmra.mrb[72].mxu0 %v10166_v30 }
 0x1ce   : > { %5713 = vmatprep.mubr.f32.mxu0 %v10167_v56  ;;  %6253 = vmatpush3.bf16.msra.mxu0 %v6250_v63  ;;  %v10172_v63 = vld [vmem:[#allocation50_spill] sm:$0xff] }
 0x1cf   : > { %1806 = vmatmul.mubr.f32.gmra.mrb[86].mxu1 %v8160_v7  ;;  %6255 = vmatprep.subr.bf16.mxu0 %v6254_v57 }
 0x1d0   : > { %5270 = vmatprep.mubr.msk.f32.mxu1 %vm497_vm5, %v8133_v11 }
 0x1d1   : > { %5714 = vmatmul.mubr.f32.gmra.mrb[74].mxu0 %v10169_v54 }
 0x1d2   : > { %5716 = vmatprep.mubr.f32.mxu0 %v10170_v0  ;;  %6257 = vmatpush3.bf16.msra.mxu0 %v6254_v57  ;;  %v8189_v57 = vld [vmem:[%s7441_s23 + $0x18] sm:$0xff] }
 0x1d3   : > { %1811 = vmatmul.mubr.f32.gmra.mrb[88].mxu1 %v8173_v6  ;;  %6258 = vmatprep.subr.bf16.mxu0 %v10134_v33  ;;  %v10175_v6 = vld [vmem:[#allocation56_spill] sm:$0xff] }
 0x1d4   : > { %2324 = vmatprep.mubr.f32.mxu1 %v7535_v25  ;;  %v10176_v25 = vld [vmem:[#allocation59_spill] sm:$0xff] }
 0x1d5   : > { %5717 = vmatmul.mubr.f32.gmra.mrb[76].mxu0 %v10171_v43 }
 0x1d6   : > { %5719 = vmatprep.mubr.f32.mxu0 %v10172_v63 }
 0x1d7   : > { %2325 = vmatmul.mubr.f32.vlgmr.msra.gmra.mrb[90].mxu1 %v7857_v35  ;;  %v508_v35 = vmax.f32 %v8189_v57, 0.0 }
 0x1d8   : > { %2329 = vmatprep.mubr.f32.mxu1 %v7541_v32  ;;  %v10177_v32 = vld [vmem:[#allocation60_spill] sm:$0xff] }
 0x1d9   : > { %5720 = vmatmul.mubr.f32.gmra.mrb[78].mxu0 %v10173_v4  ;;  %v8205_v11 = vsel %vm498_vm3, %v508_v35, 0.0 }
 0x1da   : > { %5722 = vmatprep.mubr.f32.mxu0 %v10174_v61 }
 0x1db   : > { %2330 = vmatmul.mubr.f32.gmra.mrb[92].mxu1 %v7873_v3  ;;  %v785_v3 = vrot.slane %v8131_v1, 1 }
 0x1dc   : > { %2334 = vmatprep.mubr.f32.mxu1 %v7551_v45  ;;  %v786_v45 = vrot.slane %v8151_v31, 1 }
 0x1dd   : > { %5723 = vmatmul.mubr.f32.gmra.mrb[80].mxu0 %v10175_v6 }
 0x1de   : > { %5725 = vmatprep.mubr.f32.mxu0 %v10176_v25  ;;  %v8220_v1 = vsel %vm790_vm1, %v785_v3, %v786_v45 }
 0x1df   : > { %2335 = vmatmul.mubr.f32.gmra.mrb[94].mxu1 %v7887_v34 }
 0x1e0   : > { %2339 = vmatprep.mubr.f32.mxu1 %v7559_v50  ;;  %v10178_v50 = vrot.slane %v7831_v42, 1 }
 0x1e1   : > { %5726 = vmatmul.mubr.f32.gmra.mrb[82].mxu0 %v7825_v15 }
 0x1e2   : > { %5728 = vmatprep.mubr.f32.mxu0 %v10177_v32  ;;  %v8214_v34 = vsel %vm790_vm1, %v10178_v50, %v785_v3  ;;  %v3351_v3 = vld [vmem:[#allocation12 + $0x18] sm:$0xff] }
 0x1e3   : > { %2340 = vmatmul.mubr.f32.gmra.mrb[96].mxu1 %v7896_v12  ;;  %v787_v12 = vrot.slane %v8205_v11, 1 }
 0x1e4   : > { %2344 = vmatprep.mubr.f32.mxu1 %v7571_v62 }
 0x1e5   : > { %5729 = vmatmul.mubr.f32.gmra.mrb[84].mxu0 %v7852_v51  ;;  %v8229_v62 = vsel %vm790_vm1, %v786_v45, %v787_v12 }
 0x1e6   : > { %5731 = vmatprep.mubr.f32.mxu0 %v7866_v18 }
 0x1e7   : > { %2345 = vmatmul.mubr.f32.gmra.mrb[98].mxu1 %v7908_v53 }
 0x1e8   : > { %2349 = vmatprep.mubr.f32.mxu1 %v7579_v8  ;;  %v10179_v8 = vld [vmem:[#allocation33_spill] sm:$0xff] }
 0x1e9   : > { %5732 = vmatmul.mubr.f32.gmra.mrb[86].mxu0 %v8214_v34 }
 0x1ea   : > { %5734 = vmatprep.mubr.f32.mxu0 %v8220_v1 }
 0x1eb   : > { %2350 = vmatmul.mubr.f32.gmra.mrb[100].mxu1 %v7920_v21  ;;  %v10180_v21 = vld [vmem:[#allocation34_spill] sm:$0xff] }
 0x1ec   : > { %2354 = vmatprep.mubr.f32.mxu1 %v7591_v19 }
 0x1ed   : > { %5735 = vmatmul.mubr.f32.gmra.mrb[88].mxu0 %v8229_v62 }
 0x1ee   : > { %5769 = vmatprep.mubr.f32.mxu0 %v7576_v2 }
 0x1ef   : > { %2355 = vmatmul.mubr.f32.gmra.mrb[102].mxu1 %v7930_v23  ;;  %v10181_v23 = vld [vmem:[#allocation36_spill] sm:$0xff] }
 0x1f0   : > { %2359 = vmatprep.mubr.f32.mxu1 %v10179_v8  ;;  %v10185_v8 = vld [vmem:[#allocation62_spill] sm:$0xff] }
 0x1f1   : > { %5770 = vmatmul.mubr.f32.vlgmr.msra.gmra.mrb[90].mxu0 %v7588_v16 }
 0x1f2   : > { %5772 = vmatprep.mubr.f32.mxu0 %v7597_v22  ;;  %v8239_v42 = vpop.f32.mrb[0].mxu1 }
 0x1f3   : > { %2360 = vmatmul.mubr.f32.gmra.mrb[104].mxu1 %v7940_v58  ;;  %v1282_v53 = vpop.f32.mrb[1].mxu1  ;;  %v10182_v58 = vld [vmem:[#allocation37_spill] sm:$0xff] }
 0x1f4   : > { %2364 = vmatprep.mubr.f32.mxu1 %v10180_v21 }
 0x1f5   : > { %5773 = vmatmul.mubr.f32.gmra.mrb[92].mxu0 %v7611_v40 }
 0x1f6   : > { %5775 = vmatprep.mubr.f32.mxu0 %v7622_v52  ;;  %v8245_v2 = vpop.f32.mrb[2].mxu1 }
 0x1f7   : > { %2365 = vmatmul.mubr.f32.gmra.mrb[106].mxu1 %v7950_v46  ;;  %v1292_v19 = vpop.f32.mrb[3].mxu1 }
 0x1f8   : > { %2369 = vmatprep.mubr.f32.mxu1 %v10181_v23  ;;  %v10186_v19 = vld [vmem:[#allocation47_spill] sm:$0xff]  ;;  %v3352_v23 = vld [vmem:[#allocation12 + $0x20] sm:$0xff] }
 0x1f9   : > { %5776 = vmatmul.mubr.f32.gmra.mrb[94].mxu0 %v7636_v9 }
 0x1fa   : > { %5778 = vmatprep.mubr.f32.mxu0 %v10159_v39  ;;  %v5623_v16 = vpop.f32.mrb[4].mxu1 }
 0x1fb   : > { %2370 = vmatmul.mubr.f32.gmra.mrb[108].mxu1 %v7960_v10  ;;  %v8252_v22 = vpop.f32.mrb[5].mxu1 }
 0x1fc   : > { %2374 = vmatprep.mubr.f32.mxu1 %v10182_v58 }
 0x1fd   : > { %5779 = vmatmul.mubr.f32.gmra.mrb[96].mxu0 %v10161_v48  ;;  %v3349_v48 = vld [vmem:[#allocation12 + $0x8] sm:$0xff] }
 0x1fe   : > { %5781 = vmatprep.mubr.f32.mxu0 %v10164_v17  ;;  %v8257_v40 = vpop.f32.mrb[6].mxu1 }
 0x1ff   : > { %2375 = vmatmul.mubr.f32.gmra.mrb[110].mxu1 %v7970_v38  ;;  %v8260_v52 = vpop.f32.mrb[7].mxu1  ;;  %v3381_v38 = vld [vmem:[#allocation12 + $0x108] sm:$0xff] }
 0x200   : > { %2379 = vmatprep.mubr.f32.mxu1 %v7647_v20 }
 0x201   : > { %5782 = vmatmul.mubr.f32.gmra.mrb[98].mxu0 %v10165_v59 }
 0x202   : > { %5784 = vmatprep.mubr.f32.mxu0 %v10166_v30  ;;  %v8265_v9 = vpop.f32.mrb[8].mxu1  ;;  %v3348_v30 = vld [vmem:[#allocation12] sm:$0xff] }
 0x203   : > { %2380 = vmatmul.mubr.f32.gmra.mrb[112].mxu1 %v7980_v28  ;;  %v1322_v39 = vpop.f32.mrb[9].mxu1 }
 0x204   : > { %2384 = vmatprep.mubr.f32.mxu1 %v7665_v55 }
 0x205   : > { %5785 = vmatmul.mubr.f32.gmra.mrb[100].mxu0 %v10167_v56  ;;  %v3380_v56 = vld [vmem:[#allocation12 + $0x100] sm:$0xff] }
 0x206   : > { %5787 = vmatprep.mubr.f32.mxu0 %v10169_v54  ;;  %v5632_v46 = vpop.f32.mrb[10].mxu1  ;;  %v6306_v28 = vpack.c.bf16 %v3381_v38, %v3380_v56  ;;  %v6259_v54 = vpack.c.bf16 %v3349_v48, %v3348_v30  ;;  %v3382_v56 = vld [vmem:[#allocation12 + $0x110] sm:$0xff] }
 0x207   : > { %2385 = vmatmul.mubr.f32.gmra.mrb[114].mxu1 %v7990_v60  ;;  %v8272_v10 = vpop.f32.mrb[11].mxu1 }
 0x208   : > { %2389 = vmatprep.mubr.f32.mxu1 %v7673_v5  ;;  %6307 = vmatprep.subr.bf16.mxu1 %v6306_v28 }
 0x209   : > { %5788 = vmatmul.mubr.f32.gmra.mrb[102].mxu0 %v10170_v0  ;;  %6309 = vmatpush3.bf16.msra.mxu1 %v6306_v28  ;;  %v10183_v0 = vld [vmem:[#allocation61_spill] sm:$0xff] }
 0x20a   : > { %5790 = vmatprep.mubr.f32.mxu0 %v10171_v43  ;;  %v8277_v20 = vpop.f32.mrb[12].mxu1  ;;  %6260 = vmatpush1.bf16.msra.mxu0 %v6259_v54 }
 0x20b   : > { %2390 = vmatmul.mubr.f32.gmra.mrb[116].mxu1 %v8000_v49  ;;  %v8280_v55 = vpop.f32.mrb[13].mxu1  ;;  %6261 = vmatprep.subr.bf16.mxu0 %v10134_v33 }
 0x20c   : > { %2394 = vmatprep.mubr.f32.mxu1 %v7688_v29 }
 0x20d   : > { %5791 = vmatmul.mubr.f32.gmra.mrb[104].mxu0 %v10172_v63  ;;  %v10184_v63 = vld [vmem:[#allocation45_spill] sm:$0xff] }
 0x20e   : > { %5793 = vmatprep.mubr.f32.mxu0 %v10173_v4  ;;  %v8285_v5 = vpop.f32.mrb[14].mxu1 }
 0x20f   : > { %2395 = vmatmul.mubr.f32.gmra.mrb[118].mxu1 %v8010_v24  ;;  %v1352_v60 = vpop.f32.mrb[15].mxu1 }
 0x210   : > { %v1067_v17 = vpop.f32.mrb[0].mxu0  ;;  %2399 = vmatprep.mubr.f32.mxu1 %v7696_v47  ;;  %v8298_v47 = vld [vmem:[%s7441_s23 + $0x20] sm:$0xff]  ;;  %s6510_s23 = smul.u32 24, %s10118_s28 }
 0x211   : > { %v8289_v49 = vadd.f32 %v1282_v53, %v1067_v17  ;;  %v1069_v29 = vpop.f32.mrb[1].mxu0  ;;  %5794 = vmatmul.mubr.f32.gmra.mrb[106].mxu0 %v10174_v61  ;;  %v509_v21 = vmax.f32 %v8298_v47, 0.0  ;;  %v3355_v17 = vld [vmem:[#allocation12 + $0x38] sm:$0xff] }
 0x212   : > { %5796 = vmatprep.mubr.f32.mxu0 %v10175_v6  ;;  %v5641_v59 = vpop.f32.mrb[16].mxu1  ;;  %v3350_v6 = vld [vmem:[#allocation12 + $0x10] sm:$0xff]  ;;  %s5057_s28 = sadd.s32 %s6511_s6, %s6510_s23 }
 0x213   : > { %2400 = vmatmul.mubr.f32.gmra.mrb[120].mxu1 %v10183_v0  ;;  %v8294_v24 = vpop.f32.mrb[17].mxu1  ;;  %v6262_v50 = vpack.c.bf16 %v3351_v3, %v3350_v6  ;;  %v8323_v46 = vsel %vm498_vm3, %v509_v21, 0.0  ;;  %s5250_s3 = sshll.u32 %s5057_s28, 7 }
 0x214   : > { %v1072_v43 = vpop.f32.mrb[2].mxu0  ;;  %2404 = vmatprep.mubr.f32.mxu1 %v10184_v63  ;;  %v788_v30 = vrot.slane %v8323_v46, 1  ;;  %s9812_s10 = scalar_lea.hbm %s10317_s24, %s5250_s3 }
 0x215   : > { %v8301_v4 = vadd.f32 %v8239_v42, %v1072_v43  ;;  %v1074_v61 = vpop.f32.mrb[3].mxu0  ;;  %5797 = vmatmul.mubr.f32.gmra.mrb[108].mxu0 %v10176_v25  ;;  %v3357_v43 = vld [vmem:[#allocation12 + $0x48] sm:$0xff] }
 0x216   : > { %5799 = vmatprep.mubr.f32.mxu0 %v7825_v15  ;;  %v8306_v45 = vpop.f32.mrb[18].mxu1  ;;  %6263 = vmatpush1.bf16.msra.mxu0 %v6262_v50  ;;  %v3353_v15 = vld [vmem:[#allocation12 + $0x28] sm:$0xff]  ;;  %v10188_v61 = vld [vmem:[#allocation63_spill] sm:$0xff]  ;;  %v3358_v50 = vld [vmem:[#allocation12 + $0x50] sm:$0xff] }
 0x217   : > { %2405 = vmatmul.mubr.f32.gmra.mrb[122].mxu1 %v10185_v8  ;;  %v8309_v53 = vpop.f32.mrb[19].mxu1  ;;  %6264 = vmatprep.subr.bf16.mxu0 %v10134_v33  ;;  %v6265_v58 = vpack.c.bf16 %v3353_v15, %v3352_v23  ;;  %v3359_v8 = vld [vmem:[#allocation12 + $0x58] sm:$0xff]  ;;  %v10192_v15 = vld [vmem:[#allocation64_spill] sm:$0xff] }
 0x218   : > { %v1077_v42 = vpop.f32.mrb[4].mxu0  ;;  %2409 = vmatprep.mubr.f32.mxu1 %v10186_v19  ;;  %v6274_v23 = vpack.c.bf16 %v3359_v8, %v3358_v50  ;;  %v3364_v50 = vld [vmem:[#allocation12 + $0x80] sm:$0xff]  ;;  %v3365_v8 = vld [vmem:[#allocation12 + $0x88] sm:$0xff] }
 0x219   : > { %v1079_v25 = vpop.f32.mrb[5].mxu0  ;;  %5800 = vmatmul.mubr.f32.gmra.mrb[110].mxu0 %v10177_v32  ;;  %v3383_v32 = vld [vmem:[#allocation12 + $0x118] sm:$0xff]  ;;  %v10190_v42 = vld [vmem:[#allocation32_spill] sm:$0xff] }
 0x21a   : > { %5802 = vmatprep.mubr.f32.mxu0 %v7852_v51  ;;  %v8316_v16 = vpop.f32.mrb[20].mxu1  ;;  %v6310_v28 = vpack.c.bf16 %v3383_v32, %v3382_v56  ;;  %6266 = vmatpush1.bf16.msra.mxu0 %v6265_v58  ;;  %v10191_v19 = vrot.slane %v10190_v42, 1  ;;  %v3385_v56 = vld [vmem:[#allocation12 + $0x128] sm:$0xff] }
 0x21b   : > { %2410 = vmatmul.mubr.f32.gmra.mrb[124].mxu1 %v8040_v26  ;;  %v1382_v39 = vpop.f32.mrb[21].mxu1  ;;  %6267 = vmatprep.subr.bf16.mxu0 %v10134_v33  ;;  %v3354_v26 = vld [vmem:[#allocation12 + $0x30] sm:$0xff] }
 0x21c   : > { %v1082_v38 = vpop.f32.mrb[6].mxu0  ;;  %2414 = vmatprep.mubr.f32.mxu1 %v7738_v13  ;;  %6311 = vmatprep.subr.bf16.mxu1 %v6310_v28  ;;  %v6268_v48 = vpack.c.bf16 %v3355_v17, %v3354_v26  ;;  %v3384_v39 = vld [vmem:[#allocation12 + $0x120] sm:$0xff] }
 0x21d   : > { %v8327_v51 = vadd.f32 %v8245_v2, %v1082_v38  ;;  %v1084_v60 = vpop.f32.mrb[7].mxu0  ;;  %5803 = vmatmul.mubr.f32.gmra.mrb[112].mxu0 %v7866_v18  ;;  %v10187_v2 = vld [vmem:[#allocation39_spill] sm:$0xff]  ;;  %6313 = vmatpush3.bf16.msra.mxu1 %v6310_v28  ;;  %v10193_v38 = vld [vmem:[#allocation53_spill] sm:$0xff]  ;;  %v6314_v28 = vpack.c.bf16 %v3385_v56, %v3384_v39  ;;  %v3360_v17 = vld [vmem:[#allocation12 + $0x60] sm:$0xff] }
 0x21e   : > { %5805 = vmatprep.mubr.f32.mxu0 %v8214_v34  ;;  %v5650_v29 = vpop.f32.mrb[22].mxu1  ;;  %v789_v59 = vrot.slane %v10187_v2, 1  ;;  %v3356_v34 = vld [vmem:[#allocation12 + $0x40] sm:$0xff]  ;;  %6269 = vmatpush1.bf16.msra.mxu0 %v6268_v48  ;;  %v3366_v56 = vld [vmem:[#allocation12 + $0x90] sm:$0xff] }
 0x21f   : > { %2415 = vmatmul.mubr.f32.gmra.mrb[126].mxu1 %v8050_v14  ;;  %v8334_v13 = vpop.f32.mrb[23].mxu1  ;;  %v792_v14 = vsel %vm790_vm1, %v787_v12, %v788_v30  ;;  %6270 = vmatprep.subr.bf16.mxu0 %v10134_v33  ;;  %v3361_v29 = vld [vmem:[#allocation12 + $0x68] sm:$0xff] }
 0x220   : > { %v1087_v54 = vpop.f32.mrb[8].mxu0  ;;  %2419 = vmatprep.mubr.f32.mxu1 %v7746_v41  ;;  %v6271_v41 = vpack.c.bf16 %v3357_v43, %v3356_v34  ;;  %v826_v25 = vsel %vm790_vm1, %v789_v59, %v10191_v19  ;;  %6315 = vmatprep.subr.bf16.mxu1 %v6314_v28  ;;  %v6277_v48 = vpack.c.bf16 %v3361_v29, %v3360_v17  ;;  %v10195_v34 = vld [vmem:[#allocation55_spill] sm:$0xff]  ;;  %v3386_v29 = vld [vmem:[#allocation12 + $0x130] sm:$0xff] }
 0x221   : > { %v8339_v18 = vadd.f32 %v8252_v22, %v1087_v54  ;;  %v1089_v0 = vpop.f32.mrb[9].mxu0  ;;  %5806 = vmatmul.mubr.f32.gmra.mrb[114].mxu0 %v8220_v1  ;;  %v791_v1 = vsel %vm790_vm1, %v788_v30, %v789_v59  ;;  %v10194_v59 = vld [vmem:[#allocation65_spill] sm:$0xff]  ;;  %6317 = vmatpush3.bf16.msra.mxu1 %v6314_v28  ;;  %v10198_v19 = vld [vmem:[#allocation67_spill] sm:$0xff] }
 0x222   : > { %5808 = vmatprep.mubr.f32.mxu0 %v8229_v62  ;;  %v8343_v63 = vpop.f32.mrb[24].mxu1  ;;  %v10189_v62 = vld [vmem:[#allocation51_spill] sm:$0xff]  ;;  %6272 = vmatpush1.bf16.msra.mxu0 %v6271_v41 }
 0x223   : > { %2420 = vmatmul.mubr.f32.gmra.mrb[128].mxu1 %v10188_v61  ;;  %v8350_v22 = vpop.f32.mrb[25].mxu1  ;;  %6273 = vmatprep.subr.bf16.mxu0 %v10134_v33  ;;  %v3363_v41 = vld [vmem:[#allocation12 + $0x78] sm:$0xff] }
 0x224   : > { %v1092_v6 = vpop.f32.mrb[10].mxu0  ;;  %2424 = vmatprep.mubr.f32.mxu1 %v10189_v62  ;;  %v10197_v62 = vld [vmem:[#allocation57_spill] sm:$0xff] }
 0x225   : > { %v1094_v3 = vpop.f32.mrb[11].mxu0  ;;  %5809 = vmatmul.mubr.f32.gmra.mrb[116].mxu0 %v792_v14  ;;  %v3362_v14 = vld [vmem:[#allocation12 + $0x70] sm:$0xff] }
 0x226   : > { %5811 = vmatprep.mubr.f32.mxu0 %v791_v1  ;;  %v8356_v12 = vpop.f32.mrb[26].mxu1  ;;  %6275 = vmatpush1.bf16.msra.mxu0 %v6274_v23  ;;  %v6280_v61 = vpack.c.bf16 %v3363_v41, %v3362_v14  ;;  %v10196_v1 = vld [vmem:[#allocation66_spill] sm:$0xff] }
 0x227   : > { %2425 = vmatmul.mubr.f32.gmra.mrb[130].mxu1 %v10192_v15  ;;  %v1412_v58 = vpop.f32.mrb[27].mxu1  ;;  %6276 = vmatprep.subr.bf16.mxu0 %v10134_v33  ;;  %v10199_v15 = vld [vmem:[#allocation58_spill] sm:$0xff] }
 0x228   : > { %v1097_v32 = vpop.f32.mrb[12].mxu0  ;;  %2429 = vmatprep.mubr.f32.mxu1 %v10193_v38 }
 0x229   : > { %v8366_v60 = vadd.f32 %v8260_v52, %v1097_v32  ;;  %v1099_v26 = vpop.f32.mrb[13].mxu0  ;;  %5812 = vmatmul.mubr.f32.gmra.mrb[118].mxu0 %v826_v25  ;;  %v3367_v32 = vld [vmem:[#allocation12 + $0x98] sm:$0xff] }
 0x22a   : > { %v5659_v30 = vpop.f32.mrb[28].mxu1  ;;  %6278 = vmatpush1.bf16.msra.mxu0 %v6277_v48  ;;  %v6286_v28 = vpack.c.bf16 %v3367_v32, %v3366_v56  ;;  %v3388_v56 = vld [vmem:[#allocation12 + $0x140] sm:$0xff] }
 0x22b   : > { %2430 = vmatmul.mubr.f32.gmra.mrb[132].mxu1 %v10194_v59  ;;  %v8369_v54 = vpop.f32.mrb[29].mxu1  ;;  %6279 = vmatprep.subr.bf16.mxu0 %v10134_v33 }
 0x22c   : > { %v1102_v0 = vpop.f32.mrb[14].mxu0  ;;  %2434 = vmatprep.mubr.f32.mxu1 %v10195_v34  ;;  %v3369_v34 = vld [vmem:[#allocation12 + $0xa8] sm:$0xff] }
 0x22d   : > { %v8374_v52 = vadd.f32 %v8257_v40, %v1102_v0  ;;  %v1104_v43 = vpop.f32.mrb[15].mxu0  ;;  %v6283_v40 = vpack.c.bf16 %v3365_v8, %v3364_v50  ;;  %v3368_v0 = vld [vmem:[#allocation12 + $0xa0] sm:$0xff] }
 0x22e   : > { %6281 = vmatpush1.bf16.msra.mxu0 %v6280_v61  ;;  %v10200_v61 = vld [vmem:[#allocation38_spill] sm:$0xff] }
 0x22f   : > { %2435 = vmatmul.mubr.f32.gmra.mrb[134].mxu1 %v10196_v1  ;;  %6282 = vmatprep.subr.bf16.mxu0 %v10134_v33  ;;  %v3370_v1 = vld [vmem:[#allocation12 + $0xb0] sm:$0xff] }
 0x230   : > { %v1107_v6 = vpop.f32.mrb[16].mxu0  ;;  %2439 = vmatprep.mubr.f32.mxu1 %v10197_v62 }
 0x231   : > { %v1109_v3 = vpop.f32.mrb[17].mxu0  ;;  %v3371_v6 = vld [vmem:[#allocation12 + $0xb8] sm:$0xff] }
 0x232   : > { %v8379_v42 = vpop.f32.mrb[30].mxu1  ;;  %6284 = vmatpush1.bf16.msra.mxu0 %v6283_v40  ;;  %v6292_v3 = vpack.c.bf16 %v3371_v6, %v3370_v1  ;;  %v3393_v6 = vld [vmem:[#allocation12 + $0x168] sm:$0xff] }
 0x233   : > { %2440 = vmatmul.mubr.f32.gmra.mrb[136].mxu1 %v10198_v19  ;;  %v1669_v25 = vpop.f32.mrb[31].mxu1  ;;  %6285 = vmatprep.subr.bf16.mxu0 %v10134_v33  ;;  %v677_v19 = vrot.slane %v8323_v46, 7 }
 0x234   : > { %v1112_v23 = vpop.f32.mrb[18].mxu0  ;;  %5271 = vmatprep.mubr.msk.f32.mxu1 %vm497_vm5, %v10199_v15  ;;  %v3372_v15 = vld [vmem:[#allocation12 + $0xc0] sm:$0xff] }
 0x235   : > { %v8387_v58 = vadd.f32 %v8265_v9, %v1112_v23  ;;  %v1114_v39 = vpop.f32.mrb[19].mxu0  ;;  %v3387_v9 = vld [vmem:[#allocation12 + $0x138] sm:$0xff] }
 0x236   : > { %v8389_v38 = vpop.f32.mrb[32].mxu1  ;;  %v6318_v59 = vpack.c.bf16 %v3387_v9, %v3386_v29  ;;  %6287 = vmatpush1.bf16.msra.mxu0 %v6286_v28  ;;  %v3373_v39 = vld [vmem:[#allocation12 + $0xc8] sm:$0xff]  ;;  %v3374_v29 = vld [vmem:[#allocation12 + $0xd0] sm:$0xff]  ;;  %v3375_v9 = vld [vmem:[#allocation12 + $0xd8] sm:$0xff] }
 0x237   : > { %2445 = vmatmul.mubr.f32.gmra.mrb[138].mxu1 %v8144_v37  ;;  %v1674_v26 = vpop.f32.mrb[33].mxu1  ;;  %v6289_v37 = vpack.c.bf16 %v3369_v34, %v3368_v0  ;;  %6288 = vmatprep.subr.bf16.mxu0 %v10134_v33  ;;  %v6295_v57 = vpack.c.bf16 %v3373_v39, %v3372_v15  ;;  %v3389_v28 = vld [vmem:[#allocation12 + $0x148] sm:$0xff]  ;;  %v6298_v0 = vpack.c.bf16 %v3375_v9, %v3374_v29  ;;  %v3391_v34 = vld [vmem:[#allocation12 + $0x158] sm:$0xff]  ;;  %v3394_v39 = vld [vmem:[#allocation12 + $0x170] sm:$0xff] }
 0x238   : > { %v1117_v17 = vpop.f32.mrb[20].mxu0  ;;  %5272 = vmatprep.mubr.msk.f32.mxu1 %vm497_vm5, %v8120_v44  ;;  %6319 = vmatprep.subr.bf16.mxu1 %v6318_v59  ;;  %v676_v44 = vrot.slane %v8205_v11, 7  ;;  %v10202_v11 = vrot.slane %v8151_v31, 7  ;;  %v6322_v31 = vpack.c.bf16 %v3389_v28, %v3388_v56  ;;  %v3395_v56 = vld [vmem:[#allocation12 + $0x178] sm:$0xff]  ;;  %v10205_v28 = vrot.slane %v10187_v2, 7 }
 0x239   : > { %v8397_v30 = vadd.f32 %v8272_v10, %v1117_v17  ;;  %v1119_v48 = vpop.f32.mrb[21].mxu0  ;;  %6321 = vmatpush3.bf16.msra.mxu1 %v6318_v59 }
 0x23a   : > { %v1677_v43 = vpop.f32.mrb[34].mxu1  ;;  %6290 = vmatpush1.bf16.msra.mxu0 %v6289_v37  ;;  %v684_v40 = vsel %vm681_vm4, %v10202_v11, %v676_v44  ;;  %6323 = vmatprep.subr.bf16.mxu1 %v6322_v31  ;;  %v3390_v48 = vld [vmem:[#allocation12 + $0x150] sm:$0xff]  ;;  %v10203_v37 = vld [vmem:[#allocation35_spill] sm:$0xff] }
 0x23b   : > { %2450 = vmatmul.mubr.f32.gmra.mrb[140].mxu1 %v8160_v7  ;;  %v1679_v14 = vpop.f32.mrb[35].mxu1  ;;  %v10201_v7 = vld [vmem:[#allocation40_spill] sm:$0xff]  ;;  %6291 = vmatprep.subr.bf16.mxu0 %v10134_v33  ;;  %v3378_v11 = vld [vmem:[#allocation12 + $0xf0] sm:$0xff] }
 0x23c   : > { %v1122_v41 = vpop.f32.mrb[22].mxu0  ;;  %5273 = vmatprep.mubr.msk.f32.mxu1 %vm497_vm5, %v10200_v61  ;;  %v10204_v14 = vmax.f32 %v10203_v37, 0.0  ;;  %v3377_v61 = vld [vmem:[#allocation12 + $0xe8] sm:$0xff] }
 0x23d   : > { %v1124_v10 = vpop.f32.mrb[23].mxu0  ;;  %6325 = vmatpush3.bf16.msra.mxu1 %v6322_v31  ;;  %v3376_v41 = vld [vmem:[#allocation12 + $0xe0] sm:$0xff] }
 0x23e   : > { %v8405_v62 = vpop.f32.mrb[36].mxu1  ;;  %6293 = vmatpush1.bf16.msra.mxu0 %v6292_v3  ;;  %v6301_v1 = vpack.c.bf16 %v3377_v61, %v3376_v41 }
 0x23f   : > { %2455 = vmatmul.mubr.f32.gmra.mrb[142].mxu1 %v10201_v7  ;;  %v1684_v50 = vpop.f32.mrb[37].mxu1  ;;  %6294 = vmatprep.subr.bf16.mxu0 %v10134_v33 }
 0x240   : > { %v1127_v8 = vpop.f32.mrb[24].mxu0  ;;  %5274 = vmatprep.mubr.msk.f32.mxu1 %vm498_vm3, %v508_v35 }
 0x241   : > { %v8419_v25 = vadd.f32 %v8280_v55, %v1127_v8  ;;  %v1129_v23 = vpop.f32.mrb[25].mxu0  ;;  %v683_v55 = vsel %vm681_vm4, %v676_v44, %v677_v19  ;;  %v3392_v44 = vld [vmem:[#allocation12 + $0x160] sm:$0xff] }
 0x242   : > { %v8421_v32 = vpop.f32.mrb[38].mxu1  ;;  %6296 = vmatpush1.bf16.msra.mxu0 %v6295_v57  ;;  %v6330_v7 = vpack.c.bf16 %v3393_v6, %v3392_v44 }
 0x243   : > { %2460 = vmatmul.mubr.f32.gmra.mrb[144].mxu1 %v684_v40  ;;  %v1689_v35 = vpop.f32.mrb[39].mxu1  ;;  %6297 = vmatprep.subr.bf16.mxu0 %v10134_v33  ;;  %v3379_v40 = vld [vmem:[#allocation12 + $0xf8] sm:$0xff] }
 0x244   : > { %v1132_v26 = vpop.f32.mrb[26].mxu0  ;;  %5275 = vmatprep.mubr.msk.f32.mxu1 %vm498_vm3, %v509_v21  ;;  %v6326_v21 = vpack.c.bf16 %v3391_v34, %v3390_v48  ;;  %v6304_v15 = vpack.c.bf16 %v3379_v40, %v3378_v11  ;;  %v6334_v35 = vpack.c.bf16 %v3395_v56, %v3394_v39  ;;  %v3896_v34 = vld [vmem:[#allocation12 + $0x288] sm:$0xff] }
 0x245   : > { %v8431_v46 = vadd.f32 %v8277_v20, %v1132_v26  ;;  %v1134_v17 = vpop.f32.mrb[27].mxu0 }
 0x246   : > { %v1692_v59 = vpop.f32.mrb[40].mxu1  ;;  %6327 = vmatprep.subr.bf16.mxu1 %v6326_v21  ;;  %6299 = vmatpush1.bf16.msra.mxu0 %v6298_v0  ;;  %v3895_v0 = vld [vmem:[#allocation12 + $0x280] sm:$0xff] }
 0x247   : > { %2465 = vmatmul.mubr.f32.gmra.mrb[146].mxu1 %v683_v55  ;;  %v1694_v47 = vpop.f32.mrb[41].mxu1  ;;  %6300 = vmatprep.subr.bf16.mxu0 %v10134_v33 }
 0x248   : > { %v1137_v43 = vpop.f32.mrb[28].mxu0  ;;  %5276 = vmatprep.mubr.msk.f32.mxu1 %vm498_vm3, %v10204_v14  ;;  %6329 = vmatpush3.bf16.msra.mxu1 %v6326_v21  ;;  %v8460_v21 = vpack.c.bf16 %v3896_v34, %v3895_v0 }
 0x249   : > { %v1139_v20 = vpop.f32.mrb[29].mxu0  ;;  %6331 = vmatprep.subr.bf16.mxu1 %v6330_v7 }
 0x24a   : > { %v8438_v10 = vpop.f32.mrb[42].mxu1  ;;  %6302 = vmatpush1.bf16.msra.mxu0 %v6301_v1 }
 0x24b   : > { %v1699_v3 = vpop.f32.mrb[43].mxu1  ;;  %6303 = vmatprep.subr.bf16.mxu0 %v10134_v33 }
 0x24c   : > { %v1142_v50 = vpop.f32.mrb[30].mxu0  ;;  %6333 = vmatpush3.bf16.msra.mxu1 %v6330_v7 }
 0x24d   : > { %v8442_v8 = vadd.f32 %v8285_v5, %v1142_v50  ;;  %v1144_v36 = vpop.f32.mrb[31].mxu0  ;;  %v682_v5 = vsel %vm681_vm4, %v677_v19, %v10205_v28  ;;  %6335 = vmatprep.subr.bf16.mxu1 %v6334_v35 }
 0x24e   : > { %v8444_v23 = vpop.f32.mrb[44].mxu1  ;;  %2470 = vmatmul.mubr.f32.gmra.mrb[148].mxu1 %v682_v5  ;;  %6305 = vmatpush1.bf16.msra.mxu0 %v6304_v15 }
 0x24f   : > { %v1704_v57 = vpop.f32.mrb[45].mxu1  ;;  %6387 = vmatprep.subr.bf16.mxu0 %v8460_v21 }
 0x250   : > { %v1147_v31 = vpop.f32.mrb[32].mxu0  ;;  %6337 = vmatpush3.bf16.msra.mxu1 %v6334_v35 }
 0x251   : > { %v8452_v26 = vadd.f32 %v8294_v24, %v1147_v31  ;;  %v1149_v55 = vpop.f32.mrb[33].mxu0  ;;  %6338 = vmatprep.subr.bf16.mxu1 %v10134_v33 }
 0x252   : > { %v1707_v17 = vpop.f32.mrb[46].mxu1 }
 0x253   : > { %v1709_v29 = vpop.f32.mrb[47].mxu1 }
 0x254   : > { %v1152_v9 = vpop.f32.mrb[34].mxu0 }
 0x255   : > { %v1154_v48 = vpop.f32.mrb[35].mxu0 }
 0x256   : > { %v8455_v2 = vpop.f32.mrb[48].mxu1 }
 0x257   : > { %v1714_v59 = vpop.f32.mrb[49].mxu1 }
 0x258   : > { %v1157_v19 = vpop.f32.mrb[36].mxu0 }
 0x259   : > { %v8458_v47 = vadd.f32 %v8309_v53, %v1157_v19  ;;  %v1159_v24 = vpop.f32.mrb[37].mxu0 }
 0x25a   : > { %v8462_v43 = vpop.f32.mrb[50].mxu1 }
 0x25b   : > { %v1719_v37 = vpop.f32.mrb[51].mxu1 }
 0x25c   : > { %v1162_v14 = vpop.f32.mrb[38].mxu0 }
 0x25d   : > { %v8466_v20 = vadd.f32 %v8306_v45, %v1162_v14  ;;  %v1164_v41 = vpop.f32.mrb[39].mxu0 }
 0x25e   : > { %v1722_v61 = vpop.f32.mrb[52].mxu1 }
 0x25f   : > { %v1724_v44 = vpop.f32.mrb[53].mxu1 }
 0x260   : > { %v1167_v1 = vpop.f32.mrb[40].mxu0 }
 0x261   : > { %v1169_v6 = vpop.f32.mrb[41].mxu0 }
 0x262   : > { %v8468_v3 = vpop.f32.mrb[54].mxu1 }
 0x263   : > { %v1729_v53 = vpop.f32.mrb[55].mxu1 }
 0x264   : > { %v1172_v7 = vpop.f32.mrb[42].mxu0 }
 0x265   : > { %v8471_v50 = vadd.f32 %v8316_v16, %v1172_v7  ;;  %v1174_v36 = vpop.f32.mrb[43].mxu0 }
 0x266   : > { %v8473_v11 = vpop.f32.mrb[56].mxu1 }
 0x267   : > { %v1734_v40 = vpop.f32.mrb[57].mxu1 }
 0x268   : > { %v1177_v15 = vpop.f32.mrb[44].mxu0 }
 0x269   : > { %v8476_v45 = vadd.f32 %v8334_v13, %v1177_v15  ;;  %v1179_v39 = vpop.f32.mrb[45].mxu0 }
 0x26a   : > { %v1737_v56 = vpop.f32.mrb[58].mxu1 }
 0x26b   : > { %v1739_v57 = vpop.f32.mrb[59].mxu1 }
 0x26c   : > { %v1182_v28 = vpop.f32.mrb[46].mxu0 }
 0x26d   : > { %v1184_v5 = vpop.f32.mrb[47].mxu0 }
 0x26e   : > { %v8478_v35 = vpop.f32.mrb[60].mxu1 }
 0x26f   : > { %v1744_v31 = vpop.f32.mrb[61].mxu1 }
 0x270   : > { %v1187_v55 = vpop.f32.mrb[48].mxu0 }
 0x271   : > { %v8481_v16 = vadd.f32 %v8350_v22, %v1187_v55  ;;  %v1189_v17 = vpop.f32.mrb[49].mxu0 }
 0x272   : > { %v8483_v29 = vpop.f32.mrb[62].mxu1 }
 0x273   : > { %v1749_v9 = vpop.f32.mrb[63].mxu1 }
 0x274   : > { %v1192_v48 = vpop.f32.mrb[50].mxu0 }
 0x275   : > { %v8486_v13 = vadd.f32 %v8343_v63, %v1192_v48  ;;  %v1194_v59 = vpop.f32.mrb[51].mxu0 }
 0x276   : > { %v1752_v19 = vpop.f32.mrb[64].mxu1 }
 0x277   : > { %v1754_v0 = vpop.f32.mrb[65].mxu1 }
 0x278   : > { %v1197_v34 = vpop.f32.mrb[52].mxu0 }
 0x279   : > { %v1199_v24 = vpop.f32.mrb[53].mxu0 }
 0x27a   : > { %v8488_v37 = vpop.f32.mrb[66].mxu1 }
 0x27b   : > { %v1759_v14 = vpop.f32.mrb[67].mxu1 }
 0x27c   : > { %v1202_v41 = vpop.f32.mrb[54].mxu0 }
 0x27d   : > { %v8491_v22 = vadd.f32 %v8356_v12, %v1202_v41  ;;  %v1204_v61 = vpop.f32.mrb[55].mxu0 }
 0x27e   : > { %v8493_v44 = vpop.f32.mrb[68].mxu1 }
 0x27f   : > { %v1764_v1 = vpop.f32.mrb[69].mxu1 }
 0x280   : > { %v1207_v6 = vpop.f32.mrb[56].mxu0 }
 0x281   : > { %v8496_v63 = vadd.f32 %v8369_v54, %v1207_v6  ;;  %v1209_v53 = vpop.f32.mrb[57].mxu0 }
 0x282   : > { %v1767_v7 = vpop.f32.mrb[70].mxu1 }
 0x283   : > { %v1769_v36 = vpop.f32.mrb[71].mxu1 }
 0x284   : > { %v1212_v40 = vpop.f32.mrb[58].mxu0 }
 0x285   : > { %v1214_v15 = vpop.f32.mrb[59].mxu0 }
 0x286   : > { %v8498_v39 = vpop.f32.mrb[72].mxu1 }
 0x287   : > { %v1774_v56 = vpop.f32.mrb[73].mxu1 }
 0x288   : > { %v5694_v57 = vpop.f32.mrb[60].mxu0 }
 0x289   : > { %v1888_v12 = vadd.f32 %v5694_v57, %v8389_v38  ;;  %v1882_v28 = vpop.f32.mrb[61].mxu0 }
 0x28a   : > { %v1883_v5 = vadd.f32 %v1882_v28, %v8379_v42  ;;  %v8502_v31 = vpop.f32.mrb[74].mxu1 }
 0x28b   : > { %v8505_v55 = vadd.f32 %v1888_v12, %v8301_v4  ;;  %v1779_v54 = vpop.f32.mrb[75].mxu1 }
 0x28c   : > { %v8508_v17 = vadd.f32 %v1883_v5, %v8289_v49  ;;  %v5697_v9 = vpop.f32.mrb[62].mxu0 }
 0x28d   : > { %v1898_v48 = vadd.f32 %v5697_v9, %v8405_v62  ;;  %v1892_v59 = vpop.f32.mrb[63].mxu0 }
 0x28e   : > { %v1782_v19 = vpop.f32.mrb[76].mxu1 }
 0x28f   : > { %v8512_v0 = vadd.f32 %v1898_v48, %v8327_v51  ;;  %v1784_v38 = vpop.f32.mrb[77].mxu1 }
 0x290   : > { %v5700_v34 = vpop.f32.mrb[64].mxu0 }
 0x291   : > { %v1902_v42 = vpop.f32.mrb[65].mxu0 }
 0x292   : > { %v1903_v24 = vadd.f32 %v1902_v42, %v8421_v32  ;;  %v8515_v14 = vpop.f32.mrb[78].mxu1 }
 0x293   : > { %v1789_v4 = vpop.f32.mrb[79].mxu1 }
 0x294   : > { %v8518_v41 = vadd.f32 %v1903_v24, %v8339_v18  ;;  %v5703_v49 = vpop.f32.mrb[66].mxu0 }
 0x295   : > { %v1918_v61 = vadd.f32 %v5703_v49, %v8444_v23  ;;  %v1912_v62 = vpop.f32.mrb[67].mxu0 }
 0x296   : > { %v1913_v1 = vadd.f32 %v1912_v62, %v8438_v10  ;;  %v1792_v6 = vpop.f32.mrb[80].mxu1 }
 0x297   : > { %v8523_v51 = vadd.f32 %v1918_v61, %v8374_v52  ;;  %v1794_v53 = vpop.f32.mrb[81].mxu1 }
 0x298   : > { %v8526_v7 = vadd.f32 %v1913_v1, %v8366_v60  ;;  %v5706_v32 = vpop.f32.mrb[68].mxu0 }
 0x299   : > { %v1928_v36 = vadd.f32 %v5706_v32, %v8455_v2  ;;  %v1922_v40 = vpop.f32.mrb[69].mxu0 }
 0x29a   : > { %v1797_v18 = vpop.f32.mrb[82].mxu1 }
 0x29b   : > { %v8530_v15 = vadd.f32 %v1928_v36, %v8387_v58  ;;  %v1799_v23 = vpop.f32.mrb[83].mxu1 }
 0x29c   : > { %v5709_v56 = vpop.f32.mrb[70].mxu0 }
 0x29d   : > { %v1932_v57 = vpop.f32.mrb[71].mxu0 }
 0x29e   : > { %v1933_v10 = vadd.f32 %v1932_v57, %v8462_v43  ;;  %v1802_v12 = vpop.f32.mrb[84].mxu1 }
 0x29f   : > { %v1804_v52 = vpop.f32.mrb[85].mxu1 }
 0x2a0   : > { %v8534_v28 = vadd.f32 %v1933_v10, %v8397_v30  ;;  %v5712_v60 = vpop.f32.mrb[72].mxu0 }
 0x2a1   : > { %v1948_v5 = vadd.f32 %v5712_v60, %v8473_v11  ;;  %v1942_v54 = vpop.f32.mrb[73].mxu0 }
 0x2a2   : > { %v1943_v2 = vadd.f32 %v1942_v54, %v8468_v3  ;;  %v1807_v9 = vpop.f32.mrb[86].mxu1 }
 0x2a3   : > { %v8539_v58 = vadd.f32 %v1948_v5, %v8431_v46  ;;  %v1809_v48 = vpop.f32.mrb[87].mxu1 }
 0x2a4   : > { %v8542_v59 = vadd.f32 %v1943_v2, %v8419_v25  ;;  %v5715_v43 = vpop.f32.mrb[74].mxu0 }
 0x2a5   : > { %v1958_v19 = vadd.f32 %v5715_v43, %v8478_v35  ;;  %v1952_v38 = vpop.f32.mrb[75].mxu0 }
 0x2a6   : > { %v1812_v30 = vpop.f32.mrb[88].mxu1 }
 0x2a7   : > { %v8546_v34 = vadd.f32 %v1958_v19, %v8442_v8  ;;  %v1814_v11 = vpop.f32.mrb[89].mxu1 }
 0x2a8   : > { %v5718_v42 = vpop.f32.mrb[76].mxu0 }
 0x2a9   : > { %v1962_v24 = vpop.f32.mrb[77].mxu0  ;;  %v8582_v42 = vstv %s2849_s27 }
 0x2aa   : > { %v1963_v3 = vadd.f32 %v1962_v24, %v8483_v29  ;;  %v2326_v4 = vpop.f32.mrb[90].mxu1  ;;  %vm2851_vm6 = vcmp.le.s32.totalorder %v8582_v42, 0  ;;  %vm2852_vm9 = vcmp.le.s32.totalorder %v8582_v42, 1  ;;  %vm2853_vm12 = vcmp.le.s32.totalorder %v8582_v42, 2 }
 0x2ab   : > { %v2328_v46 = vpop.f32.mrb[91].mxu1  ;;  %vm2854_vm15 = vcmp.le.s32.totalorder %v8582_v42, 3  ;;  %vm2855_vm3 = vcmp.le.s32.totalorder %v8582_v42, 4 }
 0x2ac   : > { %v8550_v49 = vadd.f32 %v1963_v3, %v8452_v26  ;;  %v5721_v25 = vpop.f32.mrb[78].mxu0  ;;  %v8592_v46 = vld [vmem:[%s10206_s2] ss:$0 sm:$0xff] }
 0x2ad   : > { %v1978_v61 = vadd.f32 %v5721_v25, %v8493_v44  ;;  %v1972_v62 = vpop.f32.mrb[79].mxu0 }
 0x2ae   : > { %v1973_v35 = vadd.f32 %v1972_v62, %v8488_v37  ;;  %v2331_v1 = vpop.f32.mrb[92].mxu1 }
 0x2af   : > { %v8555_v8 = vadd.f32 %v1978_v61, %v8466_v20  ;;  %v2333_v53 = vpop.f32.mrb[93].mxu1 }
 0x2b0   : > { %v8558_v32 = vadd.f32 %v1973_v35, %v8458_v47  ;;  %v5724_v29 = vpop.f32.mrb[80].mxu0 }
 0x2b1   : > { %v1988_v36 = vadd.f32 %v5724_v29, %v8498_v39  ;;  %v1982_v40 = vpop.f32.mrb[81].mxu0 }
 0x2b2   : > { %v2336_v26 = vpop.f32.mrb[94].mxu1 }
 0x2b3   : > { %v8562_v18 = vadd.f32 %v1988_v36, %v8471_v50  ;;  %v2338_v44 = vpop.f32.mrb[95].mxu1 }
 0x2b4   : > { %v5727_v23 = vpop.f32.mrb[82].mxu0 }
 0x2b5   : > { %v1992_v56 = vpop.f32.mrb[83].mxu0 }
 0x2b6   : > { %v1993_v37 = vadd.f32 %v1992_v56, %v8502_v31  ;;  %v2341_v57 = vpop.f32.mrb[96].mxu1  ;;  %v9989_v56 = vmov 0.0  }
 0x2b7   : > { %v2343_v20 = vpop.f32.mrb[97].mxu1 }
 0x2b8   : > { %v8566_v10 = vadd.f32 %v1993_v37, %v8476_v45  ;;  %v5730_v47 = vpop.f32.mrb[84].mxu0  ;;  %v8608_v37 = vrot.slane %v9989_v56, 1 }
 0x2b9   : > { %v2008_v52 = vadd.f32 %v5730_v47, %v1792_v6  ;;  %v2002_v39 = vpop.f32.mrb[85].mxu0 }
 0x2ba   : > { %v2003_v60 = vadd.f32 %v2002_v39, %v8515_v14  ;;  %v2346_v5 = vpop.f32.mrb[98].mxu1  ;;  %v3864_v39 = vld [vmem:[#allocation12 + $0x188] sm:$0xff] }
 0x2bb   : > { %v8570_v50 = vadd.f32 %v2008_v52, %v8486_v13  ;;  %v2348_v54 = vpop.f32.mrb[99].mxu1  ;;  %v8612_v52 = vrot.slane %v9989_v56, 7 }
 0x2bc   : > { %v8573_v2 = vadd.f32 %v2003_v60, %v8481_v16  ;;  %v5733_v31 = vpop.f32.mrb[86].mxu0  ;;  %v8584_v16 = vstv %s2861_s1  ;;  %v3897_v60 = vld [vmem:[#allocation12 + $0x290] sm:$0xff]  ;;  %v3898_v54 = vld [vmem:[#allocation12 + $0x298] sm:$0xff] }
 0x2bd   : > { %v2018_v48 = vadd.f32 %v5733_v31, %v1802_v12  ;;  %v2012_v43 = vpop.f32.mrb[87].mxu0  ;;  %vm2863_vm7 = vcmp.gt.s32.totalorder %v8584_v16, 0  ;;  %vm2864_vm10 = vcmp.gt.s32.totalorder %v8584_v16, 1  ;;  %vm2865_vm13 = vcmp.gt.s32.totalorder %v8584_v16, 2 }
 0x2be   : > { %v2351_v45 = vpop.f32.mrb[100].mxu1  ;;  %vm8600_vm8 = vmand %vm2851_vm6, %vm2863_vm7  ;;  %vm2866_vm0 = vcmp.gt.s32.totalorder %v8584_v16, 3  ;;  %vm2867_vm5 = vcmp.gt.s32.totalorder %v8584_v16, 4  ;;  %vm2856_vm7 = vcmp.le.s32.totalorder %v8582_v42, 5 }
 0x2bf   : > { %v8576_v19 = vadd.f32 %v2018_v48, %v8491_v22  ;;  %v2353_v38 = vpop.f32.mrb[101].mxu1  ;;  %vm8629_vm11 = vmand %vm2852_vm9, %vm2864_vm10  ;;  %vm2857_vm10 = vcmp.le.s32.totalorder %v8582_v42, 6 }
 0x2c0   : > { %v5736_v6 = vpop.f32.mrb[88].mxu0  ;;  %vm8685_vm14 = vmand %vm2853_vm12, %vm2865_vm13  ;;  %vm2869_vm12 = vcmp.gt.s32.totalorder %v8584_v16, 6 }
 0x2c1   : > { %v2022_v14 = vpop.f32.mrb[89].mxu0  ;;  %vm8731_vm2 = vmand %vm2854_vm15, %vm2866_vm0  ;;  %vm2858_vm15 = vcmp.le.s32.totalorder %v8582_v42, 7  ;;  %vm2870_vm0 = vcmp.gt.s32.totalorder %v8584_v16, 7 }
 0x2c2   : > { %v2023_v30 = vadd.f32 %v2022_v14, %v1807_v9  ;;  %v8580_v11 = vpop.f32.mrb[102].mxu1  ;;  %vm8813_vm6 = vmand %vm2855_vm3, %vm2867_vm5  ;;  %vm2859_vm5 = vcmp.le.s32.totalorder %v8582_v42, 8 }
 0x2c3   : > { %v2358_v13 = vpop.f32.mrb[103].mxu1  ;;  %vm8979_vm13 = vmand %vm2857_vm10, %vm2869_vm12  ;;  %vm2860_vm10 = vcmp.le.s32.totalorder %v8582_v42, 9  ;;  %vm2872_vm12 = vcmp.gt.s32.totalorder %v8584_v16, 9 }
 0x2c4   : > { %v8587_v12 = vadd.f32 %v2023_v30, %v8496_v63  ;;  %v5771_v24 = vpop.f32.mrb[90].mxu0  ;;  %vm9061_vm3 = vmand %vm2858_vm15, %vm2870_vm0 }
 0x2c5   : > { %v2547_v3 = vadd.f32 %v5771_v24, %v2331_v1  ;;  %v2541_v22 = vpop.f32.mrb[91].mxu0  ;;  %vm9211_vm15 = vmand %vm2860_vm10, %vm2872_vm12 }
 0x2c6   : > { %v2542_v25 = vadd.f32 %v2541_v22, %v2326_v4  ;;  %v2361_v9 = vpop.f32.mrb[104].mxu1 }
 0x2c7   : > { %v2721_v61 = vadd.f32 %v2547_v3, %v8505_v55  ;;  %v2363_v62 = vpop.f32.mrb[105].mxu1 }
 0x2c8   : > { %v2720_v63 = vadd.f32 %v2542_v25, %v8508_v17  ;;  %v5774_v35 = vpop.f32.mrb[92].mxu0 }
 0x2c9   : > { %v2818_v1 = vadd.f32 %v8592_v46, %v2721_v61  ;;  %v2557_v53 = vadd.f32 %v5774_v35, %v2341_v57  ;;  %v2551_v29 = vpop.f32.mrb[93].mxu0  ;;  %v3863_v57 = vld [vmem:[#allocation12 + $0x180] sm:$0xff]  ;;  %v6390_v61 = vpack.c.bf16 %v3898_v54, %v3897_v60  ;;  %v3868_v60 = vld [vmem:[#allocation12 + $0x1a8] sm:$0xff] }
 0x2ca   : > { %v2817_v36 = vadd.f32 %v8592_v46, %v2720_v63  ;;  %v2366_v4 = vpop.f32.mrb[106].mxu1  ;;  %v6339_v25 = vpack.c.bf16 %v3864_v39, %v3863_v57  ;;  %v3866_v29 = vld [vmem:[#allocation12 + $0x198] sm:$0xff] }
 0x2cb   : > { %v2917_v55 = vmax.f32 %v2818_v1, 0.0  ;;  %v2723_v26 = vadd.f32 %v2557_v53, %v8512_v0  ;;  %v2368_v44 = vpop.f32.mrb[107].mxu1  ;;  %v3865_v53 = vld [vmem:[#allocation12 + $0x190] sm:$0xff] }
 0x2cc   : > { %v2916_v17 = vmax.f32 %v2817_v36, 0.0  ;;  %v5777_v23 = vpop.f32.mrb[94].mxu0  ;;  %v6342_v40 = vpack.c.bf16 %v3866_v29, %v3865_v53 }
 0x2cd   : > { %v2820_v20 = vadd.f32 %v8592_v46, %v2723_v26  ;;  %v2561_v47 = vpop.f32.mrb[95].mxu0  ;;  %v8616_v0 = vsel %vm8600_vm8, %v2917_v55, 0.0  ;;  %v3900_v23 = vld [vmem:[#allocation12 + $0x2a8] sm:$0xff] }
 0x2ce   : > { %v2562_v31 = vadd.f32 %v2561_v47, %v2346_v5  ;;  %v8620_v48 = vsel %vm8600_vm8, %v2916_v17, 0.0  ;;  %5277 = vmatprep.mubr.msk.f32.mxu0 %vm8600_vm8, %v2916_v17  ;;  %v3187_v43 = vrot.slane %v8616_v0, 1  ;;  %v2371_v45 = vpop.f32.mrb[108].mxu1  ;;  %v3097_v5 = vrot.slane %v8616_v0, 7  ;;  %v3899_v17 = vld [vmem:[#allocation12 + $0x2a0] sm:$0xff] }
 0x2cf   : > { %10209 = vst [vmem:[#allocation41_spill] sm:$0xff] %v8620_v48  ;;  %v8634_v6 = vmax.f32 %v2820_v20, 0.0  ;;  %v3096_v14 = vrot.slane %v8620_v48, 7  ;;  %v9988_v30 = vrot.slane %v8620_v48, 1  ;;  %v2373_v13 = vpop.f32.mrb[109].mxu1 }
 0x2d0   : > { %v2724_v24 = vadd.f32 %v2562_v31, %v8518_v41  ;;  %v5780_v3 = vpop.f32.mrb[96].mxu0  ;;  %v3243_v22 = vsel %vm790_vm1, %v3187_v43, %v8608_v37  ;;  %v3902_v13 = vld [vmem:[#allocation12 + $0x2b8] sm:$0xff]  ;;  %v3153_v29 = vsel %vm681_vm4, %v3097_v5, %v8612_v52 }
 0x2d1   : > { %v2577_v62 = vadd.f32 %v5780_v3, %v2361_v9  ;;  %v2571_v63 = vpop.f32.mrb[97].mxu0  ;;  %v3155_v35 = vsel %vm681_vm4, %v8612_v52, %v3096_v14  ;;  %v3244_v1 = vsel %vm790_vm1, %v9988_v30, %v3187_v43  ;;  %v8652_v41 = vsel %vm8629_vm11, %v8634_v6, 0.0 }
 0x2d2   : > { %v2821_v36 = vadd.f32 %v8592_v46, %v2724_v24  ;;  %v2572_v9 = vadd.f32 %v2571_v63, %v8580_v11  ;;  %3461 = vmatmul.mubr.f32.vlgmr.msra.gmra.mrb[120].mxu0 %v3155_v35  ;;  %5846 = vmatprep.mubr.f32.mxu1 %v3244_v1  ;;  %v3189_v4 = vrot.slane %v8652_v41, 1  ;;  %v3154_v26 = vsel %vm681_vm4, %v3096_v14, %v3097_v5  ;;  %v2376_v44 = vpop.f32.mrb[110].mxu1 }
 0x2d3   : > { %v2727_v57 = vadd.f32 %v2577_v62, %v8523_v51  ;;  %5278 = vmatprep.mubr.msk.f32.mxu0 %vm8600_vm8, %v2917_v55  ;;  %5847 = vmatmul.mubr.f32.vlgmr.msra.gmra.mrb[150].mxu1 %v3243_v22  ;;  %v2378_v20 = vpop.f32.mrb[111].mxu1  ;;  %v3867_v55 = vld [vmem:[#allocation12 + $0x1a0] sm:$0xff]  ;;  %v6394_v14 = vpack.c.bf16 %v3900_v23, %v3899_v17  ;;  %vm2868_vm8 = vcmp.gt.s32.totalorder %v8584_v16, 5 }
 0x2d4   : > { %v8666_v11 = vmax.f32 %v2821_v36, 0.0  ;;  %v2726_v47 = vadd.f32 %v2572_v9, %v8526_v7  ;;  %6389 = vmatpush3.bf16.msra.mxu0 %v8460_v21  ;;  %v5783_v39 = vpop.f32.mrb[98].mxu0  ;;  %v3242_v51 = vsel %vm790_vm1, %v8608_v37, %v3189_v4  ;;  %6340 = vmatpush1.bf16.msra.mxu1 %v6339_v25  ;;  %v3901_v7 = vld [vmem:[#allocation12 + $0x2b0] sm:$0xff]  ;;  %v6345_v35 = vpack.c.bf16 %v3868_v60, %v3867_v55  ;;  %v3870_v9 = vld [vmem:[#allocation12 + $0x1b8] sm:$0xff]  ;;  %v3904_v20 = vld [vmem:[#allocation12 + $0x2c8] sm:$0xff] }
 0x2d5   : > { %v2824_v54 = vadd.f32 %v8592_v46, %v2727_v57  ;;  %v2587_v31 = vadd.f32 %v5783_v39, %v2371_v45  ;;  %5849 = vmatprep.mubr.f32.mxu1 %v3242_v51  ;;  %v2581_v43 = vpop.f32.mrb[99].mxu0  ;;  %6341 = vmatprep.subr.bf16.mxu1 %v10134_v33  ;;  %v3099_v36 = vrot.slane %v8652_v41, 7  ;;  %vm8887_vm9 = vmand %vm2856_vm7, %vm2868_vm8  ;;  %vm2871_vm7 = vcmp.gt.s32.totalorder %v8584_v16, 8 }
 0x2d6   : > { %v2823_v21 = vadd.f32 %v8592_v46, %v2726_v47  ;;  %3466 = vmatmul.mubr.f32.gmra.mrb[122].mxu0 %v3154_v26  ;;  %v2381_v24 = vpop.f32.mrb[112].mxu1  ;;  %v8679_v3 = vsel %vm8629_vm11, %v8666_v11, 0.0  ;;  %6391 = vmatprep.subr.bf16.mxu0 %v6390_v61  ;;  %v6398_v26 = vpack.c.bf16 %v3902_v13, %v3901_v7  ;;  %v3871_v13 = vld [vmem:[#allocation12 + $0x1c0] sm:$0xff]  ;;  %vm9139_vm8 = vmand %vm2859_vm5, %vm2871_vm7 }
 0x2d7   : > { %v8691_v22 = vmax.f32 %v2824_v54, 0.0  ;;  %v2729_v25 = vadd.f32 %v2587_v31, %v8530_v15  ;;  %3470 = vmatprep.mubr.f32.mxu0 %v9989_v56  ;;  %v2383_v62 = vpop.f32.mrb[113].mxu1  ;;  %v3190_v63 = vrot.slane %v8679_v3, 1  ;;  %v3869_v15 = vld [vmem:[#allocation12 + $0x1b0] sm:$0xff]  ;;  %v8748_v7 = vsel %vm681_vm4, %v8612_v52, %v3099_v36 }
 0x2d8   : > { %v8696_v1 = vmax.f32 %v2823_v21, 0.0  ;;  %v5786_v53 = vpop.f32.mrb[100].mxu0  ;;  %6343 = vmatpush1.bf16.msra.mxu1 %v6342_v40  ;;  %6393 = vmatpush3.bf16.msra.mxu0 %v6390_v61  ;;  %v3903_v61 = vld [vmem:[#allocation12 + $0x2c0] sm:$0xff]  ;;  %v6348_v54 = vpack.c.bf16 %v3870_v9, %v3869_v15  ;;  %v3100_v62 = vrot.slane %v8679_v3, 7 }
 0x2d9   : > { %v2826_v17 = vadd.f32 %v8592_v46, %v2729_v25  ;;  %v2591_v23 = vpop.f32.mrb[101].mxu0  ;;  %v8707_v57 = vsel %vm790_vm1, %v3189_v4, %v3190_v63  ;;  %v8712_v0 = vsel %vm790_vm1, %v3190_v63, %v8608_v37  ;;  %v8717_v5 = vsel %vm8685_vm14, %v8691_v22, 0.0  ;;  %6344 = vmatprep.subr.bf16.mxu1 %v10134_v33  ;;  %6395 = vmatprep.subr.bf16.mxu0 %v6394_v14  ;;  %v3906_v53 = vld [vmem:[#allocation12 + $0x2d8] sm:$0xff] }
 0x2da   : > { %v2592_v47 = vadd.f32 %v2591_v23, %v2376_v44  ;;  %3471 = vmatmul.mubr.f32.gmra.mrb[124].mxu0 %v3153_v29  ;;  %5850 = vmatmul.mubr.f32.gmra.mrb[152].mxu1 %v8707_v57  ;;  %v2386_v4 = vpop.f32.mrb[114].mxu1  ;;  %v8724_v39 = vsel %vm8685_vm14, %v8696_v1, 0.0  ;;  %v3193_v51 = vrot.slane %v8717_v5, 1  ;;  %v6402_v21 = vpack.c.bf16 %v3904_v20, %v3903_v61 }
 0x2db   : > { %v8735_v44 = vmax.f32 %v2826_v17, 0.0  ;;  %5279 = vmatprep.mubr.msk.f32.mxu0 %vm8629_vm11, %v8634_v6  ;;  %5852 = vmatprep.mubr.f32.mxu1 %v8712_v0  ;;  %v2388_v55 = vpop.f32.mrb[115].mxu1  ;;  %v3192_v60 = vrot.slane %v8724_v39, 1 }
 0x2dc   : > { %v2730_v31 = vadd.f32 %v2592_v47, %v8534_v28  ;;  %v5789_v43 = vpop.f32.mrb[102].mxu0  ;;  %6346 = vmatpush1.bf16.msra.mxu1 %v6345_v35  ;;  %6397 = vmatpush3.bf16.msra.mxu0 %v6394_v14  ;;  %v3872_v14 = vld [vmem:[#allocation12 + $0x1c8] sm:$0xff]  ;;  %v3905_v35 = vld [vmem:[#allocation12 + $0x2d0] sm:$0xff] }
 0x2dd   : > { %v2601_v24 = vpop.f32.mrb[103].mxu0  ;;  %v8753_v25 = vsel %vm790_vm1, %v8608_v37, %v3192_v60  ;;  %v8757_v28 = vsel %vm790_vm1, %v3192_v60, %v3193_v51  ;;  %v8763_v63 = vsel %vm8731_vm2, %v8735_v44, 0.0  ;;  %6347 = vmatprep.subr.bf16.mxu1 %v10134_v33  ;;  %6399 = vmatprep.subr.bf16.mxu0 %v6398_v26  ;;  %v3873_v55 = vld [vmem:[#allocation12 + $0x1d0] sm:$0xff]  ;;  %v6406_v60 = vpack.c.bf16 %v3906_v53, %v3905_v35 }
 0x2de   : > { %10216 = vst [vmem:[#allocation42_spill] sm:$0xff] %v8753_v25  ;;  %10217 = vst [vmem:[#allocation43_spill] sm:$0xff] %v8757_v28  ;;  %v2827_v29 = vadd.f32 %v8592_v46, %v2730_v31  ;;  %v2391_v15 = vpop.f32.mrb[116].mxu1  ;;  %v2602_v9 = vadd.f32 %v2601_v24, %v2386_v4  ;;  %3476 = vmatmul.mubr.f32.gmra.mrb[126].mxu0 %v8748_v7  ;;  %5853 = vmatmul.mubr.f32.gmra.mrb[154].mxu1 %v8753_v25  ;;  %v3195_v3 = vrot.slane %v8763_v63, 1 }
 0x2df   : > { %v2607_v17 = vadd.f32 %v5789_v43, %v2391_v15  ;;  %5280 = vmatprep.mubr.msk.f32.mxu0 %vm8629_vm11, %v8666_v11  ;;  %5855 = vmatprep.mubr.f32.mxu1 %v8757_v28  ;;  %v2393_v23 = vpop.f32.mrb[117].mxu1  ;;  %v6351_v4 = vpack.c.bf16 %v3872_v14, %v3871_v13  ;;  %v8784_v43 = vsel %vm681_vm4, %v3099_v36, %v3100_v62  ;;  %v3908_v13 = vld [vmem:[#allocation12 + $0x2e8] sm:$0xff] }
 0x2e0   : > { %v8776_v61 = vmax.f32 %v2827_v29, 0.0  ;;  %v2732_v20 = vadd.f32 %v2602_v9, %v8542_v59  ;;  %v5792_v47 = vpop.f32.mrb[104].mxu0  ;;  %6349 = vmatpush1.bf16.msra.mxu1 %v6348_v54  ;;  %6401 = vmatpush3.bf16.msra.mxu0 %v6398_v26  ;;  %v8789_v24 = vsel %vm790_vm1, %v3193_v51, %v8608_v37  ;;  %v3874_v54 = vld [vmem:[#allocation12 + $0x1d8] sm:$0xff]  ;;  %v3907_v26 = vld [vmem:[#allocation12 + $0x2e0] sm:$0xff]  ;;  %v8798_v36 = vsel %vm790_vm1, %v8608_v37, %v3195_v3 }
 0x2e1   : > { %v2733_v31 = vadd.f32 %v2607_v17, %v8539_v58  ;;  %10218 = vst [vmem:[#allocation44_spill] sm:$0xff] %v8789_v24  ;;  %v2611_v59 = vpop.f32.mrb[105].mxu0  ;;  %6350 = vmatprep.subr.bf16.mxu1 %v10134_v33  ;;  %6403 = vmatprep.subr.bf16.mxu0 %v6402_v21  ;;  %10219 = vst [vmem:[#allocation46_spill] sm:$0xff] %v8798_v36  ;;  %v8822_v9 = vsel %vm681_vm4, %v3100_v62, %v8612_v52  ;;  %v3102_v62 = vrot.slane %v8724_v39, 7 }
 0x2e2   : > { %v2829_v58 = vadd.f32 %v8592_v46, %v2732_v20  ;;  %3481 = vmatmul.mubr.f32.gmra.mrb[128].mxu0 %v8784_v43  ;;  %5856 = vmatmul.mubr.f32.gmra.mrb[156].mxu1 %v8789_v24  ;;  %v2396_v41 = vpop.f32.mrb[118].mxu1  ;;  %v8803_v51 = vsel %vm8731_vm2, %v8776_v61, 0.0  ;;  %v6354_v23 = vpack.c.bf16 %v3874_v54, %v3873_v55  ;;  %v3875_v20 = vld [vmem:[#allocation12 + $0x1e0] sm:$0xff]  ;;  %v3910_v55 = vld [vmem:[#allocation12 + $0x2f8] sm:$0xff] }
 0x2e3   : > { %v2830_v14 = vadd.f32 %v8592_v46, %v2733_v31  ;;  %5858 = vmatprep.mubr.f32.mxu1 %v8798_v36  ;;  %v2398_v35 = vpop.f32.mrb[119].mxu1  ;;  %3485 = vmatprep.mubr.f32.mxu0 %v9989_v56  ;;  %v3196_v53 = vrot.slane %v8803_v51, 1  ;;  %v6410_v31 = vpack.c.bf16 %v3908_v13, %v3907_v26  ;;  %v8863_v30 = vsel %vm681_vm4, %v8612_v52, %v3102_v62 }
 0x2e4   : > { %v8817_v15 = vmax.f32 %v2829_v58, 0.0  ;;  %v5795_v17 = vpop.f32.mrb[106].mxu0  ;;  %6352 = vmatpush1.bf16.msra.mxu1 %v6351_v4  ;;  %6405 = vmatpush3.bf16.msra.mxu0 %v6402_v21  ;;  %v3876_v4 = vld [vmem:[#allocation12 + $0x1e8] sm:$0xff]  ;;  %v3909_v21 = vld [vmem:[#allocation12 + $0x2f0] sm:$0xff] }
 0x2e5   : > { %v8824_v59 = vmax.f32 %v2830_v14, 0.0  ;;  %v8828_v41 = vsel %vm790_vm1, %v3195_v3, %v3196_v53  ;;  %v8833_v58 = vsel %vm790_vm1, %v3196_v53, %v8608_v37  ;;  %v2621_v35 = vpop.f32.mrb[107].mxu0  ;;  %6353 = vmatprep.subr.bf16.mxu1 %v10134_v33  ;;  %6407 = vmatprep.subr.bf16.mxu0 %v6406_v60  ;;  %v6357_v17 = vpack.c.bf16 %v3876_v4, %v3875_v20  ;;  %v3877_v20 = vld [vmem:[#allocation12 + $0x1f0] sm:$0xff] }
 0x2e6   : > { %10222 = vst [vmem:[#allocation48_spill] sm:$0xff] %v8817_v15  ;;  %10224 = vst [vmem:[#allocation50_spill] sm:$0xff] %v8828_v41  ;;  %v2401_v54 = vpop.f32.mrb[120].mxu1  ;;  %3486 = vmatmul.mubr.f32.gmra.mrb[130].mxu0 %v8822_v9  ;;  %5859 = vmatmul.mubr.f32.gmra.mrb[158].mxu1 %v8828_v41  ;;  %v8842_v3 = vsel %vm8813_vm6, %v8817_v15, 0.0 }
 0x2e7   : > { %10223 = vst [vmem:[#allocation49_spill] sm:$0xff] %v8824_v59  ;;  %10225 = vst [vmem:[#allocation52_spill] sm:$0xff] %v8833_v58  ;;  %v2617_v26 = vadd.f32 %v5792_v47, %v2401_v54  ;;  %5281 = vmatprep.mubr.msk.f32.mxu0 %vm8685_vm14, %v8696_v1  ;;  %5861 = vmatprep.mubr.f32.mxu1 %v8833_v58  ;;  %v2403_v39 = vpop.f32.mrb[121].mxu1  ;;  %v3198_v13 = vrot.slane %v8842_v3, 1  ;;  %v8852_v14 = vsel %vm8813_vm6, %v8824_v59, 0.0 }
 0x2e8   : > { %v3199_v53 = vrot.slane %v8852_v14, 1  ;;  %6355 = vmatpush1.bf16.msra.mxu1 %v6354_v23  ;;  %v8856_v47 = vpop.f32.mrb[108].mxu0  ;;  %6409 = vmatpush3.bf16.msra.mxu0 %v6406_v60  ;;  %v6414_v54 = vpack.c.bf16 %v3910_v55, %v3909_v21  ;;  %v3103_v23 = vrot.slane %v8717_v5, 7  ;;  %v3878_v60 = vld [vmem:[#allocation12 + $0x1f8] sm:$0xff] }
 0x2e9   : > { %v2735_v39 = vadd.f32 %v2617_v26, %v8546_v34  ;;  %v8868_v56 = vsel %vm790_vm1, %v8608_v37, %v3198_v13  ;;  %v2631_v48 = vpop.f32.mrb[109].mxu0  ;;  %6356 = vmatprep.subr.bf16.mxu1 %v10134_v33  ;;  %6411 = vmatprep.subr.bf16.mxu0 %v6410_v31 }
 0x2ea   : > { %10226 = vst [vmem:[#allocation54_spill] sm:$0xff] %v8868_v56  ;;  %v2406_v4 = vpop.f32.mrb[122].mxu1  ;;  %3491 = vmatmul.mubr.f32.gmra.mrb[132].mxu0 %v8863_v30  ;;  %5862 = vmatmul.mubr.f32.gmra.mrb[160].mxu1 %v8868_v56  ;;  %v8876_v34 = vsel %vm790_vm1, %v3198_v13, %v3199_v53  ;;  %v6360_v13 = vpack.c.bf16 %v3878_v60, %v3877_v20  ;;  %v3880_v20 = vld [vmem:[#allocation12 + $0x208] sm:$0xff] }
 0x2eb   : > { %10227 = vst [vmem:[#allocation56_spill] sm:$0xff] %v8876_v34  ;;  %v2832_v21 = vadd.f32 %v8592_v46, %v2735_v39  ;;  %v2622_v55 = vadd.f32 %v2621_v35, %v2406_v4  ;;  %5282 = vmatprep.mubr.msk.f32.mxu0 %vm8685_vm14, %v8691_v22  ;;  %5864 = vmatprep.mubr.f32.mxu1 %v8876_v34  ;;  %v2408_v5 = vpop.f32.mrb[123].mxu1 }
 0x2ec   : > { %6358 = vmatpush1.bf16.msra.mxu1 %v6357_v17  ;;  %v8891_v56 = vpop.f32.mrb[110].mxu0  ;;  %6413 = vmatpush3.bf16.msra.mxu0 %v6410_v31  ;;  %v8898_v4 = vsel %vm681_vm4, %v3102_v62, %v3103_v23  ;;  %v8903_v5 = vsel %vm790_vm1, %v3199_v53, %v8608_v37  ;;  %v3879_v17 = vld [vmem:[#allocation12 + $0x200] sm:$0xff] }
 0x2ed   : > { %v8893_v35 = vmax.f32 %v2832_v21, 0.0  ;;  %v2736_v39 = vadd.f32 %v2622_v55, %v8550_v49  ;;  %10231 = vst [vmem:[#allocation60_spill] sm:$0xff] %v8903_v5  ;;  %6359 = vmatprep.subr.bf16.mxu1 %v10134_v33  ;;  %v2641_v60 = vpop.f32.mrb[111].mxu0  ;;  %6415 = vmatprep.subr.bf16.mxu0 %v6414_v54  ;;  %v10232_v21 = vmov 0.0  }
 0x2ee   : > { %3496 = vmatmul.mubr.f32.gmra.mrb[134].mxu0 %v8898_v4  ;;  %5865 = vmatmul.mubr.f32.gmra.mrb[162].mxu1 %v8903_v5  ;;  %v2411_v49 = vpop.f32.mrb[124].mxu1  ;;  %v6363_v60 = vpack.c.bf16 %v3880_v20, %v3879_v17  ;;  %v3882_v5 = vld [vmem:[#allocation12 + $0x218] sm:$0xff]  ;;  %v10292_v45 = vld [vmem:[#allocation49_spill] sm:$0xff] }
 0x2ef   : > { %10230 = vst [vmem:[#allocation59_spill] sm:$0xff] %v8893_v35  ;;  %v2833_v31 = vadd.f32 %v8592_v46, %v2736_v39  ;;  %v2413_v62 = vpop.f32.mrb[125].mxu1  ;;  %3500 = vmatprep.mubr.f32.mxu0 %v10232_v21  ;;  %v8913_v53 = vsel %vm8887_vm9, %v8893_v35, 0.0  ;;  %v8921_v39 = vsel %vm681_vm4, %v3103_v23, %v8612_v52  ;;  %v3105_v49 = vrot.slane %v8763_v63, 7 }
 0x2f0   : > { %v3201_v55 = vrot.slane %v8913_v53, 1  ;;  %6361 = vmatpush1.bf16.msra.mxu1 %v6360_v13  ;;  %v5804_v34 = vpop.f32.mrb[112].mxu0  ;;  %6417 = vmatpush3.bf16.msra.mxu0 %v6414_v54  ;;  %v3881_v62 = vld [vmem:[#allocation12 + $0x210] sm:$0xff] }
 0x2f1   : > { %v8916_v58 = vmax.f32 %v2833_v31, 0.0  ;;  %6362 = vmatprep.subr.bf16.mxu1 %v10134_v33  ;;  %v8925_v41 = vpop.f32.mrb[113].mxu0  ;;  %6418 = vmatprep.subr.bf16.mxu0 %v10134_v33  ;;  %v6366_v20 = vpack.c.bf16 %v3882_v5, %v3881_v62 }
 0x2f2   : > { %v2416_v13 = vpop.f32.mrb[126].mxu1  ;;  %3501 = vmatmul.mubr.f32.gmra.mrb[136].mxu0 %v8921_v39  ;;  %v8932_v54 = vsel %vm790_vm1, %v8608_v37, %v3201_v55 }
 0x2f3   : > { %10233 = vst [vmem:[#allocation33_spill] sm:$0xff] %v8932_v54  ;;  %v2632_v23 = vadd.f32 %v2631_v48, %v2416_v13  ;;  %5867 = vmatprep.mubr.f32.mxu1 %v8932_v54  ;;  %5283 = vmatprep.mubr.msk.f32.mxu0 %vm8731_vm2, %v8735_v44  ;;  %v2418_v63 = vpop.f32.mrb[127].mxu1  ;;  %v8941_v34 = vsel %vm8887_vm9, %v8916_v58, 0.0  ;;  %v8951_v13 = vsel %vm681_vm4, %v8612_v52, %v3105_v49  ;;  %v3883_v54 = vld [vmem:[#allocation12 + $0x220] sm:$0xff] }
 0x2f4   : > { %v3202_v17 = vrot.slane %v8941_v34, 1  ;;  %6364 = vmatpush1.bf16.msra.mxu1 %v6363_v60  ;;  %v8945_v31 = vpop.f32.mrb[114].mxu0  ;;  %v3106_v63 = vrot.slane %v8803_v51, 7  ;;  %v3884_v60 = vld [vmem:[#allocation12 + $0x228] sm:$0xff] }
 0x2f5   : > { %v2738_v48 = vadd.f32 %v2632_v23, %v8558_v32  ;;  %6365 = vmatprep.subr.bf16.mxu1 %v10134_v33  ;;  %v8956_v36 = vpop.f32.mrb[115].mxu0 }
 0x2f6   : > { %v2421_v5 = vpop.f32.mrb[128].mxu1  ;;  %3506 = vmatmul.mubr.f32.gmra.mrb[138].mxu0 %v8951_v13  ;;  %v8961_v32 = vsel %vm790_vm1, %v3201_v55, %v3202_v17  ;;  %v8966_v62 = vsel %vm790_vm1, %v3202_v17, %v8608_v37  ;;  %v6369_v17 = vpack.c.bf16 %v3884_v60, %v3883_v54 }
 0x2f7   : > { %10234 = vst [vmem:[#allocation34_spill] sm:$0xff] %v8961_v32  ;;  %10235 = vst [vmem:[#allocation36_spill] sm:$0xff] %v8966_v62  ;;  %v2835_v51 = vadd.f32 %v8592_v46, %v2738_v48  ;;  %v2637_v23 = vadd.f32 %v8856_v47, %v2421_v5  ;;  %5868 = vmatmul.mubr.f32.gmra.mrb[164].mxu1 %v8961_v32  ;;  %5284 = vmatprep.mubr.msk.f32.mxu0 %vm8731_vm2, %v8776_v61  ;;  %v2423_v24 = vpop.f32.mrb[129].mxu1  ;;  %v3886_v32 = vld [vmem:[#allocation12 + $0x238] sm:$0xff] }
 0x2f8   : > { %5870 = vmatprep.mubr.f32.mxu1 %v8966_v62  ;;  %6367 = vmatpush1.bf16.msra.mxu1 %v6366_v20  ;;  %v8983_v47 = vpop.f32.mrb[116].mxu0  ;;  %v8990_v24 = vsel %vm681_vm4, %v3105_v49, %v3106_v63  ;;  %v3885_v62 = vld [vmem:[#allocation12 + $0x230] sm:$0xff] }
 0x2f9   : > { %v8985_v48 = vmax.f32 %v2835_v51, 0.0  ;;  %v2739_v5 = vadd.f32 %v2637_v23, %v8555_v8  ;;  %10239 = vst [vmem:[#allocation61_spill] sm:$0xff] %v8990_v24  ;;  %6368 = vmatprep.subr.bf16.mxu1 %v10134_v33  ;;  %v2671_v28 = vpop.f32.mrb[117].mxu0  ;;  %v6372_v60 = vpack.c.bf16 %v3886_v32, %v3885_v62  ;;  %v3887_v62 = vld [vmem:[#allocation12 + $0x240] sm:$0xff] }
 0x2fa   : > { %3511 = vmatmul.mubr.f32.gmra.mrb[140].mxu0 %v8990_v24  ;;  %v2426_v25 = vpop.f32.mrb[130].mxu1  ;;  %v3108_v28 = vrot.slane %v8842_v3, 7 }
 0x2fb   : > { %10238 = vst [vmem:[#allocation37_spill] sm:$0xff] %v8985_v48  ;;  %v2836_v54 = vadd.f32 %v8592_v46, %v2739_v5  ;;  %v2428_v20 = vpop.f32.mrb[131].mxu1  ;;  %3515 = vmatprep.mubr.f32.mxu0 %v10232_v21  ;;  %v8999_v8 = vsel %vm8979_vm13, %v8985_v48, 0.0  ;;  %v9007_v25 = vsel %vm681_vm4, %v3106_v63, %v8612_v52 }
 0x2fc   : > { %v3204_v49 = vrot.slane %v8999_v8, 1  ;;  %6370 = vmatpush1.bf16.msra.mxu1 %v6369_v17  ;;  %v5813_v51 = vpop.f32.mrb[118].mxu0  ;;  %10241 = vst [vmem:[#allocation62_spill] sm:$0xff] %v9007_v25  ;;  %v3888_v17 = vld [vmem:[#allocation12 + $0x248] sm:$0xff] }
 0x2fd   : > { %v9002_v23 = vmax.f32 %v2836_v54, 0.0  ;;  %6371 = vmatprep.subr.bf16.mxu1 %v10134_v33  ;;  %v9011_v5 = vpop.f32.mrb[119].mxu0 }
 0x2fe   : > { %v2431_v20 = vpop.f32.mrb[132].mxu1  ;;  %3516 = vmatmul.mubr.f32.gmra.mrb[142].mxu0 %v9007_v25  ;;  %v9017_v32 = vsel %vm790_vm1, %v8608_v37, %v3204_v49  ;;  %v3890_v25 = vld [vmem:[#allocation12 + $0x258] sm:$0xff] }
 0x2ff   : > { %10240 = vst [vmem:[#allocation45_spill] sm:$0xff] %v9002_v23  ;;  %10242 = vst [vmem:[#allocation47_spill] sm:$0xff] %v9017_v32  ;;  %v2647_v54 = vadd.f32 %v8891_v56, %v2431_v20  ;;  %5871 = vmatmul.mubr.f32.gmra.mrb[166].mxu1 %v9017_v32  ;;  %5285 = vmatprep.mubr.msk.f32.mxu0 %vm8813_vm6, %v8817_v15  ;;  %v2433_v3 = vpop.f32.mrb[133].mxu1  ;;  %v9027_v63 = vsel %vm8979_vm13, %v9002_v23, 0.0  ;;  %v9036_v20 = vsel %vm681_vm4, %v8612_v52, %v3108_v28 }
 0x300   : > { %v3205_v51 = vrot.slane %v9027_v63, 1  ;;  %6373 = vmatpush1.bf16.msra.mxu1 %v6372_v60  ;;  %10243 = vst [vmem:[#allocation39_spill] sm:$0xff] %v9036_v20  ;;  %v3109_v3 = vrot.slane %v8852_v14, 7  ;;  %v6375_v32 = vpack.c.bf16 %v3888_v17, %v3887_v62 }
 0x301   : > { %v2741_v56 = vadd.f32 %v2647_v54, %v8562_v18  ;;  %6374 = vmatprep.subr.bf16.mxu1 %v10134_v33  ;;  %v3889_v54 = vld [vmem:[#allocation12 + $0x250] sm:$0xff] }
 0x302   : > { %v2436_v15 = vpop.f32.mrb[134].mxu1  ;;  %3521 = vmatmul.mubr.f32.gmra.mrb[144].mxu0 %v9036_v20  ;;  %v9043_v60 = vsel %vm790_vm1, %v3204_v49, %v3205_v51  ;;  %v9048_v18 = vsel %vm790_vm1, %v3205_v51, %v8608_v37  ;;  %v6378_v51 = vpack.c.bf16 %v3890_v25, %v3889_v54 }
 0x303   : > { %10244 = vst [vmem:[#allocation63_spill] sm:$0xff] %v9043_v60  ;;  %10245 = vst [vmem:[#allocation51_spill] sm:$0xff] %v9048_v18  ;;  %v2838_v24 = vadd.f32 %v8592_v46, %v2741_v56  ;;  %v2652_v14 = vadd.f32 %v8925_v41, %v2436_v15  ;;  %5873 = vmatprep.mubr.f32.mxu1 %v9043_v60  ;;  %5286 = vmatprep.mubr.msk.f32.mxu0 %vm8813_vm6, %v8824_v59  ;;  %v2438_v62 = vpop.f32.mrb[135].mxu1 }
 0x304   : > { %5874 = vmatmul.mubr.f32.gmra.mrb[168].mxu1 %v9048_v18  ;;  %v9070_v41 = vsel %vm681_vm4, %v3108_v28, %v3109_v3  ;;  %v3891_v62 = vld [vmem:[#allocation12 + $0x260] sm:$0xff]  ;;  %v3892_v18 = vld [vmem:[#allocation12 + $0x268] sm:$0xff]  ;;  %v9087_v28 = vsel %vm681_vm4, %v3109_v3, %v8612_v52 }
 0x305   : > { %v9065_v17 = vmax.f32 %v2838_v24, 0.0  ;;  %v2742_v15 = vadd.f32 %v2652_v14, %v8566_v10  ;;  %10248 = vst [vmem:[#allocation32_spill] sm:$0xff] %v9070_v41  ;;  %6376 = vmatpush1.bf16.msra.mxu1 %v6375_v32  ;;  %10249 = vst [vmem:[#allocation64_spill] sm:$0xff] %v9087_v28  ;;  %v3111_v32 = vrot.slane %v8913_v53, 7 }
 0x306   : > { %3526 = vmatmul.mubr.f32.gmra.mrb[146].mxu0 %v9070_v41  ;;  %v2441_v56 = vpop.f32.mrb[136].mxu1  ;;  %6377 = vmatprep.subr.bf16.mxu1 %v10134_v33 }
 0x307   : > { %v2839_v60 = vadd.f32 %v8592_v46, %v2742_v15  ;;  %v2443_v59 = vpop.f32.mrb[137].mxu1  ;;  %3530 = vmatprep.mubr.f32.mxu0 %v10232_v21  ;;  %v9079_v10 = vsel %vm9061_vm3, %v9065_v17, 0.0  ;;  %v3894_v15 = vld [vmem:[#allocation12 + $0x278] sm:$0xff] }
 0x308   : > { %v3207_v24 = vrot.slane %v9079_v10, 1  ;;  %v6381_v59 = vpack.c.bf16 %v3892_v18, %v3891_v62  ;;  %v4458_v18 = vld [vmem:[#allocation12 + $0x400] sm:$0xff] }
 0x309   : > { %v9082_v25 = vmax.f32 %v2839_v60, 0.0  ;;  %6379 = vmatpush1.bf16.msra.mxu1 %v6378_v51  ;;  %v3893_v60 = vld [vmem:[#allocation12 + $0x270] sm:$0xff]  ;;  %v4459_v51 = vld [vmem:[#allocation12 + $0x408] sm:$0xff] }
 0x30a   : > { %v2446_v54 = vpop.f32.mrb[138].mxu1  ;;  %3531 = vmatmul.mubr.f32.gmra.mrb[148].mxu0 %v9087_v28  ;;  %v9094_v14 = vsel %vm790_vm1, %v8608_v37, %v3207_v24  ;;  %6380 = vmatprep.subr.bf16.mxu1 %v10134_v33 }
 0x30b   : > { %10250 = vst [vmem:[#allocation53_spill] sm:$0xff] %v9094_v14  ;;  %v2662_v56 = vadd.f32 %v8956_v36, %v2446_v54  ;;  %5876 = vmatprep.mubr.f32.mxu1 %v9094_v14  ;;  %5287 = vmatprep.mubr.msk.f32.mxu0 %vm8887_vm9, %v8893_v35  ;;  %v2448_v53 = vpop.f32.mrb[139].mxu1  ;;  %v9105_v3 = vsel %vm9061_vm3, %v9082_v25, 0.0  ;;  %v9114_v54 = vsel %vm681_vm4, %v8612_v52, %v3111_v32 }
 0x30c   : > { %v3208_v62 = vrot.slane %v9105_v3, 1  ;;  %v3112_v53 = vrot.slane %v8941_v34, 7  ;;  %v6384_v14 = vpack.c.bf16 %v3894_v15, %v3893_v60  ;;  %v10294_v40 = vld [vmem:[#allocation32_spill] sm:$0xff] }
 0x30d   : > { %v2744_v36 = vadd.f32 %v2662_v56, %v8573_v2  ;;  %6382 = vmatpush1.bf16.msra.mxu1 %v6381_v59  ;;  %v6466_v56 = vpack.c.bf16 %v4459_v51, %v4458_v18 }
 0x30e   : > { %v2451_v35 = vpop.f32.mrb[140].mxu1  ;;  %3536 = vmatmul.mubr.f32.gmra.mrb[150].mxu0 %v9114_v54  ;;  %v9120_v28 = vsel %vm790_vm1, %v3207_v24, %v3208_v62  ;;  %v9125_v2 = vsel %vm790_vm1, %v3208_v62, %v8608_v37  ;;  %6383 = vmatprep.subr.bf16.mxu1 %v10134_v33 }
 0x30f   : > { %v2841_v41 = vadd.f32 %v8592_v46, %v2744_v36  ;;  %v2667_v34 = vadd.f32 %v8945_v31, %v2451_v35  ;;  %5877 = vmatmul.mubr.f32.gmra.mrb[170].mxu1 %v9120_v28  ;;  %5288 = vmatprep.mubr.msk.f32.mxu0 %vm8887_vm9, %v8916_v58  ;;  %v2453_v24 = vpop.f32.mrb[141].mxu1  ;;  %v9150_v31 = vsel %vm681_vm4, %v3111_v32, %v3112_v53  ;;  %v4460_v36 = vld [vmem:[#allocation12 + $0x410] sm:$0xff] }
 0x310   : > { %5879 = vmatprep.mubr.f32.mxu1 %v9125_v2  ;;  %10254 = vst [vmem:[#allocation55_spill] sm:$0xff] %v9150_v31  ;;  %v9163_v32 = vsel %vm681_vm4, %v3112_v53, %v8612_v52 }
 0x311   : > { %v9143_v60 = vmax.f32 %v2841_v41, 0.0  ;;  %v9146_v35 = vadd.f32 %v2667_v34, %v8570_v50  ;;  %6385 = vmatpush1.bf16.msra.mxu1 %v6384_v14  ;;  %10255 = vst [vmem:[#allocation66_spill] sm:$0xff] %v9163_v32  ;;  %v3114_v14 = vrot.slane %v8999_v8, 7  ;;  %v4461_v34 = vld [vmem:[#allocation12 + $0x418] sm:$0xff] }
 0x312   : > { %3541 = vmatmul.mubr.f32.gmra.mrb[152].mxu0 %v9150_v31  ;;  %v2456_v15 = vpop.f32.mrb[142].mxu1  ;;  %6467 = vmatprep.subr.bf16.mxu1 %v6466_v56 }
 0x313   : > { %10253 = vst [vmem:[#allocation65_spill] sm:$0xff] %v9143_v60  ;;  %v2458_v18 = vpop.f32.mrb[143].mxu1  ;;  %3545 = vmatprep.mubr.f32.mxu0 %v10232_v21  ;;  %v9157_v41 = vsel %vm9139_vm8, %v9143_v60, 0.0  ;;  %v9186_v15 = vsel %vm681_vm4, %v8612_v52, %v3114_v14  ;;  %v4463_v60 = vld [vmem:[#allocation12 + $0x428] sm:$0xff] }
 0x314   : > { %v10037_v50 = vrot.slane %v9157_v41, 1  ;;  %v6470_v18 = vpack.c.bf16 %v4461_v34, %v4460_v36  ;;  %v4465_v34 = vld [vmem:[#allocation12 + $0x438] sm:$0xff] }
 0x316   : > { %v2461_v51 = vpop.f32.mrb[144].mxu1  ;;  %3546 = vmatmul.mubr.f32.gmra.mrb[154].mxu0 %v9163_v32  ;;  %v9172_v62 = vsel %vm790_vm1, %v8608_v37, %v10037_v50  ;;  %v4462_v50 = vld [vmem:[#allocation12 + $0x420] sm:$0xff] }
 0x317   : > { %v2677_v24 = vadd.f32 %v8983_v47, %v2461_v51  ;;  %5880 = vmatmul.mubr.f32.gmra.mrb[172].mxu1 %v9172_v62  ;;  %5289 = vmatprep.mubr.msk.f32.mxu0 %vm8979_vm13, %v8985_v48  ;;  %v2463_v8 = vpop.f32.mrb[145].mxu1  ;;  %v3115_v47 = vrot.slane %v9027_v63, 7  ;;  %v10297_v29 = vld [vmem:[#allocation55_spill] sm:$0xff] }
 0x318   : > { %5293 = vmatprep.mubr.msk.f32.mxu1 %vm8629_vm11, %v8634_v6 }
 0x319   : > { %v2747_v53 = vadd.f32 %v2677_v24, %v8576_v19  ;;  %v9207_v16 = vsel %vm681_vm4, %v3114_v14, %v3115_v47  ;;  %v10257_v24 = vmov 0 }
 0x31a   : > { %v2466_v51 = vpop.f32.mrb[146].mxu1  ;;  %3551 = vmatmul.mubr.f32.gmra.mrb[156].mxu0 %v9186_v15  ;;  %v10258_v24 = vsel %vm9211_vm15, 4294967295, %v10257_v24 }
 0x31b   : > { %v9191_v8 = vadd.f32 %v8592_v46, %v2747_v53  ;;  %v2682_v19 = vadd.f32 %v9011_v5, %v2466_v51  ;;  %3976 = vmatmul.mubr.f32.vlgmr.msra.gmra.mrb[174].mxu1 %v8748_v7  ;;  %5290 = vmatprep.mubr.msk.f32.mxu0 %vm8979_vm13, %v9002_v23  ;;  %v2468_v6 = vpop.f32.mrb[147].mxu1  ;;  %v6474_v7 = vpack.c.bf16 %v4463_v60, %v4462_v50  ;;  %v4464_v5 = vld [vmem:[#allocation12 + $0x430] sm:$0xff]  ;;  %v4467_v60 = vld [vmem:[#allocation12 + $0x448] sm:$0xff] }
 0x31c   : > { %5294 = vmatprep.mubr.msk.f32.mxu1 %vm8629_vm11, %v8666_v11  ;;  %6469 = vmatpush3.bf16.msra.mxu1 %v6466_v56  ;;  %10259 = vst [vmem:[#allocation67_spill] sm:$0xff] %v10258_v24  ;;  %v4466_v56 = vld [vmem:[#allocation12 + $0x440] sm:$0xff] }
 0x31d   : > { %10256 = vst [vmem:[#allocation57_spill] sm:$0xff] %v9191_v8  ;;  %v10043_v63 = vmax.f32 %v9191_v8, 0.0  ;;  %v2748_v36 = vadd.f32 %v2682_v19, %v8587_v12  ;;  %6471 = vmatprep.subr.bf16.mxu1 %v6470_v18  ;;  %v6478_v12 = vpack.c.bf16 %v4465_v34, %v4464_v5  ;;  %v3118_v19 = vrot.slane %v9105_v3, 7  ;;  %v10278_v24 = vld [vmem:[#allocation60_spill] sm:$0xff] }
 0x31e   : > { %3556 = vmatmul.mubr.f32.gmra.mrb[158].mxu0 %v9207_v16  ;;  %v6482_v6 = vpack.c.bf16 %v4467_v60, %v4466_v56  ;;  %v4470_v60 = vld [vmem:[#allocation12 + $0x460] sm:$0xff] }
 0x31f   : > { %v9217_v38 = vadd.f32 %v8592_v46, %v2748_v36  ;;  %3981 = vmatmul.mubr.f32.gmra.mrb[176].mxu1 %v8784_v43  ;;  %3560 = vmatprep.mubr.f32.mxu0 %v10232_v21  ;;  %v9226_v42 = vsel %vm9211_vm15, %v10043_v63, 0.0  ;;  %v9232_v46 = vsel %vm681_vm4, %v3115_v47, %v8612_v52  ;;  %v3117_v43 = vrot.slane %v9079_v10, 7  ;;  %v4468_v36 = vld [vmem:[#allocation12 + $0x450] sm:$0xff]  ;;  %v10273_v63 = vld [vmem:[#allocation52_spill] sm:$0xff] }
 0x320   : > { %3985 = vmatprep.mubr.f32.mxu1 %v10232_v21  ;;  %6473 = vmatpush3.bf16.msra.mxu1 %v6470_v18  ;;  %10261 = vst [vmem:[#allocation38_spill] sm:$0xff] %v9226_v42  ;;  %v10045_v10 = vrot.slane %v9226_v42, 1  ;;  %v10042_v18 = vrot.slane %v9226_v42, 7  ;;  %v10280_v8 = vld [vmem:[#allocation64_spill] sm:$0xff] }
 0x321   : > { %10260 = vst [vmem:[#allocation58_spill] sm:$0xff] %v9217_v38  ;;  %v10041_v11 = vmax.f32 %v9217_v38, 0.0  ;;  %6475 = vmatprep.subr.bf16.mxu1 %v6474_v7  ;;  %v2471_v14 = vpop.f32.mrb[148].mxu1  ;;  %v9285_v34 = vsel %vm681_vm4, %v3117_v43, %v3118_v19 }
 0x322   : > { %3561 = vmatmul.mubr.f32.gmra.mrb[160].mxu0 %v9232_v46  ;;  %v2473_v47 = vpop.f32.mrb[149].mxu1  ;;  %v4471_v14 = vld [vmem:[#allocation12 + $0x468] sm:$0xff] }
 0x323   : > { %v9240_v50 = vsel %vm9211_vm15, %v10041_v11, 0.0  ;;  %3986 = vmatmul.mubr.f32.gmra.mrb[178].mxu1 %v8822_v9  ;;  %5291 = vmatprep.mubr.msk.f32.mxu0 %vm9061_vm3, %v9065_v17  ;;  %v9256_v9 = vsel %vm681_vm4, %v8612_v52, %v3117_v43  ;;  %v4426_v47 = vld [vmem:[#allocation12 + $0x300] sm:$0xff]  ;;  %v6490_v43 = vpack.c.bf16 %v4471_v14, %v4470_v60  ;;  %v4473_v11 = vld [vmem:[#allocation12 + $0x478] sm:$0xff]  ;;  %v4431_v14 = vld [vmem:[#allocation12 + $0x328] sm:$0xff] }
 0x324   : > { %10262 = vst [vmem:[#allocation40_spill] sm:$0xff] %v9240_v50  ;;  %5295 = vmatprep.mubr.msk.f32.mxu1 %vm8685_vm14, %v8696_v1  ;;  %6477 = vmatpush3.bf16.msra.mxu1 %v6474_v7  ;;  %v10044_v53 = vrot.slane %v9240_v50, 1  ;;  %v10040_v51 = vrot.slane %v9240_v50, 7  ;;  %v4469_v7 = vld [vmem:[#allocation12 + $0x458] sm:$0xff]  ;;  %v10306_v59 = vld [vmem:[#allocation57_spill] sm:$0xff] }
 0x325   : > { %6479 = vmatprep.subr.bf16.mxu1 %v6478_v12  ;;  %v6486_v56 = vpack.c.bf16 %v4469_v7, %v4468_v36  ;;  %v4472_v7 = vld [vmem:[#allocation12 + $0x470] sm:$0xff] }
 0x326   : > { %3566 = vmatmul.mubr.f32.gmra.mrb[162].mxu0 %v9256_v9  ;;  %v9266_v5 = vsel %vm790_vm1, %v10045_v10, %v10044_v53  ;;  %v9274_v3 = vsel %vm681_vm4, %v10042_v18, %v10040_v51  ;;  %v4427_v51 = vld [vmem:[#allocation12 + $0x308] sm:$0xff]  ;;  %v4429_v18 = vld [vmem:[#allocation12 + $0x318] sm:$0xff]  ;;  %v10276_v10 = vld [vmem:[#allocation56_spill] sm:$0xff] }
 0x327   : > { %10263 = vst [vmem:[#allocation35_spill] sm:$0xff] %v9266_v5  ;;  %10264 = vst [vmem:[#allocation68_spill] sm:$0xff] %v9274_v3  ;;  %3991 = vmatmul.mubr.f32.gmra.mrb[180].mxu1 %v8863_v30  ;;  %5292 = vmatprep.mubr.msk.f32.mxu0 %vm9061_vm3, %v9082_v25  ;;  %v6419_v36 = vpack.c.bf16 %v4427_v51, %v4426_v47  ;;  %v4430_v51 = vld [vmem:[#allocation12 + $0x320] sm:$0xff]  ;;  %v10274_v53 = vld [vmem:[#allocation49_spill] sm:$0xff] }
 0x328   : > { %5296 = vmatprep.mubr.msk.f32.mxu1 %vm8685_vm14, %v8691_v22  ;;  %6481 = vmatpush3.bf16.msra.mxu1 %v6478_v12  ;;  %v9294_v12 = vsel %vm681_vm4, %v3118_v19, %v8612_v52  ;;  %v6494_v19 = vpack.c.bf16 %v4473_v11, %v4472_v7  ;;  %v6425_v11 = vpack.c.bf16 %v4431_v14, %v4430_v51  ;;  %v10268_v47 = vld [vmem:[#allocation44_spill] sm:$0xff]  ;;  %v10269_v7 = vld [vmem:[#allocation46_spill] sm:$0xff]  ;;  %v4435_v14 = vld [vmem:[#allocation12 + $0x348] sm:$0xff] }
 0x329   : > { %6483 = vmatprep.subr.bf16.mxu1 %v6482_v6  ;;  %v4434_v51 = vld [vmem:[#allocation12 + $0x340] sm:$0xff]  ;;  %v10281_v5 = vld [vmem:[#allocation59_spill] sm:$0xff] }
 0x32a   : > { %3571 = vmatmul.mubr.f32.gmra.mrb[164].mxu0 %v9285_v34  ;;  %v10277_v3 = vld [vmem:[#allocation32_spill] sm:$0xff] }
 0x32b   : > { %3996 = vmatmul.mubr.f32.gmra.mrb[182].mxu1 %v8898_v4  ;;  %3575 = vmatprep.mubr.f32.mxu0 %v10232_v21 }
 0x32c   : > { %4000 = vmatprep.mubr.f32.mxu1 %v10232_v21  ;;  %6485 = vmatpush3.bf16.msra.mxu1 %v6482_v6  ;;  %v4428_v6 = vld [vmem:[#allocation12 + $0x310] sm:$0xff] }
 0x32d   : > { %6487 = vmatprep.subr.bf16.mxu1 %v6486_v56  ;;  %v6422_v60 = vpack.c.bf16 %v4429_v18, %v4428_v6  ;;  %v4432_v18 = vld [vmem:[#allocation12 + $0x330] sm:$0xff] }
 0x32e   : > { %3576 = vmatmul.mubr.f32.gmra.mrb[166].mxu0 %v9294_v12  ;;  %v10270_v6 = vld [vmem:[#allocation62_spill] sm:$0xff]  ;;  %v10301_v26 = vld [vmem:[#allocation35_spill] sm:$0xff] }
 0x32f   : > { %4001 = vmatmul.mubr.f32.gmra.mrb[184].mxu1 %v8921_v39  ;;  %5914 = vmatprep.mubr.f32.mxu0 %v8707_v57  ;;  %v10265_v57 = vld [vmem:[#allocation42_spill] sm:$0xff] }
 0x330   : > { %5297 = vmatprep.mubr.msk.f32.mxu1 %vm8731_vm2, %v8735_v44  ;;  %6489 = vmatpush3.bf16.msra.mxu1 %v6486_v56  ;;  %v10266_v56 = vld [vmem:[#allocation43_spill] sm:$0xff] }
 0x331   : > { %6491 = vmatprep.subr.bf16.mxu1 %v6490_v43 }
 0x332   : > { %5915 = vmatmul.mubr.f32.vlgmr.msra.gmra.mrb[168].mxu0 %v8712_v0  ;;  %v10267_v0 = vld [vmem:[#allocation61_spill] sm:$0xff] }
 0x333   : > { %4006 = vmatmul.mubr.f32.gmra.mrb[186].mxu1 %v8951_v13  ;;  %6420 = vmatpush1.bf16.msra.mxu0 %v6419_v36  ;;  %v4433_v36 = vld [vmem:[#allocation12 + $0x338] sm:$0xff] }
 0x334   : > { %5298 = vmatprep.mubr.msk.f32.mxu1 %vm8731_vm2, %v8776_v61  ;;  %5917 = vmatprep.mubr.f32.mxu0 %v10265_v57  ;;  %v10271_v57 = vld [vmem:[#allocation48_spill] sm:$0xff] }
 0x335   : > { %6421 = vmatprep.subr.bf16.mxu0 %v10134_v33  ;;  %6493 = vmatpush3.bf16.msra.mxu1 %v6490_v43  ;;  %v6428_v43 = vpack.c.bf16 %v4433_v36, %v4432_v18  ;;  %v4436_v18 = vld [vmem:[#allocation12 + $0x350] sm:$0xff]  ;;  %v4437_v36 = vld [vmem:[#allocation12 + $0x358] sm:$0xff] }
 0x336   : > { %5918 = vmatmul.mubr.f32.gmra.mrb[170].mxu0 %v10266_v56  ;;  %6495 = vmatprep.subr.bf16.mxu1 %v6494_v19  ;;  %v6434_v38 = vpack.c.bf16 %v4437_v36, %v4436_v18  ;;  %v4440_v18 = vld [vmem:[#allocation12 + $0x370] sm:$0xff]  ;;  %v4441_v36 = vld [vmem:[#allocation12 + $0x378] sm:$0xff] }
 0x337   : > { %4011 = vmatmul.mubr.f32.gmra.mrb[188].mxu1 %v10267_v0  ;;  %6423 = vmatpush1.bf16.msra.mxu0 %v6422_v60  ;;  %v10272_v60 = vld [vmem:[#allocation50_spill] sm:$0xff] }
 0x338   : > { %5920 = vmatprep.mubr.f32.mxu0 %v10268_v47  ;;  %4015 = vmatprep.mubr.f32.mxu1 %v10232_v21 }
 0x339   : > { %6424 = vmatprep.subr.bf16.mxu0 %v10134_v33  ;;  %6497 = vmatpush3.bf16.msra.mxu1 %v6494_v19  ;;  %v6431_v19 = vpack.c.bf16 %v4435_v14, %v4434_v51  ;;  %v4439_v51 = vld [vmem:[#allocation12 + $0x368] sm:$0xff] }
 0x33a   : > { %5921 = vmatmul.mubr.f32.gmra.mrb[172].mxu0 %v10269_v7  ;;  %v10279_v14 = vld [vmem:[#allocation33_spill] sm:$0xff] }
 0x33b   : > { %4016 = vmatmul.mubr.f32.gmra.mrb[190].mxu1 %v10270_v6  ;;  %6426 = vmatpush1.bf16.msra.mxu0 %v6425_v11  ;;  %v10275_v11 = vld [vmem:[#allocation54_spill] sm:$0xff] }
 0x33c   : > { %5299 = vmatprep.mubr.msk.f32.mxu1 %vm8813_vm6, %v10271_v57  ;;  %5923 = vmatprep.mubr.f32.mxu0 %v10272_v60 }
 0x33d   : > { %6427 = vmatprep.subr.bf16.mxu0 %v10134_v33 }
 0x33e   : > { %5924 = vmatmul.mubr.f32.gmra.mrb[174].mxu0 %v10273_v63 }
 0x33f   : > { %4021 = vmatmul.mubr.f32.gmra.mrb[192].mxu1 %v9036_v20  ;;  %6429 = vmatpush1.bf16.msra.mxu0 %v6428_v43  ;;  %v4438_v43 = vld [vmem:[#allocation12 + $0x360] sm:$0xff] }
 0x340   : > { %5300 = vmatprep.mubr.msk.f32.mxu1 %vm8813_vm6, %v10274_v53  ;;  %5926 = vmatprep.mubr.f32.mxu0 %v10275_v11  ;;  %v6437_v50 = vpack.c.bf16 %v4439_v51, %v4438_v43  ;;  %v10283_v20 = vld [vmem:[#allocation36_spill] sm:$0xff]  ;;  %v10284_v43 = vld [vmem:[#allocation47_spill] sm:$0xff] }
 0x341   : > { %6430 = vmatprep.subr.bf16.mxu0 %v10134_v33  ;;  %v4442_v51 = vld [vmem:[#allocation12 + $0x380] sm:$0xff] }
 0x342   : > { %5927 = vmatmul.mubr.f32.gmra.mrb[176].mxu0 %v10276_v10 }
 0x343   : > { %4026 = vmatmul.mubr.f32.gmra.mrb[194].mxu1 %v10277_v3  ;;  %6432 = vmatpush1.bf16.msra.mxu0 %v6431_v19  ;;  %v10282_v19 = vld [vmem:[#allocation34_spill] sm:$0xff]  ;;  %v6675_v3 = vld [vmem:[%s10206_s2] ss:$0 sm:$0xff] }
 0x344   : > { %5929 = vmatprep.mubr.f32.mxu0 %v10278_v24  ;;  %4030 = vmatprep.mubr.f32.mxu1 %v10232_v21  ;;  %v2842_v53 = vadd.f32 %v6675_v3, %v9146_v35  ;;  %v4444_v3 = vld [vmem:[#allocation12 + $0x390] sm:$0xff] }
 0x345   : > { %6433 = vmatprep.subr.bf16.mxu0 %v10134_v33 }
 0x346   : > { %5930 = vmatmul.mubr.f32.gmra.mrb[178].mxu0 %v10279_v14 }
 0x347   : > { %4031 = vmatmul.mubr.f32.gmra.mrb[196].mxu1 %v10280_v8  ;;  %6435 = vmatpush1.bf16.msra.mxu0 %v6434_v38  ;;  %v6440_v38 = vpack.c.bf16 %v4441_v36, %v4440_v18  ;;  %v9351_v8 = vmax.f32 %v2842_v53, 0.0  ;;  %v4445_v18 = vld [vmem:[#allocation12 + $0x398] sm:$0xff]  ;;  %v10287_v36 = vld [vmem:[#allocation53_spill] sm:$0xff] }
 0x348   : > { %5301 = vmatprep.mubr.msk.f32.mxu1 %vm8887_vm9, %v10281_v5  ;;  %5932 = vmatprep.mubr.f32.mxu0 %v10282_v19  ;;  %v4443_v5 = vld [vmem:[#allocation12 + $0x388] sm:$0xff]  ;;  %v10285_v19 = vld [vmem:[#allocation63_spill] sm:$0xff] }
 0x349   : > { %6436 = vmatprep.subr.bf16.mxu0 %v10134_v33  ;;  %v6443_v35 = vpack.c.bf16 %v4443_v5, %v4442_v51  ;;  %v9362_v53 = vsel %vm9139_vm8, %v9351_v8, 0.0  ;;  %v4446_v5 = vld [vmem:[#allocation12 + $0x3a0] sm:$0xff]  ;;  %v4447_v51 = vld [vmem:[#allocation12 + $0x3a8] sm:$0xff] }
 0x34a   : > { %5933 = vmatmul.mubr.f32.gmra.mrb[180].mxu0 %v10283_v20 }
 0x34b   : > { %4036 = vmatmul.mubr.f32.gmra.mrb[198].mxu1 %v9114_v54  ;;  %6438 = vmatpush1.bf16.msra.mxu0 %v6437_v50  ;;  %v10286_v50 = vld [vmem:[#allocation51_spill] sm:$0xff] }
 0x34c   : > { %5302 = vmatprep.mubr.msk.f32.mxu1 %vm8887_vm9, %v8916_v58  ;;  %5935 = vmatprep.mubr.f32.mxu0 %v10284_v43 }
 0x34d   : > { %6439 = vmatprep.subr.bf16.mxu0 %v10134_v33 }
 0x34e   : > { %5936 = vmatmul.mubr.f32.gmra.mrb[182].mxu0 %v10285_v19 }
 0x34f   : > { %4041 = vmatmul.mubr.f32.gmra.mrb[200].mxu1 %v9150_v31  ;;  %6441 = vmatpush1.bf16.msra.mxu0 %v6440_v38  ;;  %v6446_v38 = vpack.c.bf16 %v4445_v18, %v4444_v3  ;;  %v3211_v31 = vrot.slane %v9362_v53, 1  ;;  %v4449_v3 = vld [vmem:[#allocation12 + $0x3b8] sm:$0xff]  ;;  %v10288_v18 = vrot.slane %v9157_v41, 1 }
 0x350   : > { %5938 = vmatprep.mubr.f32.mxu0 %v10286_v50  ;;  %4045 = vmatprep.mubr.f32.mxu1 %v10232_v21 }
 0x351   : > { %6442 = vmatprep.subr.bf16.mxu0 %v10134_v33 }
 0x352   : > { %5939 = vmatmul.mubr.f32.gmra.mrb[184].mxu0 %v10287_v36 }
 0x353   : > { %4046 = vmatmul.mubr.f32.gmra.mrb[202].mxu1 %v9163_v32  ;;  %6444 = vmatpush1.bf16.msra.mxu0 %v6443_v35  ;;  %v6449_v32 = vpack.c.bf16 %v4447_v51, %v4446_v5  ;;  %v4448_v35 = vld [vmem:[#allocation12 + $0x3b0] sm:$0xff]  ;;  %v4450_v51 = vld [vmem:[#allocation12 + $0x3c0] sm:$0xff] }
 0x354   : > { %5303 = vmatprep.mubr.msk.f32.mxu1 %vm8979_vm13, %v8985_v48  ;;  %5941 = vmatprep.mubr.f32.mxu0 %v9120_v28  ;;  %v9382_v48 = vsel %vm790_vm1, %v10288_v18, %v3211_v31  ;;  %v6452_v5 = vpack.c.bf16 %v4449_v3, %v4448_v35  ;;  %v10289_v18 = vrot.slane %v9226_v42, 1  ;;  %v4452_v35 = vld [vmem:[#allocation12 + $0x3d0] sm:$0xff]  ;;  %v4453_v3 = vld [vmem:[#allocation12 + $0x3d8] sm:$0xff] }
 0x355   : > { %6445 = vmatprep.subr.bf16.mxu0 %v10134_v33  ;;  %v4457_v42 = vld [vmem:[#allocation12 + $0x3f8] sm:$0xff] }
 0x356   : > { %5942 = vmatmul.mubr.f32.gmra.mrb[186].mxu0 %v9125_v2 }
 0x357   : > { %4051 = vmatmul.mubr.f32.gmra.mrb[204].mxu1 %v9186_v15  ;;  %6447 = vmatpush1.bf16.msra.mxu0 %v6446_v38  ;;  %v9389_v38 = vsel %vm790_vm1, %v3211_v31, %v8608_v37 }
 0x358   : > { %5304 = vmatprep.mubr.msk.f32.mxu1 %vm8979_vm13, %v9002_v23  ;;  %5944 = vmatprep.mubr.f32.mxu0 %v9172_v62  ;;  %v4451_v23 = vld [vmem:[#allocation12 + $0x3c8] sm:$0xff] }
 0x359   : > { %6448 = vmatprep.subr.bf16.mxu0 %v10134_v33  ;;  %v6455_v31 = vpack.c.bf16 %v4451_v23, %v4450_v51  ;;  %v4454_v23 = vld [vmem:[#allocation12 + $0x3e0] sm:$0xff]  ;;  %v4456_v51 = vld [vmem:[#allocation12 + $0x3f0] sm:$0xff] }
 0x35a   : > { %5945 = vmatmul.mubr.f32.gmra.mrb[188].mxu0 %v9382_v48 }
 0x35b   : > { %4056 = vmatmul.mubr.f32.gmra.mrb[206].mxu1 %v9207_v16  ;;  %6450 = vmatpush1.bf16.msra.mxu0 %v6449_v32  ;;  %v9399_v32 = vsel %vm790_vm1, %v8608_v37, %v10289_v18  ;;  %v6458_v18 = vpack.c.bf16 %v4453_v3, %v4452_v35  ;;  %v6464_v35 = vpack.c.bf16 %v4457_v42, %v4456_v51  ;;  %v10290_v3 = vld [vmem:[#allocation65_spill] sm:$0xff] }
 0x35c   : > { %5947 = vmatprep.mubr.f32.mxu0 %v9389_v38  ;;  %4060 = vmatprep.mubr.f32.mxu1 %v10232_v21 }
 0x35d   : > { %6451 = vmatprep.subr.bf16.mxu0 %v10134_v33 }
 0x35e   : > { %5948 = vmatmul.mubr.f32.gmra.mrb[190].mxu0 %v9399_v32 }
 0x35f   : > { %4061 = vmatmul.mubr.f32.gmra.mrb[208].mxu1 %v9232_v46  ;;  %6453 = vmatpush1.bf16.msra.mxu0 %v6452_v5  ;;  %v4455_v5 = vld [vmem:[#allocation12 + $0x3e8] sm:$0xff] }
 0x360   : > { %5305 = vmatprep.mubr.msk.f32.mxu1 %vm9061_vm3, %v9065_v17  ;;  %5309 = vmatprep.mubr.msk.f32.mxu0 %vm8685_vm14, %v8696_v1  ;;  %v6461_v1 = vpack.c.bf16 %v4455_v5, %v4454_v23  ;;  %v3121_v23 = vrot.slane %v9362_v53, 7 }
 0x361   : > { %6454 = vmatprep.subr.bf16.mxu0 %v10134_v33 }
 0x363   : > { %4066 = vmatmul.mubr.f32.gmra.mrb[210].mxu1 %v9256_v9  ;;  %6456 = vmatpush1.bf16.msra.mxu0 %v6455_v31  ;;  %v3120_v31 = vrot.slane %v9157_v41, 7 }
 0x364   : > { %5306 = vmatprep.mubr.msk.f32.mxu1 %vm9061_vm3, %v9082_v25  ;;  %6457 = vmatprep.subr.bf16.mxu0 %v10134_v33 }
 0x365   : > { %v9437_v41 = vsel %vm681_vm4, %v3120_v31, %v3121_v23 }
 0x367   : > { %4071 = vmatmul.mubr.f32.gmra.mrb[212].mxu1 %v9285_v34  ;;  %6459 = vmatpush1.bf16.msra.mxu0 %v6458_v18  ;;  %v9427_v18 = vsel %vm681_vm4, %v8612_v52, %v3120_v31 }
 0x368   : > { %4075 = vmatprep.mubr.f32.mxu1 %v10232_v21  ;;  %6460 = vmatprep.subr.bf16.mxu0 %v10134_v33 }
 0x36b   : > { %4076 = vmatmul.mubr.f32.gmra.mrb[214].mxu1 %v9294_v12  ;;  %6462 = vmatpush1.bf16.msra.mxu0 %v6461_v1 }
 0x36c   : > { %5307 = vmatprep.mubr.msk.f32.mxu1 %vm9139_vm8, %v10290_v3  ;;  %6463 = vmatprep.subr.bf16.mxu0 %v10134_v33  ;;  %v9448_v33 = vsel %vm681_vm4, %v3121_v23, %v8612_v52 }
 0x36f   : > { %4081 = vmatmul.mubr.f32.gmra.mrb[216].mxu1 %v9427_v18  ;;  %6465 = vmatpush1.bf16.msra.mxu0 %v6464_v35 }
 0x370   : > { %5308 = vmatprep.mubr.msk.f32.mxu1 %vm9139_vm8, %v9351_v8 }
 0x372   : > { %4539 = vmatmul.mubr.f32.vlgmr.msra.gmra.mrb[192].mxu0 %v8863_v30  ;;  %v10291_v30 = vld [vmem:[#allocation39_spill] sm:$0xff] }
 0x373   : > { %4086 = vmatmul.mubr.f32.gmra.mrb[218].mxu1 %v9437_v41  ;;  %5310 = vmatprep.mubr.msk.f32.mxu0 %vm8685_vm14, %v8691_v22  ;;  %v10293_v22 = vld [vmem:[#allocation34_spill] sm:$0xff] }
 0x374   : > { %4090 = vmatprep.mubr.f32.mxu1 %v10232_v21 }
 0x376   : > { %4544 = vmatmul.mubr.f32.gmra.mrb[194].mxu0 %v8898_v4  ;;  %v10298_v4 = vld [vmem:[#allocation66_spill] sm:$0xff] }
 0x377   : > { %4091 = vmatmul.mubr.f32.gmra.mrb[220].mxu1 %v9448_v33  ;;  %4548 = vmatprep.mubr.f32.mxu0 %v10232_v21 }
 0x378   : > { %5982 = vmatprep.mubr.f32.mxu1 %v10266_v56 }
 0x37a   : > { %4549 = vmatmul.mubr.f32.gmra.mrb[196].mxu0 %v8921_v39  ;;  %v10299_v39 = vld [vmem:[#allocation37_spill] sm:$0xff] }
 0x37b   : > { %5311 = vmatprep.mubr.msk.f32.mxu0 %vm8731_vm2, %v8735_v44  ;;  %5983 = vmatmul.mubr.f32.vlgmr.msra.gmra.mrb[222].mxu1 %v10268_v47  ;;  %v10295_v44 = vld [vmem:[#allocation64_spill] sm:$0xff] }
 0x37c   : > { %5985 = vmatprep.mubr.f32.mxu1 %v10269_v7 }
 0x37e   : > { %4554 = vmatmul.mubr.f32.gmra.mrb[198].mxu0 %v8951_v13  ;;  %v10302_v13 = vld [vmem:[#allocation40_spill] sm:$0xff] }
 0x37f   : > { %5312 = vmatprep.mubr.msk.f32.mxu0 %vm8731_vm2, %v8776_v61  ;;  %5986 = vmatmul.mubr.f32.gmra.mrb[224].mxu1 %v10272_v60  ;;  %v10296_v61 = vld [vmem:[#allocation59_spill] sm:$0xff] }
 0x380   : > { %5988 = vmatprep.mubr.f32.mxu1 %v10273_v63 }
 0x382   : > { %4559 = vmatmul.mubr.f32.gmra.mrb[200].mxu0 %v10267_v0 }
 0x383   : > { %5989 = vmatmul.mubr.f32.gmra.mrb[226].mxu1 %v10275_v11  ;;  %4563 = vmatprep.mubr.f32.mxu0 %v10232_v21 }
 0x384   : > { %5991 = vmatprep.mubr.f32.mxu1 %v10276_v10 }
 0x386   : > { %4564 = vmatmul.mubr.f32.gmra.mrb[202].mxu0 %v10270_v6 }
 0x387   : > { %5313 = vmatprep.mubr.msk.f32.mxu0 %vm8813_vm6, %v10271_v57  ;;  %5992 = vmatmul.mubr.f32.gmra.mrb[228].mxu1 %v10278_v24 }
 0x388   : > { %5994 = vmatprep.mubr.f32.mxu1 %v10279_v14 }
 0x38a   : > { %4569 = vmatmul.mubr.f32.gmra.mrb[204].mxu0 %v10291_v30  ;;  %v10309_v30 = vld [vmem:[#allocation38_spill] sm:$0xff] }
 0x38b   : > { %5314 = vmatprep.mubr.msk.f32.mxu0 %vm8813_vm6, %v10292_v45  ;;  %5995 = vmatmul.mubr.f32.gmra.mrb[230].mxu1 %v10293_v22 }
 0x38c   : > { %5997 = vmatprep.mubr.f32.mxu1 %v10283_v20 }
 0x38e   : > { %4574 = vmatmul.mubr.f32.gmra.mrb[206].mxu0 %v10294_v40 }
 0x38f   : > { %5998 = vmatmul.mubr.f32.gmra.mrb[232].mxu1 %v10284_v43  ;;  %4578 = vmatprep.mubr.f32.mxu0 %v10232_v21 }
 0x390   : > { %6000 = vmatprep.mubr.f32.mxu1 %v10285_v19 }
 0x392   : > { %4579 = vmatmul.mubr.f32.gmra.mrb[208].mxu0 %v10295_v44  ;;  %v10311_v44 = vld [vmem:[#allocation58_spill] sm:$0xff] }
 0x393   : > { %5315 = vmatprep.mubr.msk.f32.mxu0 %vm8887_vm9, %v10296_v61  ;;  %6001 = vmatmul.mubr.f32.gmra.mrb[234].mxu1 %v10286_v50 }
 0x394   : > { %6003 = vmatprep.mubr.f32.mxu1 %v10287_v36 }
 0x396   : > { %4584 = vmatmul.mubr.f32.gmra.mrb[210].mxu0 %v9114_v54 }
 0x397   : > { %5316 = vmatprep.mubr.msk.f32.mxu0 %vm8887_vm9, %v8916_v58  ;;  %6004 = vmatmul.mubr.f32.gmra.mrb[236].mxu1 %v9120_v28  ;;  %v10300_v58 = vld [vmem:[#allocation45_spill] sm:$0xff] }
 0x398   : > { %6006 = vmatprep.mubr.f32.mxu1 %v9125_v2 }
 0x39a   : > { %4589 = vmatmul.mubr.f32.gmra.mrb[212].mxu0 %v10297_v29 }
 0x39b   : > { %6007 = vmatmul.mubr.f32.gmra.mrb[238].mxu1 %v9172_v62  ;;  %4593 = vmatprep.mubr.f32.mxu0 %v10232_v21  ;;  %v10304_v62 = vld [vmem:[#allocation41_spill] sm:$0xff] }
 0x39c   : > { %6009 = vmatprep.mubr.f32.mxu1 %v9382_v48  ;;  %v10303_v48 = vrot.slane %v10302_v13, 1 }
 0x39e   : > { %4594 = vmatmul.mubr.f32.gmra.mrb[214].mxu0 %v10298_v4  ;;  %v3216_v20 = vsel %vm790_vm1, %v10303_v48, %v8608_v37 }
 0x39f   : > { %5317 = vmatprep.mubr.msk.f32.mxu0 %vm8979_vm13, %v10299_v39  ;;  %6010 = vmatmul.mubr.f32.gmra.mrb[240].mxu1 %v9389_v38  ;;  %v10313_v39 = vld [vmem:[#allocation68_spill] sm:$0xff] }
 0x3a0   : > { %6012 = vmatprep.mubr.f32.mxu1 %v9399_v32 }
 0x3a2   : > { %4599 = vmatmul.mubr.f32.gmra.mrb[216].mxu0 %v9186_v15  ;;  %v10305_v15 = vrot.slane %v10304_v62, 1 }
 0x3a3   : > { %5318 = vmatprep.mubr.msk.f32.mxu0 %vm8979_vm13, %v10300_v58  ;;  %6013 = vmatmul.mubr.f32.gmra.mrb[242].mxu1 %v10301_v26 }
 0x3a4   : > { %6015 = vmatprep.mubr.f32.mxu1 %v3216_v20  ;;  %v3245_v55 = vsel %vm790_vm1, %v8608_v37, %v10305_v15  ;;  %v10314_v20 = vrot.slane %v10302_v13, 7 }
 0x3a5   : > { %v3462_v28 = vpop.f32.mrb[120].mxu0 }
 0x3a6   : > { %4604 = vmatmul.mubr.f32.gmra.mrb[218].mxu0 %v9207_v16  ;;  %v3464_v54 = vpop.f32.mrb[121].mxu0  ;;  %v5848_v2 = vpop.f32.mrb[150].mxu1 }
 0x3a7   : > { %6016 = vmatmul.mubr.f32.gmra.mrb[244].mxu1 %v3245_v55  ;;  %v3647_v63 = vpop.f32.mrb[151].mxu1  ;;  %4608 = vmatprep.mubr.f32.mxu0 %v10232_v21 }
 0x3a8   : > { %v9524_v24 = vadd.f32 %v3647_v63, %v3462_v28  ;;  %v3126_v28 = vsel %vm681_vm4, %v10314_v20, %v8612_v52 }
 0x3a9   : > { %v3467_v42 = vpop.f32.mrb[122].mxu0 }
 0x3aa   : > { %v9526_v10 = vadd.f32 %v5848_v2, %v3467_v42  ;;  %4609 = vmatmul.mubr.f32.gmra.mrb[220].mxu0 %v9232_v46  ;;  %v3469_v16 = vpop.f32.mrb[123].mxu0 }
 0x3ab   : > { %5319 = vmatprep.mubr.msk.f32.mxu0 %vm9061_vm3, %v9065_v17 }
 0x3ad   : > { %v3472_v56 = vpop.f32.mrb[124].mxu0  ;;  %v5851_v0 = vpop.f32.mrb[152].mxu1 }
 0x3ae   : > { %4614 = vmatmul.mubr.f32.gmra.mrb[222].mxu0 %v9256_v9  ;;  %v3474_v37 = vpop.f32.mrb[125].mxu0  ;;  %v3657_v47 = vpop.f32.mrb[153].mxu1 }
 0x3af   : > { %v9533_v7 = vadd.f32 %v3657_v47, %v3472_v56  ;;  %5320 = vmatprep.mubr.msk.f32.mxu0 %vm9061_vm3, %v9082_v25 }
 0x3b1   : > { %v3477_v6 = vpop.f32.mrb[126].mxu0  ;;  %v5854_v57 = vpop.f32.mrb[154].mxu1 }
 0x3b2   : > { %v9538_v46 = vadd.f32 %v5851_v0, %v3477_v6  ;;  %4619 = vmatmul.mubr.f32.gmra.mrb[224].mxu0 %v9285_v34  ;;  %v3479_v60 = vpop.f32.mrb[127].mxu0  ;;  %v3667_v17 = vpop.f32.mrb[155].mxu1 }
 0x3b3   : > { %4623 = vmatprep.mubr.f32.mxu0 %v10232_v21 }
 0x3b5   : > { %v3482_v11 = vpop.f32.mrb[128].mxu0  ;;  %v5857_v9 = vpop.f32.mrb[156].mxu1 }
 0x3b6   : > { %v9542_v14 = vadd.f32 %v3667_v17, %v3482_v11  ;;  %4624 = vmatmul.mubr.f32.gmra.mrb[226].mxu0 %v9294_v12  ;;  %v3484_v19 = vpop.f32.mrb[129].mxu0  ;;  %v3677_v43 = vpop.f32.mrb[157].mxu1 }
 0x3b7   : > { %5321 = vmatprep.mubr.msk.f32.mxu0 %vm9139_vm8, %v10290_v3 }
 0x3b9   : > { %v3487_v49 = vpop.f32.mrb[130].mxu0  ;;  %v5860_v25 = vpop.f32.mrb[158].mxu1 }
 0x3ba   : > { %v9548_v50 = vadd.f32 %v5854_v57, %v3487_v49  ;;  %4629 = vmatmul.mubr.f32.gmra.mrb[228].mxu0 %v9427_v18  ;;  %v3489_v34 = vpop.f32.mrb[131].mxu0  ;;  %v3687_v36 = vpop.f32.mrb[159].mxu1 }
 0x3bb   : > { %5322 = vmatprep.mubr.msk.f32.mxu0 %vm9139_vm8, %v9351_v8  ;;  %v10307_v8 = vmax.f32 %v10306_v59, 0.0 }
 0x3bd   : > { %v3492_v53 = vpop.f32.mrb[132].mxu0  ;;  %v5863_v12 = vpop.f32.mrb[160].mxu1 }
 0x3be   : > { %v9554_v38 = vadd.f32 %v3677_v43, %v3492_v53  ;;  %4634 = vmatmul.mubr.f32.gmra.mrb[230].mxu0 %v9437_v41  ;;  %v3494_v32 = vpop.f32.mrb[133].mxu0  ;;  %v3697_v5 = vpop.f32.mrb[161].mxu1  ;;  %v10310_v41 = vrot.slane %v10309_v30, 7 }
 0x3bf   : > { %4638 = vmatprep.mubr.f32.mxu0 %v10232_v21 }
 0x3c0   : > { %v3128_v45 = vsel %vm681_vm4, %v8612_v52, %v10310_v41 }
 0x3c1   : > { %v3497_v1 = vpop.f32.mrb[134].mxu0  ;;  %v5866_v51 = vpop.f32.mrb[162].mxu1 }
 0x3c2   : > { %v9558_v31 = vadd.f32 %v5857_v9, %v3497_v1  ;;  %4639 = vmatmul.mubr.f32.gmra.mrb[232].mxu0 %v9448_v33  ;;  %v3499_v35 = vpop.f32.mrb[135].mxu0  ;;  %v3707_v3 = vpop.f32.mrb[163].mxu1  ;;  %v10312_v33 = vmax.f32 %v10311_v44, 0.0 }
 0x3c3   : > { %5323 = vmatprep.mubr.msk.f32.mxu0 %vm9211_vm15, %v10307_v8 }
 0x3c5   : > { %v3502_v23 = vpop.f32.mrb[136].mxu0 }
 0x3c6   : > { %v9570_v22 = vadd.f32 %v3687_v36, %v3502_v23  ;;  %4644 = vmatmul.mubr.f32.gmra.mrb[234].mxu0 %v3128_v45  ;;  %v3504_v40 = vpop.f32.mrb[137].mxu0 }
 0x3c7   : > { %5324 = vmatprep.mubr.msk.f32.mxu0 %vm9211_vm15, %v10312_v33 }
 0x3c9   : > { %v3507_v61 = vpop.f32.mrb[138].mxu0 }
 0x3ca   : > { %v9576_v29 = vadd.f32 %v5860_v25, %v3507_v61  ;;  %v5869_v4 = vpop.f32.mrb[164].mxu1  ;;  %4649 = vmatmul.mubr.f32.gmra.mrb[236].mxu0 %v10313_v39  ;;  %v3509_v58 = vpop.f32.mrb[139].mxu0 }
 0x3cb   : > { %v3717_v26 = vpop.f32.mrb[165].mxu1  ;;  %4653 = vmatprep.mubr.f32.mxu0 %v10232_v21 }
 0x3cd   : > { %v3512_v48 = vpop.f32.mrb[140].mxu0 }
 0x3ce   : > { %v9585_v54 = vadd.f32 %v3697_v5, %v3512_v48  ;;  %4654 = vmatmul.mubr.f32.gmra.mrb[238].mxu0 %v3126_v28  ;;  %v3514_v2 = vpop.f32.mrb[141].mxu0 }
 0x3d1   : > { %v3517_v62 = vpop.f32.mrb[142].mxu0 }
 0x3d2   : > { %v9587_v15 = vadd.f32 %v5863_v12, %v3517_v62  ;;  %v5872_v55 = vpop.f32.mrb[166].mxu1  ;;  %v3519_v63 = vpop.f32.mrb[143].mxu0 }
 0x3d3   : > { %v3727_v42 = vpop.f32.mrb[167].mxu1 }
 0x3d5   : > { %v3522_v16 = vpop.f32.mrb[144].mxu0 }
 0x3d6   : > { %v9589_v56 = vadd.f32 %v3707_v3, %v3522_v16  ;;  %v3524_v21 = vpop.f32.mrb[145].mxu0 }
 0x3d7   : > { %v5875_v0 = vpop.f32.mrb[168].mxu1 }
 0x3d8   : > { %v3737_v37 = vpop.f32.mrb[169].mxu1 }
 0x3d9   : > { %v3527_v13 = vpop.f32.mrb[146].mxu0 }
 0x3da   : > { %v9591_v47 = vadd.f32 %v5866_v51, %v3527_v13  ;;  %v3529_v27 = vpop.f32.mrb[147].mxu0 }
 0x3dd   : > { %v3532_v52 = vpop.f32.mrb[148].mxu0 }
 0x3de   : > { %v9593_v6 = vadd.f32 %v3717_v26, %v3532_v52  ;;  %v3534_v57 = vpop.f32.mrb[149].mxu0 }
 0x3e1   : > { %v3537_v60 = vpop.f32.mrb[150].mxu0 }
 0x3e2   : > { %v9595_v17 = vadd.f32 %v5869_v4, %v3537_v60  ;;  %v5878_v11 = vpop.f32.mrb[170].mxu1  ;;  %v3539_v9 = vpop.f32.mrb[151].mxu0 }
 0x3e3   : > { %v3747_v19 = vpop.f32.mrb[171].mxu1 }
 0x3e5   : > { %v3542_v43 = vpop.f32.mrb[152].mxu0 }
 0x3e6   : > { %v9597_v49 = vadd.f32 %v3727_v42, %v3542_v43  ;;  %v3544_v25 = vpop.f32.mrb[153].mxu0 }
 0x3e9   : > { %v3547_v34 = vpop.f32.mrb[154].mxu0 }
 0x3ea   : > { %v9599_v36 = vadd.f32 %v5872_v55, %v3547_v34  ;;  %v5881_v53 = vpop.f32.mrb[172].mxu1  ;;  %v3549_v12 = vpop.f32.mrb[155].mxu0 }
 0x3eb   : > { %v3757_v32 = vpop.f32.mrb[173].mxu1 }
 0x3ed   : > { %v3552_v5 = vpop.f32.mrb[156].mxu0 }
 0x3ee   : > { %v9601_v1 = vadd.f32 %v3737_v37, %v3552_v5  ;;  %v3977_v51 = vpop.f32.mrb[174].mxu1  ;;  %v3554_v35 = vpop.f32.mrb[157].mxu0 }
 0x3ef   : > { %v3979_v3 = vpop.f32.mrb[175].mxu1 }
 0x3f1   : > { %v3557_v59 = vpop.f32.mrb[158].mxu0 }
 0x3f2   : > { %v9603_v8 = vadd.f32 %v5875_v0, %v3557_v59  ;;  %v3982_v18 = vpop.f32.mrb[176].mxu1  ;;  %v3559_v23 = vpop.f32.mrb[159].mxu0 }
 0x3f3   : > { %v3984_v30 = vpop.f32.mrb[177].mxu1 }
 0x3f5   : > { %v3562_v41 = vpop.f32.mrb[160].mxu0 }
 0x3f6   : > { %v9605_v45 = vadd.f32 %v3747_v19, %v3562_v41  ;;  %v3987_v40 = vpop.f32.mrb[178].mxu1  ;;  %v3564_v44 = vpop.f32.mrb[161].mxu0 }
 0x3f7   : > { %v3989_v33 = vpop.f32.mrb[179].mxu1 }
 0x3f9   : > { %v3567_v61 = vpop.f32.mrb[162].mxu0 }
 0x3fa   : > { %v9607_v4 = vadd.f32 %v5878_v11, %v3567_v61  ;;  %v3992_v39 = vpop.f32.mrb[180].mxu1  ;;  %v3569_v58 = vpop.f32.mrb[163].mxu0 }
 0x3fb   : > { %v3994_v26 = vpop.f32.mrb[181].mxu1 }
 0x3fd   : > { %v3572_v48 = vpop.f32.mrb[164].mxu0 }
 0x3fe   : > { %v9609_v20 = vadd.f32 %v3757_v32, %v3572_v48  ;;  %v3997_v28 = vpop.f32.mrb[182].mxu1  ;;  %v3574_v2 = vpop.f32.mrb[165].mxu0 }
 0x3ff   : > { %v3999_v62 = vpop.f32.mrb[183].mxu1 }
 0x401   : > { %v3577_v55 = vpop.f32.mrb[166].mxu0 }
 0x402   : > { %v9611_v63 = vadd.f32 %v5881_v53, %v3577_v55  ;;  %v4002_v42 = vpop.f32.mrb[184].mxu1  ;;  %v3579_v16 = vpop.f32.mrb[167].mxu0 }
 0x403   : > { %v4004_v21 = vpop.f32.mrb[185].mxu1 }
 0x405   : > { %v5916_v0 = vpop.f32.mrb[168].mxu0 }
 0x406   : > { %v4007_v37 = vpop.f32.mrb[186].mxu1  ;;  %v4168_v13 = vadd.f32 %v5916_v0, %v3982_v18  ;;  %v4162_v27 = vpop.f32.mrb[169].mxu0 }
 0x407   : > { %v4009_v52 = vpop.f32.mrb[187].mxu1  ;;  %v4163_v57 = vadd.f32 %v4162_v27, %v3977_v51 }
 0x408   : > { %v9614_v60 = vadd.f32 %v4168_v13, %v9526_v10 }
 0x409   : > { %v9617_v11 = vadd.f32 %v4163_v57, %v9524_v24  ;;  %v5919_v9 = vpop.f32.mrb[170].mxu0 }
 0x40a   : > { %v4012_v19 = vpop.f32.mrb[188].mxu1  ;;  %v4178_v43 = vadd.f32 %v5919_v9, %v3992_v39  ;;  %v4172_v25 = vpop.f32.mrb[171].mxu0 }
 0x40b   : > { %v4014_v34 = vpop.f32.mrb[189].mxu1  ;;  %v4173_v53 = vadd.f32 %v4172_v25, %v3987_v40 }
 0x40c   : > { %v9620_v12 = vadd.f32 %v4178_v43, %v9538_v46 }
 0x40d   : > { %v9623_v32 = vadd.f32 %v4173_v53, %v9533_v7  ;;  %v5922_v5 = vpop.f32.mrb[172].mxu0 }
 0x40e   : > { %v4017_v51 = vpop.f32.mrb[190].mxu1  ;;  %v4188_v35 = vadd.f32 %v5922_v5, %v4002_v42  ;;  %v4182_v10 = vpop.f32.mrb[173].mxu0 }
 0x40f   : > { %v4019_v3 = vpop.f32.mrb[191].mxu1  ;;  %v4183_v59 = vadd.f32 %v4182_v10, %v3997_v28 }
 0x410   : > { %v9626_v24 = vadd.f32 %v4188_v35, %v9548_v50 }
 0x411   : > { %v9629_v18 = vadd.f32 %v4183_v59, %v9542_v14  ;;  %v5925_v23 = vpop.f32.mrb[174].mxu0 }
 0x412   : > { %v4022_v30 = vpop.f32.mrb[192].mxu1  ;;  %v4198_v41 = vadd.f32 %v5925_v23, %v4012_v19  ;;  %v4192_v46 = vpop.f32.mrb[175].mxu0 }
 0x413   : > { %v4024_v40 = vpop.f32.mrb[193].mxu1  ;;  %v4193_v44 = vadd.f32 %v4192_v46, %v4007_v37 }
 0x414   : > { %v9632_v7 = vadd.f32 %v4198_v41, %v9558_v31 }
 0x415   : > { %v9635_v33 = vadd.f32 %v4193_v44, %v9554_v38  ;;  %v5928_v61 = vpop.f32.mrb[176].mxu0 }
 0x416   : > { %v4027_v39 = vpop.f32.mrb[194].mxu1  ;;  %v4208_v58 = vadd.f32 %v5928_v61, %v4022_v30  ;;  %v4202_v50 = vpop.f32.mrb[177].mxu0 }
 0x417   : > { %v4029_v26 = vpop.f32.mrb[195].mxu1  ;;  %v4203_v48 = vadd.f32 %v4202_v50, %v4017_v51 }
 0x418   : > { %v9638_v14 = vadd.f32 %v4208_v58, %v9576_v29 }
 0x419   : > { %v9641_v28 = vadd.f32 %v4203_v48, %v9570_v22  ;;  %v5931_v2 = vpop.f32.mrb[178].mxu0 }
 0x41a   : > { %v4032_v62 = vpop.f32.mrb[196].mxu1  ;;  %v4212_v55 = vpop.f32.mrb[179].mxu0 }
 0x41b   : > { %v4218_v31 = vadd.f32 %v5931_v2, %v4032_v62  ;;  %v4034_v42 = vpop.f32.mrb[197].mxu1  ;;  %v4213_v16 = vadd.f32 %v4212_v55, %v4027_v39 }
 0x41d   : > { %v9644_v38 = vadd.f32 %v4218_v31, %v9587_v15  ;;  %v9647_v21 = vadd.f32 %v4213_v16, %v9585_v54  ;;  %v5934_v0 = vpop.f32.mrb[180].mxu0 }
 0x41e   : > { %v4037_v37 = vpop.f32.mrb[198].mxu1  ;;  %v4222_v13 = vpop.f32.mrb[181].mxu0 }
 0x41f   : > { %v4039_v29 = vpop.f32.mrb[199].mxu1  ;;  %v4223_v27 = vadd.f32 %v4222_v13, %v4037_v37 }
 0x421   : > { %v9650_v22 = vadd.f32 %v4223_v27, %v9589_v56  ;;  %v5937_v52 = vpop.f32.mrb[182].mxu0 }
 0x422   : > { %v4042_v57 = vpop.f32.mrb[200].mxu1  ;;  %v4232_v9 = vpop.f32.mrb[183].mxu0 }
 0x423   : > { %v4228_v19 = vadd.f32 %v5934_v0, %v4042_v57  ;;  %v4044_v43 = vpop.f32.mrb[201].mxu1 }
 0x425   : > { %v9653_v25 = vadd.f32 %v4228_v19, %v9591_v47  ;;  %v5940_v15 = vpop.f32.mrb[184].mxu0 }
 0x426   : > { %v4047_v34 = vpop.f32.mrb[202].mxu1  ;;  %v4242_v54 = vpop.f32.mrb[185].mxu0 }
 0x427   : > { %v4233_v53 = vadd.f32 %v4232_v9, %v4047_v34  ;;  %v4049_v5 = vpop.f32.mrb[203].mxu1 }
 0x429   : > { %v9656_v51 = vadd.f32 %v4233_v53, %v9593_v6  ;;  %v5943_v35 = vpop.f32.mrb[186].mxu0 }
 0x42a   : > { %v4052_v10 = vpop.f32.mrb[204].mxu1  ;;  %v4252_v56 = vpop.f32.mrb[187].mxu0 }
 0x42b   : > { %v4238_v3 = vadd.f32 %v5937_v52, %v4052_v10  ;;  %v4054_v59 = vpop.f32.mrb[205].mxu1 }
 0x42d   : > { %v9659_v23 = vadd.f32 %v4238_v3, %v9595_v17  ;;  %v5946_v30 = vpop.f32.mrb[188].mxu0 }
 0x42e   : > { %v4057_v41 = vpop.f32.mrb[206].mxu1  ;;  %v4262_v47 = vpop.f32.mrb[189].mxu0 }
 0x42f   : > { %v4243_v46 = vadd.f32 %v4242_v54, %v4057_v41  ;;  %v4059_v40 = vpop.f32.mrb[207].mxu1 }
 0x431   : > { %v9662_v44 = vadd.f32 %v4243_v46, %v9597_v49  ;;  %v5949_v61 = vpop.f32.mrb[190].mxu0 }
 0x432   : > { %v4062_v39 = vpop.f32.mrb[208].mxu1  ;;  %v4272_v6 = vpop.f32.mrb[191].mxu0 }
 0x433   : > { %v4248_v58 = vadd.f32 %v5940_v15, %v4062_v39  ;;  %v4064_v50 = vpop.f32.mrb[209].mxu1  ;;  %v4971_v39 = vld [vmem:[%s7426_s16] sm:$0xff] }
 0x435   : > { %v9665_v26 = vadd.f32 %v4248_v58, %v9599_v36 }
 0x436   : > { %v4067_v48 = vpop.f32.mrb[210].mxu1 }
 0x437   : > { %v4253_v2 = vadd.f32 %v4252_v56, %v4067_v48  ;;  %v4069_v17 = vpop.f32.mrb[211].mxu1 }
 0x439   : > { %v9668_v62 = vadd.f32 %v4253_v2, %v9601_v1 }
 0x43a   : > { %v4072_v55 = vpop.f32.mrb[212].mxu1 }
 0x43b   : > { %v4258_v31 = vadd.f32 %v5943_v35, %v4072_v55  ;;  %v4074_v42 = vpop.f32.mrb[213].mxu1 }
 0x43d   : > { %v9671_v49 = vadd.f32 %v4258_v31, %v9603_v8  ;;  %v4974_v31 = vld [vmem:[%s7426_s16 + $0x18] sm:$0xff] }
 0x43e   : > { %v4077_v16 = vpop.f32.mrb[214].mxu1 }
 0x43f   : > { %v4263_v0 = vadd.f32 %v4262_v47, %v4077_v16  ;;  %v4079_v37 = vpop.f32.mrb[215].mxu1  ;;  %v4972_v47 = vld [vmem:[%s7426_s16 + $0x8] sm:$0xff] }
 0x440   : > { %v4973_v37 = vld [vmem:[%s7426_s16 + $0x10] sm:$0xff] }
 0x441   : > { %v9674_v13 = vadd.f32 %v4263_v0, %v9605_v45 }
 0x442   : > { %v4082_v36 = vpop.f32.mrb[216].mxu1 }
 0x443   : > { %v4268_v29 = vadd.f32 %v5946_v30, %v4082_v36  ;;  %v4084_v27 = vpop.f32.mrb[217].mxu1 }
 0x445   : > { %v9677_v52 = vadd.f32 %v4268_v29, %v9607_v4  ;;  %v4540_v1 = vpop.f32.mrb[192].mxu0 }
 0x446   : > { %v4087_v57 = vpop.f32.mrb[218].mxu1  ;;  %v4542_v9 = vpop.f32.mrb[193].mxu0 }
 0x447   : > { %v4273_v19 = vadd.f32 %v4272_v6, %v4087_v57  ;;  %v4089_v43 = vpop.f32.mrb[219].mxu1 }
 0x449   : > { %v9680_v8 = vadd.f32 %v4273_v19, %v9609_v20  ;;  %v4545_v15 = vpop.f32.mrb[194].mxu0  ;;  %v9688_v20 = vld [vmem:[%s10315_s21] ss:$0 sm:$0xff] }
 0x44a   : > { %v4092_v34 = vpop.f32.mrb[220].mxu1  ;;  %v4547_v54 = vpop.f32.mrb[195].mxu0 }
 0x44b   : > { %v4278_v45 = vadd.f32 %v5949_v61, %v4092_v34  ;;  %v4094_v53 = vpop.f32.mrb[221].mxu1 }
 0x44c   : > { %v4976_v53 = vld [vmem:[%s7426_s16 + $0x28] sm:$0xff] }
 0x44d   : > { %v9683_v5 = vadd.f32 %v4278_v45, %v9611_v63  ;;  %v4550_v4 = vpop.f32.mrb[196].mxu0 }
 0x44e   : > { %v4552_v35 = vpop.f32.mrb[197].mxu0  ;;  %v5984_v10 = vpop.f32.mrb[222].mxu1 }
 0x44f   : > { %v4731_v56 = vadd.f32 %v5984_v10, %v4545_v15  ;;  %v4725_v3 = vpop.f32.mrb[223].mxu1  ;;  %v4975_v15 = vld [vmem:[%s7426_s16 + $0x20] sm:$0xff] }
 0x450   : > { %v4726_v59 = vadd.f32 %v4725_v3, %v4540_v1 }
 0x451   : > { %v4869_v30 = vadd.f32 %v4731_v56, %v9614_v60  ;;  %v4555_v41 = vpop.f32.mrb[198].mxu0 }
 0x452   : > { %v4868_v46 = vadd.f32 %v4726_v59, %v9617_v11  ;;  %v4557_v63 = vpop.f32.mrb[199].mxu0  ;;  %v5987_v40 = vpop.f32.mrb[224].mxu1 }
 0x453   : > { %v4948_v61 = vadd.f32 %v9688_v20, %v4869_v30  ;;  %v4741_v6 = vadd.f32 %v5987_v40, %v4555_v41  ;;  %v4735_v58 = vpop.f32.mrb[225].mxu1 }
 0x454   : > { %v4947_v50 = vadd.f32 %v9688_v20, %v4868_v46  ;;  %v4736_v48 = vadd.f32 %v4735_v58, %v4550_v4 }
 0x455   : > { %v4996_v2 = vadd.f32 %v4972_v47, %v4948_v61  ;;  %v4871_v60 = vadd.f32 %v4741_v6, %v9620_v12  ;;  %v4560_v17 = vpop.f32.mrb[200].mxu0  ;;  %v4977_v47 = vld [vmem:[%s7426_s16 + $0x30] sm:$0xff] }
 0x456   : > { %v4995_v55 = vadd.f32 %v4971_v39, %v4947_v50  ;;  %v4870_v11 = vadd.f32 %v4736_v48, %v9623_v32  ;;  %v4562_v42 = vpop.f32.mrb[201].mxu0  ;;  %v5990_v16 = vpop.f32.mrb[226].mxu1  ;;  %v4978_v50 = vld [vmem:[%s7426_s16 + $0x38] sm:$0xff] }
 0x457   : > { %5020 = vst [vmem:[%s9701_s7 + $0x8] sm:$0xff] %v4996_v2  ;;  %v4950_v0 = vadd.f32 %v9688_v20, %v4871_v60  ;;  %v4745_v12 = vpop.f32.mrb[227].mxu1  ;;  %v4979_v42 = vld [vmem:[%s7426_s16 + $0x40] sm:$0xff] }
 0x458   : > { %5019 = vst [vmem:[%s9701_s7] sm:$0xff] %v4995_v55  ;;  %v4949_v36 = vadd.f32 %v9688_v20, %v4870_v11  ;;  %v4746_v32 = vadd.f32 %v4745_v12, %v4560_v17 }
 0x459   : > { %v4998_v29 = vadd.f32 %v4974_v31, %v4950_v0  ;;  %v4565_v27 = vpop.f32.mrb[202].mxu0 }
 0x45a   : > { %v4997_v1 = vadd.f32 %v4973_v37, %v4949_v36  ;;  %v4872_v57 = vadd.f32 %v4746_v32, %v9629_v18  ;;  %v4751_v9 = vadd.f32 %v5990_v16, %v4565_v27  ;;  %v4567_v19 = vpop.f32.mrb[203].mxu0  ;;  %v5993_v43 = vpop.f32.mrb[228].mxu1  ;;  %v4980_v27 = vld [vmem:[%s7426_s16 + $0x48] sm:$0xff] }
 0x45b   : > { %5022 = vst [vmem:[%s9701_s7 + $0x18] sm:$0xff] %v4998_v29  ;;  %v4755_v34 = vpop.f32.mrb[229].mxu1 }
 0x45c   : > { %5021 = vst [vmem:[%s9701_s7 + $0x10] sm:$0xff] %v4997_v1  ;;  %v4951_v54 = vadd.f32 %v9688_v20, %v4872_v57  ;;  %v4873_v45 = vadd.f32 %v4751_v9, %v9626_v24 }
 0x45d   : > { %v4570_v4 = vpop.f32.mrb[204].mxu0 }
 0x45e   : > { %v4999_v35 = vadd.f32 %v4975_v15, %v4951_v54  ;;  %v4952_v10 = vadd.f32 %v9688_v20, %v4873_v45  ;;  %v4756_v18 = vadd.f32 %v4755_v34, %v4570_v4  ;;  %v4572_v56 = vpop.f32.mrb[205].mxu0  ;;  %v5996_v3 = vpop.f32.mrb[230].mxu1  ;;  %v4981_v54 = vld [vmem:[%s7426_s16 + $0x50] sm:$0xff] }
 0x45f   : > { %v4765_v59 = vpop.f32.mrb[231].mxu1 }
 0x460   : > { %5023 = vst [vmem:[%s9701_s7 + $0x20] sm:$0xff] %v4999_v35  ;;  %v5000_v30 = vadd.f32 %v4976_v53, %v4952_v10  ;;  %v4874_v41 = vadd.f32 %v4756_v18, %v9635_v33 }
 0x461   : > { %v4575_v46 = vpop.f32.mrb[206].mxu0 }
 0x462   : > { %5024 = vst [vmem:[%s9701_s7 + $0x28] sm:$0xff] %v5000_v30  ;;  %v4953_v24 = vadd.f32 %v9688_v20, %v4874_v41  ;;  %v4761_v63 = vadd.f32 %v5993_v43, %v4575_v46  ;;  %v4577_v40 = vpop.f32.mrb[207].mxu0  ;;  %v5999_v61 = vpop.f32.mrb[232].mxu1 }
 0x463   : > { %v4775_v39 = vpop.f32.mrb[233].mxu1  ;;  %v4983_v40 = vld [vmem:[%s7426_s16 + $0x60] sm:$0xff] }
 0x464   : > { %v5001_v6 = vadd.f32 %v4977_v47, %v4953_v24  ;;  %v4875_v58 = vadd.f32 %v4761_v63, %v9632_v7 }
 0x465   : > { %v4580_v48 = vpop.f32.mrb[208].mxu0 }
 0x466   : > { %5025 = vst [vmem:[%s9701_s7 + $0x30] sm:$0xff] %v5001_v6  ;;  %v4954_v2 = vadd.f32 %v9688_v20, %v4875_v58  ;;  %v4766_v33 = vadd.f32 %v4765_v59, %v4580_v48  ;;  %v4582_v60 = vpop.f32.mrb[209].mxu0  ;;  %v6002_v17 = vpop.f32.mrb[234].mxu1 }
 0x467   : > { %v4785_v55 = vpop.f32.mrb[235].mxu1 }
 0x468   : > { %v5002_v31 = vadd.f32 %v4978_v50, %v4954_v2  ;;  %v4876_v11 = vadd.f32 %v4766_v33, %v9641_v28  ;;  %v4984_v33 = vld [vmem:[%s7426_s16 + $0x68] sm:$0xff] }
 0x469   : > { %v4585_v16 = vpop.f32.mrb[210].mxu0 }
 0x46a   : > { %5026 = vst [vmem:[%s9701_s7 + $0x38] sm:$0xff] %v5002_v31  ;;  %v4955_v0 = vadd.f32 %v9688_v20, %v4876_v11  ;;  %v4771_v7 = vadd.f32 %v5996_v3, %v4585_v16  ;;  %v4587_v37 = vpop.f32.mrb[211].mxu0  ;;  %v6005_v12 = vpop.f32.mrb[236].mxu1  ;;  %v4982_v3 = vld [vmem:[%s7426_s16 + $0x58] sm:$0xff] }
 0x46b   : > { %v4795_v36 = vpop.f32.mrb[237].mxu1 }
 0x46c   : > { %v5003_v32 = vadd.f32 %v4979_v42, %v4955_v0  ;;  %v4877_v29 = vadd.f32 %v4771_v7, %v9638_v14  ;;  %v4985_v42 = vld [vmem:[%s7426_s16 + $0x70] sm:$0xff] }
 0x46d   : > { %v4590_v1 = vpop.f32.mrb[212].mxu0 }
 0x46e   : > { %5027 = vst [vmem:[%s9701_s7 + $0x40] sm:$0xff] %v5003_v32  ;;  %v4956_v57 = vadd.f32 %v9688_v20, %v4877_v29  ;;  %v4776_v28 = vadd.f32 %v4775_v39, %v4590_v1  ;;  %v4592_v9 = vpop.f32.mrb[213].mxu0  ;;  %v6008_v19 = vpop.f32.mrb[238].mxu1  ;;  %v4986_v29 = vld [vmem:[%s7426_s16 + $0x78] sm:$0xff] }
 0x46f   : > { %v4805_v43 = vpop.f32.mrb[239].mxu1  ;;  %v4987_v9 = vld [vmem:[%s7426_s16 + $0x80] sm:$0xff] }
 0x470   : > { %v5004_v15 = vadd.f32 %v4980_v27, %v4956_v57  ;;  %v4878_v34 = vadd.f32 %v4776_v28, %v9647_v21 }
 0x471   : > { %v4595_v45 = vpop.f32.mrb[214].mxu0 }
 0x472   : > { %5028 = vst [vmem:[%s9701_s7 + $0x48] sm:$0xff] %v5004_v15  ;;  %v4957_v53 = vadd.f32 %v9688_v20, %v4878_v34  ;;  %v4781_v14 = vadd.f32 %v5999_v61, %v4595_v45  ;;  %v4597_v4 = vpop.f32.mrb[215].mxu0  ;;  %v9737_v35 = vpop.f32.mrb[240].mxu1 }
 0x473   : > { %v4815_v10 = vpop.f32.mrb[241].mxu1 }
 0x474   : > { %v5005_v18 = vadd.f32 %v4981_v54, %v4957_v53  ;;  %v4879_v56 = vadd.f32 %v4781_v14, %v9644_v38  ;;  %v4988_v53 = vld [vmem:[%s7426_s16 + $0x88] sm:$0xff] }
 0x475   : > { %v4600_v59 = vpop.f32.mrb[216].mxu0 }
 0x476   : > { %5029 = vst [vmem:[%s9701_s7 + $0x50] sm:$0xff] %v5005_v18  ;;  %v4958_v21 = vadd.f32 %v9688_v20, %v4879_v56  ;;  %v4786_v30 = vadd.f32 %v4785_v55, %v4600_v59  ;;  %v4602_v41 = vpop.f32.mrb[217].mxu0  ;;  %v9743_v47 = vpop.f32.mrb[242].mxu1 }
 0x477   : > { %v9745_v46 = vpop.f32.mrb[243].mxu1 }
 0x478   : > { %v5006_v24 = vadd.f32 %v4982_v3, %v4958_v21  ;;  %v4880_v63 = vadd.f32 %v4786_v30, %v9650_v22  ;;  %v4989_v3 = vld [vmem:[%s7426_s16 + $0x90] sm:$0xff] }
 0x479   : > { %v4605_v61 = vpop.f32.mrb[218].mxu0 }
 0x47a   : > { %5030 = vst [vmem:[%s9701_s7 + $0x58] sm:$0xff] %v5006_v24  ;;  %v4959_v38 = vadd.f32 %v9688_v20, %v4880_v63  ;;  %v4791_v39 = vadd.f32 %v6002_v17, %v4605_v61  ;;  %v4607_v6 = vpop.f32.mrb[219].mxu0  ;;  %v9751_v58 = vpop.f32.mrb[244].mxu1  ;;  %v4990_v24 = vld [vmem:[%s7426_s16 + $0x98] sm:$0xff] }
 0x47b   : > { %v9753_v50 = vpop.f32.mrb[245].mxu1 }
 0x47c   : > { %v5007_v48 = vadd.f32 %v4983_v40, %v4959_v38  ;;  %v4881_v2 = vadd.f32 %v4791_v39, %v9653_v25 }
 0x47d   : > { %v4610_v60 = vpop.f32.mrb[220].mxu0 }
 0x47e   : > { %5031 = vst [vmem:[%s9701_s7 + $0x60] sm:$0xff] %v5007_v48  ;;  %v4960_v22 = vadd.f32 %v9688_v20, %v4881_v2  ;;  %v4796_v55 = vadd.f32 %v4795_v36, %v4610_v60  ;;  %v4612_v31 = vpop.f32.mrb[221].mxu0  ;;  %v4992_v60 = vld [vmem:[%s7426_s16 + $0xa8] sm:$0xff] }
 0x480   : > { %v5008_v11 = vadd.f32 %v4984_v33, %v4960_v22  ;;  %v4882_v17 = vadd.f32 %v4796_v55, %v9656_v51 }
 0x481   : > { %v4615_v16 = vpop.f32.mrb[222].mxu0 }
 0x482   : > { %5032 = vst [vmem:[%s9701_s7 + $0x68] sm:$0xff] %v5008_v11  ;;  %v4961_v0 = vadd.f32 %v9688_v20, %v4882_v17  ;;  %v4801_v25 = vadd.f32 %v6005_v12, %v4615_v16  ;;  %v4617_v7 = vpop.f32.mrb[223].mxu0  ;;  %v4993_v11 = vld [vmem:[%s7426_s16 + $0xb0] sm:$0xff] }
 0x484   : > { %v5009_v37 = vadd.f32 %v4985_v42, %v4961_v0  ;;  %v4883_v32 = vadd.f32 %v4801_v25, %v9659_v23  ;;  %v4994_v25 = vld [vmem:[%s7426_s16 + $0xb8] sm:$0xff] }
 0x485   : > { %v4620_v27 = vpop.f32.mrb[224].mxu0 }
 0x486   : > { %5033 = vst [vmem:[%s9701_s7 + $0x70] sm:$0xff] %v5009_v37  ;;  %v4962_v36 = vadd.f32 %v9688_v20, %v4883_v32  ;;  %v4806_v51 = vadd.f32 %v4805_v43, %v4620_v27  ;;  %v4622_v1 = vpop.f32.mrb[225].mxu0 }
 0x488   : > { %v5010_v57 = vadd.f32 %v4986_v29, %v4962_v36  ;;  %v4884_v28 = vadd.f32 %v4806_v51, %v9662_v44 }
 0x489   : > { %v4625_v15 = vpop.f32.mrb[226].mxu0 }
 0x48a   : > { %5034 = vst [vmem:[%s9701_s7 + $0x78] sm:$0xff] %v5010_v57  ;;  %v4963_v12 = vadd.f32 %v9688_v20, %v4884_v28  ;;  %v4811_v23 = vadd.f32 %v6008_v19, %v4625_v15  ;;  %v4627_v34 = vpop.f32.mrb[227].mxu0 }
 0x48c   : > { %v5011_v54 = vadd.f32 %v4987_v9, %v4963_v12  ;;  %v4885_v45 = vadd.f32 %v4811_v23, %v9665_v26 }
 0x48d   : > { %v4630_v14 = vpop.f32.mrb[228].mxu0 }
 0x48e   : > { %5035 = vst [vmem:[%s9701_s7 + $0x80] sm:$0xff] %v5011_v54  ;;  %v4964_v43 = vadd.f32 %v9688_v20, %v4885_v45  ;;  %v4816_v44 = vadd.f32 %v4815_v10, %v4630_v14  ;;  %v4632_v4 = vpop.f32.mrb[229].mxu0 }
 0x490   : > { %v5012_v18 = vadd.f32 %v4988_v53, %v4964_v43  ;;  %v4886_v56 = vadd.f32 %v4816_v44, %v9668_v62 }
 0x491   : > { %v4635_v59 = vpop.f32.mrb[230].mxu0 }
 0x492   : > { %5036 = vst [vmem:[%s9701_s7 + $0x88] sm:$0xff] %v5012_v18  ;;  %v4965_v19 = vadd.f32 %v9688_v20, %v4886_v56  ;;  %v4821_v26 = vadd.f32 %v9737_v35, %v4635_v59  ;;  %v4637_v21 = vpop.f32.mrb[231].mxu0  ;;  %v4991_v35 = vld [vmem:[%s7426_s16 + $0xa0] sm:$0xff]  ;;  %s6991_s16 = smov [#allocation13]  }
 0x493   : > { %s6826_s11 = sshll.u32 %s6991_s16, 4  ;;  %s6827_s11 = int_to_ptr.vmem [resolvable:$false] %s6826_s11 }
 0x494   : > { %v5013_v30 = vadd.f32 %v4989_v3, %v4965_v19  ;;  %v4887_v41 = vadd.f32 %v4821_v26, %v9671_v49  ;;  %s6828_s21 = scalar_lea.vmem %s6827_s11, 6144  ;;  %p6829_p12 = scmp.lt.s32.totalorder %s9807_s15, %s6827_s11 }
 0x495   : > { %v4640_v10 = vpop.f32.mrb[232].mxu0  ;;  %p6830_p3 = scmp.lt.s32.totalorder %s6828_s21, %s6822_s19 }
 0x496   : > { %5037 = vst [vmem:[%s9701_s7 + $0x90] sm:$0xff] %v5013_v30  ;;  %v4966_v62 = vadd.f32 %v9688_v20, %v4887_v41  ;;  %v4826_v63 = vadd.f32 %v9745_v46, %v4640_v10  ;;  %v4642_v40 = vpop.f32.mrb[233].mxu0 }
 0x497   : > { %p6831_p8 = por %p6830_p3, %p6829_p12 }
 0x498   : > { %v5014_v61 = vadd.f32 %v4990_v24, %v4966_v62  ;;  %v4888_v38 = vadd.f32 %v4826_v63, %v9674_v13 }
 0x499   : > { %v4645_v39 = vpop.f32.mrb[234].mxu0  ;;  %p6832_p5 = pnand %p6831_p8, %p6825_p0 }
 0x49a   : > { %5038 = vst [vmem:[%s9701_s7 + $0x98] sm:$0xff] %v5014_v61  ;;  %v4967_v49 = vadd.f32 %v9688_v20, %v4888_v38  ;;  %v4831_v6 = vadd.f32 %v9743_v47, %v4645_v39  ;;  %v4647_v48 = vpop.f32.mrb[235].mxu0 }
 0x49c   : > { %v5015_v2 = vadd.f32 %v4991_v35, %v4967_v49  ;;  %v4889_v33 = vadd.f32 %v4831_v6, %v9677_v52 }
 0x49d   : > { %v4650_v46 = vpop.f32.mrb[236].mxu0 }
 0x49e   : > { %5039 = vst [vmem:[%s9701_s7 + $0xa0] sm:$0xff] %v5015_v2  ;;  %v4968_v13 = vadd.f32 %v9688_v20, %v4889_v33  ;;  %v4836_v22 = vadd.f32 %v9753_v50, %v4650_v46  ;;  %v4652_v55 = vpop.f32.mrb[237].mxu0 }
 0x4a0   : > { %v5016_v31 = vadd.f32 %v4992_v60, %v4968_v13  ;;  %v4890_v47 = vadd.f32 %v4836_v22, %v9680_v8 }
 0x4a1   : > { %v4655_v17 = vpop.f32.mrb[238].mxu0 }
 0x4a2   : > { %5040 = vst [vmem:[%s9701_s7 + $0xa8] sm:$0xff] %v5016_v31  ;;  %v4969_v52 = vadd.f32 %v9688_v20, %v4890_v47  ;;  %v4841_v42 = vadd.f32 %v9751_v58, %v4655_v17  ;;  %v4657_v16 = vpop.f32.mrb[239].mxu0 }
 0x4a4   : > { %v5017_v0 = vadd.f32 %v4993_v11, %v4969_v52  ;;  %v4891_v50 = vadd.f32 %v4841_v42, %v9683_v5 }
 0x4a6   : > { %5041 = vst [vmem:[%s9701_s7 + $0xb0] sm:$0xff] %v5017_v0  ;;  %v4970_v8 = vadd.f32 %v9688_v20, %v4891_v50 }
 0x4a8   : > { %v5018_v7 = vadd.f32 %v4994_v25, %v4970_v8 }
 0x4aa   : > { %5042 = vst [vmem:[%s9701_s7 + $0xb8] sm:$0xff] %v5018_v7 }
 0x4ab   : > { %6835 = shalt.err (!%p6832_p5)
}
 0x4ac   : > { %s6836_s7 = scalar_lea.hbm %s9812_s10, 3072  ;;  %s6840_s6 = scalar_lea.hbm %s10318_s18, 12288 }
 0x4ad   : > { %p6837_p10 = scmp.ne.s32.totalorder %s9812_s10, %s6836_s7  ;;  %p6841_p4 = scmp.lt.u32.totalorder %s9812_s10, %s10318_s18 }
 0x4ae   : > { %p6842_p7 = scmp.lt.u32.totalorder %s6840_s6, %s6836_s7  ;;  %p6844_p13 = scmp.lt.u32.totalorder %s6836_s7, %s9812_s10 }
 0x4af   : > { %p6838_p9 = pnand %p6837_p10, %p10319_p1 }
 0x4b0   : > { %p6843_p6 = por %p6842_p7, %p6841_p4 }
 0x4b1   : > { %p6839_p11 = pneg %p6838_p9 }
 0x4b2   : > { %p6845_p2 = por %p6844_p13, %p6843_p6 }
 0x4b4   : > { %p6846_p0 = pnand %p6845_p2, %p6839_p11 }
 0x4b6   : > { %6849 = shalt.err (!%p6846_p0)
}
 0x4b7   : > { %s6992_s27 = smov 128   ;;  %s6993_s1 = smov 8  }
 0x4b8   : > { %6526 = dma.vmem_to_hbm [thread:$0]  (%p10319_p1), %s9807_s15, 3072, %s9812_s10, %s5044_s20, %s6992_s27, %s6992_s27, %s6993_s1  }
 0x4b9 PF: > { %p6554_p12 = scmp.ge.s32.totalorder %s6980_s14, 2  ;;  %s5075_s24 = sand.u32 1, %s6952_s30  }
 0x4ba   : > { %p10320_p3 = scmp.ne.s32.totalorder %s10097_s17, 0  ;;  %s5076_s19 = scalar_lea.sflag [#allocation6], %s5075_s24 }
 0x4bc   : > { %p6546_p8 = pnand %p6554_p12, %p10320_p3 }
 0x4be   : > { %6923 = dma.done.wait (!%p6546_p8), %s5076_s19, 3072  }
 0x4bf   : > { %6925 = vsyncadd (!%p6546_p8), %s5076_s19, 4294964224  ;;  %s27_s14 = sadd.s32 1, %s6980_s14   ;;  %s10322_s27 = sld [smem:[#allocation20_spill]] }
 0x4c0   : > { %p9844_p5 = scmp.ge.s32.totalorder %s27_s14, 6   ;;  %s10323_s28 = sld [smem:[#allocation21_spill]] }
 0x4c1   : > { %s10324_s29 = sld [smem:[#allocation30_spill]]  ;;  %s10325_s13 = sld [smem:[#allocation31_spill]] }
 0x4c2   : > { %s10326_s11 = sld [smem:[#allocation24_spill]]  ;;  %s10327_s17 = sld [smem:[#allocation26_spill]] }
 0x4c3   : > { %s10328_s15 = sld [smem:[#allocation27_spill]]  ;;  %s10329_s24 = smov %s6932_s25 }
 0x4c4   : > { %s10330_s25 = smov %s6936_s26  ;;  %s10331_s26 = smov %s7372_s5 }
 0x4c5   : > { %s10332_s30 = smov %s6956_s8  ;;  %s10333_s8 = smov %s6960_s9 }
 0x4c6   : > { %s10335_s10 = smov %s6972_s12  ;;  %26 = sbr.rel (!%p9844_p5) target bundleno = 21 (0x15), region = 132 }
 0x4c7   : > { %s10334_s9 = smov %s10325_s13 }
 0x4c8   : > { %s10336_s12 = smov %s10327_s17 }
 0x4c9   : > { %s10337_s13 = smov %s10328_s15 }
 0x4cd   :  { %5081 = vsyncpa [#allocation5], 1 }
 0x4ce   :  { %5083 = vsyncpa [#allocation5 + $0x1], 1 }
 0x4cf   :  { %5084 = vsyncpa [#allocation8], 1 }
 0x4d0   :  { %5086 = vsyncpa [#allocation8 + $0x1], 1 }
 0x4d1   :  { %5087 = vsyncpa [#allocation11], 1 }
 0x4d2   :  { %5088 = vsyncpa [#allocation6], 1 }
 0x4d3   :  { %5090 = vsyncpa [#allocation6 + $0x1], 1 }

// kernel: tpu_custom_call.1
= control target key start
LH: loop header
LB: loop body
LE: loop exit
PB: predicated region body
PF: predicated region fallthrough
CT: control target
= control target key end

     0   :  { %s9891_s0 = inlined_call_operand.hbm [shape: f32[2,16,24,128], index: 0, kind: input, shape index: {}]   ;;  %s9892_s1 = inlined_call_operand.hbm [shape: f32[2,16,24,128], index: 1, kind: input, shape index: {}]   ;;  %s9893_s2 = inlined_call_operand.hbm [shape: f32[2,16,24,128], index: 2, kind: input, shape index: {}]   ;;  %s9894_s3 = inlined_call_operand.hbm [shape: f32[3,384,128], index: 3, kind: input, shape index: {}]   ;;  %s9895_s4 = inlined_call_operand.vmem [shape: f32[1,128], index: 4, kind: input, shape index: {}]   ;;  %s9896_s5 = inlined_call_operand.hbm [shape: f32[3,384,128], index: 5, kind: input, shape index: {}]   ;;  %s9897_s6 = inlined_call_operand.vmem [shape: f32[1,128], index: 6, kind: input, shape index: {}]   ;;  %s9898_s7 = inlined_call_operand.hbm [shape: f32[2,16,24,128], index: 7, kind: output, shape index: {}]  }
   0x1   :  { %10058 = sst [smem:[#allocation69_spill]] %s9892_s1 }
   0x2   :  { %10059 = sst [smem:[#allocation70_spill]] %s9893_s2 }
   0x3   :  { %10060 = sst [smem:[#allocation71_spill]] %s9894_s3 }
   0x4   :  { %10061 = sst [smem:[#allocation72_spill]] %s9895_s4 }
   0x5   :  { %10062 = sst [smem:[#allocation73_spill]] %s9896_s5 }
   0x6   :  { %10063 = sst [smem:[#allocation74_spill]] %s9897_s6 }
   0x7   :  { %10064 = sst [smem:[#allocation75_spill]] %s9898_s7 }
   0x8   :  { %12 = vsyncpa [#allocation5], 0 }
   0x9   :  { %14 = vsyncpa [#allocation5 + $0x1], 0 }
   0xa   :  { %15 = vsyncpa [#allocation8], 0 }
   0xb   :  { %17 = vsyncpa [#allocation8 + $0x1], 0 }
   0xc   :  { %18 = vsyncpa [#allocation11], 0 }
   0xd   :  { %19 = vsyncpa [#allocation6], 0 }
   0xe   :  { %21 = vsyncpa [#allocation6 + $0x1], 0  ;;  %s7034_s24 = smov 0   ;;  %s7036_s25 = smov 0  }
   0xf   :  { %s7038_s26 = smov 0   ;;  %s7040_s27 = smov 0  }
  0x10   :  { %s7042_s28 = smov 0   ;;  %s7044_s29 = smov 0  }
  0x11   :  { %s7046_s30 = smov 0   ;;  %s7048_s8 = smov 0  }
  0x12   :  { %s7050_s9 = smov 0   ;;  %s7052_s10 = smov 0  }
  0x13   :  { %s7054_s11 = smov 0   ;;  %s7056_s12 = smov 0  }
  0x14   :  { %s7058_s13 = smov 0   ;;  %s7060_s14 = smov 0  }
  0x15 LB: > { %10065 = sst [smem:[#allocation19_spill]] %s6928_s24  ;;  %s7105_s15 = sadd.s32 4294967295, %s6980_s14   ;;  %s6980_s14 = sphi %s7060_s14, %s27_s14   ;;  %s6976_s13 = sphi %s7058_s13, %s10337_s13   ;;  %s6972_s12 = sphi %s7056_s12, %s10336_s12   ;;  %s6968_s11 = sphi %s7054_s11, %s10326_s11   ;;  %s6964_s10 = sphi %s7052_s10, %s10335_s10   ;;  %s6960_s9 = sphi %s7050_s9, %s10334_s9   ;;  %s6956_s8 = sphi %s7048_s8, %s10333_s8   ;;  %s6952_s30 = sphi %s7046_s30, %s10332_s30   ;;  %s6948_s29 = sphi %s7044_s29, %s10324_s29   ;;  %s6944_s28 = sphi %s7042_s28, %s10323_s28   ;;  %s6940_s27 = sphi %s7040_s27, %s10322_s27   ;;  %s6936_s26 = sphi %s7038_s26, %s10331_s26   ;;  %s6932_s25 = sphi %s7036_s25, %s10330_s25   ;;  %s6928_s24 = sphi %s7034_s24, %s10329_s24  }
  0x16   : > { %10066 = sst [smem:[#allocation20_spill]] %s6944_s28  ;;  %p5226_p0 = scmp.ge.s32.totalorder %s6980_s14, 1 }
  0x17   : > { %10067 = sst [smem:[#allocation21_spill]] %s6948_s29  ;;  %p9900_p1 = scmp.eq.s32.totalorder %s7105_s15, 0 }
  0x18   : > { %10068 = sst [smem:[#allocation22_spill]] %s6964_s10  ;;  %p256_p3 = scmp.lt.s32.totalorder %s6980_s14, 5 }
  0x19   : > { %10069 = sst [smem:[#allocation23_spill]] %s6968_s11  ;;  %s6982_s17 = smov [#allocation10]  }
  0x1a   : > { %10070 = sst [smem:[#allocation24_spill]] %s6976_s13  ;;  %p7111_p4 = pnand %p5226_p0, %p256_p3 }
  0x1b   : > { %s268_s18 = sshll.u32 %s6982_s17, 4  ;;  %s10074_s3 = sld [smem:[#allocation71_spill]]  ;;  %s269_s18 = int_to_ptr.vmem [resolvable:$true] %s268_s18 }
  0x1c   : > { %s10071_s16 = scalar_select %p7111_p4, 1, 0 }
  0x1d   : > { %p6528_p5 = pneg %p7111_p4 }
  0x1e   : > { %10072 = sst [smem:[#allocation25_spill]] %s10071_s16 }
  0x1f   : > { %p7119_p6 = pnand %p6528_p5, %p9900_p1 }
  0x21   : > { %s6676_s22 = scalar_lea.hbm %s10074_s3, 18432  ;;  %p9920_p8 = pneg %p7119_p6 }
  0x22   : > { %p6677_p7 = scmp.ne.s32.totalorder %s10074_s3, %s6676_s22  ;;  %p6683_p11 = scmp.lt.u32.totalorder %s6676_s22, %s10074_s3 }
  0x24   : > { %p6679_p9 = pnand %p9920_p8, %p6677_p7 }
  0x26   : > { %p6680_p10 = pneg %p6679_p9 }
  0x28   : > { %p6685_p12 = pnand %p6683_p11, %p6680_p10 }
  0x2a   : > { %6688 = shalt.err (!%p6685_p12)
}
  0x2b   : > { %s6689_s20 = scalar_lea.vmem %s269_s18, 18432  ;;  %p6697_p5 = scmp.lt.s32.totalorder %s269_s18, %s269_s18 }
  0x2c   : > { %p6690_p13 = scmp.ne.s32.totalorder %s269_s18, %s6689_s20  ;;  %p6698_p2 = scmp.lt.s32.totalorder %s6689_s20, %s6689_s20 }
  0x2e   : > { %p6692_p0 = pnand %p6690_p13, %p9920_p8  ;;  %p6699_p1 = por %p6698_p2, %p6697_p5 }
  0x30   : > { %p6693_p3 = pneg %p6692_p0 }
  0x32   : > { %p6700_p4 = pnand %p6699_p1, %p6693_p3 }
  0x34   : > { %6703 = shalt.err (!%p6700_p4)
}
  0x35   : > { %s9904_s7 = smov 128   ;;  %s9906_s11 = smov 8  }
  0x36   : > { %6531 = dma.hbm_to_vmem [thread:$0]  (!%p7119_p6), %s10074_s3, 18432, %s269_s18, [#allocation11], %s9904_s7, %s9904_s7, %s9906_s11  }
  0x37   : > { %s36_s23 = sadd.s32 1, %s6972_s12  ;;  %s39_s17 = sadd.s32 1, %s6976_s13 }
  0x38   : > { %p37_p1 = scmp.ge.s32.totalorder %s36_s23, 2  ;;  %p9919_p2 = scmp.eq.s32.totalorder %s6980_s14, 0 }
  0x39   : > { %s5220_s20 = sshll.u32 %s6972_s12, 2  ;;  %s84_s6 = sadd.s32 1, %s6948_s29 }
  0x3a   : > { %s10339_s23 = smov (%p37_p1, %s36_s23), 0  ;;  %s10341_s17 = smov (!%p37_p1, %s39_s17), %s6976_s13 }
  0x3b   : > { %10075 = sst [smem:[#allocation26_spill]] %s10339_s23  ;;  %s44_s4 = ssub.s32 %s6972_s12, %s10339_s23 }
  0x3c   : > { %s5221_s10 = sadd.s32 4294967295, %s5220_s20  ;;  %p41_p4 = scmp.ge.s32.totalorder %s10341_s17, 2 }
  0x3d   : > { %p73_p7 = scmp.gt.s32.totalorder %s5221_s10, 0  ;;  %s5222_s18 = sshll.u32 %s10339_s23, 2 }
  0x3e   : > { %p91_p9 = scmp.ne.s32.totalorder %s6948_s29, %s6944_s28  ;;  %s10343_s17 = smov (%p41_p4, %s10341_s17), 0 }
  0x3f   : > { %10076 = sst [smem:[#allocation27_spill]] %s10343_s17  ;;  %s10345_s10 = smov (!%p73_p7, %s5221_s10), 0 }
  0x40   : > { %s7165_s21 = ssub.s32 %s6976_s13, %s10343_s17  ;;  %s5223_s22 = sadd.s32 4294967295, %s5222_s18 }
  0x41   : > { %10077 = sst [smem:[#allocation28_spill]] %s7165_s21  ;;  %s7168_s7 = sor.u32 %s44_s4, %s7165_s21 }
  0x42   : > { %p77_p10 = scmp.gt.s32.totalorder %s5223_s22, 0  ;;  %p7173_p12 = por %p91_p9, %p9919_p2 }
  0x43   : > { %p97_p13 = scmp.ne.s32.totalorder %s6944_s28, %s6940_s27  ;;  %s7179_s3 = sadd.s32 4, %s5220_s20 }
  0x44   : > { %s10347_s22 = smov (!%p77_p10, %s5223_s22), 0  ;;  %p10079_p3 = scmp.eq.s32.totalorder %s7105_s15, 0 }
  0x45   : > { %s80_s4 = ssub.s32 %s10345_s10, %s10347_s22  ;;  %s7189_s16 = sadd.s32 4, %s5222_s18 }
  0x46   : > { %s81_s17 = sor.u32 %s80_s4, %s7165_s21  ;;  %p7185_p5 = por %p97_p13, %p10079_p3 }
  0x47   : > { %p82_p1 = scmp.eq.s32.totalorder %s81_s17, 0  ;;  %p9918_p7 = scmp.lt.s32.totalorder %s6980_s14, 4 }
  0x48   : > { %s10080_s23 = scalar_select %p7185_p5, 1, 0 }
  0x49   : > { %s7194_s2 = scalar_select %p82_p1, %s6948_s29, %s84_s6  }
  0x4a   : > { %10081 = sst [smem:[#allocation29_spill]] %s10080_s23  ;;  %s7197_s27 = smul.u32 48, %s6976_s13 }
  0x4b   : > { %10082 = sst [smem:[#allocation30_spill]] %s7194_s2  ;;  %s325_s20 = sand.u32 1, %s6980_s14  }
  0x4c   : > { %s327_s22 = sand.u32 1, %s6948_s29   ;;  %p7205_p9 = pnand %p9918_p7, %p7173_p12 }
  0x4d   : > { %s6501_s28 = smul.u32 48, %s327_s22  ;;  %s10084_s1 = sld [smem:[#allocation69_spill]] }
  0x4e   : > { %s6502_s17 = smul.u32 6, %s10345_s10  ;;  %s6985_s11 = smov [#allocation12]  }
  0x4f   : > { %s329_s23 = scalar_lea.vmem [#allocation7], %s6501_s28  ;;  %s7217_s22 = sshll.u32 %s6985_s11, 4  ;;  %s285_s22 = int_to_ptr.vmem [resolvable:$true] %s7217_s22 }
  0x50   : > { %s340_s18 = sadd.s32 %s6502_s17, %s7197_s27  ;;  %s343_s21 = sshll.u32 %s329_s23, 4  ;;  %s7210_s21 = int_to_ptr.vmem [resolvable:$true] %s343_s21 }
  0x51   : > { %s5237_s6 = sshll.u32 %s340_s18, 7  ;;  %s7219_s24 = scalar_lea.sflag [#allocation8], %s325_s20 }
  0x52   : > { %p6706_p12 = pneg %p7205_p9 }
  0x53   : > { %s7215_s29 = scalar_lea.hbm %s10084_s1, %s5237_s6  ;;  %s6709_s13 = scalar_lea.hbm %s10084_s1, 12288 }
  0x54   : > { %s6704_s10 = scalar_lea.hbm %s7215_s29, 768  ;;  %p6710_p1 = scmp.lt.u32.totalorder %s7215_s29, %s10084_s1 }
  0x55   : > { %p6705_p10 = scmp.ne.s32.totalorder %s7215_s29, %s6704_s10  ;;  %p6711_p4 = scmp.lt.u32.totalorder %s6709_s13, %s6704_s10 }
  0x56   : > { %p6713_p7 = scmp.lt.u32.totalorder %s6704_s10, %s7215_s29 }
  0x57   : > { %p6707_p13 = pnand %p6706_p12, %p6705_p10  ;;  %p6712_p0 = por %p6711_p4, %p6710_p1 }
  0x59   : > { %p6708_p3 = pneg %p6707_p13  ;;  %p6714_p2 = por %p6713_p7, %p6712_p0 }
  0x5b   : > { %p6715_p11 = pnand %p6714_p2, %p6708_p3 }
  0x5d   : > { %6718 = shalt.err (!%p6715_p11)
}
  0x5e   : > { %s6719_s20 = scalar_lea.vmem %s7210_s21, 768  ;;  %s6986_s18 = smov [#allocation7]  }
  0x5f   : > { %p6720_p10 = scmp.ne.s32.totalorder %s7210_s21, %s6719_s20  ;;  %s6724_s6 = sshll.u32 %s6986_s18, 4  ;;  %s6725_s6 = int_to_ptr.vmem [resolvable:$false] %s6724_s6 }
  0x60   : > { %s6726_s11 = scalar_lea.vmem %s6725_s6, 1536  ;;  %p6727_p5 = scmp.lt.s32.totalorder %s7210_s21, %s6725_s6 }
  0x61   : > { %p6722_p13 = pnand %p6720_p10, %p6706_p12  ;;  %p6728_p4 = scmp.lt.s32.totalorder %s6726_s11, %s6719_s20 }
  0x63   : > { %p6723_p8 = pneg %p6722_p13  ;;  %p6729_p1 = por %p6728_p4, %p6727_p5 }
  0x65   : > { %p6730_p0 = pnand %p6729_p1, %p6723_p8 }
  0x67   : > { %6733 = shalt.err (!%p6730_p0)
}
  0x68   : > { %s10085_s10 = smov 8   ;;  %s10086_s2 = smov 128  }
  0x69   : > { %6541 = dma.hbm_to_vmem [thread:$0]  (!%p7205_p9), %s7215_s29, 768, %s7210_s21, %s7219_s24, %s10086_s2, %s10086_s2, %s10085_s10  }
  0x6a   : > { %s10087_s5 = sld [smem:[#allocation73_spill]]  ;;  %p10088_p2 = pneg %p7119_p6 }
  0x70   : > { %s6734_s23 = scalar_lea.hbm %s10087_s5, 18432 }
  0x71   : > { %p6735_p8 = scmp.ne.s32.totalorder %s10087_s5, %s6734_s23  ;;  %p6741_p7 = scmp.lt.u32.totalorder %s6734_s23, %s10087_s5 }
  0x73   : > { %p6737_p11 = pnand %p6735_p8, %p10088_p2 }
  0x75   : > { %p6738_p5 = pneg %p6737_p11 }
  0x77   : > { %p6743_p12 = pnand %p6741_p7, %p6738_p5 }
  0x79   : > { %6746 = shalt.err (!%p6743_p12)
}
  0x7a   : > { %s6747_s29 = scalar_lea.vmem %s285_s22, 18432  ;;  %p10089_p3 = pmov %p10088_p2 }
  0x7b   : > { %p6748_p9 = scmp.ne.s32.totalorder %s285_s22, %s6747_s29  ;;  %p6755_p4 = scmp.lt.s32.totalorder %s285_s22, %s285_s22 }
  0x7c   : > { %p6756_p1 = scmp.lt.s32.totalorder %s6747_s29, %s6747_s29 }
  0x7d   : > { %p6750_p10 = pnand %p6748_p9, %p10089_p3 }
  0x7e   : > { %p6757_p0 = por %p6756_p1, %p6755_p4 }
  0x7f   : > { %p6751_p13 = pneg %p6750_p10 }
  0x81   : > { %p6758_p2 = pnand %p6757_p0, %p6751_p13 }
  0x83   : > { %6761 = shalt.err (!%p6758_p2)
}
  0x84   : > { %6534 = dma.hbm_to_vmem [thread:$0]  (!%p7119_p6), %s10087_s5, 18432, %s285_s22, [#allocation11], %s10086_s2, %s10086_s2, %s10085_s10  }
  0x85   : > { %s5219_s19 = sadd.s32 4294967294, %s6980_s14   ;;  %s48_s11 = sadd.s32 1, %s6960_s9 }
  0x86   : > { %p55_p8 = scmp.ne.s32.totalorder %s6960_s9, %s6956_s8  ;;  %p10090_p11 = scmp.eq.s32.totalorder %s7168_s7, 0 }
  0x87   : > { %p10092_p5 = scmp.eq.s32.totalorder %s6980_s14, 0  ;;  %p61_p12 = scmp.ne.s32.totalorder %s6956_s8, %s6952_s30 }
  0x88   : > { %s7281_s28 = scalar_select %p10090_p11, %s6960_s9, %s48_s11  }
  0x89   : > { %p57_p7 = por %p10092_p5, %p55_p8  ;;  %p10093_p9 = scmp.eq.s32.totalorder %s7105_s15, 3 }
  0x8a   : > { %10091 = sst [smem:[#allocation31_spill]] %s7281_s28  ;;  %p249_p10 = scmp.eq.s32.totalorder %s5219_s19, 3 }
  0x8b   : > { %p7289_p3 = por %p10093_p9, %p55_p8  ;;  %p10095_p13 = scmp.eq.s32.totalorder %s7105_s15, 0 }
  0x8c   : > { %s301_s22 = sand.u32 1, %s6960_s9   ;;  %p7300_p6 = por %p249_p10, %p61_p12 }
  0x8d   : > { %s10094_s13 = scalar_select %p7289_p3, 1, 0 }
  0x8e   : > { %p7295_p4 = por %p10095_p13, %p61_p12  ;;  %s6498_s7 = smul.u32 192, %s301_s22 }
  0x8f   : > { %s10097_s17 = scalar_select %p7300_p6, 1, 0 }
  0x90   : > { %p10098_p1 = scmp.lt.s32.totalorder %s6980_s14, 4  ;;  %s6499_s4 = smul.u32 24, %s6972_s12 }
  0x91   : > { %s305_s29 = scalar_lea.vmem [#allocation4], %s6498_s7  ;;  %s7319_s5 = scalar_lea.sflag [#allocation5], %s301_s22 }
  0x92   : > { %p7306_p0 = pnand %p10098_p1, %p57_p7  ;;  %s312_s18 = sadd.s32 %s7197_s27, %s6499_s4 }
  0x93   : > { %s315_s21 = sshll.u32 %s305_s29, 4  ;;  %s5232_s6 = sshll.u32 %s312_s18, 7  ;;  %s7312_s21 = int_to_ptr.vmem [resolvable:$true] %s315_s21 }
  0x94   : > { %s7317_s1 = scalar_lea.hbm %s9891_s0, %s5232_s6  ;;  %p6764_p8 = pneg %p7306_p0 }
  0x95   : > { %s6762_s28 = scalar_lea.hbm %s7317_s1, 3072  ;;  %s6767_s18 = scalar_lea.hbm %s9891_s0, 12288 }
  0x96   : > { %p6763_p2 = scmp.ne.s32.totalorder %s7317_s1, %s6762_s28  ;;  %p6768_p7 = scmp.lt.u32.totalorder %s7317_s1, %s9891_s0 }
  0x97   : > { %p6769_p12 = scmp.lt.u32.totalorder %s6767_s18, %s6762_s28  ;;  %p6771_p10 = scmp.lt.u32.totalorder %s6762_s28, %s7317_s1 }
  0x98   : > { %p6765_p11 = pnand %p6764_p8, %p6763_p2 }
  0x99   : > { %p6770_p9 = por %p6769_p12, %p6768_p7 }
  0x9a   : > { %p6766_p5 = pneg %p6765_p11 }
  0x9b   : > { %p6772_p13 = por %p6771_p10, %p6770_p9 }
  0x9d   : > { %p6773_p1 = pnand %p6772_p13, %p6766_p5 }
  0x9f   : > { %6776 = shalt.err (!%p6773_p1)
}
  0xa0   : > { %s6777_s22 = scalar_lea.vmem %s7312_s21, 3072  ;;  %s6987_s19 = smov [#allocation4]  }
  0xa1   : > { %p6778_p2 = scmp.ne.s32.totalorder %s7312_s21, %s6777_s22  ;;  %s6782_s11 = sshll.u32 %s6987_s19, 4  ;;  %s6783_s11 = int_to_ptr.vmem [resolvable:$false] %s6782_s11 }
  0xa2   : > { %s6784_s7 = scalar_lea.vmem %s6783_s11, 6144  ;;  %p6785_p3 = scmp.lt.s32.totalorder %s7312_s21, %s6783_s11 }
  0xa3   : > { %p6780_p11 = pnand %p6778_p2, %p6764_p8  ;;  %p6786_p7 = scmp.lt.s32.totalorder %s6784_s7, %s6777_s22 }
  0xa5   : > { %p6781_p6 = pneg %p6780_p11  ;;  %p6787_p12 = por %p6786_p7, %p6785_p3 }
  0xa7   : > { %p6788_p9 = pnand %p6787_p12, %p6781_p6 }
  0xa9   : > { %6791 = shalt.err (!%p6788_p9)
}
  0xaa   : > { %s10100_s28 = sld [smem:[#allocation19_spill]]  ;;  %s10101_s4 = sld [smem:[#allocation28_spill]] }
  0xab   : > { %6538 = dma.hbm_to_vmem [thread:$0]  (!%p7306_p0), %s7317_s1, 3072, %s7312_s21, %s7319_s5, %s10086_s2, %s10086_s2, %s10085_s10  }
  0xac   : > { %p10102_p3 = scmp.lt.s32.totalorder %s7179_s3, 7  ;;  %p10103_p6 = scmp.lt.s32.totalorder %s7189_s16, 7 }
  0xad   : > { %s120_s20 = sadd.s32 1, %s6936_s26  ;;  %p127_p8 = scmp.ne.s32.totalorder %s6936_s26, %s6932_s25 }
  0xae   : > { %s10349_s3 = smov (!%p10102_p3, %s7179_s3), 7  ;;  %s10351_s16 = smov (!%p10103_p6, %s7189_s16), 7 }
  0xaf   : > { %s116_s18 = ssub.s32 %s10349_s3, %s10351_s16  ;;  %p10104_p10 = scmp.eq.s32.totalorder %s6980_s14, 0 }
  0xb0   : > { %p133_p5 = scmp.ne.s32.totalorder %s6932_s25, %s10100_s28  ;;  %s117_s29 = sor.u32 %s116_s18, %s10101_s4 }
  0xb1   : > { %p129_p13 = por %p127_p8, %p10104_p10  ;;  %p118_p1 = scmp.eq.s32.totalorder %s117_s29, 0 }
  0xb2   : > { %p10105_p2 = scmp.eq.s32.totalorder %s7105_s15, 0  ;;  %s355_s22 = sand.u32 1, %s6936_s26  }
  0xb3   : > { %s6505_s1 = smul.u32 6, %s10349_s3  ;;  %p10107_p0 = scmp.lt.s32.totalorder %s6980_s14, 4 }
  0xb4   : > { %p7366_p11 = por %p133_p5, %p10105_p2  ;;  %s6504_s21 = smul.u32 48, %s355_s22 }
  0xb5   : > { %s7372_s5 = scalar_select %p118_p1, %s6936_s26, %s120_s20  }
  0xb6   : > { %s10106_s6 = scalar_select %p7366_p11, 1, 0 }
  0xb7   : > { %s368_s19 = sadd.s32 %s6505_s1, %s7197_s27  ;;  %p7377_p7 = pnand %p10107_p0, %p129_p13 }
  0xb8   : > { %s5241_s11 = sshll.u32 %s368_s19, 7  ;;  %s10109_s4 = sld [smem:[#allocation70_spill]] }
  0xb9   : > { %s357_s3 = scalar_lea.vmem [#allocation9], %s6504_s21  ;;  %p6794_p9 = pneg %p7377_p7 }
  0xba   : > { %s371_s20 = sshll.u32 %s357_s3, 4  ;;  %s7386_s20 = int_to_ptr.vmem [resolvable:$true] %s371_s20 }
  0xbe   : > { %s7384_s18 = scalar_lea.hbm %s10109_s4, %s5241_s11  ;;  %s6797_s1 = scalar_lea.hbm %s10109_s4, 12288 }
  0xbf   : > { %s6792_s27 = scalar_lea.hbm %s7384_s18, 768  ;;  %p6798_p8 = scmp.lt.u32.totalorder %s7384_s18, %s10109_s4 }
  0xc0   : > { %p6793_p12 = scmp.ne.s32.totalorder %s7384_s18, %s6792_s27  ;;  %p6799_p5 = scmp.lt.u32.totalorder %s6797_s1, %s6792_s27 }
  0xc1   : > { %p6801_p13 = scmp.lt.u32.totalorder %s6792_s27, %s7384_s18 }
  0xc2   : > { %p6795_p3 = pnand %p6794_p9, %p6793_p12  ;;  %p6800_p10 = por %p6799_p5, %p6798_p8 }
  0xc4   : > { %p6796_p6 = pneg %p6795_p3  ;;  %p6802_p1 = por %p6801_p13, %p6800_p10 }
  0xc6   : > { %p6803_p2 = pnand %p6802_p1, %p6796_p6 }
  0xc8   : > { %6806 = shalt.err (!%p6803_p2)
}
  0xc9   : > { %s6807_s21 = scalar_lea.vmem %s7386_s20, 768  ;;  %s6988_s7 = smov [#allocation9]  }
  0xca   : > { %p6808_p0 = scmp.ne.s32.totalorder %s7386_s20, %s6807_s21  ;;  %s6812_s28 = sshll.u32 %s6988_s7, 4  ;;  %s6813_s28 = int_to_ptr.vmem [resolvable:$false] %s6812_s28 }
  0xcb   : > { %s6814_s3 = scalar_lea.vmem %s6813_s28, 1536  ;;  %p6815_p11 = scmp.lt.s32.totalorder %s7386_s20, %s6813_s28 }
  0xcc   : > { %p6810_p12 = pnand %p6808_p0, %p6794_p9  ;;  %p6816_p8 = scmp.lt.s32.totalorder %s6814_s3, %s6807_s21 }
  0xce   : > { %p6811_p3 = pneg %p6810_p12  ;;  %p6817_p5 = por %p6816_p8, %p6815_p11 }
  0xd0   : > { %p6818_p10 = pnand %p6817_p5, %p6811_p3 }
  0xd2   : > { %6821 = shalt.err (!%p6818_p10)
}
  0xd3   : > { %6544 = dma.hbm_to_vmem [thread:$0]  (!%p7377_p7), %s7384_s18, 768, %s7386_s20, %s7219_s24, %s10086_s2, %s10086_s2, %s10085_s10  }
  0xd4   : > { %s10110_s27 = sld [smem:[#allocation25_spill]] }
  0xda   : > { %p10111_p9 = scmp.ne.s32.totalorder %s10110_s27, 0 }
  0xdc   : > { %383 = sbr.rel (%p10111_p9) target bundleno = 1209 (0x4b9), region = 48 }
  0xe3   : > { %s7420_s29 = sand.u32 1, %s6956_s8  }
  0xe4   : > { %s6507_s22 = smul.u32 192, %s7420_s29  ;;  %s386_s1 = scalar_lea.sflag [#allocation5], %s7420_s29 }
  0xe6   : > { %s7426_s16 = scalar_lea.vmem [#allocation4], %s6507_s22 }
  0xe7   : > { %6907 = dma.done.wait (%p7295_p4), %s386_s1, 3072  }
  0xe8   : > { %6909 = vsyncadd (%p7295_p4), %s386_s1, 4294964224  ;;  %s10112_s24 = sld [smem:[#allocation20_spill]]  ;;  %s10113_s10 = sld [smem:[#allocation29_spill]] }
  0xe9   : > { %s394_s2 = sand.u32 1, %s7105_s15  }
  0xea   : > { %s395_s19 = scalar_lea.sflag [#allocation8], %s394_s2 }
  0xee   : > { %s396_s18 = sand.u32 1, %s10112_s24   ;;  %p10114_p11 = scmp.ne.s32.totalorder %s10113_s10, 0 }
  0xef   : > { %s6508_s20 = smul.u32 48, %s396_s18 }
  0xf1   : > { %s7434_s11 = scalar_lea.vmem [#allocation7], %s6508_s20 }
  0xf2   : > { %6911 = dma.done.wait (%p10114_p11), %s395_s19, 768  }
  0xf3   : > { %6913 = vsyncadd (%p10114_p11), %s395_s19, 4294966528  ;;  %s405_s21 = sand.u32 1, %s6932_s25   ;;  %p10115_p4 = scmp.ne.s32.totalorder %s10106_s6, 0 }
  0xf4   : > { %s6509_s7 = smul.u32 48, %s405_s21 }
  0xf6   : > { %s7441_s23 = scalar_lea.vmem [#allocation9], %s6509_s7 }
  0xf7   : > { %6915 = dma.done.wait (%p10115_p4), %s395_s19, 768  }
  0xf8   : > { %6917 = vsyncadd (%p10115_p4), %s395_s19, 4294966528  ;;  %p10116_p7 = scmp.eq.s32.totalorder %s7105_s15, 0 }
  0xfa   : > { %6919 = dma.done.wait (%p10116_p7), [#allocation11], 36864   ;;  %p10117_p6 = pmov %p10116_p7 }
  0xfb   : > { %s10118_s28 = sld [smem:[#allocation22_spill]]  ;;  %v9928_v0 = vmov 0.0|0.0   ;;  %v953_v1 = vld [vmem:[#allocation10] sm:$0xff]  ;;  %v954_v2 = vld [vmem:[#allocation10 + $0x8] sm:$0xff]  ;;  %v955_v6 = vld [vmem:[#allocation10 + $0x10] sm:$0xff]  ;;  %v679_v18 = vlaneseq  ;;  %s10206_s2 = sld [smem:[#allocation72_spill]] }
  0xfc   : > { %6921 = vsyncadd (%p10117_p6), [#allocation11], 4294930432  ;;  %6018 = vmatprep.subr.bf16.mxu0 %v9928_v0  ;;  %v985_v3 = vld [vmem:[#allocation10 + $0x100] sm:$0xff]  ;;  %v6019_v4 = vpack.c.bf16 %v954_v2, %v953_v1  ;;  %v986_v5 = vld [vmem:[#allocation10 + $0x108] sm:$0xff]  ;;  %s10315_s21 = sld [smem:[#allocation74_spill]]  ;;  %s9701_s7 = scalar_lea.vmem [#allocation13], %s6507_s22 }
  0xfd   : > { %v956_v7 = vld [vmem:[#allocation10 + $0x18] sm:$0xff]  ;;  %v6066_v8 = vpack.c.bf16 %v986_v5, %v985_v3  ;;  %v987_v9 = vld [vmem:[#allocation10 + $0x110] sm:$0xff]  ;;  %v989_v13 = vld [vmem:[#allocation10 + $0x120] sm:$0xff]  ;;  %v7460_v27 = vshrl.u32 %v679_v18, 7  ;;  %s10316_s22 = sld [smem:[#allocation23_spill]]  ;;  %s10317_s24 = sld [smem:[#allocation75_spill]] }
  0xfe   : > { %v988_v10 = vld [vmem:[#allocation10 + $0x118] sm:$0xff]  ;;  %6020 = vmatpush1.bf16.msra.mxu0 %v6019_v4  ;;  %v6022_v11 = vpack.c.bf16 %v956_v7, %v955_v6  ;;  %v990_v14 = vld [vmem:[#allocation10 + $0x128] sm:$0xff]  ;;  %v957_v15 = vld [vmem:[#allocation10 + $0x20] sm:$0xff]  ;;  %s5044_s20 = scalar_lea.sflag [#allocation6], %s7420_s29  ;;  %p10319_p1 = scmp.ne.s32.totalorder %s10094_s13, 0 }
  0xff   : > { %v6070_v12 = vpack.c.bf16 %v988_v10, %v987_v9  ;;  %6067 = vmatprep.subr.bf16.mxu1 %v6066_v8  ;;  %6021 = vmatprep.subr.bf16.mxu0 %v9928_v0  ;;  %v958_v16 = vld [vmem:[#allocation10 + $0x28] sm:$0xff]  ;;  %v6074_v17 = vpack.c.bf16 %v990_v14, %v989_v13  ;;  %v991_v20 = vld [vmem:[#allocation10 + $0x130] sm:$0xff]  ;;  %v992_v21 = vld [vmem:[#allocation10 + $0x138] sm:$0xff]  ;;  %vm790_vm1 = vcmp.lt.s32.totalorder %v7460_v27, 7  ;;  %vm681_vm4 = vcmp.lt.s32.totalorder %v7460_v27, 1 }
 0x100   : > { %6069 = vmatpush3.bf16.msra.mxu1 %v6066_v8  ;;  %v6025_v19 = vpack.c.bf16 %v958_v16, %v957_v15  ;;  %v959_v22 = vld [vmem:[#allocation10 + $0x30] sm:$0xff]  ;;  %v960_v23 = vld [vmem:[#allocation10 + $0x38] sm:$0xff]  ;;  %v6078_v25 = vpack.c.bf16 %v992_v21, %v991_v20  ;;  %v993_v26 = vld [vmem:[#allocation10 + $0x140] sm:$0xff] }
 0x101   : > { %s7453_s6 = sshll.u32 %s10118_s28, 3  ;;  %6071 = vmatprep.subr.bf16.mxu1 %v6070_v12  ;;  %v6028_v28 = vpack.c.bf16 %v960_v23, %v959_v22  ;;  %v994_v29 = vld [vmem:[#allocation10 + $0x148] sm:$0xff]  ;;  %v473_v30 = vld [vmem:[%s7434_s11] sm:$0xff]  ;;  %v996_v41 = vld [vmem:[#allocation10 + $0x158] sm:$0xff] }
 0x102   : > { %s469_s15 = ssub.s32 2, %s7453_s6  ;;  %6023 = vmatpush1.bf16.msra.mxu0 %v6022_v11  ;;  %v7465_v31 = vld [vmem:[%s7434_s11 + $0x8] sm:$0xff]  ;;  %v961_v32 = vld [vmem:[#allocation10 + $0x40] sm:$0xff]  ;;  %v479_v34 = vmax.f32 %v473_v30, 0.0  ;;  %v6082_v36 = vpack.c.bf16 %v994_v29, %v993_v26  ;;  %v995_v40 = vld [vmem:[#allocation10 + $0x150] sm:$0xff]  ;;  %s495_s3 = ssub.s32 8, %s7453_s6 }
 0x103   : > { %6024 = vmatprep.subr.bf16.mxu0 %v9928_v0  ;;  %v7458_v24 = vstv %s469_s15  ;;  %v962_v33 = vld [vmem:[#allocation10 + $0x48] sm:$0xff]  ;;  %v9927_v35 = vmax.f32 %v7465_v31, 0.0  ;;  %v963_v44 = vld [vmem:[#allocation10 + $0x50] sm:$0xff]  ;;  %v964_v45 = vld [vmem:[#allocation10 + $0x58] sm:$0xff]  ;;  %v6086_v47 = vpack.c.bf16 %v996_v41, %v995_v40  ;;  %s2849_s27 = ssub.s32 1, %s7453_s6  ;;  %s2861_s1 = ssub.s32 17, %s7453_s6 }
 0x104   : > { %6073 = vmatpush3.bf16.msra.mxu1 %v6070_v12  ;;  %vm471_vm0 = vcmp.le.s32.totalorder %v7458_v24, 0  ;;  %v6031_v39 = vpack.c.bf16 %v962_v33, %v961_v32  ;;  %v6034_v48 = vpack.c.bf16 %v964_v45, %v963_v44  ;;  %v997_v49 = vld [vmem:[#allocation10 + $0x160] sm:$0xff]  ;;  %v998_v50 = vld [vmem:[#allocation10 + $0x168] sm:$0xff]  ;;  %v999_v58 = vld [vmem:[#allocation10 + $0x170] sm:$0xff]  ;;  %vm472_vm2 = vcmp.le.s32.totalorder %v7458_v24, 1  ;;  %s6511_s6 = smul.u32 48, %s10316_s22  ;;  %s10318_s18 = smov %s10317_s24 }
 0x105   : > { %6075 = vmatprep.subr.bf16.mxu1 %v6074_v17  ;;  %v7471_v37 = vsel %vm471_vm0, %v479_v34, 0.0  ;;  %v7477_v38 = vsel %vm471_vm0, %v9927_v35, 0.0  ;;  %5259 = vmatprep.mubr.msk.f32.mxu0 %vm471_vm0, %v479_v34  ;;  %v7490_v51 = vld [vmem:[%s7434_s11 + $0x10] sm:$0xff]  ;;  %v966_v53 = vld [vmem:[#allocation10 + $0x68] sm:$0xff]  ;;  %v6090_v55 = vpack.c.bf16 %v998_v50, %v997_v49  ;;  %v1000_v59 = vld [vmem:[#allocation10 + $0x178] sm:$0xff]  ;;  %s5060_s15 = sshll.u32 %s9701_s7, 4  ;;  %s9807_s15 = int_to_ptr.vmem [resolvable:$true] %s5060_s15 }
 0x106   : > { %6026 = vmatpush1.bf16.msra.mxu0 %v6025_v19  ;;  %10119 = vst [vmem:[#allocation32_spill] sm:$0xff] %v7471_v37  ;;  %v9925_v42 = vrot.slane %v7471_v37, 1  ;;  %v755_v43 = vrot.slane %v7477_v38, 1  ;;  %v965_v52 = vld [vmem:[#allocation10 + $0x60] sm:$0xff]  ;;  %v476_v54 = vld [vmem:[%s7434_s11 + $0x18] sm:$0xff]  ;;  %v9926_v56 = vmax.f32 %v7490_v51, 0.0  ;;  %v6094_v2 = vpack.c.bf16 %v1000_v59, %v999_v58 }
 0x107   : > { %6027 = vmatprep.subr.bf16.mxu0 %v9928_v0  ;;  %v6037_v57 = vpack.c.bf16 %v966_v53, %v965_v52  ;;  %v7495_v60 = vmax.f32 %v476_v54, 0.0  ;;  %v477_v61 = vld [vmem:[%s7434_s11 + $0x20] sm:$0xff]  ;;  %v968_v63 = vld [vmem:[#allocation10 + $0x78] sm:$0xff]  ;;  %v970_v9 = vld [vmem:[#allocation10 + $0x88] sm:$0xff]  ;;  %s6822_s19 = scalar_lea.vmem %s9807_s15, 3072 }
 0x108   : > { %6077 = vmatpush3.bf16.msra.mxu1 %v6074_v17  ;;  %v825_v46 = vsel %vm790_vm1, %v9925_v42, %v755_v43  ;;  %v967_v62 = vld [vmem:[#allocation10 + $0x70] sm:$0xff]  ;;  %v478_v1 = vld [vmem:[%s7434_s11 + $0x28] sm:$0xff]  ;;  %v7505_v3 = vsel %vm471_vm0, %v9926_v56, 0.0  ;;  %v7507_v4 = vmax.f32 %v477_v61, 0.0  ;;  %v969_v8 = vld [vmem:[#allocation10 + $0x80] sm:$0xff]  ;;  %p6823_p13 = scmp.ne.s32.totalorder %s9807_s15, %s6822_s19 }
 0x109   : > { %6079 = vmatprep.subr.bf16.mxu1 %v6078_v25  ;;  %5615 = vmatprep.mubr.f32.mxu1 %v825_v46  ;;  %v6040_v5 = vpack.c.bf16 %v968_v63, %v967_v62  ;;  %v7512_v6 = vsel %vm472_vm2, %v7495_v60, 0.0  ;;  %v7514_v7 = vmax.f32 %v478_v1, 0.0  ;;  %v756_v10 = vrot.slane %v7505_v3, 1  ;;  %v1553_v11 = vld [vmem:[#allocation10 + $0x180] sm:$0xff]  ;;  %v1554_v12 = vld [vmem:[#allocation10 + $0x188] sm:$0xff]  ;;  %v971_v19 = vld [vmem:[#allocation10 + $0x90] sm:$0xff] }
 0x10a   : > { %6029 = vmatpush1.bf16.msra.mxu0 %v6028_v28  ;;  %v757_v13 = vrot.slane %v7512_v6, 1  ;;  %v7522_v14 = vsel %vm472_vm2, %v7507_v4, 0.0  ;;  %v527_v15 = vld [vmem:[%s7426_s16] sm:$0xff]  ;;  %v6043_v16 = vpack.c.bf16 %v970_v9, %v969_v8  ;;  %v528_v18 = vld [vmem:[%s7426_s16 + $0x8] sm:$0xff]  ;;  %v972_v20 = vld [vmem:[#allocation10 + $0x98] sm:$0xff]  ;;  %v6099_v22 = vpack.c.bf16 %v1554_v12, %v1553_v11  ;;  %p6824_p2 = pnand %p6823_p13, %p10319_p1 }
 0x10b   : > { %6030 = vmatprep.subr.bf16.mxu0 %v9928_v0  ;;  %v7528_v17 = vsel %vm472_vm2, %v7514_v7, 0.0  ;;  %v824_v21 = vsel %vm790_vm1, %v755_v43, %v756_v10  ;;  %v758_v23 = vrot.slane %v7522_v14, 1  ;;  %v1555_v26 = vld [vmem:[#allocation10 + $0x190] sm:$0xff]  ;;  %v1556_v28 = vld [vmem:[#allocation10 + $0x198] sm:$0xff]  ;;  %v7541_v32 = vmax.f32 %v528_v18, 0.0  ;;  %v974_v40 = vld [vmem:[#allocation10 + $0xa8] sm:$0xff] }
 0x10c   : > { %6081 = vmatpush3.bf16.msra.mxu1 %v6078_v25  ;;  %v7535_v25 = vmax.f32 %v527_v15, 0.0  ;;  %v823_v29 = vsel %vm790_vm1, %v756_v10, %v757_v13  ;;  %v759_v30 = vrot.slane %v7528_v17, 1  ;;  %v529_v33 = vld [vmem:[%s7426_s16 + $0x10] sm:$0xff]  ;;  %v6046_v34 = vpack.c.bf16 %v972_v20, %v971_v19  ;;  %v1557_v46 = vld [vmem:[#allocation10 + $0x1a0] sm:$0xff]  ;;  %v532_v54 = vld [vmem:[%s7426_s16 + $0x28] sm:$0xff]  ;;  %p6825_p0 = pneg %p6824_p2 }
 0x10d   : > { %6083 = vmatprep.subr.bf16.mxu1 %v6082_v36  ;;  %v6102_v41 = vpack.c.bf16 %v1556_v28, %v1555_v26  ;;  %v7548_v43 = vsel %vm790_vm1, %v757_v13, %v758_v23  ;;  %v7551_v45 = vmax.f32 %v529_v33, 0.0  ;;  %v761_v49 = vrot.slane %v7541_v32, 1  ;;  %v531_v52 = vld [vmem:[%s7426_s16 + $0x20] sm:$0xff]  ;;  %v1559_v63 = vld [vmem:[#allocation10 + $0x1b0] sm:$0xff]  ;;  %v1560_v1 = vld [vmem:[#allocation10 + $0x1b8] sm:$0xff] }
 0x10e   : > { %6032 = vmatpush1.bf16.msra.mxu0 %v6031_v39  ;;  %v973_v39 = vld [vmem:[#allocation10 + $0xa0] sm:$0xff]  ;;  %v760_v44 = vrot.slane %v7535_v25, 1  ;;  %v7571_v62 = vmax.f32 %v531_v52, 0.0  ;;  %v7579_v8 = vmax.f32 %v532_v54, 0.0  ;;  %v533_v9 = vld [vmem:[%s7426_s16 + $0x30] sm:$0xff]  ;;  %v534_v11 = vld [vmem:[%s7426_s16 + $0x38] sm:$0xff]  ;;  %v6108_v15 = vpack.c.bf16 %v1560_v1, %v1559_v63 }
 0x10f   : > { %6033 = vmatprep.subr.bf16.mxu0 %v9928_v0  ;;  %v6049_v53 = vpack.c.bf16 %v974_v40, %v973_v39  ;;  %v762_v61 = vrot.slane %v7551_v45, 1  ;;  %v977_v12 = vld [vmem:[#allocation10 + $0xc0] sm:$0xff]  ;;  %v978_v13 = vld [vmem:[#allocation10 + $0xc8] sm:$0xff]  ;;  %v7591_v19 = vmax.f32 %v533_v9, 0.0  ;;  %v7600_v26 = vmax.f32 %v534_v11, 0.0  ;;  %v979_v33 = vld [vmem:[#allocation10 + $0xd0] sm:$0xff] }
 0x110   : > { %6085 = vmatpush3.bf16.msra.mxu1 %v6082_v36  ;;  %v530_v36 = vld [vmem:[%s7426_s16 + $0x18] sm:$0xff]  ;;  %v7568_v59 = vsel %vm790_vm1, %v759_v30, %v760_v44  ;;  %v764_v18 = vrot.slane %v7571_v62, 1  ;;  %v1561_v20 = vld [vmem:[#allocation10 + $0x1c0] sm:$0xff]  ;;  %v982_v63 = vld [vmem:[#allocation10 + $0xe8] sm:$0xff] }
 0x111   : > { %6087 = vmatprep.subr.bf16.mxu1 %v6086_v47  ;;  %v7559_v50 = vmax.f32 %v530_v36, 0.0  ;;  %10120 = vst [vmem:[#allocation33_spill] sm:$0xff] %v7600_v26  ;;  %v535_v28 = vld [vmem:[%s7426_s16 + $0x40] sm:$0xff]  ;;  %v7606_v36 = vstv %s495_s3  ;;  %v1588_v56 = vld [vmem:[#allocation10 + $0x298] sm:$0xff] }
 0x112   : > { %6035 = vmatpush1.bf16.msra.mxu0 %v6034_v48  ;;  %v7556_v48 = vsel %vm790_vm1, %v758_v23, %v759_v30  ;;  %v765_v23 = vrot.slane %v7579_v8, 1  ;;  %v536_v30 = vld [vmem:[%s7426_s16 + $0x48] sm:$0xff]  ;;  %vm498_vm3 = vcmp.gt.s32.totalorder %v7606_v36, 1  ;;  %v1569_v35 = vld [vmem:[#allocation10 + $0x200] sm:$0xff]  ;;  %vm497_vm5 = vcmp.gt.s32.totalorder %v7606_v36, 0 }
 0x113   : > { %6036 = vmatprep.subr.bf16.mxu0 %v9928_v0  ;;  %v7625_v54 = vmax.f32 %v536_v30, 0.0  ;;  %v984_v30 = vld [vmem:[#allocation10 + $0xf8] sm:$0xff] }
 0x114   : > { %6089 = vmatpush3.bf16.msra.mxu1 %v6086_v47  ;;  %v1558_v47 = vld [vmem:[#allocation10 + $0x1a8] sm:$0xff]  ;;  %v7622_v52 = vsel %vm790_vm1, %v764_v18, %v765_v23 }
 0x115   : > { %6091 = vmatprep.subr.bf16.mxu1 %v6090_v55  ;;  %v6105_v58 = vpack.c.bf16 %v1558_v47, %v1557_v46  ;;  %v7617_v46 = vld [vmem:[%s7441_s23 + $0x28] sm:$0xff]  ;;  %v1563_v47 = vld [vmem:[#allocation10 + $0x1d0] sm:$0xff]  ;;  %10123 = vst [vmem:[#allocation36_spill] sm:$0xff] %v7625_v54 }
 0x116   : > { %6038 = vmatpush1.bf16.msra.mxu0 %v6037_v57  ;;  %v976_v57 = vld [vmem:[#allocation10 + $0xb8] sm:$0xff]  ;;  %10122 = vst [vmem:[#allocation35_spill] sm:$0xff] %v7617_v46  ;;  %v9924_v1 = vmax.f32 %v7617_v46, 0.0 }
 0x117   : > { %6039 = vmatprep.subr.bf16.mxu0 %v9928_v0 }
 0x118   : > { %6093 = vmatpush3.bf16.msra.mxu1 %v6090_v55  ;;  %v975_v55 = vld [vmem:[#allocation10 + $0xb0] sm:$0xff] }
 0x119   : > { %6095 = vmatprep.subr.bf16.mxu1 %v6094_v2  ;;  %v6052_v10 = vpack.c.bf16 %v976_v57, %v975_v55  ;;  %v537_v55 = vld [vmem:[%s7426_s16 + $0x50] sm:$0xff] }
 0x11a   : > { %6041 = vmatpush1.bf16.msra.mxu0 %v6040_v5  ;;  %v763_v5 = vrot.slane %v7559_v50, 1  ;;  %v7639_v11 = vmax.f32 %v537_v55, 0.0 }
 0x11b   : > { %6042 = vmatprep.subr.bf16.mxu0 %v9928_v0 }
 0x11c   : > { %6097 = vmatpush3.bf16.msra.mxu1 %v6094_v2  ;;  %v7576_v2 = vsel %vm790_vm1, %v760_v44, %v761_v49  ;;  %v7611_v40 = vsel %vm790_vm1, %v763_v5, %v764_v18  ;;  %v7614_v44 = vmax.f32 %v535_v28, 0.0  ;;  %10124 = vst [vmem:[#allocation37_spill] sm:$0xff] %v7639_v11  ;;  %v769_v18 = vrot.slane %v7625_v54, 1  ;;  %v540_v28 = vld [vmem:[%s7426_s16 + $0x68] sm:$0xff] }
 0x11d   : > { %6098 = vmatprep.subr.bf16.mxu1 %v9928_v0 }
 0x11e   : > { %6044 = vmatpush1.bf16.msra.mxu0 %v6043_v16  ;;  %v7588_v16 = vsel %vm790_vm1, %v761_v49, %v762_v61  ;;  %10121 = vst [vmem:[#allocation34_spill] sm:$0xff] %v7614_v44  ;;  %v1564_v49 = vld [vmem:[#allocation10 + $0x1d8] sm:$0xff] }
 0x11f   : > { %5616 = vmatmul.mubr.f32.vlgmr.msra.gmra.mrb[0].mxu1 %v824_v21  ;;  %6045 = vmatprep.subr.bf16.mxu0 %v9928_v0  ;;  %v1562_v21 = vld [vmem:[#allocation10 + $0x1c8] sm:$0xff] }
 0x120   : > { %6100 = vmatpush1.bf16.msra.mxu1 %v6099_v22  ;;  %5618 = vmatprep.mubr.f32.mxu1 %v823_v29  ;;  %v7597_v22 = vsel %vm790_vm1, %v762_v61, %v763_v5  ;;  %v6055_v29 = vpack.c.bf16 %v978_v13, %v977_v12  ;;  %v6111_v39 = vpack.c.bf16 %v1562_v21, %v1561_v20  ;;  %v981_v61 = vld [vmem:[#allocation10 + $0xe0] sm:$0xff]  ;;  %v1566_v13 = vld [vmem:[#allocation10 + $0x1e8] sm:$0xff] }
 0x121   : > { %6101 = vmatprep.subr.bf16.mxu1 %v9928_v0  ;;  %v6114_v5 = vpack.c.bf16 %v1564_v49, %v1563_v47  ;;  %v1565_v12 = vld [vmem:[#allocation10 + $0x1e0] sm:$0xff]  ;;  %v1586_v47 = vld [vmem:[#allocation10 + $0x288] sm:$0xff]  ;;  %v770_v49 = vrot.slane %v7639_v11, 1 }
 0x122   : > { %6047 = vmatpush1.bf16.msra.mxu0 %v6046_v34  ;;  %v980_v34 = vld [vmem:[#allocation10 + $0xd8] sm:$0xff]  ;;  %v539_v21 = vld [vmem:[%s7426_s16 + $0x60] sm:$0xff] }
 0x123   : > { %6048 = vmatprep.subr.bf16.mxu0 %v9928_v0  ;;  %5619 = vmatmul.mubr.f32.gmra.mrb[2].mxu1 %v7548_v43  ;;  %v6058_v57 = vpack.c.bf16 %v980_v34, %v979_v33  ;;  %v7657_v33 = vsel %vm498_vm3, %v9924_v1, 0.0  ;;  %v6117_v34 = vpack.c.bf16 %v1566_v13, %v1565_v12  ;;  %v7665_v55 = vmax.f32 %v539_v21, 0.0  ;;  %v542_v1 = vld [vmem:[%s7426_s16 + $0x78] sm:$0xff]  ;;  %v1570_v21 = vld [vmem:[#allocation10 + $0x208] sm:$0xff] }
 0x124   : > { %6103 = vmatpush1.bf16.msra.mxu1 %v6102_v41  ;;  %5621 = vmatprep.mubr.f32.mxu1 %v7556_v48  ;;  %v766_v41 = vrot.slane %v7591_v19, 1  ;;  %10126 = vst [vmem:[#allocation39_spill] sm:$0xff] %v7657_v33  ;;  %v643_v13 = vrot.slane %v7471_v37, 7  ;;  %v1590_v37 = vld [vmem:[#allocation10 + $0x2a8] sm:$0xff] }
 0x125   : > { %6104 = vmatprep.subr.bf16.mxu1 %v9928_v0 }
 0x126   : > { %6050 = vmatpush1.bf16.msra.mxu0 %v6049_v53  ;;  %v767_v53 = vrot.slane %v7600_v26, 1  ;;  %v7636_v9 = vsel %vm790_vm1, %v765_v23, %v766_v41  ;;  %v6061_v23 = vpack.c.bf16 %v982_v63, %v981_v61 }
 0x127   : > { %6051 = vmatprep.subr.bf16.mxu0 %v9928_v0  ;;  %5622 = vmatmul.mubr.f32.gmra.mrb[4].mxu1 %v7568_v59 }
 0x128   : > { %6106 = vmatpush1.bf16.msra.mxu1 %v6105_v58  ;;  %5624 = vmatprep.mubr.f32.mxu1 %v7576_v2  ;;  %v538_v58 = vld [vmem:[%s7426_s16 + $0x58] sm:$0xff] }
 0x129   : > { %6107 = vmatprep.subr.bf16.mxu1 %v9928_v0  ;;  %v7647_v20 = vmax.f32 %v538_v58, 0.0  ;;  %v1568_v58 = vld [vmem:[#allocation10 + $0x1f8] sm:$0xff] }
 0x12a   : > { %6053 = vmatpush1.bf16.msra.mxu0 %v6052_v10  ;;  %v768_v10 = vrot.slane %v7614_v44, 1 }
 0x12b   : > { %6054 = vmatprep.subr.bf16.mxu0 %v9928_v0  ;;  %5625 = vmatmul.mubr.f32.gmra.mrb[6].mxu1 %v7588_v16  ;;  %v771_v63 = vrot.slane %v7647_v20, 1 }
 0x12c   : > { %6109 = vmatpush1.bf16.msra.mxu1 %v6108_v15  ;;  %5627 = vmatprep.mubr.f32.mxu1 %v7597_v22  ;;  %v7644_v15 = vsel %vm790_vm1, %v766_v41, %v767_v53  ;;  %v1585_v41 = vld [vmem:[#allocation10 + $0x280] sm:$0xff]  ;;  %v7670_v61 = vsel %vm790_vm1, %v768_v10, %v769_v18 }
 0x12d   : > { %6110 = vmatprep.subr.bf16.mxu1 %v9928_v0  ;;  %10125 = vst [vmem:[#allocation38_spill] sm:$0xff] %v7644_v15  ;;  %10128 = vst [vmem:[#allocation41_spill] sm:$0xff] %v7670_v61 }
 0x12e   : > { %6056 = vmatpush1.bf16.msra.mxu0 %v6055_v29  ;;  %v983_v29 = vld [vmem:[#allocation10 + $0xf0] sm:$0xff] }
 0x12f   : > { %6057 = vmatprep.subr.bf16.mxu0 %v9928_v0  ;;  %5628 = vmatmul.mubr.f32.gmra.mrb[8].mxu1 %v7611_v40  ;;  %v6064_v12 = vpack.c.bf16 %v984_v30, %v983_v29  ;;  %v1587_v30 = vld [vmem:[#allocation10 + $0x290] sm:$0xff] }
 0x130   : > { %6112 = vmatpush1.bf16.msra.mxu1 %v6111_v39  ;;  %5630 = vmatprep.mubr.f32.mxu1 %v7622_v52  ;;  %v7662_v39 = vsel %vm790_vm1, %v767_v53, %v768_v10  ;;  %v541_v53 = vld [vmem:[%s7426_s16 + $0x70] sm:$0xff]  ;;  %v6146_v10 = vpack.c.bf16 %v1586_v47, %v1585_v41  ;;  %v7696_v47 = vmax.f32 %v542_v1, 0.0  ;;  %v6150_v46 = vpack.c.bf16 %v1588_v56, %v1587_v30  ;;  %v1572_v30 = vld [vmem:[#allocation10 + $0x218] sm:$0xff] }
 0x131   : > { %6113 = vmatprep.subr.bf16.mxu1 %v9928_v0  ;;  %10127 = vst [vmem:[#allocation40_spill] sm:$0xff] %v7662_v39  ;;  %v7688_v29 = vmax.f32 %v541_v53, 0.0  ;;  %v644_v53 = vrot.slane %v7477_v38, 7  ;;  %v1589_v38 = vld [vmem:[#allocation10 + $0x2a0] sm:$0xff]  ;;  %v1571_v56 = vld [vmem:[#allocation10 + $0x210] sm:$0xff] }
 0x132   : > { %6059 = vmatpush1.bf16.msra.mxu0 %v6058_v57  ;;  %v1567_v57 = vld [vmem:[#allocation10 + $0x1f0] sm:$0xff] }
 0x133   : > { %6060 = vmatprep.subr.bf16.mxu0 %v9928_v0  ;;  %5631 = vmatmul.mubr.f32.gmra.mrb[10].mxu1 %v7636_v9  ;;  %v6120_v42 = vpack.c.bf16 %v1568_v58, %v1567_v57  ;;  %v10131_v57 = vrot.slane %v7657_v33, 7  ;;  %v10134_v33 = vmov 0.0|0.0  }
 0x134   : > { %6115 = vmatpush1.bf16.msra.mxu1 %v6114_v5  ;;  %5633 = vmatprep.mubr.f32.mxu1 %v7644_v15  ;;  %v7673_v5 = vmax.f32 %v540_v28, 0.0  ;;  %v772_v28 = vrot.slane %v7665_v55, 1  ;;  %v1596_v15 = vld [vmem:[#allocation10 + $0x2d8] sm:$0xff] }
 0x135   : > { %6116 = vmatprep.subr.bf16.mxu1 %v9928_v0  ;;  %v717_v58 = vsel %vm681_vm4, %v10131_v57, %v643_v13 }
 0x136   : > { %6062 = vmatpush1.bf16.msra.mxu0 %v6061_v23  ;;  %v7685_v23 = vsel %vm790_vm1, %v769_v18, %v770_v49  ;;  %v773_v41 = vrot.slane %v7673_v5, 1  ;;  %v543_v18 = vld [vmem:[%s7426_s16 + $0x80] sm:$0xff]  ;;  %v7709_v1 = vsel %vm790_vm1, %v771_v63, %v772_v28 }
 0x137   : > { %6063 = vmatprep.subr.bf16.mxu0 %v9928_v0  ;;  %5634 = vmatmul.mubr.f32.gmra.mrb[12].mxu1 %v7662_v39  ;;  %10129 = vst [vmem:[#allocation42_spill] sm:$0xff] %v7685_v23  ;;  %10132 = vst [vmem:[#allocation44_spill] sm:$0xff] %v7709_v1  ;;  %v7712_v57 = vmax.f32 %v543_v18, 0.0  ;;  %v10137_v18 = vmax.f32 %v7465_v31, 0.0 }
 0x138   : > { %6118 = vmatpush1.bf16.msra.mxu1 %v6117_v34  ;;  %5636 = vmatprep.mubr.f32.mxu1 %v7670_v61  ;;  %v7693_v34 = vsel %vm790_vm1, %v770_v49, %v771_v63  ;;  %v6123_v49 = vpack.c.bf16 %v1570_v21, %v1569_v35  ;;  %v7717_v35 = vsel %vm790_vm1, %v772_v28, %v773_v41  ;;  %v545_v21 = vld [vmem:[%s7426_s16 + $0x90] sm:$0xff] }
 0x139   : > { %6119 = vmatprep.subr.bf16.mxu1 %v9928_v0  ;;  %10130 = vst [vmem:[#allocation43_spill] sm:$0xff] %v7693_v34  ;;  %v544_v0 = vld [vmem:[%s7426_s16 + $0x88] sm:$0xff]  ;;  %10133 = vst [vmem:[#allocation45_spill] sm:$0xff] %v7712_v57  ;;  %v6154_v28 = vpack.c.bf16 %v1590_v37, %v1589_v38  ;;  %v1573_v37 = vld [vmem:[#allocation10 + $0x220] sm:$0xff] }
 0x13a   : > { %6065 = vmatpush1.bf16.msra.mxu0 %v6064_v12  ;;  %v774_v12 = vrot.slane %v7688_v29, 1  ;;  %10135 = vst [vmem:[#allocation46_spill] sm:$0xff] %v7717_v35  ;;  %v7720_v63 = vmax.f32 %v544_v0, 0.0  ;;  %v6126_v0 = vpack.c.bf16 %v1572_v30, %v1571_v56  ;;  %v1574_v38 = vld [vmem:[#allocation10 + $0x228] sm:$0xff]  ;;  %v547_v30 = vld [vmem:[%s7426_s16 + $0xa0] sm:$0xff] }
 0x13b   : > { %6147 = vmatprep.subr.bf16.mxu0 %v6146_v10  ;;  %5637 = vmatmul.mubr.f32.gmra.mrb[14].mxu1 %v7685_v23  ;;  %v546_v23 = vld [vmem:[%s7426_s16 + $0x98] sm:$0xff] }
 0x13c   : > { %6121 = vmatpush1.bf16.msra.mxu1 %v6120_v42  ;;  %5639 = vmatprep.mubr.f32.mxu1 %v7693_v34  ;;  %v775_v42 = vrot.slane %v7696_v47, 1  ;;  %10136 = vst [vmem:[#allocation47_spill] sm:$0xff] %v7720_v63  ;;  %v645_v34 = vrot.slane %v7505_v3, 7  ;;  %v7735_v31 = vsel %vm790_vm1, %v773_v41, %v774_v12  ;;  %v1591_v3 = vld [vmem:[#allocation10 + $0x2b0] sm:$0xff]  ;;  %v777_v56 = vrot.slane %v7720_v63, 1 }
 0x13d   : > { %1066 = vmatmul.mubr.f32.vlgmr.msra.gmra.mrb[0].mxu0 %v717_v58  ;;  %6122 = vmatprep.subr.bf16.mxu1 %v10134_v33  ;;  %v716_v58 = vsel %vm681_vm4, %v643_v13, %v644_v53  ;;  %10138 = vst [vmem:[#allocation48_spill] sm:$0xff] %v7735_v31  ;;  %v7738_v13 = vmax.f32 %v545_v21, 0.0  ;;  %v7746_v41 = vmax.f32 %v546_v23, 0.0  ;;  %v6129_v23 = vpack.c.bf16 %v1574_v38, %v1573_v37  ;;  %v549_v38 = vld [vmem:[%s7426_s16 + $0xb0] sm:$0xff] }
 0x13e   : > { %6149 = vmatpush3.bf16.msra.mxu0 %v6146_v10  ;;  %5260 = vmatprep.mubr.msk.f32.mxu0 %vm471_vm0, %v10137_v18  ;;  %v776_v10 = vrot.slane %v7712_v57, 1  ;;  %v1592_v18 = vld [vmem:[#allocation10 + $0x2b8] sm:$0xff]  ;;  %v715_v21 = vsel %vm681_vm4, %v644_v53, %v645_v34  ;;  %v7792_v39 = vmax.f32 %v549_v38, 0.0  ;;  %v648_v38 = vrot.slane %v7528_v17, 7  ;;  %v1579_v17 = vld [vmem:[#allocation10 + $0x250] sm:$0xff] }
 0x13f   : > { %5640 = vmatmul.mubr.f32.gmra.mrb[16].mxu1 %v7709_v1  ;;  %6151 = vmatprep.subr.bf16.mxu0 %v6150_v46  ;;  %v548_v1 = vld [vmem:[%s7426_s16 + $0xa8] sm:$0xff]  ;;  %v778_v53 = vrot.slane %v7738_v13, 1 }
 0x140   : > { %6124 = vmatpush1.bf16.msra.mxu1 %v6123_v49  ;;  %5642 = vmatprep.mubr.f32.mxu1 %v7717_v35  ;;  %v7743_v49 = vsel %vm790_vm1, %v774_v12, %v775_v42  ;;  %v10140_v35 = vmax.f32 %v7490_v51, 0.0  ;;  %v6158_v12 = vpack.c.bf16 %v1592_v18, %v1591_v3  ;;  %v7761_v51 = vsel %vm790_vm1, %v775_v42, %v776_v10  ;;  %v1575_v3 = vld [vmem:[#allocation10 + $0x230] sm:$0xff] }
 0x141   : > { %1071 = vmatmul.mubr.f32.gmra.mrb[2].mxu0 %v716_v58  ;;  %6125 = vmatprep.subr.bf16.mxu1 %v10134_v33  ;;  %10139 = vst [vmem:[#allocation49_spill] sm:$0xff] %v7743_v49  ;;  %v646_v58 = vrot.slane %v7512_v6, 7  ;;  %10141 = vst [vmem:[#allocation50_spill] sm:$0xff] %v7761_v51  ;;  %v7764_v6 = vmax.f32 %v547_v30, 0.0  ;;  %v7769_v18 = vsel %vm790_vm1, %v776_v10, %v777_v56  ;;  %v779_v42 = vrot.slane %v7746_v41, 1 }
 0x142   : > { %5261 = vmatprep.mubr.msk.f32.mxu0 %vm471_vm0, %v10140_v35  ;;  %6153 = vmatpush3.bf16.msra.mxu0 %v6150_v46  ;;  %v1593_v46 = vld [vmem:[#allocation10 + $0x2c0] sm:$0xff]  ;;  %v1594_v35 = vld [vmem:[#allocation10 + $0x2c8] sm:$0xff]  ;;  %10143 = vst [vmem:[#allocation52_spill] sm:$0xff] %v7769_v18  ;;  %v7772_v37 = vmax.f32 %v548_v1, 0.0  ;;  %v7789_v61 = vsel %vm790_vm1, %v777_v56, %v778_v53  ;;  %10146 = vst [vmem:[#allocation55_spill] sm:$0xff] %v7792_v39 }
 0x143   : > { %5643 = vmatmul.mubr.f32.gmra.mrb[18].mxu1 %v7735_v31  ;;  %6155 = vmatprep.subr.bf16.mxu0 %v6154_v28  ;;  %10142 = vst [vmem:[#allocation51_spill] sm:$0xff] %v7764_v6  ;;  %v7780_v30 = vsel %vm681_vm4, %v645_v34, %v646_v58  ;;  %v499_v31 = vld [vmem:[%s7441_s23] sm:$0xff]  ;;  %v6162_v10 = vpack.c.bf16 %v1594_v35, %v1593_v46  ;;  %10145 = vst [vmem:[#allocation54_spill] sm:$0xff] %v7789_v61  ;;  %v780_v34 = vrot.slane %v7764_v6, 1  ;;  %v1578_v46 = vld [vmem:[#allocation10 + $0x248] sm:$0xff] }
 0x144   : > { %6127 = vmatpush1.bf16.msra.mxu1 %v6126_v0  ;;  %5645 = vmatprep.mubr.f32.mxu1 %v7743_v49  ;;  %v1576_v0 = vld [vmem:[#allocation10 + $0x238] sm:$0xff]  ;;  %10144 = vst [vmem:[#allocation53_spill] sm:$0xff] %v7772_v37  ;;  %v781_v35 = vrot.slane %v7772_v37, 1 }
 0x145   : > { %1076 = vmatmul.mubr.f32.gmra.mrb[4].mxu0 %v715_v21  ;;  %6128 = vmatprep.subr.bf16.mxu1 %v10134_v33  ;;  %v647_v21 = vrot.slane %v7522_v14, 7  ;;  %v550_v49 = vld [vmem:[%s7426_s16 + $0xb8] sm:$0xff]  ;;  %v6132_v1 = vpack.c.bf16 %v1576_v0, %v1575_v3  ;;  %v1595_v14 = vld [vmem:[#allocation10 + $0x2d0] sm:$0xff]  ;;  %v7803_v3 = vmax.f32 %v499_v31, 0.0 }
 0x146   : > { %5262 = vmatprep.mubr.msk.f32.mxu0 %vm472_vm2, %v7495_v60  ;;  %6157 = vmatpush3.bf16.msra.mxu0 %v6154_v28  ;;  %v1577_v28 = vld [vmem:[#allocation10 + $0x240] sm:$0xff]  ;;  %v7801_v56 = vmax.f32 %v550_v49, 0.0  ;;  %v6166_v49 = vpack.c.bf16 %v1596_v15, %v1595_v14  ;;  %v7825_v15 = vsel %vm790_vm1, %v780_v34, %v781_v35 }
 0x147   : > { %5646 = vmatmul.mubr.f32.gmra.mrb[20].mxu1 %v7761_v51  ;;  %6159 = vmatprep.subr.bf16.mxu0 %v6158_v12  ;;  %10149 = vst [vmem:[#allocation58_spill] sm:$0xff] %v7803_v3  ;;  %v7811_v0 = vsel %vm681_vm4, %v646_v58, %v647_v21  ;;  %v6135_v31 = vpack.c.bf16 %v1578_v46, %v1577_v28  ;;  %v1597_v51 = vld [vmem:[#allocation10 + $0x2e0] sm:$0xff]  ;;  %v1598_v58 = vld [vmem:[#allocation10 + $0x2e8] sm:$0xff]  ;;  %v649_v28 = vrot.slane %v7535_v25, 7 }
 0x148   : > { %6130 = vmatpush1.bf16.msra.mxu1 %v6129_v23  ;;  %5648 = vmatprep.mubr.f32.mxu1 %v7769_v18  ;;  %v7798_v23 = vsel %vm790_vm1, %v778_v53, %v779_v42  ;;  %10148 = vst [vmem:[#allocation57_spill] sm:$0xff] %v7801_v56  ;;  %v7818_v53 = vsel %vm790_vm1, %v779_v42, %v780_v34  ;;  %v782_v18 = vrot.slane %v7792_v39, 1  ;;  %v7831_v42 = vsel %vm497_vm5, %v7803_v3, 0.0  ;;  %v1599_v3 = vld [vmem:[#allocation10 + $0x2f0] sm:$0xff] }
 0x149   : > { %1081 = vmatmul.mubr.f32.gmra.mrb[6].mxu0 %v7780_v30  ;;  %6131 = vmatprep.subr.bf16.mxu1 %v10134_v33  ;;  %10147 = vst [vmem:[#allocation56_spill] sm:$0xff] %v7798_v23  ;;  %10150 = vst [vmem:[#allocation59_spill] sm:$0xff] %v7818_v53  ;;  %v7838_v14 = vsel %vm681_vm4, %v647_v21, %v648_v38  ;;  %v6170_v34 = vpack.c.bf16 %v1598_v58, %v1597_v51  ;;  %v1600_v21 = vld [vmem:[#allocation10 + $0x2f8] sm:$0xff] }
 0x14a   : > { %5263 = vmatprep.mubr.msk.f32.mxu0 %vm472_vm2, %v7507_v4  ;;  %6161 = vmatpush3.bf16.msra.mxu0 %v6158_v12  ;;  %v1580_v12 = vld [vmem:[#allocation10 + $0x258] sm:$0xff]  ;;  %v6174_v58 = vpack.c.bf16 %v1600_v21, %v1599_v3  ;;  %v2213_v21 = vld [vmem:[#allocation10 + $0x308] sm:$0xff] }
 0x14b   : > { %5649 = vmatmul.mubr.f32.gmra.mrb[22].mxu1 %v7789_v61  ;;  %6163 = vmatprep.subr.bf16.mxu0 %v6162_v10  ;;  %v6138_v46 = vpack.c.bf16 %v1580_v12, %v1579_v17  ;;  %v9966_v61 = vrot.slane %v7831_v42, 1  ;;  %v2244_v12 = vld [vmem:[#allocation10 + $0x400] sm:$0xff] }
 0x14c   : > { %6133 = vmatpush1.bf16.msra.mxu1 %v6132_v1  ;;  %5651 = vmatprep.mubr.f32.mxu1 %v7798_v23  ;;  %v783_v1 = vrot.slane %v7801_v56, 1  ;;  %v7845_v23 = vsel %vm790_vm1, %v781_v35, %v782_v18  ;;  %v7857_v35 = vsel %vm681_vm4, %v648_v38, %v649_v28  ;;  %v2245_v38 = vld [vmem:[#allocation10 + $0x408] sm:$0xff] }
 0x14d   : > { %1086 = vmatmul.mubr.f32.gmra.mrb[8].mxu0 %v7811_v0  ;;  %6134 = vmatprep.subr.bf16.mxu1 %v10134_v33  ;;  %10151 = vst [vmem:[#allocation60_spill] sm:$0xff] %v7845_v23 }
 0x14e   : > { %5264 = vmatprep.mubr.msk.f32.mxu0 %vm472_vm2, %v7514_v7  ;;  %6165 = vmatpush3.bf16.msra.mxu0 %v6162_v10  ;;  %v1581_v10 = vld [vmem:[#allocation10 + $0x260] sm:$0xff]  ;;  %v7852_v51 = vsel %vm790_vm1, %v782_v18, %v783_v1  ;;  %v7866_v18 = vsel %vm790_vm1, %v783_v1, %v9966_v61  ;;  %v7877_v1 = vpack.c.bf16 %v2245_v38, %v2244_v12  ;;  %v663_v61 = vrot.slane %v7688_v29, 7 }
 0x14f   : > { %5652 = vmatmul.mubr.f32.gmra.mrb[24].mxu1 %v7818_v53  ;;  %6167 = vmatprep.subr.bf16.mxu0 %v6166_v49  ;;  %v1582_v53 = vld [vmem:[#allocation10 + $0x268] sm:$0xff]  ;;  %v2216_v38 = vld [vmem:[#allocation10 + $0x320] sm:$0xff] }
 0x150   : > { %6136 = vmatpush1.bf16.msra.mxu1 %v6135_v31  ;;  %5654 = vmatprep.mubr.f32.mxu1 %v7825_v15  ;;  %v650_v31 = vrot.slane %v7541_v32, 7  ;;  %v6141_v17 = vpack.c.bf16 %v1582_v53, %v1581_v10  ;;  %v651_v53 = vrot.slane %v7551_v45, 7  ;;  %v652_v10 = vrot.slane %v7559_v50, 7 }
 0x151   : > { %1091 = vmatmul.mubr.f32.gmra.mrb[10].mxu0 %v7838_v14  ;;  %6137 = vmatprep.subr.bf16.mxu1 %v10134_v33 }
 0x152   : > { %1095 = vmatprep.mubr.f32.mxu0 %v7535_v25  ;;  %6169 = vmatpush3.bf16.msra.mxu0 %v6166_v49  ;;  %v1583_v49 = vld [vmem:[#allocation10 + $0x270] sm:$0xff]  ;;  %v7873_v3 = vsel %vm681_vm4, %v649_v28, %v650_v31  ;;  %v2212_v28 = vld [vmem:[#allocation10 + $0x300] sm:$0xff]  ;;  %v7896_v12 = vsel %vm681_vm4, %v651_v53, %v652_v10 }
 0x153   : > { %5655 = vmatmul.mubr.f32.gmra.mrb[26].mxu1 %v7845_v23  ;;  %6171 = vmatprep.subr.bf16.mxu0 %v6170_v34  ;;  %v1584_v23 = vld [vmem:[#allocation10 + $0x278] sm:$0xff] }
 0x154   : > { %6139 = vmatpush1.bf16.msra.mxu1 %v6138_v46  ;;  %5657 = vmatprep.mubr.f32.mxu1 %v7852_v51  ;;  %v6144_v46 = vpack.c.bf16 %v1584_v23, %v1583_v49  ;;  %v6179_v23 = vpack.c.bf16 %v2213_v21, %v2212_v28  ;;  %v2217_v49 = vld [vmem:[#allocation10 + $0x328] sm:$0xff]  ;;  %v2219_v28 = vld [vmem:[#allocation10 + $0x338] sm:$0xff] }
 0x155   : > { %1096 = vmatmul.mubr.f32.gmra.mrb[12].mxu0 %v7857_v35  ;;  %6140 = vmatprep.subr.bf16.mxu1 %v10134_v33 }
 0x156   : > { %1100 = vmatprep.mubr.f32.mxu0 %v7541_v32  ;;  %6173 = vmatpush3.bf16.msra.mxu0 %v6170_v34  ;;  %v7887_v34 = vsel %vm681_vm4, %v650_v31, %v651_v53  ;;  %v653_v31 = vrot.slane %v7571_v62, 7 }
 0x157   : > { %5658 = vmatmul.mubr.f32.gmra.mrb[28].mxu1 %v7866_v18  ;;  %6175 = vmatprep.subr.bf16.mxu0 %v6174_v58 }
 0x158   : > { %6142 = vmatpush1.bf16.msra.mxu1 %v6141_v17  ;;  %5265 = vmatprep.mubr.msk.f32.mxu1 %vm472_vm2, %v7495_v60  ;;  %v2214_v60 = vld [vmem:[#allocation10 + $0x310] sm:$0xff]  ;;  %v2215_v17 = vld [vmem:[#allocation10 + $0x318] sm:$0xff]  ;;  %v7908_v53 = vsel %vm681_vm4, %v652_v10, %v653_v31  ;;  %v2221_v10 = vld [vmem:[#allocation10 + $0x348] sm:$0xff] }
 0x159   : > { %1101 = vmatmul.mubr.f32.gmra.mrb[14].mxu0 %v7873_v3  ;;  %6143 = vmatprep.subr.bf16.mxu1 %v10134_v33 }
 0x15a   : > { %1105 = vmatprep.mubr.f32.mxu0 %v7551_v45  ;;  %6177 = vmatpush3.bf16.msra.mxu0 %v6174_v58  ;;  %v6182_v58 = vpack.c.bf16 %v2215_v17, %v2214_v60  ;;  %v656_v60 = vrot.slane %v7600_v26, 7  ;;  %v2222_v17 = vld [vmem:[#allocation10 + $0x350] sm:$0xff] }
 0x15b   : > { %6227 = vmatprep.subr.bf16.mxu0 %v7877_v1 }
 0x15c   : > { %6145 = vmatpush1.bf16.msra.mxu1 %v6144_v46  ;;  %v2218_v46 = vld [vmem:[#allocation10 + $0x330] sm:$0xff] }
 0x15d   : > { %1106 = vmatmul.mubr.f32.gmra.mrb[16].mxu0 %v7887_v34  ;;  %6178 = vmatprep.subr.bf16.mxu1 %v10134_v33  ;;  %v6188_v24 = vpack.c.bf16 %v2219_v28, %v2218_v46  ;;  %v658_v28 = vrot.slane %v7625_v54, 7 }
 0x15e   : > { %1110 = vmatprep.mubr.f32.mxu0 %v7559_v50 }
 0x15f   : > { %1666 = vmatmul.mubr.f32.vlgmr.msra.gmra.mrb[30].mxu1 %v7780_v30  ;;  %v654_v30 = vrot.slane %v7579_v8, 7 }
 0x160   : > { %5266 = vmatprep.mubr.msk.f32.mxu1 %vm472_vm2, %v7507_v4  ;;  %6180 = vmatpush1.bf16.msra.mxu1 %v6179_v23  ;;  %v6185_v4 = vpack.c.bf16 %v2217_v49, %v2216_v38  ;;  %v657_v38 = vrot.slane %v7614_v44, 7 }
 0x161   : > { %1111 = vmatmul.mubr.f32.gmra.mrb[18].mxu0 %v7896_v12  ;;  %6181 = vmatprep.subr.bf16.mxu1 %v10134_v33  ;;  %v7920_v21 = vsel %vm681_vm4, %v653_v31, %v654_v30  ;;  %v2223_v31 = vld [vmem:[#allocation10 + $0x358] sm:$0xff] }
 0x162   : > { %1115 = vmatprep.mubr.f32.mxu0 %v7571_v62  ;;  %v6194_v49 = vpack.c.bf16 %v2223_v31, %v2222_v17  ;;  %v7950_v46 = vsel %vm681_vm4, %v656_v60, %v657_v38  ;;  %v2228_v17 = vld [vmem:[#allocation10 + $0x380] sm:$0xff]  ;;  %v2229_v31 = vld [vmem:[#allocation10 + $0x388] sm:$0xff] }
 0x163   : > { %1671 = vmatmul.mubr.f32.gmra.mrb[32].mxu1 %v7811_v0  ;;  %v655_v0 = vrot.slane %v7591_v19, 7 }
 0x164   : > { %5267 = vmatprep.mubr.msk.f32.mxu1 %vm472_vm2, %v7514_v7  ;;  %6183 = vmatpush1.bf16.msra.mxu1 %v6182_v58  ;;  %v2220_v7 = vld [vmem:[#allocation10 + $0x340] sm:$0xff] }
 0x165   : > { %1116 = vmatmul.mubr.f32.gmra.mrb[20].mxu0 %v7908_v53  ;;  %6184 = vmatprep.subr.bf16.mxu1 %v10134_v33  ;;  %v7930_v23 = vsel %vm681_vm4, %v654_v30, %v655_v0  ;;  %v7940_v58 = vsel %vm681_vm4, %v655_v0, %v656_v60  ;;  %v2224_v30 = vld [vmem:[#allocation10 + $0x360] sm:$0xff]  ;;  %v659_v60 = vrot.slane %v7639_v11, 7 }
 0x166   : > { %1120 = vmatprep.mubr.f32.mxu0 %v7579_v8 }
 0x167   : > { %1676 = vmatmul.mubr.f32.gmra.mrb[34].mxu1 %v7838_v14  ;;  %v6191_v14 = vpack.c.bf16 %v2221_v10, %v2220_v7  ;;  %v2227_v7 = vld [vmem:[#allocation10 + $0x378] sm:$0xff]  ;;  %v7960_v10 = vsel %vm681_vm4, %v657_v38, %v658_v28  ;;  %v7970_v38 = vsel %vm681_vm4, %v658_v28, %v659_v60 }
 0x168   : > { %1680 = vmatprep.mubr.f32.mxu1 %v7535_v25  ;;  %6186 = vmatpush1.bf16.msra.mxu1 %v6185_v4  ;;  %v2225_v4 = vld [vmem:[#allocation10 + $0x368] sm:$0xff] }
 0x169   : > { %1121 = vmatmul.mubr.f32.gmra.mrb[22].mxu0 %v7920_v21  ;;  %6187 = vmatprep.subr.bf16.mxu1 %v10134_v33  ;;  %v6197_v0 = vpack.c.bf16 %v2225_v4, %v2224_v30  ;;  %v6203_v30 = vpack.c.bf16 %v2229_v31, %v2228_v17  ;;  %v2230_v4 = vld [vmem:[#allocation10 + $0x390] sm:$0xff]  ;;  %v2233_v17 = vld [vmem:[#allocation10 + $0x3a8] sm:$0xff]  ;;  %v662_v31 = vrot.slane %v7673_v5, 7 }
 0x16a   : > { %1125 = vmatprep.mubr.f32.mxu0 %v7591_v19 }
 0x16b   : > { %1681 = vmatmul.mubr.f32.gmra.mrb[36].mxu1 %v7857_v35 }
 0x16c   : > { %1685 = vmatprep.mubr.f32.mxu1 %v7541_v32  ;;  %6189 = vmatpush1.bf16.msra.mxu1 %v6188_v24  ;;  %v2226_v24 = vld [vmem:[#allocation10 + $0x370] sm:$0xff] }
 0x16d   : > { %1126 = vmatmul.mubr.f32.gmra.mrb[24].mxu0 %v7930_v23  ;;  %6190 = vmatprep.subr.bf16.mxu1 %v10134_v33 }
 0x16e   : > { %1130 = vmatprep.mubr.f32.mxu0 %v7600_v26 }
 0x16f   : > { %1686 = vmatmul.mubr.f32.gmra.mrb[38].mxu1 %v7873_v3 }
 0x170   : > { %1690 = vmatprep.mubr.f32.mxu1 %v7551_v45  ;;  %6192 = vmatpush1.bf16.msra.mxu1 %v6191_v14  ;;  %v6200_v14 = vpack.c.bf16 %v2227_v7, %v2226_v24  ;;  %v661_v24 = vrot.slane %v7665_v55, 7 }
 0x171   : > { %1131 = vmatmul.mubr.f32.gmra.mrb[26].mxu0 %v7940_v58  ;;  %6193 = vmatprep.subr.bf16.mxu1 %v10134_v33 }
 0x172   : > { %1135 = vmatprep.mubr.f32.mxu0 %v7614_v44 }
 0x173   : > { %1691 = vmatmul.mubr.f32.gmra.mrb[40].mxu1 %v7887_v34 }
 0x174   : > { %1695 = vmatprep.mubr.f32.mxu1 %v7559_v50  ;;  %6195 = vmatpush1.bf16.msra.mxu1 %v6194_v49  ;;  %v660_v49 = vrot.slane %v7647_v20, 7 }
 0x175   : > { %1136 = vmatmul.mubr.f32.gmra.mrb[28].mxu0 %v7950_v46  ;;  %6196 = vmatprep.subr.bf16.mxu1 %v10134_v33 }
 0x176   : > { %1140 = vmatprep.mubr.f32.mxu0 %v7625_v54  ;;  %v7980_v28 = vsel %vm681_vm4, %v659_v60, %v660_v49  ;;  %v7990_v60 = vsel %vm681_vm4, %v660_v49, %v661_v24  ;;  %v8000_v49 = vsel %vm681_vm4, %v661_v24, %v662_v31  ;;  %v8010_v24 = vsel %vm681_vm4, %v662_v31, %v663_v61 }
 0x177   : > { %1696 = vmatmul.mubr.f32.gmra.mrb[42].mxu1 %v7896_v12 }
 0x178   : > { %1700 = vmatprep.mubr.f32.mxu1 %v7571_v62  ;;  %6198 = vmatpush1.bf16.msra.mxu1 %v6197_v0  ;;  %v2231_v0 = vld [vmem:[#allocation10 + $0x398] sm:$0xff] }
 0x179   : > { %1141 = vmatmul.mubr.f32.gmra.mrb[30].mxu0 %v7960_v10  ;;  %6199 = vmatprep.subr.bf16.mxu1 %v10134_v33  ;;  %v6206_v7 = vpack.c.bf16 %v2231_v0, %v2230_v4  ;;  %v2234_v4 = vld [vmem:[#allocation10 + $0x3b0] sm:$0xff]  ;;  %v2235_v0 = vld [vmem:[#allocation10 + $0x3b8] sm:$0xff] }
 0x17a   : > { %1145 = vmatprep.mubr.f32.mxu0 %v7639_v11 }
 0x17b   : > { %1701 = vmatmul.mubr.f32.gmra.mrb[44].mxu1 %v7908_v53 }
 0x17c   : > { %1705 = vmatprep.mubr.f32.mxu1 %v7579_v8  ;;  %6201 = vmatpush1.bf16.msra.mxu1 %v6200_v14  ;;  %v2232_v14 = vld [vmem:[#allocation10 + $0x3a0] sm:$0xff] }
 0x17d   : > { %1146 = vmatmul.mubr.f32.gmra.mrb[32].mxu0 %v7970_v38  ;;  %6202 = vmatprep.subr.bf16.mxu1 %v10134_v33 }
 0x17e   : > { %1150 = vmatprep.mubr.f32.mxu0 %v7647_v20 }
 0x17f   : > { %1706 = vmatmul.mubr.f32.gmra.mrb[46].mxu1 %v7920_v21 }
 0x180   : > { %1710 = vmatprep.mubr.f32.mxu1 %v7591_v19  ;;  %6204 = vmatpush1.bf16.msra.mxu1 %v6203_v30  ;;  %v6209_v30 = vpack.c.bf16 %v2233_v17, %v2232_v14  ;;  %v2236_v14 = vld [vmem:[#allocation10 + $0x3c0] sm:$0xff]  ;;  %v2237_v17 = vld [vmem:[#allocation10 + $0x3c8] sm:$0xff] }
 0x181   : > { %1151 = vmatmul.mubr.f32.gmra.mrb[34].mxu0 %v7980_v28  ;;  %6205 = vmatprep.subr.bf16.mxu1 %v10134_v33 }
 0x182   : > { %1155 = vmatprep.mubr.f32.mxu0 %v7665_v55 }
 0x183   : > { %1711 = vmatmul.mubr.f32.gmra.mrb[48].mxu1 %v7930_v23 }
 0x184   : > { %1715 = vmatprep.mubr.f32.mxu1 %v7600_v26  ;;  %6207 = vmatpush1.bf16.msra.mxu1 %v6206_v7  ;;  %v6212_v7 = vpack.c.bf16 %v2235_v0, %v2234_v4  ;;  %v664_v26 = vrot.slane %v7696_v47, 7  ;;  %v2238_v4 = vld [vmem:[#allocation10 + $0x3d0] sm:$0xff]  ;;  %v2239_v0 = vld [vmem:[#allocation10 + $0x3d8] sm:$0xff] }
 0x185   : > { %1156 = vmatmul.mubr.f32.gmra.mrb[36].mxu0 %v7990_v60  ;;  %6208 = vmatprep.subr.bf16.mxu1 %v10134_v33 }
 0x186   : > { %1160 = vmatprep.mubr.f32.mxu0 %v7673_v5  ;;  %v8020_v31 = vsel %vm681_vm4, %v663_v61, %v664_v26 }
 0x187   : > { %1716 = vmatmul.mubr.f32.gmra.mrb[50].mxu1 %v7940_v58  ;;  %10152 = vst [vmem:[#allocation61_spill] sm:$0xff] %v8020_v31 }
 0x188   : > { %1720 = vmatprep.mubr.f32.mxu1 %v7614_v44  ;;  %6210 = vmatpush1.bf16.msra.mxu1 %v6209_v30  ;;  %v6215_v30 = vpack.c.bf16 %v2237_v17, %v2236_v14  ;;  %v665_v44 = vrot.slane %v7712_v57, 7  ;;  %v2240_v14 = vld [vmem:[#allocation10 + $0x3e0] sm:$0xff]  ;;  %v2241_v17 = vld [vmem:[#allocation10 + $0x3e8] sm:$0xff] }
 0x189   : > { %1161 = vmatmul.mubr.f32.gmra.mrb[38].mxu0 %v8000_v49  ;;  %6211 = vmatprep.subr.bf16.mxu1 %v10134_v33 }
 0x18a   : > { %1165 = vmatprep.mubr.f32.mxu0 %v7688_v29  ;;  %v8030_v61 = vsel %vm681_vm4, %v664_v26, %v665_v44 }
 0x18b   : > { %1721 = vmatmul.mubr.f32.gmra.mrb[52].mxu1 %v7950_v46  ;;  %10153 = vst [vmem:[#allocation62_spill] sm:$0xff] %v8030_v61 }
 0x18c   : > { %1725 = vmatprep.mubr.f32.mxu1 %v7625_v54  ;;  %6213 = vmatpush1.bf16.msra.mxu1 %v6212_v7  ;;  %v6218_v7 = vpack.c.bf16 %v2239_v0, %v2238_v4  ;;  %v666_v54 = vrot.slane %v7720_v63, 7  ;;  %v2242_v4 = vld [vmem:[#allocation10 + $0x3f0] sm:$0xff]  ;;  %v2243_v0 = vld [vmem:[#allocation10 + $0x3f8] sm:$0xff] }
 0x18d   : > { %1166 = vmatmul.mubr.f32.gmra.mrb[40].mxu0 %v8010_v24  ;;  %6214 = vmatprep.subr.bf16.mxu1 %v10134_v33 }
 0x18e   : > { %1170 = vmatprep.mubr.f32.mxu0 %v7696_v47  ;;  %v8040_v26 = vsel %vm681_vm4, %v665_v44, %v666_v54  ;;  %v668_v44 = vrot.slane %v7746_v41, 7 }
 0x18f   : > { %1726 = vmatmul.mubr.f32.gmra.mrb[54].mxu1 %v7960_v10 }
 0x190   : > { %1730 = vmatprep.mubr.f32.mxu1 %v7639_v11  ;;  %6216 = vmatpush1.bf16.msra.mxu1 %v6215_v30  ;;  %v6221_v30 = vpack.c.bf16 %v2241_v17, %v2240_v14  ;;  %v667_v11 = vrot.slane %v7738_v13, 7 }
 0x191   : > { %1171 = vmatmul.mubr.f32.gmra.mrb[42].mxu0 %v8020_v31  ;;  %6217 = vmatprep.subr.bf16.mxu1 %v10134_v33 }
 0x192   : > { %1175 = vmatprep.mubr.f32.mxu0 %v7712_v57  ;;  %v8050_v14 = vsel %vm681_vm4, %v666_v54, %v667_v11  ;;  %v8059_v17 = vsel %vm681_vm4, %v667_v11, %v668_v44 }
 0x193   : > { %1731 = vmatmul.mubr.f32.gmra.mrb[56].mxu1 %v7970_v38  ;;  %10154 = vst [vmem:[#allocation63_spill] sm:$0xff] %v8059_v17 }
 0x194   : > { %1735 = vmatprep.mubr.f32.mxu1 %v7647_v20  ;;  %6219 = vmatpush1.bf16.msra.mxu1 %v6218_v7  ;;  %v6224_v7 = vpack.c.bf16 %v2243_v0, %v2242_v4  ;;  %v670_v4 = vrot.slane %v7772_v37, 7  ;;  %v671_v0 = vrot.slane %v7792_v39, 7 }
 0x195   : > { %1176 = vmatmul.mubr.f32.gmra.mrb[44].mxu0 %v8030_v61  ;;  %6220 = vmatprep.subr.bf16.mxu1 %v10134_v33 }
 0x196   : > { %1180 = vmatprep.mubr.f32.mxu0 %v7720_v63 }
 0x197   : > { %1736 = vmatmul.mubr.f32.gmra.mrb[58].mxu1 %v7980_v28 }
 0x198   : > { %1740 = vmatprep.mubr.f32.mxu1 %v7665_v55  ;;  %6222 = vmatpush1.bf16.msra.mxu1 %v6221_v30  ;;  %v669_v30 = vrot.slane %v7764_v6, 7 }
 0x199   : > { %1181 = vmatmul.mubr.f32.gmra.mrb[46].mxu0 %v8040_v26  ;;  %6223 = vmatprep.subr.bf16.mxu1 %v10134_v33 }
 0x19a   : > { %1185 = vmatprep.mubr.f32.mxu0 %v7738_v13  ;;  %v8068_v54 = vsel %vm681_vm4, %v668_v44, %v669_v30  ;;  %v8077_v11 = vsel %vm681_vm4, %v669_v30, %v670_v4  ;;  %v9975_v44 = vrot.slane %v7801_v56, 7 }
 0x19b   : > { %1741 = vmatmul.mubr.f32.gmra.mrb[60].mxu1 %v7990_v60  ;;  %10155 = vst [vmem:[#allocation64_spill] sm:$0xff] %v8068_v54  ;;  %10156 = vst [vmem:[#allocation65_spill] sm:$0xff] %v8077_v11 }
 0x19c   : > { %1745 = vmatprep.mubr.f32.mxu1 %v7673_v5  ;;  %6225 = vmatpush1.bf16.msra.mxu1 %v6224_v7  ;;  %v8086_v7 = vsel %vm681_vm4, %v670_v4, %v671_v0  ;;  %v8097_v30 = vsel %vm681_vm4, %v671_v0, %v9975_v44  ;;  %v2246_v4 = vld [vmem:[#allocation10 + $0x410] sm:$0xff]  ;;  %v2251_v44 = vld [vmem:[#allocation10 + $0x438] sm:$0xff] }
 0x19d   : > { %1186 = vmatmul.mubr.f32.gmra.mrb[48].mxu0 %v8050_v14  ;;  %10157 = vst [vmem:[#allocation66_spill] sm:$0xff] %v8086_v7  ;;  %10158 = vst [vmem:[#allocation67_spill] sm:$0xff] %v8097_v30 }
 0x19e   : > { %1190 = vmatprep.mubr.f32.mxu0 %v7746_v41 }
 0x19f   : > { %1746 = vmatmul.mubr.f32.gmra.mrb[62].mxu1 %v8000_v49 }
 0x1a0   : > { %1750 = vmatprep.mubr.f32.mxu1 %v7688_v29 }
 0x1a1   : > { %1191 = vmatmul.mubr.f32.gmra.mrb[50].mxu0 %v8059_v17 }
 0x1a2   : > { %1195 = vmatprep.mubr.f32.mxu0 %v7764_v6 }
 0x1a3   : > { %1751 = vmatmul.mubr.f32.gmra.mrb[64].mxu1 %v8010_v24 }
 0x1a4   : > { %1755 = vmatprep.mubr.f32.mxu1 %v7696_v47 }
 0x1a5   : > { %1196 = vmatmul.mubr.f32.gmra.mrb[52].mxu0 %v8068_v54 }
 0x1a6   : > { %1200 = vmatprep.mubr.f32.mxu0 %v7772_v37 }
 0x1a7   : > { %1756 = vmatmul.mubr.f32.gmra.mrb[66].mxu1 %v8020_v31  ;;  %v2249_v31 = vld [vmem:[#allocation10 + $0x428] sm:$0xff] }
 0x1a8   : > { %1760 = vmatprep.mubr.f32.mxu1 %v7712_v57  ;;  %v2247_v57 = vld [vmem:[#allocation10 + $0x418] sm:$0xff] }
 0x1a9   : > { %1201 = vmatmul.mubr.f32.gmra.mrb[54].mxu0 %v8077_v11 }
 0x1aa   : > { %1205 = vmatprep.mubr.f32.mxu0 %v7792_v39 }
 0x1ab   : > { %1761 = vmatmul.mubr.f32.gmra.mrb[68].mxu1 %v8030_v61  ;;  %v2248_v61 = vld [vmem:[#allocation10 + $0x420] sm:$0xff] }
 0x1ac   : > { %1765 = vmatprep.mubr.f32.mxu1 %v7720_v63  ;;  %v6230_v63 = vpack.c.bf16 %v2247_v57, %v2246_v4  ;;  %v6234_v0 = vpack.c.bf16 %v2249_v31, %v2248_v61  ;;  %v2253_v57 = vld [vmem:[#allocation10 + $0x448] sm:$0xff]  ;;  %v2255_v61 = vld [vmem:[#allocation10 + $0x458] sm:$0xff]  ;;  %v501_v4 = vld [vmem:[%s7441_s23 + $0x10] sm:$0xff] }
 0x1ad   : > { %1206 = vmatmul.mubr.f32.gmra.mrb[56].mxu0 %v8086_v7 }
 0x1ae   : > { %1210 = vmatprep.mubr.f32.mxu0 %v7801_v56 }
 0x1af   : > { %1766 = vmatmul.mubr.f32.gmra.mrb[70].mxu1 %v8040_v26 }
 0x1b0   : > { %1770 = vmatprep.mubr.f32.mxu1 %v7738_v13 }
 0x1b1   : > { %1211 = vmatmul.mubr.f32.gmra.mrb[58].mxu0 %v8097_v30 }
 0x1b2   : > { %5692 = vmatprep.mubr.f32.mxu0 %v7548_v43  ;;  %v2250_v43 = vld [vmem:[#allocation10 + $0x430] sm:$0xff] }
 0x1b3   : > { %1771 = vmatmul.mubr.f32.gmra.mrb[72].mxu1 %v8050_v14 }
 0x1b4   : > { %1775 = vmatprep.mubr.f32.mxu1 %v7746_v41 }
 0x1b5   : > { %5693 = vmatmul.mubr.f32.vlgmr.msra.gmra.mrb[60].mxu0 %v7556_v48  ;;  %v6238_v48 = vpack.c.bf16 %v2251_v44, %v2250_v43  ;;  %v673_v43 = vrot.slane %v7831_v42, 7 }
 0x1b6   : > { %6229 = vmatpush3.bf16.msra.mxu0 %v7877_v1  ;;  %5695 = vmatprep.mubr.f32.mxu0 %v7568_v59  ;;  %v2252_v59 = vld [vmem:[#allocation10 + $0x440] sm:$0xff]  ;;  %v500_v1 = vld [vmem:[%s7441_s23 + $0x8] sm:$0xff] }
 0x1b7   : > { %1776 = vmatmul.mubr.f32.gmra.mrb[74].mxu1 %v8059_v17  ;;  %6231 = vmatprep.subr.bf16.mxu0 %v6230_v63  ;;  %v6242_v31 = vpack.c.bf16 %v2253_v57, %v2252_v59  ;;  %v8120_v44 = vmax.f32 %v500_v1, 0.0  ;;  %v2256_v59 = vld [vmem:[#allocation10 + $0x460] sm:$0xff]  ;;  %v2257_v57 = vld [vmem:[#allocation10 + $0x468] sm:$0xff] }
 0x1b8   : > { %1780 = vmatprep.mubr.f32.mxu1 %v7764_v6  ;;  %v2259_v6 = vld [vmem:[#allocation10 + $0x478] sm:$0xff]  ;;  %v10164_v17 = vld [vmem:[#allocation41_spill] sm:$0xff] }
 0x1b9   : > { %5696 = vmatmul.mubr.f32.gmra.mrb[62].mxu0 %v7576_v2  ;;  %v8131_v1 = vsel %vm497_vm5, %v8120_v44, 0.0 }
 0x1ba   : > { %5698 = vmatprep.mubr.f32.mxu0 %v7588_v16  ;;  %6233 = vmatpush3.bf16.msra.mxu0 %v6230_v63  ;;  %v2254_v63 = vld [vmem:[#allocation10 + $0x450] sm:$0xff] }
 0x1bb   : > { %1781 = vmatmul.mubr.f32.gmra.mrb[76].mxu1 %v8068_v54  ;;  %6235 = vmatprep.subr.bf16.mxu0 %v6234_v0  ;;  %v2258_v54 = vld [vmem:[#allocation10 + $0x470] sm:$0xff] }
 0x1bc   : > { %1785 = vmatprep.mubr.f32.mxu1 %v7772_v37 }
 0x1bd   : > { %5699 = vmatmul.mubr.f32.gmra.mrb[64].mxu0 %v7597_v22 }
 0x1be   : > { %5701 = vmatprep.mubr.f32.mxu0 %v7611_v40  ;;  %6237 = vmatpush3.bf16.msra.mxu0 %v6234_v0  ;;  %v6246_v0 = vpack.c.bf16 %v2255_v61, %v2254_v63  ;;  %v6250_v63 = vpack.c.bf16 %v2257_v57, %v2256_v59  ;;  %v10162_v61 = vld [vmem:[#allocation58_spill] sm:$0xff]  ;;  %v6254_v57 = vpack.c.bf16 %v2259_v6, %v2258_v54 }
 0x1bf   : > { %1786 = vmatmul.mubr.f32.gmra.mrb[78].mxu1 %v8077_v11  ;;  %6239 = vmatprep.subr.bf16.mxu0 %v6238_v48  ;;  %v8133_v11 = vmax.f32 %v501_v4, 0.0  ;;  %v674_v4 = vrot.slane %v8131_v1, 7  ;;  %v10165_v59 = vld [vmem:[#allocation42_spill] sm:$0xff] }
 0x1c0   : > { %1790 = vmatprep.mubr.f32.mxu1 %v7792_v39  ;;  %v10159_v39 = vld [vmem:[#allocation38_spill] sm:$0xff] }
 0x1c1   : > { %5702 = vmatmul.mubr.f32.gmra.mrb[66].mxu0 %v7622_v52  ;;  %10160 = vst [vmem:[#allocation38_spill] sm:$0xff] %v8133_v11  ;;  %v10169_v54 = vld [vmem:[#allocation46_spill] sm:$0xff] }
 0x1c2   : > { %5704 = vmatprep.mubr.f32.mxu0 %v7636_v9  ;;  %6241 = vmatpush3.bf16.msra.mxu0 %v6238_v48  ;;  %v10161_v48 = vld [vmem:[#allocation40_spill] sm:$0xff] }
 0x1c3   : > { %1791 = vmatmul.mubr.f32.gmra.mrb[80].mxu1 %v8086_v7  ;;  %6243 = vmatprep.subr.bf16.mxu0 %v6242_v31  ;;  %v10163_v7 = vrot.slane %v7801_v56, 7 }
 0x1c4   : > { %1795 = vmatprep.mubr.f32.mxu1 %v7801_v56  ;;  %v10167_v56 = vld [vmem:[#allocation44_spill] sm:$0xff] }
 0x1c5   : > { %5705 = vmatmul.mubr.f32.gmra.mrb[68].mxu0 %v10159_v39  ;;  %v8144_v37 = vsel %vm681_vm4, %v10163_v7, %v673_v43  ;;  %v8160_v7 = vsel %vm681_vm4, %v673_v43, %v674_v4  ;;  %v10171_v43 = vld [vmem:[#allocation49_spill] sm:$0xff] }
 0x1c6   : > { %5707 = vmatprep.mubr.f32.mxu0 %v10161_v48  ;;  %6245 = vmatpush3.bf16.msra.mxu0 %v6242_v31  ;;  %v8151_v31 = vsel %vm497_vm5, %v8133_v11, 0.0 }
 0x1c7   : > { %1796 = vmatmul.mubr.f32.gmra.mrb[82].mxu1 %v8097_v30  ;;  %6247 = vmatprep.subr.bf16.mxu0 %v6246_v0  ;;  %v10166_v30 = vld [vmem:[#allocation43_spill] sm:$0xff] }
 0x1c8   : > { %5268 = vmatprep.mubr.msk.f32.mxu1 %vm497_vm5, %v10162_v61  ;;  %v9985_v61 = vrot.slane %v8151_v31, 7 }
 0x1c9   : > { %5708 = vmatmul.mubr.f32.gmra.mrb[70].mxu0 %v10164_v17 }
 0x1ca   : > { %5710 = vmatprep.mubr.f32.mxu0 %v10165_v59  ;;  %6249 = vmatpush3.bf16.msra.mxu0 %v6246_v0  ;;  %v8173_v6 = vsel %vm681_vm4, %v674_v4, %v9985_v61  ;;  %v10170_v0 = vld [vmem:[#allocation48_spill] sm:$0xff]  ;;  %v10174_v61 = vld [vmem:[#allocation54_spill] sm:$0xff] }
 0x1cb   : > { %1801 = vmatmul.mubr.f32.gmra.mrb[84].mxu1 %v8144_v37  ;;  %6251 = vmatprep.subr.bf16.mxu0 %v6250_v63  ;;  %10168 = vst [vmem:[#allocation40_spill] sm:$0xff] %v8173_v6  ;;  %v10173_v4 = vld [vmem:[#allocation52_spill] sm:$0xff] }
 0x1cc   : > { %5269 = vmatprep.mubr.msk.f32.mxu1 %vm497_vm5, %v8120_v44 }
 0x1cd   : > { %5711 = vmatmul.mubr.f32.gmra.mrb[72].mxu0 %v10166_v30 }
 0x1ce   : > { %5713 = vmatprep.mubr.f32.mxu0 %v10167_v56  ;;  %6253 = vmatpush3.bf16.msra.mxu0 %v6250_v63  ;;  %v10172_v63 = vld [vmem:[#allocation50_spill] sm:$0xff] }
 0x1cf   : > { %1806 = vmatmul.mubr.f32.gmra.mrb[86].mxu1 %v8160_v7  ;;  %6255 = vmatprep.subr.bf16.mxu0 %v6254_v57 }
 0x1d0   : > { %5270 = vmatprep.mubr.msk.f32.mxu1 %vm497_vm5, %v8133_v11 }
 0x1d1   : > { %5714 = vmatmul.mubr.f32.gmra.mrb[74].mxu0 %v10169_v54 }
 0x1d2   : > { %5716 = vmatprep.mubr.f32.mxu0 %v10170_v0  ;;  %6257 = vmatpush3.bf16.msra.mxu0 %v6254_v57  ;;  %v8189_v57 = vld [vmem:[%s7441_s23 + $0x18] sm:$0xff] }
 0x1d3   : > { %1811 = vmatmul.mubr.f32.gmra.mrb[88].mxu1 %v8173_v6  ;;  %6258 = vmatprep.subr.bf16.mxu0 %v10134_v33  ;;  %v10175_v6 = vld [vmem:[#allocation56_spill] sm:$0xff] }
 0x1d4   : > { %2324 = vmatprep.mubr.f32.mxu1 %v7535_v25  ;;  %v10176_v25 = vld [vmem:[#allocation59_spill] sm:$0xff] }
 0x1d5   : > { %5717 = vmatmul.mubr.f32.gmra.mrb[76].mxu0 %v10171_v43 }
 0x1d6   : > { %5719 = vmatprep.mubr.f32.mxu0 %v10172_v63 }
 0x1d7   : > { %2325 = vmatmul.mubr.f32.vlgmr.msra.gmra.mrb[90].mxu1 %v7857_v35  ;;  %v508_v35 = vmax.f32 %v8189_v57, 0.0 }
 0x1d8   : > { %2329 = vmatprep.mubr.f32.mxu1 %v7541_v32  ;;  %v10177_v32 = vld [vmem:[#allocation60_spill] sm:$0xff] }
 0x1d9   : > { %5720 = vmatmul.mubr.f32.gmra.mrb[78].mxu0 %v10173_v4  ;;  %v8205_v11 = vsel %vm498_vm3, %v508_v35, 0.0 }
 0x1da   : > { %5722 = vmatprep.mubr.f32.mxu0 %v10174_v61 }
 0x1db   : > { %2330 = vmatmul.mubr.f32.gmra.mrb[92].mxu1 %v7873_v3  ;;  %v785_v3 = vrot.slane %v8131_v1, 1 }
 0x1dc   : > { %2334 = vmatprep.mubr.f32.mxu1 %v7551_v45  ;;  %v786_v45 = vrot.slane %v8151_v31, 1 }
 0x1dd   : > { %5723 = vmatmul.mubr.f32.gmra.mrb[80].mxu0 %v10175_v6 }
 0x1de   : > { %5725 = vmatprep.mubr.f32.mxu0 %v10176_v25  ;;  %v8220_v1 = vsel %vm790_vm1, %v785_v3, %v786_v45 }
 0x1df   : > { %2335 = vmatmul.mubr.f32.gmra.mrb[94].mxu1 %v7887_v34 }
 0x1e0   : > { %2339 = vmatprep.mubr.f32.mxu1 %v7559_v50  ;;  %v10178_v50 = vrot.slane %v7831_v42, 1 }
 0x1e1   : > { %5726 = vmatmul.mubr.f32.gmra.mrb[82].mxu0 %v7825_v15 }
 0x1e2   : > { %5728 = vmatprep.mubr.f32.mxu0 %v10177_v32  ;;  %v8214_v34 = vsel %vm790_vm1, %v10178_v50, %v785_v3  ;;  %v3351_v3 = vld [vmem:[#allocation12 + $0x18] sm:$0xff] }
 0x1e3   : > { %2340 = vmatmul.mubr.f32.gmra.mrb[96].mxu1 %v7896_v12  ;;  %v787_v12 = vrot.slane %v8205_v11, 1 }
 0x1e4   : > { %2344 = vmatprep.mubr.f32.mxu1 %v7571_v62 }
 0x1e5   : > { %5729 = vmatmul.mubr.f32.gmra.mrb[84].mxu0 %v7852_v51  ;;  %v8229_v62 = vsel %vm790_vm1, %v786_v45, %v787_v12 }
 0x1e6   : > { %5731 = vmatprep.mubr.f32.mxu0 %v7866_v18 }
 0x1e7   : > { %2345 = vmatmul.mubr.f32.gmra.mrb[98].mxu1 %v7908_v53 }
 0x1e8   : > { %2349 = vmatprep.mubr.f32.mxu1 %v7579_v8  ;;  %v10179_v8 = vld [vmem:[#allocation33_spill] sm:$0xff] }
 0x1e9   : > { %5732 = vmatmul.mubr.f32.gmra.mrb[86].mxu0 %v8214_v34 }
 0x1ea   : > { %5734 = vmatprep.mubr.f32.mxu0 %v8220_v1 }
 0x1eb   : > { %2350 = vmatmul.mubr.f32.gmra.mrb[100].mxu1 %v7920_v21  ;;  %v10180_v21 = vld [vmem:[#allocation34_spill] sm:$0xff] }
 0x1ec   : > { %2354 = vmatprep.mubr.f32.mxu1 %v7591_v19 }
 0x1ed   : > { %5735 = vmatmul.mubr.f32.gmra.mrb[88].mxu0 %v8229_v62 }
 0x1ee   : > { %5769 = vmatprep.mubr.f32.mxu0 %v7576_v2 }
 0x1ef   : > { %2355 = vmatmul.mubr.f32.gmra.mrb[102].mxu1 %v7930_v23  ;;  %v10181_v23 = vld [vmem:[#allocation36_spill] sm:$0xff] }
 0x1f0   : > { %2359 = vmatprep.mubr.f32.mxu1 %v10179_v8  ;;  %v10185_v8 = vld [vmem:[#allocation62_spill] sm:$0xff] }
 0x1f1   : > { %5770 = vmatmul.mubr.f32.vlgmr.msra.gmra.mrb[90].mxu0 %v7588_v16 }
 0x1f2   : > { %5772 = vmatprep.mubr.f32.mxu0 %v7597_v22  ;;  %v8239_v42 = vpop.f32.mrb[0].mxu1 }
 0x1f3   : > { %2360 = vmatmul.mubr.f32.gmra.mrb[104].mxu1 %v7940_v58  ;;  %v1282_v53 = vpop.f32.mrb[1].mxu1  ;;  %v10182_v58 = vld [vmem:[#allocation37_spill] sm:$0xff] }
 0x1f4   : > { %2364 = vmatprep.mubr.f32.mxu1 %v10180_v21 }
 0x1f5   : > { %5773 = vmatmul.mubr.f32.gmra.mrb[92].mxu0 %v7611_v40 }
 0x1f6   : > { %5775 = vmatprep.mubr.f32.mxu0 %v7622_v52  ;;  %v8245_v2 = vpop.f32.mrb[2].mxu1 }
 0x1f7   : > { %2365 = vmatmul.mubr.f32.gmra.mrb[106].mxu1 %v7950_v46  ;;  %v1292_v19 = vpop.f32.mrb[3].mxu1 }
 0x1f8   : > { %2369 = vmatprep.mubr.f32.mxu1 %v10181_v23  ;;  %v10186_v19 = vld [vmem:[#allocation47_spill] sm:$0xff]  ;;  %v3352_v23 = vld [vmem:[#allocation12 + $0x20] sm:$0xff] }
 0x1f9   : > { %5776 = vmatmul.mubr.f32.gmra.mrb[94].mxu0 %v7636_v9 }
 0x1fa   : > { %5778 = vmatprep.mubr.f32.mxu0 %v10159_v39  ;;  %v5623_v16 = vpop.f32.mrb[4].mxu1 }
 0x1fb   : > { %2370 = vmatmul.mubr.f32.gmra.mrb[108].mxu1 %v7960_v10  ;;  %v8252_v22 = vpop.f32.mrb[5].mxu1 }
 0x1fc   : > { %2374 = vmatprep.mubr.f32.mxu1 %v10182_v58 }
 0x1fd   : > { %5779 = vmatmul.mubr.f32.gmra.mrb[96].mxu0 %v10161_v48  ;;  %v3349_v48 = vld [vmem:[#allocation12 + $0x8] sm:$0xff] }
 0x1fe   : > { %5781 = vmatprep.mubr.f32.mxu0 %v10164_v17  ;;  %v8257_v40 = vpop.f32.mrb[6].mxu1 }
 0x1ff   : > { %2375 = vmatmul.mubr.f32.gmra.mrb[110].mxu1 %v7970_v38  ;;  %v8260_v52 = vpop.f32.mrb[7].mxu1  ;;  %v3381_v38 = vld [vmem:[#allocation12 + $0x108] sm:$0xff] }
 0x200   : > { %2379 = vmatprep.mubr.f32.mxu1 %v7647_v20 }
 0x201   : > { %5782 = vmatmul.mubr.f32.gmra.mrb[98].mxu0 %v10165_v59 }
 0x202   : > { %5784 = vmatprep.mubr.f32.mxu0 %v10166_v30  ;;  %v8265_v9 = vpop.f32.mrb[8].mxu1  ;;  %v3348_v30 = vld [vmem:[#allocation12] sm:$0xff] }
 0x203   : > { %2380 = vmatmul.mubr.f32.gmra.mrb[112].mxu1 %v7980_v28  ;;  %v1322_v39 = vpop.f32.mrb[9].mxu1 }
 0x204   : > { %2384 = vmatprep.mubr.f32.mxu1 %v7665_v55 }
 0x205   : > { %5785 = vmatmul.mubr.f32.gmra.mrb[100].mxu0 %v10167_v56  ;;  %v3380_v56 = vld [vmem:[#allocation12 + $0x100] sm:$0xff] }
 0x206   : > { %5787 = vmatprep.mubr.f32.mxu0 %v10169_v54  ;;  %v5632_v46 = vpop.f32.mrb[10].mxu1  ;;  %v6306_v28 = vpack.c.bf16 %v3381_v38, %v3380_v56  ;;  %v6259_v54 = vpack.c.bf16 %v3349_v48, %v3348_v30  ;;  %v3382_v56 = vld [vmem:[#allocation12 + $0x110] sm:$0xff] }
 0x207   : > { %2385 = vmatmul.mubr.f32.gmra.mrb[114].mxu1 %v7990_v60  ;;  %v8272_v10 = vpop.f32.mrb[11].mxu1 }
 0x208   : > { %2389 = vmatprep.mubr.f32.mxu1 %v7673_v5  ;;  %6307 = vmatprep.subr.bf16.mxu1 %v6306_v28 }
 0x209   : > { %5788 = vmatmul.mubr.f32.gmra.mrb[102].mxu0 %v10170_v0  ;;  %6309 = vmatpush3.bf16.msra.mxu1 %v6306_v28  ;;  %v10183_v0 = vld [vmem:[#allocation61_spill] sm:$0xff] }
 0x20a   : > { %5790 = vmatprep.mubr.f32.mxu0 %v10171_v43  ;;  %v8277_v20 = vpop.f32.mrb[12].mxu1  ;;  %6260 = vmatpush1.bf16.msra.mxu0 %v6259_v54 }
 0x20b   : > { %2390 = vmatmul.mubr.f32.gmra.mrb[116].mxu1 %v8000_v49  ;;  %v8280_v55 = vpop.f32.mrb[13].mxu1  ;;  %6261 = vmatprep.subr.bf16.mxu0 %v10134_v33 }
 0x20c   : > { %2394 = vmatprep.mubr.f32.mxu1 %v7688_v29 }
 0x20d   : > { %5791 = vmatmul.mubr.f32.gmra.mrb[104].mxu0 %v10172_v63  ;;  %v10184_v63 = vld [vmem:[#allocation45_spill] sm:$0xff] }
 0x20e   : > { %5793 = vmatprep.mubr.f32.mxu0 %v10173_v4  ;;  %v8285_v5 = vpop.f32.mrb[14].mxu1 }
 0x20f   : > { %2395 = vmatmul.mubr.f32.gmra.mrb[118].mxu1 %v8010_v24  ;;  %v1352_v60 = vpop.f32.mrb[15].mxu1 }
 0x210   : > { %v1067_v17 = vpop.f32.mrb[0].mxu0  ;;  %2399 = vmatprep.mubr.f32.mxu1 %v7696_v47  ;;  %v8298_v47 = vld [vmem:[%s7441_s23 + $0x20] sm:$0xff]  ;;  %s6510_s23 = smul.u32 24, %s10118_s28 }
 0x211   : > { %v8289_v49 = vadd.f32 %v1282_v53, %v1067_v17  ;;  %v1069_v29 = vpop.f32.mrb[1].mxu0  ;;  %5794 = vmatmul.mubr.f32.gmra.mrb[106].mxu0 %v10174_v61  ;;  %v509_v21 = vmax.f32 %v8298_v47, 0.0  ;;  %v3355_v17 = vld [vmem:[#allocation12 + $0x38] sm:$0xff] }
 0x212   : > { %5796 = vmatprep.mubr.f32.mxu0 %v10175_v6  ;;  %v5641_v59 = vpop.f32.mrb[16].mxu1  ;;  %v3350_v6 = vld [vmem:[#allocation12 + $0x10] sm:$0xff]  ;;  %s5057_s28 = sadd.s32 %s6511_s6, %s6510_s23 }
 0x213   : > { %2400 = vmatmul.mubr.f32.gmra.mrb[120].mxu1 %v10183_v0  ;;  %v8294_v24 = vpop.f32.mrb[17].mxu1  ;;  %v6262_v50 = vpack.c.bf16 %v3351_v3, %v3350_v6  ;;  %v8323_v46 = vsel %vm498_vm3, %v509_v21, 0.0  ;;  %s5250_s3 = sshll.u32 %s5057_s28, 7 }
 0x214   : > { %v1072_v43 = vpop.f32.mrb[2].mxu0  ;;  %2404 = vmatprep.mubr.f32.mxu1 %v10184_v63  ;;  %v788_v30 = vrot.slane %v8323_v46, 1  ;;  %s9812_s10 = scalar_lea.hbm %s10317_s24, %s5250_s3 }
 0x215   : > { %v8301_v4 = vadd.f32 %v8239_v42, %v1072_v43  ;;  %v1074_v61 = vpop.f32.mrb[3].mxu0  ;;  %5797 = vmatmul.mubr.f32.gmra.mrb[108].mxu0 %v10176_v25  ;;  %v3357_v43 = vld [vmem:[#allocation12 + $0x48] sm:$0xff] }
 0x216   : > { %5799 = vmatprep.mubr.f32.mxu0 %v7825_v15  ;;  %v8306_v45 = vpop.f32.mrb[18].mxu1  ;;  %6263 = vmatpush1.bf16.msra.mxu0 %v6262_v50  ;;  %v3353_v15 = vld [vmem:[#allocation12 + $0x28] sm:$0xff]  ;;  %v10188_v61 = vld [vmem:[#allocation63_spill] sm:$0xff]  ;;  %v3358_v50 = vld [vmem:[#allocation12 + $0x50] sm:$0xff] }
 0x217   : > { %2405 = vmatmul.mubr.f32.gmra.mrb[122].mxu1 %v10185_v8  ;;  %v8309_v53 = vpop.f32.mrb[19].mxu1  ;;  %6264 = vmatprep.subr.bf16.mxu0 %v10134_v33  ;;  %v6265_v58 = vpack.c.bf16 %v3353_v15, %v3352_v23  ;;  %v3359_v8 = vld [vmem:[#allocation12 + $0x58] sm:$0xff]  ;;  %v10192_v15 = vld [vmem:[#allocation64_spill] sm:$0xff] }
 0x218   : > { %v1077_v42 = vpop.f32.mrb[4].mxu0  ;;  %2409 = vmatprep.mubr.f32.mxu1 %v10186_v19  ;;  %v6274_v23 = vpack.c.bf16 %v3359_v8, %v3358_v50  ;;  %v3364_v50 = vld [vmem:[#allocation12 + $0x80] sm:$0xff]  ;;  %v3365_v8 = vld [vmem:[#allocation12 + $0x88] sm:$0xff] }
 0x219   : > { %v1079_v25 = vpop.f32.mrb[5].mxu0  ;;  %5800 = vmatmul.mubr.f32.gmra.mrb[110].mxu0 %v10177_v32  ;;  %v3383_v32 = vld [vmem:[#allocation12 + $0x118] sm:$0xff]  ;;  %v10190_v42 = vld [vmem:[#allocation32_spill] sm:$0xff] }
 0x21a   : > { %5802 = vmatprep.mubr.f32.mxu0 %v7852_v51  ;;  %v8316_v16 = vpop.f32.mrb[20].mxu1  ;;  %v6310_v28 = vpack.c.bf16 %v3383_v32, %v3382_v56  ;;  %6266 = vmatpush1.bf16.msra.mxu0 %v6265_v58  ;;  %v10191_v19 = vrot.slane %v10190_v42, 1  ;;  %v3385_v56 = vld [vmem:[#allocation12 + $0x128] sm:$0xff] }
 0x21b   : > { %2410 = vmatmul.mubr.f32.gmra.mrb[124].mxu1 %v8040_v26  ;;  %v1382_v39 = vpop.f32.mrb[21].mxu1  ;;  %6267 = vmatprep.subr.bf16.mxu0 %v10134_v33  ;;  %v3354_v26 = vld [vmem:[#allocation12 + $0x30] sm:$0xff] }
 0x21c   : > { %v1082_v38 = vpop.f32.mrb[6].mxu0  ;;  %2414 = vmatprep.mubr.f32.mxu1 %v7738_v13  ;;  %6311 = vmatprep.subr.bf16.mxu1 %v6310_v28  ;;  %v6268_v48 = vpack.c.bf16 %v3355_v17, %v3354_v26  ;;  %v3384_v39 = vld [vmem:[#allocation12 + $0x120] sm:$0xff] }
 0x21d   : > { %v8327_v51 = vadd.f32 %v8245_v2, %v1082_v38  ;;  %v1084_v60 = vpop.f32.mrb[7].mxu0  ;;  %5803 = vmatmul.mubr.f32.gmra.mrb[112].mxu0 %v7866_v18  ;;  %v10187_v2 = vld [vmem:[#allocation39_spill] sm:$0xff]  ;;  %6313 = vmatpush3.bf16.msra.mxu1 %v6310_v28  ;;  %v10193_v38 = vld [vmem:[#allocation53_spill] sm:$0xff]  ;;  %v6314_v28 = vpack.c.bf16 %v3385_v56, %v3384_v39  ;;  %v3360_v17 = vld [vmem:[#allocation12 + $0x60] sm:$0xff] }
 0x21e   : > { %5805 = vmatprep.mubr.f32.mxu0 %v8214_v34  ;;  %v5650_v29 = vpop.f32.mrb[22].mxu1  ;;  %v789_v59 = vrot.slane %v10187_v2, 1  ;;  %v3356_v34 = vld [vmem:[#allocation12 + $0x40] sm:$0xff]  ;;  %6269 = vmatpush1.bf16.msra.mxu0 %v6268_v48  ;;  %v3366_v56 = vld [vmem:[#allocation12 + $0x90] sm:$0xff] }
 0x21f   : > { %2415 = vmatmul.mubr.f32.gmra.mrb[126].mxu1 %v8050_v14  ;;  %v8334_v13 = vpop.f32.mrb[23].mxu1  ;;  %v792_v14 = vsel %vm790_vm1, %v787_v12, %v788_v30  ;;  %6270 = vmatprep.subr.bf16.mxu0 %v10134_v33  ;;  %v3361_v29 = vld [vmem:[#allocation12 + $0x68] sm:$0xff] }
 0x220   : > { %v1087_v54 = vpop.f32.mrb[8].mxu0  ;;  %2419 = vmatprep.mubr.f32.mxu1 %v7746_v41  ;;  %v6271_v41 = vpack.c.bf16 %v3357_v43, %v3356_v34  ;;  %v826_v25 = vsel %vm790_vm1, %v789_v59, %v10191_v19  ;;  %6315 = vmatprep.subr.bf16.mxu1 %v6314_v28  ;;  %v6277_v48 = vpack.c.bf16 %v3361_v29, %v3360_v17  ;;  %v10195_v34 = vld [vmem:[#allocation55_spill] sm:$0xff]  ;;  %v3386_v29 = vld [vmem:[#allocation12 + $0x130] sm:$0xff] }
 0x221   : > { %v8339_v18 = vadd.f32 %v8252_v22, %v1087_v54  ;;  %v1089_v0 = vpop.f32.mrb[9].mxu0  ;;  %5806 = vmatmul.mubr.f32.gmra.mrb[114].mxu0 %v8220_v1  ;;  %v791_v1 = vsel %vm790_vm1, %v788_v30, %v789_v59  ;;  %v10194_v59 = vld [vmem:[#allocation65_spill] sm:$0xff]  ;;  %6317 = vmatpush3.bf16.msra.mxu1 %v6314_v28  ;;  %v10198_v19 = vld [vmem:[#allocation67_spill] sm:$0xff] }
 0x222   : > { %5808 = vmatprep.mubr.f32.mxu0 %v8229_v62  ;;  %v8343_v63 = vpop.f32.mrb[24].mxu1  ;;  %v10189_v62 = vld [vmem:[#allocation51_spill] sm:$0xff]  ;;  %6272 = vmatpush1.bf16.msra.mxu0 %v6271_v41 }
 0x223   : > { %2420 = vmatmul.mubr.f32.gmra.mrb[128].mxu1 %v10188_v61  ;;  %v8350_v22 = vpop.f32.mrb[25].mxu1  ;;  %6273 = vmatprep.subr.bf16.mxu0 %v10134_v33  ;;  %v3363_v41 = vld [vmem:[#allocation12 + $0x78] sm:$0xff] }
 0x224   : > { %v1092_v6 = vpop.f32.mrb[10].mxu0  ;;  %2424 = vmatprep.mubr.f32.mxu1 %v10189_v62  ;;  %v10197_v62 = vld [vmem:[#allocation57_spill] sm:$0xff] }
 0x225   : > { %v1094_v3 = vpop.f32.mrb[11].mxu0  ;;  %5809 = vmatmul.mubr.f32.gmra.mrb[116].mxu0 %v792_v14  ;;  %v3362_v14 = vld [vmem:[#allocation12 + $0x70] sm:$0xff] }
 0x226   : > { %5811 = vmatprep.mubr.f32.mxu0 %v791_v1  ;;  %v8356_v12 = vpop.f32.mrb[26].mxu1  ;;  %6275 = vmatpush1.bf16.msra.mxu0 %v6274_v23  ;;  %v6280_v61 = vpack.c.bf16 %v3363_v41, %v3362_v14  ;;  %v10196_v1 = vld [vmem:[#allocation66_spill] sm:$0xff] }
 0x227   : > { %2425 = vmatmul.mubr.f32.gmra.mrb[130].mxu1 %v10192_v15  ;;  %v1412_v58 = vpop.f32.mrb[27].mxu1  ;;  %6276 = vmatprep.subr.bf16.mxu0 %v10134_v33  ;;  %v10199_v15 = vld [vmem:[#allocation58_spill] sm:$0xff] }
 0x228   : > { %v1097_v32 = vpop.f32.mrb[12].mxu0  ;;  %2429 = vmatprep.mubr.f32.mxu1 %v10193_v38 }
 0x229   : > { %v8366_v60 = vadd.f32 %v8260_v52, %v1097_v32  ;;  %v1099_v26 = vpop.f32.mrb[13].mxu0  ;;  %5812 = vmatmul.mubr.f32.gmra.mrb[118].mxu0 %v826_v25  ;;  %v3367_v32 = vld [vmem:[#allocation12 + $0x98] sm:$0xff] }
 0x22a   : > { %v5659_v30 = vpop.f32.mrb[28].mxu1  ;;  %6278 = vmatpush1.bf16.msra.mxu0 %v6277_v48  ;;  %v6286_v28 = vpack.c.bf16 %v3367_v32, %v3366_v56  ;;  %v3388_v56 = vld [vmem:[#allocation12 + $0x140] sm:$0xff] }
 0x22b   : > { %2430 = vmatmul.mubr.f32.gmra.mrb[132].mxu1 %v10194_v59  ;;  %v8369_v54 = vpop.f32.mrb[29].mxu1  ;;  %6279 = vmatprep.subr.bf16.mxu0 %v10134_v33 }
 0x22c   : > { %v1102_v0 = vpop.f32.mrb[14].mxu0  ;;  %2434 = vmatprep.mubr.f32.mxu1 %v10195_v34  ;;  %v3369_v34 = vld [vmem:[#allocation12 + $0xa8] sm:$0xff] }
 0x22d   : > { %v8374_v52 = vadd.f32 %v8257_v40, %v1102_v0  ;;  %v1104_v43 = vpop.f32.mrb[15].mxu0  ;;  %v6283_v40 = vpack.c.bf16 %v3365_v8, %v3364_v50  ;;  %v3368_v0 = vld [vmem:[#allocation12 + $0xa0] sm:$0xff] }
 0x22e   : > { %6281 = vmatpush1.bf16.msra.mxu0 %v6280_v61  ;;  %v10200_v61 = vld [vmem:[#allocation38_spill] sm:$0xff] }
 0x22f   : > { %2435 = vmatmul.mubr.f32.gmra.mrb[134].mxu1 %v10196_v1  ;;  %6282 = vmatprep.subr.bf16.mxu0 %v10134_v33  ;;  %v3370_v1 = vld [vmem:[#allocation12 + $0xb0] sm:$0xff] }
 0x230   : > { %v1107_v6 = vpop.f32.mrb[16].mxu0  ;;  %2439 = vmatprep.mubr.f32.mxu1 %v10197_v62 }
 0x231   : > { %v1109_v3 = vpop.f32.mrb[17].mxu0  ;;  %v3371_v6 = vld [vmem:[#allocation12 + $0xb8] sm:$0xff] }
 0x232   : > { %v8379_v42 = vpop.f32.mrb[30].mxu1  ;;  %6284 = vmatpush1.bf16.msra.mxu0 %v6283_v40  ;;  %v6292_v3 = vpack.c.bf16 %v3371_v6, %v3370_v1  ;;  %v3393_v6 = vld [vmem:[#allocation12 + $0x168] sm:$0xff] }
 0x233   : > { %2440 = vmatmul.mubr.f32.gmra.mrb[136].mxu1 %v10198_v19  ;;  %v1669_v25 = vpop.f32.mrb[31].mxu1  ;;  %6285 = vmatprep.subr.bf16.mxu0 %v10134_v33  ;;  %v677_v19 = vrot.slane %v8323_v46, 7 }
 0x234   : > { %v1112_v23 = vpop.f32.mrb[18].mxu0  ;;  %5271 = vmatprep.mubr.msk.f32.mxu1 %vm497_vm5, %v10199_v15  ;;  %v3372_v15 = vld [vmem:[#allocation12 + $0xc0] sm:$0xff] }
 0x235   : > { %v8387_v58 = vadd.f32 %v8265_v9, %v1112_v23  ;;  %v1114_v39 = vpop.f32.mrb[19].mxu0  ;;  %v3387_v9 = vld [vmem:[#allocation12 + $0x138] sm:$0xff] }
 0x236   : > { %v8389_v38 = vpop.f32.mrb[32].mxu1  ;;  %v6318_v59 = vpack.c.bf16 %v3387_v9, %v3386_v29  ;;  %6287 = vmatpush1.bf16.msra.mxu0 %v6286_v28  ;;  %v3373_v39 = vld [vmem:[#allocation12 + $0xc8] sm:$0xff]  ;;  %v3374_v29 = vld [vmem:[#allocation12 + $0xd0] sm:$0xff]  ;;  %v3375_v9 = vld [vmem:[#allocation12 + $0xd8] sm:$0xff] }
 0x237   : > { %2445 = vmatmul.mubr.f32.gmra.mrb[138].mxu1 %v8144_v37  ;;  %v1674_v26 = vpop.f32.mrb[33].mxu1  ;;  %v6289_v37 = vpack.c.bf16 %v3369_v34, %v3368_v0  ;;  %6288 = vmatprep.subr.bf16.mxu0 %v10134_v33  ;;  %v6295_v57 = vpack.c.bf16 %v3373_v39, %v3372_v15  ;;  %v3389_v28 = vld [vmem:[#allocation12 + $0x148] sm:$0xff]  ;;  %v6298_v0 = vpack.c.bf16 %v3375_v9, %v3374_v29  ;;  %v3391_v34 = vld [vmem:[#allocation12 + $0x158] sm:$0xff]  ;;  %v3394_v39 = vld [vmem:[#allocation12 + $0x170] sm:$0xff] }
 0x238   : > { %v1117_v17 = vpop.f32.mrb[20].mxu0  ;;  %5272 = vmatprep.mubr.msk.f32.mxu1 %vm497_vm5, %v8120_v44  ;;  %6319 = vmatprep.subr.bf16.mxu1 %v6318_v59  ;;  %v676_v44 = vrot.slane %v8205_v11, 7  ;;  %v10202_v11 = vrot.slane %v8151_v31, 7  ;;  %v6322_v31 = vpack.c.bf16 %v3389_v28, %v3388_v56  ;;  %v3395_v56 = vld [vmem:[#allocation12 + $0x178] sm:$0xff]  ;;  %v10205_v28 = vrot.slane %v10187_v2, 7 }
 0x239   : > { %v8397_v30 = vadd.f32 %v8272_v10, %v1117_v17  ;;  %v1119_v48 = vpop.f32.mrb[21].mxu0  ;;  %6321 = vmatpush3.bf16.msra.mxu1 %v6318_v59 }
 0x23a   : > { %v1677_v43 = vpop.f32.mrb[34].mxu1  ;;  %6290 = vmatpush1.bf16.msra.mxu0 %v6289_v37  ;;  %v684_v40 = vsel %vm681_vm4, %v10202_v11, %v676_v44  ;;  %6323 = vmatprep.subr.bf16.mxu1 %v6322_v31  ;;  %v3390_v48 = vld [vmem:[#allocation12 + $0x150] sm:$0xff]  ;;  %v10203_v37 = vld [vmem:[#allocation35_spill] sm:$0xff] }
 0x23b   : > { %2450 = vmatmul.mubr.f32.gmra.mrb[140].mxu1 %v8160_v7  ;;  %v1679_v14 = vpop.f32.mrb[35].mxu1  ;;  %v10201_v7 = vld [vmem:[#allocation40_spill] sm:$0xff]  ;;  %6291 = vmatprep.subr.bf16.mxu0 %v10134_v33  ;;  %v3378_v11 = vld [vmem:[#allocation12 + $0xf0] sm:$0xff] }
 0x23c   : > { %v1122_v41 = vpop.f32.mrb[22].mxu0  ;;  %5273 = vmatprep.mubr.msk.f32.mxu1 %vm497_vm5, %v10200_v61  ;;  %v10204_v14 = vmax.f32 %v10203_v37, 0.0  ;;  %v3377_v61 = vld [vmem:[#allocation12 + $0xe8] sm:$0xff] }
 0x23d   : > { %v1124_v10 = vpop.f32.mrb[23].mxu0  ;;  %6325 = vmatpush3.bf16.msra.mxu1 %v6322_v31  ;;  %v3376_v41 = vld [vmem:[#allocation12 + $0xe0] sm:$0xff] }
 0x23e   : > { %v8405_v62 = vpop.f32.mrb[36].mxu1  ;;  %6293 = vmatpush1.bf16.msra.mxu0 %v6292_v3  ;;  %v6301_v1 = vpack.c.bf16 %v3377_v61, %v3376_v41 }
 0x23f   : > { %2455 = vmatmul.mubr.f32.gmra.mrb[142].mxu1 %v10201_v7  ;;  %v1684_v50 = vpop.f32.mrb[37].mxu1  ;;  %6294 = vmatprep.subr.bf16.mxu0 %v10134_v33 }
 0x240   : > { %v1127_v8 = vpop.f32.mrb[24].mxu0  ;;  %5274 = vmatprep.mubr.msk.f32.mxu1 %vm498_vm3, %v508_v35 }
 0x241   : > { %v8419_v25 = vadd.f32 %v8280_v55, %v1127_v8  ;;  %v1129_v23 = vpop.f32.mrb[25].mxu0  ;;  %v683_v55 = vsel %vm681_vm4, %v676_v44, %v677_v19  ;;  %v3392_v44 = vld [vmem:[#allocation12 + $0x160] sm:$0xff] }
 0x242   : > { %v8421_v32 = vpop.f32.mrb[38].mxu1  ;;  %6296 = vmatpush1.bf16.msra.mxu0 %v6295_v57  ;;  %v6330_v7 = vpack.c.bf16 %v3393_v6, %v3392_v44 }
 0x243   : > { %2460 = vmatmul.mubr.f32.gmra.mrb[144].mxu1 %v684_v40  ;;  %v1689_v35 = vpop.f32.mrb[39].mxu1  ;;  %6297 = vmatprep.subr.bf16.mxu0 %v10134_v33  ;;  %v3379_v40 = vld [vmem:[#allocation12 + $0xf8] sm:$0xff] }
 0x244   : > { %v1132_v26 = vpop.f32.mrb[26].mxu0  ;;  %5275 = vmatprep.mubr.msk.f32.mxu1 %vm498_vm3, %v509_v21  ;;  %v6326_v21 = vpack.c.bf16 %v3391_v34, %v3390_v48  ;;  %v6304_v15 = vpack.c.bf16 %v3379_v40, %v3378_v11  ;;  %v6334_v35 = vpack.c.bf16 %v3395_v56, %v3394_v39  ;;  %v3896_v34 = vld [vmem:[#allocation12 + $0x288] sm:$0xff] }
 0x245   : > { %v8431_v46 = vadd.f32 %v8277_v20, %v1132_v26  ;;  %v1134_v17 = vpop.f32.mrb[27].mxu0 }
 0x246   : > { %v1692_v59 = vpop.f32.mrb[40].mxu1  ;;  %6327 = vmatprep.subr.bf16.mxu1 %v6326_v21  ;;  %6299 = vmatpush1.bf16.msra.mxu0 %v6298_v0  ;;  %v3895_v0 = vld [vmem:[#allocation12 + $0x280] sm:$0xff] }
 0x247   : > { %2465 = vmatmul.mubr.f32.gmra.mrb[146].mxu1 %v683_v55  ;;  %v1694_v47 = vpop.f32.mrb[41].mxu1  ;;  %6300 = vmatprep.subr.bf16.mxu0 %v10134_v33 }
 0x248   : > { %v1137_v43 = vpop.f32.mrb[28].mxu0  ;;  %5276 = vmatprep.mubr.msk.f32.mxu1 %vm498_vm3, %v10204_v14  ;;  %6329 = vmatpush3.bf16.msra.mxu1 %v6326_v21  ;;  %v8460_v21 = vpack.c.bf16 %v3896_v34, %v3895_v0 }
 0x249   : > { %v1139_v20 = vpop.f32.mrb[29].mxu0  ;;  %6331 = vmatprep.subr.bf16.mxu1 %v6330_v7 }
 0x24a   : > { %v8438_v10 = vpop.f32.mrb[42].mxu1  ;;  %6302 = vmatpush1.bf16.msra.mxu0 %v6301_v1 }
 0x24b   : > { %v1699_v3 = vpop.f32.mrb[43].mxu1  ;;  %6303 = vmatprep.subr.bf16.mxu0 %v10134_v33 }
 0x24c   : > { %v1142_v50 = vpop.f32.mrb[30].mxu0  ;;  %6333 = vmatpush3.bf16.msra.mxu1 %v6330_v7 }
 0x24d   : > { %v8442_v8 = vadd.f32 %v8285_v5, %v1142_v50  ;;  %v1144_v36 = vpop.f32.mrb[31].mxu0  ;;  %v682_v5 = vsel %vm681_vm4, %v677_v19, %v10205_v28  ;;  %6335 = vmatprep.subr.bf16.mxu1 %v6334_v35 }
 0x24e   : > { %v8444_v23 = vpop.f32.mrb[44].mxu1  ;;  %2470 = vmatmul.mubr.f32.gmra.mrb[148].mxu1 %v682_v5  ;;  %6305 = vmatpush1.bf16.msra.mxu0 %v6304_v15 }
 0x24f   : > { %v1704_v57 = vpop.f32.mrb[45].mxu1  ;;  %6387 = vmatprep.subr.bf16.mxu0 %v8460_v21 }
 0x250   : > { %v1147_v31 = vpop.f32.mrb[32].mxu0  ;;  %6337 = vmatpush3.bf16.msra.mxu1 %v6334_v35 }
 0x251   : > { %v8452_v26 = vadd.f32 %v8294_v24, %v1147_v31  ;;  %v1149_v55 = vpop.f32.mrb[33].mxu0  ;;  %6338 = vmatprep.subr.bf16.mxu1 %v10134_v33 }
 0x252   : > { %v1707_v17 = vpop.f32.mrb[46].mxu1 }
 0x253   : > { %v1709_v29 = vpop.f32.mrb[47].mxu1 }
 0x254   : > { %v1152_v9 = vpop.f32.mrb[34].mxu0 }
 0x255   : > { %v1154_v48 = vpop.f32.mrb[35].mxu0 }
 0x256   : > { %v8455_v2 = vpop.f32.mrb[48].mxu1 }
 0x257   : > { %v1714_v59 = vpop.f32.mrb[49].mxu1 }
 0x258   : > { %v1157_v19 = vpop.f32.mrb[36].mxu0 }
 0x259   : > { %v8458_v47 = vadd.f32 %v8309_v53, %v1157_v19  ;;  %v1159_v24 = vpop.f32.mrb[37].mxu0 }
 0x25a   : > { %v8462_v43 = vpop.f32.mrb[50].mxu1 }
 0x25b   : > { %v1719_v37 = vpop.f32.mrb[51].mxu1 }
 0x25c   : > { %v1162_v14 = vpop.f32.mrb[38].mxu0 }
 0x25d   : > { %v8466_v20 = vadd.f32 %v8306_v45, %v1162_v14  ;;  %v1164_v41 = vpop.f32.mrb[39].mxu0 }
 0x25e   : > { %v1722_v61 = vpop.f32.mrb[52].mxu1 }
 0x25f   : > { %v1724_v44 = vpop.f32.mrb[53].mxu1 }
 0x260   : > { %v1167_v1 = vpop.f32.mrb[40].mxu0 }
 0x261   : > { %v1169_v6 = vpop.f32.mrb[41].mxu0 }
 0x262   : > { %v8468_v3 = vpop.f32.mrb[54].mxu1 }
 0x263   : > { %v1729_v53 = vpop.f32.mrb[55].mxu1 }
 0x264   : > { %v1172_v7 = vpop.f32.mrb[42].mxu0 }
 0x265   : > { %v8471_v50 = vadd.f32 %v8316_v16, %v1172_v7  ;;  %v1174_v36 = vpop.f32.mrb[43].mxu0 }
 0x266   : > { %v8473_v11 = vpop.f32.mrb[56].mxu1 }
 0x267   : > { %v1734_v40 = vpop.f32.mrb[57].mxu1 }
 0x268   : > { %v1177_v15 = vpop.f32.mrb[44].mxu0 }
 0x269   : > { %v8476_v45 = vadd.f32 %v8334_v13, %v1177_v15  ;;  %v1179_v39 = vpop.f32.mrb[45].mxu0 }
 0x26a   : > { %v1737_v56 = vpop.f32.mrb[58].mxu1 }
 0x26b   : > { %v1739_v57 = vpop.f32.mrb[59].mxu1 }
 0x26c   : > { %v1182_v28 = vpop.f32.mrb[46].mxu0 }
 0x26d   : > { %v1184_v5 = vpop.f32.mrb[47].mxu0 }
 0x26e   : > { %v8478_v35 = vpop.f32.mrb[60].mxu1 }
 0x26f   : > { %v1744_v31 = vpop.f32.mrb[61].mxu1 }
 0x270   : > { %v1187_v55 = vpop.f32.mrb[48].mxu0 }
 0x271   : > { %v8481_v16 = vadd.f32 %v8350_v22, %v1187_v55  ;;  %v1189_v17 = vpop.f32.mrb[49].mxu0 }
 0x272   : > { %v8483_v29 = vpop.f32.mrb[62].mxu1 }
 0x273   : > { %v1749_v9 = vpop.f32.mrb[63].mxu1 }
 0x274   : > { %v1192_v48 = vpop.f32.mrb[50].mxu0 }
 0x275   : > { %v8486_v13 = vadd.f32 %v8343_v63, %v1192_v48  ;;  %v1194_v59 = vpop.f32.mrb[51].mxu0 }
 0x276   : > { %v1752_v19 = vpop.f32.mrb[64].mxu1 }
 0x277   : > { %v1754_v0 = vpop.f32.mrb[65].mxu1 }
 0x278   : > { %v1197_v34 = vpop.f32.mrb[52].mxu0 }
 0x279   : > { %v1199_v24 = vpop.f32.mrb[53].mxu0 }
 0x27a   : > { %v8488_v37 = vpop.f32.mrb[66].mxu1 }
 0x27b   : > { %v1759_v14 = vpop.f32.mrb[67].mxu1 }
 0x27c   : > { %v1202_v41 = vpop.f32.mrb[54].mxu0 }
 0x27d   : > { %v8491_v22 = vadd.f32 %v8356_v12, %v1202_v41  ;;  %v1204_v61 = vpop.f32.mrb[55].mxu0 }
 0x27e   : > { %v8493_v44 = vpop.f32.mrb[68].mxu1 }
 0x27f   : > { %v1764_v1 = vpop.f32.mrb[69].mxu1 }
 0x280   : > { %v1207_v6 = vpop.f32.mrb[56].mxu0 }
 0x281   : > { %v8496_v63 = vadd.f32 %v8369_v54, %v1207_v6  ;;  %v1209_v53 = vpop.f32.mrb[57].mxu0 }
 0x282   : > { %v1767_v7 = vpop.f32.mrb[70].mxu1 }
 0x283   : > { %v1769_v36 = vpop.f32.mrb[71].mxu1 }
 0x284   : > { %v1212_v40 = vpop.f32.mrb[58].mxu0 }
 0x285   : > { %v1214_v15 = vpop.f32.mrb[59].mxu0 }
 0x286   : > { %v8498_v39 = vpop.f32.mrb[72].mxu1 }
 0x287   : > { %v1774_v56 = vpop.f32.mrb[73].mxu1 }
 0x288   : > { %v5694_v57 = vpop.f32.mrb[60].mxu0 }
 0x289   : > { %v1888_v12 = vadd.f32 %v5694_v57, %v8389_v38  ;;  %v1882_v28 = vpop.f32.mrb[61].mxu0 }
 0x28a   : > { %v1883_v5 = vadd.f32 %v1882_v28, %v8379_v42  ;;  %v8502_v31 = vpop.f32.mrb[74].mxu1 }
 0x28b   : > { %v8505_v55 = vadd.f32 %v1888_v12, %v8301_v4  ;;  %v1779_v54 = vpop.f32.mrb[75].mxu1 }
 0x28c   : > { %v8508_v17 = vadd.f32 %v1883_v5, %v8289_v49  ;;  %v5697_v9 = vpop.f32.mrb[62].mxu0 }
 0x28d   : > { %v1898_v48 = vadd.f32 %v5697_v9, %v8405_v62  ;;  %v1892_v59 = vpop.f32.mrb[63].mxu0 }
 0x28e   : > { %v1782_v19 = vpop.f32.mrb[76].mxu1 }
 0x28f   : > { %v8512_v0 = vadd.f32 %v1898_v48, %v8327_v51  ;;  %v1784_v38 = vpop.f32.mrb[77].mxu1 }
 0x290   : > { %v5700_v34 = vpop.f32.mrb[64].mxu0 }
 0x291   : > { %v1902_v42 = vpop.f32.mrb[65].mxu0 }
 0x292   : > { %v1903_v24 = vadd.f32 %v1902_v42, %v8421_v32  ;;  %v8515_v14 = vpop.f32.mrb[78].mxu1 }
 0x293   : > { %v1789_v4 = vpop.f32.mrb[79].mxu1 }
 0x294   : > { %v8518_v41 = vadd.f32 %v1903_v24, %v8339_v18  ;;  %v5703_v49 = vpop.f32.mrb[66].mxu0 }
 0x295   : > { %v1918_v61 = vadd.f32 %v5703_v49, %v8444_v23  ;;  %v1912_v62 = vpop.f32.mrb[67].mxu0 }
 0x296   : > { %v1913_v1 = vadd.f32 %v1912_v62, %v8438_v10  ;;  %v1792_v6 = vpop.f32.mrb[80].mxu1 }
 0x297   : > { %v8523_v51 = vadd.f32 %v1918_v61, %v8374_v52  ;;  %v1794_v53 = vpop.f32.mrb[81].mxu1 }
 0x298   : > { %v8526_v7 = vadd.f32 %v1913_v1, %v8366_v60  ;;  %v5706_v32 = vpop.f32.mrb[68].mxu0 }
 0x299   : > { %v1928_v36 = vadd.f32 %v5706_v32, %v8455_v2  ;;  %v1922_v40 = vpop.f32.mrb[69].mxu0 }
 0x29a   : > { %v1797_v18 = vpop.f32.mrb[82].mxu1 }
 0x29b   : > { %v8530_v15 = vadd.f32 %v1928_v36, %v8387_v58  ;;  %v1799_v23 = vpop.f32.mrb[83].mxu1 }
 0x29c   : > { %v5709_v56 = vpop.f32.mrb[70].mxu0 }
 0x29d   : > { %v1932_v57 = vpop.f32.mrb[71].mxu0 }
 0x29e   : > { %v1933_v10 = vadd.f32 %v1932_v57, %v8462_v43  ;;  %v1802_v12 = vpop.f32.mrb[84].mxu1 }
 0x29f   : > { %v1804_v52 = vpop.f32.mrb[85].mxu1 }
 0x2a0   : > { %v8534_v28 = vadd.f32 %v1933_v10, %v8397_v30  ;;  %v5712_v60 = vpop.f32.mrb[72].mxu0 }
 0x2a1   : > { %v1948_v5 = vadd.f32 %v5712_v60, %v8473_v11  ;;  %v1942_v54 = vpop.f32.mrb[73].mxu0 }
 0x2a2   : > { %v1943_v2 = vadd.f32 %v1942_v54, %v8468_v3  ;;  %v1807_v9 = vpop.f32.mrb[86].mxu1 }
 0x2a3   : > { %v8539_v58 = vadd.f32 %v1948_v5, %v8431_v46  ;;  %v1809_v48 = vpop.f32.mrb[87].mxu1 }
 0x2a4   : > { %v8542_v59 = vadd.f32 %v1943_v2, %v8419_v25  ;;  %v5715_v43 = vpop.f32.mrb[74].mxu0 }
 0x2a5   : > { %v1958_v19 = vadd.f32 %v5715_v43, %v8478_v35  ;;  %v1952_v38 = vpop.f32.mrb[75].mxu0 }
 0x2a6   : > { %v1812_v30 = vpop.f32.mrb[88].mxu1 }
 0x2a7   : > { %v8546_v34 = vadd.f32 %v1958_v19, %v8442_v8  ;;  %v1814_v11 = vpop.f32.mrb[89].mxu1 }
 0x2a8   : > { %v5718_v42 = vpop.f32.mrb[76].mxu0 }
 0x2a9   : > { %v1962_v24 = vpop.f32.mrb[77].mxu0  ;;  %v8582_v42 = vstv %s2849_s27 }
 0x2aa   : > { %v1963_v3 = vadd.f32 %v1962_v24, %v8483_v29  ;;  %v2326_v4 = vpop.f32.mrb[90].mxu1  ;;  %vm2851_vm6 = vcmp.le.s32.totalorder %v8582_v42, 0  ;;  %vm2852_vm9 = vcmp.le.s32.totalorder %v8582_v42, 1  ;;  %vm2853_vm12 = vcmp.le.s32.totalorder %v8582_v42, 2 }
 0x2ab   : > { %v2328_v46 = vpop.f32.mrb[91].mxu1  ;;  %vm2854_vm15 = vcmp.le.s32.totalorder %v8582_v42, 3  ;;  %vm2855_vm3 = vcmp.le.s32.totalorder %v8582_v42, 4 }
 0x2ac   : > { %v8550_v49 = vadd.f32 %v1963_v3, %v8452_v26  ;;  %v5721_v25 = vpop.f32.mrb[78].mxu0  ;;  %v8592_v46 = vld [vmem:[%s10206_s2] ss:$0 sm:$0xff] }
 0x2ad   : > { %v1978_v61 = vadd.f32 %v5721_v25, %v8493_v44  ;;  %v1972_v62 = vpop.f32.mrb[79].mxu0 }
 0x2ae   : > { %v1973_v35 = vadd.f32 %v1972_v62, %v8488_v37  ;;  %v2331_v1 = vpop.f32.mrb[92].mxu1 }
 0x2af   : > { %v8555_v8 = vadd.f32 %v1978_v61, %v8466_v20  ;;  %v2333_v53 = vpop.f32.mrb[93].mxu1 }
 0x2b0   : > { %v8558_v32 = vadd.f32 %v1973_v35, %v8458_v47  ;;  %v5724_v29 = vpop.f32.mrb[80].mxu0 }
 0x2b1   : > { %v1988_v36 = vadd.f32 %v5724_v29, %v8498_v39  ;;  %v1982_v40 = vpop.f32.mrb[81].mxu0 }
 0x2b2   : > { %v2336_v26 = vpop.f32.mrb[94].mxu1 }
 0x2b3   : > { %v8562_v18 = vadd.f32 %v1988_v36, %v8471_v50  ;;  %v2338_v44 = vpop.f32.mrb[95].mxu1 }
 0x2b4   : > { %v5727_v23 = vpop.f32.mrb[82].mxu0 }
 0x2b5   : > { %v1992_v56 = vpop.f32.mrb[83].mxu0 }
 0x2b6   : > { %v1993_v37 = vadd.f32 %v1992_v56, %v8502_v31  ;;  %v2341_v57 = vpop.f32.mrb[96].mxu1  ;;  %v9989_v56 = vmov 0.0  }
 0x2b7   : > { %v2343_v20 = vpop.f32.mrb[97].mxu1 }
 0x2b8   : > { %v8566_v10 = vadd.f32 %v1993_v37, %v8476_v45  ;;  %v5730_v47 = vpop.f32.mrb[84].mxu0  ;;  %v8608_v37 = vrot.slane %v9989_v56, 1 }
 0x2b9   : > { %v2008_v52 = vadd.f32 %v5730_v47, %v1792_v6  ;;  %v2002_v39 = vpop.f32.mrb[85].mxu0 }
 0x2ba   : > { %v2003_v60 = vadd.f32 %v2002_v39, %v8515_v14  ;;  %v2346_v5 = vpop.f32.mrb[98].mxu1  ;;  %v3864_v39 = vld [vmem:[#allocation12 + $0x188] sm:$0xff] }
 0x2bb   : > { %v8570_v50 = vadd.f32 %v2008_v52, %v8486_v13  ;;  %v2348_v54 = vpop.f32.mrb[99].mxu1  ;;  %v8612_v52 = vrot.slane %v9989_v56, 7 }
 0x2bc   : > { %v8573_v2 = vadd.f32 %v2003_v60, %v8481_v16  ;;  %v5733_v31 = vpop.f32.mrb[86].mxu0  ;;  %v8584_v16 = vstv %s2861_s1  ;;  %v3897_v60 = vld [vmem:[#allocation12 + $0x290] sm:$0xff]  ;;  %v3898_v54 = vld [vmem:[#allocation12 + $0x298] sm:$0xff] }
 0x2bd   : > { %v2018_v48 = vadd.f32 %v5733_v31, %v1802_v12  ;;  %v2012_v43 = vpop.f32.mrb[87].mxu0  ;;  %vm2863_vm7 = vcmp.gt.s32.totalorder %v8584_v16, 0  ;;  %vm2864_vm10 = vcmp.gt.s32.totalorder %v8584_v16, 1  ;;  %vm2865_vm13 = vcmp.gt.s32.totalorder %v8584_v16, 2 }
 0x2be   : > { %v2351_v45 = vpop.f32.mrb[100].mxu1  ;;  %vm8600_vm8 = vmand %vm2851_vm6, %vm2863_vm7  ;;  %vm2866_vm0 = vcmp.gt.s32.totalorder %v8584_v16, 3  ;;  %vm2867_vm5 = vcmp.gt.s32.totalorder %v8584_v16, 4  ;;  %vm2856_vm7 = vcmp.le.s32.totalorder %v8582_v42, 5 }
 0x2bf   : > { %v8576_v19 = vadd.f32 %v2018_v48, %v8491_v22  ;;  %v2353_v38 = vpop.f32.mrb[101].mxu1  ;;  %vm8629_vm11 = vmand %vm2852_vm9, %vm2864_vm10  ;;  %vm2857_vm10 = vcmp.le.s32.totalorder %v8582_v42, 6 }
 0x2c0   : > { %v5736_v6 = vpop.f32.mrb[88].mxu0  ;;  %vm8685_vm14 = vmand %vm2853_vm12, %vm2865_vm13  ;;  %vm2869_vm12 = vcmp.gt.s32.totalorder %v8584_v16, 6 }
 0x2c1   : > { %v2022_v14 = vpop.f32.mrb[89].mxu0  ;;  %vm8731_vm2 = vmand %vm2854_vm15, %vm2866_vm0  ;;  %vm2858_vm15 = vcmp.le.s32.totalorder %v8582_v42, 7  ;;  %vm2870_vm0 = vcmp.gt.s32.totalorder %v8584_v16, 7 }
 0x2c2   : > { %v2023_v30 = vadd.f32 %v2022_v14, %v1807_v9  ;;  %v8580_v11 = vpop.f32.mrb[102].mxu1  ;;  %vm8813_vm6 = vmand %vm2855_vm3, %vm2867_vm5  ;;  %vm2859_vm5 = vcmp.le.s32.totalorder %v8582_v42, 8 }
 0x2c3   : > { %v2358_v13 = vpop.f32.mrb[103].mxu1  ;;  %vm8979_vm13 = vmand %vm2857_vm10, %vm2869_vm12  ;;  %vm2860_vm10 = vcmp.le.s32.totalorder %v8582_v42, 9  ;;  %vm2872_vm12 = vcmp.gt.s32.totalorder %v8584_v16, 9 }
 0x2c4   : > { %v8587_v12 = vadd.f32 %v2023_v30, %v8496_v63  ;;  %v5771_v24 = vpop.f32.mrb[90].mxu0  ;;  %vm9061_vm3 = vmand %vm2858_vm15, %vm2870_vm0 }
 0x2c5   : > { %v2547_v3 = vadd.f32 %v5771_v24, %v2331_v1  ;;  %v2541_v22 = vpop.f32.mrb[91].mxu0  ;;  %vm9211_vm15 = vmand %vm2860_vm10, %vm2872_vm12 }
 0x2c6   : > { %v2542_v25 = vadd.f32 %v2541_v22, %v2326_v4  ;;  %v2361_v9 = vpop.f32.mrb[104].mxu1 }
 0x2c7   : > { %v2721_v61 = vadd.f32 %v2547_v3, %v8505_v55  ;;  %v2363_v62 = vpop.f32.mrb[105].mxu1 }
 0x2c8   : > { %v2720_v63 = vadd.f32 %v2542_v25, %v8508_v17  ;;  %v5774_v35 = vpop.f32.mrb[92].mxu0 }
 0x2c9   : > { %v2818_v1 = vadd.f32 %v8592_v46, %v2721_v61  ;;  %v2557_v53 = vadd.f32 %v5774_v35, %v2341_v57  ;;  %v2551_v29 = vpop.f32.mrb[93].mxu0  ;;  %v3863_v57 = vld [vmem:[#allocation12 + $0x180] sm:$0xff]  ;;  %v6390_v61 = vpack.c.bf16 %v3898_v54, %v3897_v60  ;;  %v3868_v60 = vld [vmem:[#allocation12 + $0x1a8] sm:$0xff] }
 0x2ca   : > { %v2817_v36 = vadd.f32 %v8592_v46, %v2720_v63  ;;  %v2366_v4 = vpop.f32.mrb[106].mxu1  ;;  %v6339_v25 = vpack.c.bf16 %v3864_v39, %v3863_v57  ;;  %v3866_v29 = vld [vmem:[#allocation12 + $0x198] sm:$0xff] }
 0x2cb   : > { %v2917_v55 = vmax.f32 %v2818_v1, 0.0  ;;  %v2723_v26 = vadd.f32 %v2557_v53, %v8512_v0  ;;  %v2368_v44 = vpop.f32.mrb[107].mxu1  ;;  %v3865_v53 = vld [vmem:[#allocation12 + $0x190] sm:$0xff] }
 0x2cc   : > { %v2916_v17 = vmax.f32 %v2817_v36, 0.0  ;;  %v5777_v23 = vpop.f32.mrb[94].mxu0  ;;  %v6342_v40 = vpack.c.bf16 %v3866_v29, %v3865_v53 }
 0x2cd   : > { %v2820_v20 = vadd.f32 %v8592_v46, %v2723_v26  ;;  %v2561_v47 = vpop.f32.mrb[95].mxu0  ;;  %v8616_v0 = vsel %vm8600_vm8, %v2917_v55, 0.0  ;;  %v3900_v23 = vld [vmem:[#allocation12 + $0x2a8] sm:$0xff] }
 0x2ce   : > { %v2562_v31 = vadd.f32 %v2561_v47, %v2346_v5  ;;  %v8620_v48 = vsel %vm8600_vm8, %v2916_v17, 0.0  ;;  %5277 = vmatprep.mubr.msk.f32.mxu0 %vm8600_vm8, %v2916_v17  ;;  %v3187_v43 = vrot.slane %v8616_v0, 1  ;;  %v2371_v45 = vpop.f32.mrb[108].mxu1  ;;  %v3097_v5 = vrot.slane %v8616_v0, 7  ;;  %v3899_v17 = vld [vmem:[#allocation12 + $0x2a0] sm:$0xff] }
 0x2cf   : > { %10209 = vst [vmem:[#allocation41_spill] sm:$0xff] %v8620_v48  ;;  %v8634_v6 = vmax.f32 %v2820_v20, 0.0  ;;  %v3096_v14 = vrot.slane %v8620_v48, 7  ;;  %v9988_v30 = vrot.slane %v8620_v48, 1  ;;  %v2373_v13 = vpop.f32.mrb[109].mxu1 }
 0x2d0   : > { %v2724_v24 = vadd.f32 %v2562_v31, %v8518_v41  ;;  %v5780_v3 = vpop.f32.mrb[96].mxu0  ;;  %v3243_v22 = vsel %vm790_vm1, %v3187_v43, %v8608_v37  ;;  %v3902_v13 = vld [vmem:[#allocation12 + $0x2b8] sm:$0xff]  ;;  %v3153_v29 = vsel %vm681_vm4, %v3097_v5, %v8612_v52 }
 0x2d1   : > { %v2577_v62 = vadd.f32 %v5780_v3, %v2361_v9  ;;  %v2571_v63 = vpop.f32.mrb[97].mxu0  ;;  %v3155_v35 = vsel %vm681_vm4, %v8612_v52, %v3096_v14  ;;  %v3244_v1 = vsel %vm790_vm1, %v9988_v30, %v3187_v43  ;;  %v8652_v41 = vsel %vm8629_vm11, %v8634_v6, 0.0 }
 0x2d2   : > { %v2821_v36 = vadd.f32 %v8592_v46, %v2724_v24  ;;  %v2572_v9 = vadd.f32 %v2571_v63, %v8580_v11  ;;  %3461 = vmatmul.mubr.f32.vlgmr.msra.gmra.mrb[120].mxu0 %v3155_v35  ;;  %5846 = vmatprep.mubr.f32.mxu1 %v3244_v1  ;;  %v3189_v4 = vrot.slane %v8652_v41, 1  ;;  %v3154_v26 = vsel %vm681_vm4, %v3096_v14, %v3097_v5  ;;  %v2376_v44 = vpop.f32.mrb[110].mxu1 }
 0x2d3   : > { %v2727_v57 = vadd.f32 %v2577_v62, %v8523_v51  ;;  %5278 = vmatprep.mubr.msk.f32.mxu0 %vm8600_vm8, %v2917_v55  ;;  %5847 = vmatmul.mubr.f32.vlgmr.msra.gmra.mrb[150].mxu1 %v3243_v22  ;;  %v2378_v20 = vpop.f32.mrb[111].mxu1  ;;  %v3867_v55 = vld [vmem:[#allocation12 + $0x1a0] sm:$0xff]  ;;  %v6394_v14 = vpack.c.bf16 %v3900_v23, %v3899_v17  ;;  %vm2868_vm8 = vcmp.gt.s32.totalorder %v8584_v16, 5 }
 0x2d4   : > { %v8666_v11 = vmax.f32 %v2821_v36, 0.0  ;;  %v2726_v47 = vadd.f32 %v2572_v9, %v8526_v7  ;;  %6389 = vmatpush3.bf16.msra.mxu0 %v8460_v21  ;;  %v5783_v39 = vpop.f32.mrb[98].mxu0  ;;  %v3242_v51 = vsel %vm790_vm1, %v8608_v37, %v3189_v4  ;;  %6340 = vmatpush1.bf16.msra.mxu1 %v6339_v25  ;;  %v3901_v7 = vld [vmem:[#allocation12 + $0x2b0] sm:$0xff]  ;;  %v6345_v35 = vpack.c.bf16 %v3868_v60, %v3867_v55  ;;  %v3870_v9 = vld [vmem:[#allocation12 + $0x1b8] sm:$0xff]  ;;  %v3904_v20 = vld [vmem:[#allocation12 + $0x2c8] sm:$0xff] }
 0x2d5   : > { %v2824_v54 = vadd.f32 %v8592_v46, %v2727_v57  ;;  %v2587_v31 = vadd.f32 %v5783_v39, %v2371_v45  ;;  %5849 = vmatprep.mubr.f32.mxu1 %v3242_v51  ;;  %v2581_v43 = vpop.f32.mrb[99].mxu0  ;;  %6341 = vmatprep.subr.bf16.mxu1 %v10134_v33  ;;  %v3099_v36 = vrot.slane %v8652_v41, 7  ;;  %vm8887_vm9 = vmand %vm2856_vm7, %vm2868_vm8  ;;  %vm2871_vm7 = vcmp.gt.s32.totalorder %v8584_v16, 8 }
 0x2d6   : > { %v2823_v21 = vadd.f32 %v8592_v46, %v2726_v47  ;;  %3466 = vmatmul.mubr.f32.gmra.mrb[122].mxu0 %v3154_v26  ;;  %v2381_v24 = vpop.f32.mrb[112].mxu1  ;;  %v8679_v3 = vsel %vm8629_vm11, %v8666_v11, 0.0  ;;  %6391 = vmatprep.subr.bf16.mxu0 %v6390_v61  ;;  %v6398_v26 = vpack.c.bf16 %v3902_v13, %v3901_v7  ;;  %v3871_v13 = vld [vmem:[#allocation12 + $0x1c0] sm:$0xff]  ;;  %vm9139_vm8 = vmand %vm2859_vm5, %vm2871_vm7 }
 0x2d7   : > { %v8691_v22 = vmax.f32 %v2824_v54, 0.0  ;;  %v2729_v25 = vadd.f32 %v2587_v31, %v8530_v15  ;;  %3470 = vmatprep.mubr.f32.mxu0 %v9989_v56  ;;  %v2383_v62 = vpop.f32.mrb[113].mxu1  ;;  %v3190_v63 = vrot.slane %v8679_v3, 1  ;;  %v3869_v15 = vld [vmem:[#allocation12 + $0x1b0] sm:$0xff]  ;;  %v8748_v7 = vsel %vm681_vm4, %v8612_v52, %v3099_v36 }
 0x2d8   : > { %v8696_v1 = vmax.f32 %v2823_v21, 0.0  ;;  %v5786_v53 = vpop.f32.mrb[100].mxu0  ;;  %6343 = vmatpush1.bf16.msra.mxu1 %v6342_v40  ;;  %6393 = vmatpush3.bf16.msra.mxu0 %v6390_v61  ;;  %v3903_v61 = vld [vmem:[#allocation12 + $0x2c0] sm:$0xff]  ;;  %v6348_v54 = vpack.c.bf16 %v3870_v9, %v3869_v15  ;;  %v3100_v62 = vrot.slane %v8679_v3, 7 }
 0x2d9   : > { %v2826_v17 = vadd.f32 %v8592_v46, %v2729_v25  ;;  %v2591_v23 = vpop.f32.mrb[101].mxu0  ;;  %v8707_v57 = vsel %vm790_vm1, %v3189_v4, %v3190_v63  ;;  %v8712_v0 = vsel %vm790_vm1, %v3190_v63, %v8608_v37  ;;  %v8717_v5 = vsel %vm8685_vm14, %v8691_v22, 0.0  ;;  %6344 = vmatprep.subr.bf16.mxu1 %v10134_v33  ;;  %6395 = vmatprep.subr.bf16.mxu0 %v6394_v14  ;;  %v3906_v53 = vld [vmem:[#allocation12 + $0x2d8] sm:$0xff] }
 0x2da   : > { %v2592_v47 = vadd.f32 %v2591_v23, %v2376_v44  ;;  %3471 = vmatmul.mubr.f32.gmra.mrb[124].mxu0 %v3153_v29  ;;  %5850 = vmatmul.mubr.f32.gmra.mrb[152].mxu1 %v8707_v57  ;;  %v2386_v4 = vpop.f32.mrb[114].mxu1  ;;  %v8724_v39 = vsel %vm8685_vm14, %v8696_v1, 0.0  ;;  %v3193_v51 = vrot.slane %v8717_v5, 1  ;;  %v6402_v21 = vpack.c.bf16 %v3904_v20, %v3903_v61 }
 0x2db   : > { %v8735_v44 = vmax.f32 %v2826_v17, 0.0  ;;  %5279 = vmatprep.mubr.msk.f32.mxu0 %vm8629_vm11, %v8634_v6  ;;  %5852 = vmatprep.mubr.f32.mxu1 %v8712_v0  ;;  %v2388_v55 = vpop.f32.mrb[115].mxu1  ;;  %v3192_v60 = vrot.slane %v8724_v39, 1 }
 0x2dc   : > { %v2730_v31 = vadd.f32 %v2592_v47, %v8534_v28  ;;  %v5789_v43 = vpop.f32.mrb[102].mxu0  ;;  %6346 = vmatpush1.bf16.msra.mxu1 %v6345_v35  ;;  %6397 = vmatpush3.bf16.msra.mxu0 %v6394_v14  ;;  %v3872_v14 = vld [vmem:[#allocation12 + $0x1c8] sm:$0xff]  ;;  %v3905_v35 = vld [vmem:[#allocation12 + $0x2d0] sm:$0xff] }
 0x2dd   : > { %v2601_v24 = vpop.f32.mrb[103].mxu0  ;;  %v8753_v25 = vsel %vm790_vm1, %v8608_v37, %v3192_v60  ;;  %v8757_v28 = vsel %vm790_vm1, %v3192_v60, %v3193_v51  ;;  %v8763_v63 = vsel %vm8731_vm2, %v8735_v44, 0.0  ;;  %6347 = vmatprep.subr.bf16.mxu1 %v10134_v33  ;;  %6399 = vmatprep.subr.bf16.mxu0 %v6398_v26  ;;  %v3873_v55 = vld [vmem:[#allocation12 + $0x1d0] sm:$0xff]  ;;  %v6406_v60 = vpack.c.bf16 %v3906_v53, %v3905_v35 }
 0x2de   : > { %10216 = vst [vmem:[#allocation42_spill] sm:$0xff] %v8753_v25  ;;  %10217 = vst [vmem:[#allocation43_spill] sm:$0xff] %v8757_v28  ;;  %v2827_v29 = vadd.f32 %v8592_v46, %v2730_v31  ;;  %v2391_v15 = vpop.f32.mrb[116].mxu1  ;;  %v2602_v9 = vadd.f32 %v2601_v24, %v2386_v4  ;;  %3476 = vmatmul.mubr.f32.gmra.mrb[126].mxu0 %v8748_v7  ;;  %5853 = vmatmul.mubr.f32.gmra.mrb[154].mxu1 %v8753_v25  ;;  %v3195_v3 = vrot.slane %v8763_v63, 1 }
 0x2df   : > { %v2607_v17 = vadd.f32 %v5789_v43, %v2391_v15  ;;  %5280 = vmatprep.mubr.msk.f32.mxu0 %vm8629_vm11, %v8666_v11  ;;  %5855 = vmatprep.mubr.f32.mxu1 %v8757_v28  ;;  %v2393_v23 = vpop.f32.mrb[117].mxu1  ;;  %v6351_v4 = vpack.c.bf16 %v3872_v14, %v3871_v13  ;;  %v8784_v43 = vsel %vm681_vm4, %v3099_v36, %v3100_v62  ;;  %v3908_v13 = vld [vmem:[#allocation12 + $0x2e8] sm:$0xff] }
 0x2e0   : > { %v8776_v61 = vmax.f32 %v2827_v29, 0.0  ;;  %v2732_v20 = vadd.f32 %v2602_v9, %v8542_v59  ;;  %v5792_v47 = vpop.f32.mrb[104].mxu0  ;;  %6349 = vmatpush1.bf16.msra.mxu1 %v6348_v54  ;;  %6401 = vmatpush3.bf16.msra.mxu0 %v6398_v26  ;;  %v8789_v24 = vsel %vm790_vm1, %v3193_v51, %v8608_v37  ;;  %v3874_v54 = vld [vmem:[#allocation12 + $0x1d8] sm:$0xff]  ;;  %v3907_v26 = vld [vmem:[#allocation12 + $0x2e0] sm:$0xff]  ;;  %v8798_v36 = vsel %vm790_vm1, %v8608_v37, %v3195_v3 }
 0x2e1   : > { %v2733_v31 = vadd.f32 %v2607_v17, %v8539_v58  ;;  %10218 = vst [vmem:[#allocation44_spill] sm:$0xff] %v8789_v24  ;;  %v2611_v59 = vpop.f32.mrb[105].mxu0  ;;  %6350 = vmatprep.subr.bf16.mxu1 %v10134_v33  ;;  %6403 = vmatprep.subr.bf16.mxu0 %v6402_v21  ;;  %10219 = vst [vmem:[#allocation46_spill] sm:$0xff] %v8798_v36  ;;  %v8822_v9 = vsel %vm681_vm4, %v3100_v62, %v8612_v52  ;;  %v3102_v62 = vrot.slane %v8724_v39, 7 }
 0x2e2   : > { %v2829_v58 = vadd.f32 %v8592_v46, %v2732_v20  ;;  %3481 = vmatmul.mubr.f32.gmra.mrb[128].mxu0 %v8784_v43  ;;  %5856 = vmatmul.mubr.f32.gmra.mrb[156].mxu1 %v8789_v24  ;;  %v2396_v41 = vpop.f32.mrb[118].mxu1  ;;  %v8803_v51 = vsel %vm8731_vm2, %v8776_v61, 0.0  ;;  %v6354_v23 = vpack.c.bf16 %v3874_v54, %v3873_v55  ;;  %v3875_v20 = vld [vmem:[#allocation12 + $0x1e0] sm:$0xff]  ;;  %v3910_v55 = vld [vmem:[#allocation12 + $0x2f8] sm:$0xff] }
 0x2e3   : > { %v2830_v14 = vadd.f32 %v8592_v46, %v2733_v31  ;;  %5858 = vmatprep.mubr.f32.mxu1 %v8798_v36  ;;  %v2398_v35 = vpop.f32.mrb[119].mxu1  ;;  %3485 = vmatprep.mubr.f32.mxu0 %v9989_v56  ;;  %v3196_v53 = vrot.slane %v8803_v51, 1  ;;  %v6410_v31 = vpack.c.bf16 %v3908_v13, %v3907_v26  ;;  %v8863_v30 = vsel %vm681_vm4, %v8612_v52, %v3102_v62 }
 0x2e4   : > { %v8817_v15 = vmax.f32 %v2829_v58, 0.0  ;;  %v5795_v17 = vpop.f32.mrb[106].mxu0  ;;  %6352 = vmatpush1.bf16.msra.mxu1 %v6351_v4  ;;  %6405 = vmatpush3.bf16.msra.mxu0 %v6402_v21  ;;  %v3876_v4 = vld [vmem:[#allocation12 + $0x1e8] sm:$0xff]  ;;  %v3909_v21 = vld [vmem:[#allocation12 + $0x2f0] sm:$0xff] }
 0x2e5   : > { %v8824_v59 = vmax.f32 %v2830_v14, 0.0  ;;  %v8828_v41 = vsel %vm790_vm1, %v3195_v3, %v3196_v53  ;;  %v8833_v58 = vsel %vm790_vm1, %v3196_v53, %v8608_v37  ;;  %v2621_v35 = vpop.f32.mrb[107].mxu0  ;;  %6353 = vmatprep.subr.bf16.mxu1 %v10134_v33  ;;  %6407 = vmatprep.subr.bf16.mxu0 %v6406_v60  ;;  %v6357_v17 = vpack.c.bf16 %v3876_v4, %v3875_v20  ;;  %v3877_v20 = vld [vmem:[#allocation12 + $0x1f0] sm:$0xff] }
 0x2e6   : > { %10222 = vst [vmem:[#allocation48_spill] sm:$0xff] %v8817_v15  ;;  %10224 = vst [vmem:[#allocation50_spill] sm:$0xff] %v8828_v41  ;;  %v2401_v54 = vpop.f32.mrb[120].mxu1  ;;  %3486 = vmatmul.mubr.f32.gmra.mrb[130].mxu0 %v8822_v9  ;;  %5859 = vmatmul.mubr.f32.gmra.mrb[158].mxu1 %v8828_v41  ;;  %v8842_v3 = vsel %vm8813_vm6, %v8817_v15, 0.0 }
 0x2e7   : > { %10223 = vst [vmem:[#allocation49_spill] sm:$0xff] %v8824_v59  ;;  %10225 = vst [vmem:[#allocation52_spill] sm:$0xff] %v8833_v58  ;;  %v2617_v26 = vadd.f32 %v5792_v47, %v2401_v54  ;;  %5281 = vmatprep.mubr.msk.f32.mxu0 %vm8685_vm14, %v8696_v1  ;;  %5861 = vmatprep.mubr.f32.mxu1 %v8833_v58  ;;  %v2403_v39 = vpop.f32.mrb[121].mxu1  ;;  %v3198_v13 = vrot.slane %v8842_v3, 1  ;;  %v8852_v14 = vsel %vm8813_vm6, %v8824_v59, 0.0 }
 0x2e8   : > { %v3199_v53 = vrot.slane %v8852_v14, 1  ;;  %6355 = vmatpush1.bf16.msra.mxu1 %v6354_v23  ;;  %v8856_v47 = vpop.f32.mrb[108].mxu0  ;;  %6409 = vmatpush3.bf16.msra.mxu0 %v6406_v60  ;;  %v6414_v54 = vpack.c.bf16 %v3910_v55, %v3909_v21  ;;  %v3103_v23 = vrot.slane %v8717_v5, 7  ;;  %v3878_v60 = vld [vmem:[#allocation12 + $0x1f8] sm:$0xff] }
 0x2e9   : > { %v2735_v39 = vadd.f32 %v2617_v26, %v8546_v34  ;;  %v8868_v56 = vsel %vm790_vm1, %v8608_v37, %v3198_v13  ;;  %v2631_v48 = vpop.f32.mrb[109].mxu0  ;;  %6356 = vmatprep.subr.bf16.mxu1 %v10134_v33  ;;  %6411 = vmatprep.subr.bf16.mxu0 %v6410_v31 }
 0x2ea   : > { %10226 = vst [vmem:[#allocation54_spill] sm:$0xff] %v8868_v56  ;;  %v2406_v4 = vpop.f32.mrb[122].mxu1  ;;  %3491 = vmatmul.mubr.f32.gmra.mrb[132].mxu0 %v8863_v30  ;;  %5862 = vmatmul.mubr.f32.gmra.mrb[160].mxu1 %v8868_v56  ;;  %v8876_v34 = vsel %vm790_vm1, %v3198_v13, %v3199_v53  ;;  %v6360_v13 = vpack.c.bf16 %v3878_v60, %v3877_v20  ;;  %v3880_v20 = vld [vmem:[#allocation12 + $0x208] sm:$0xff] }
 0x2eb   : > { %10227 = vst [vmem:[#allocation56_spill] sm:$0xff] %v8876_v34  ;;  %v2832_v21 = vadd.f32 %v8592_v46, %v2735_v39  ;;  %v2622_v55 = vadd.f32 %v2621_v35, %v2406_v4  ;;  %5282 = vmatprep.mubr.msk.f32.mxu0 %vm8685_vm14, %v8691_v22  ;;  %5864 = vmatprep.mubr.f32.mxu1 %v8876_v34  ;;  %v2408_v5 = vpop.f32.mrb[123].mxu1 }
 0x2ec   : > { %6358 = vmatpush1.bf16.msra.mxu1 %v6357_v17  ;;  %v8891_v56 = vpop.f32.mrb[110].mxu0  ;;  %6413 = vmatpush3.bf16.msra.mxu0 %v6410_v31  ;;  %v8898_v4 = vsel %vm681_vm4, %v3102_v62, %v3103_v23  ;;  %v8903_v5 = vsel %vm790_vm1, %v3199_v53, %v8608_v37  ;;  %v3879_v17 = vld [vmem:[#allocation12 + $0x200] sm:$0xff] }
 0x2ed   : > { %v8893_v35 = vmax.f32 %v2832_v21, 0.0  ;;  %v2736_v39 = vadd.f32 %v2622_v55, %v8550_v49  ;;  %10231 = vst [vmem:[#allocation60_spill] sm:$0xff] %v8903_v5  ;;  %6359 = vmatprep.subr.bf16.mxu1 %v10134_v33  ;;  %v2641_v60 = vpop.f32.mrb[111].mxu0  ;;  %6415 = vmatprep.subr.bf16.mxu0 %v6414_v54  ;;  %v10232_v21 = vmov 0.0  }
 0x2ee   : > { %3496 = vmatmul.mubr.f32.gmra.mrb[134].mxu0 %v8898_v4  ;;  %5865 = vmatmul.mubr.f32.gmra.mrb[162].mxu1 %v8903_v5  ;;  %v2411_v49 = vpop.f32.mrb[124].mxu1  ;;  %v6363_v60 = vpack.c.bf16 %v3880_v20, %v3879_v17  ;;  %v3882_v5 = vld [vmem:[#allocation12 + $0x218] sm:$0xff]  ;;  %v10292_v45 = vld [vmem:[#allocation49_spill] sm:$0xff] }
 0x2ef   : > { %10230 = vst [vmem:[#allocation59_spill] sm:$0xff] %v8893_v35  ;;  %v2833_v31 = vadd.f32 %v8592_v46, %v2736_v39  ;;  %v2413_v62 = vpop.f32.mrb[125].mxu1  ;;  %3500 = vmatprep.mubr.f32.mxu0 %v10232_v21  ;;  %v8913_v53 = vsel %vm8887_vm9, %v8893_v35, 0.0  ;;  %v8921_v39 = vsel %vm681_vm4, %v3103_v23, %v8612_v52  ;;  %v3105_v49 = vrot.slane %v8763_v63, 7 }
 0x2f0   : > { %v3201_v55 = vrot.slane %v8913_v53, 1  ;;  %6361 = vmatpush1.bf16.msra.mxu1 %v6360_v13  ;;  %v5804_v34 = vpop.f32.mrb[112].mxu0  ;;  %6417 = vmatpush3.bf16.msra.mxu0 %v6414_v54  ;;  %v3881_v62 = vld [vmem:[#allocation12 + $0x210] sm:$0xff] }
 0x2f1   : > { %v8916_v58 = vmax.f32 %v2833_v31, 0.0  ;;  %6362 = vmatprep.subr.bf16.mxu1 %v10134_v33  ;;  %v8925_v41 = vpop.f32.mrb[113].mxu0  ;;  %6418 = vmatprep.subr.bf16.mxu0 %v10134_v33  ;;  %v6366_v20 = vpack.c.bf16 %v3882_v5, %v3881_v62 }
 0x2f2   : > { %v2416_v13 = vpop.f32.mrb[126].mxu1  ;;  %3501 = vmatmul.mubr.f32.gmra.mrb[136].mxu0 %v8921_v39  ;;  %v8932_v54 = vsel %vm790_vm1, %v8608_v37, %v3201_v55 }
 0x2f3   : > { %10233 = vst [vmem:[#allocation33_spill] sm:$0xff] %v8932_v54  ;;  %v2632_v23 = vadd.f32 %v2631_v48, %v2416_v13  ;;  %5867 = vmatprep.mubr.f32.mxu1 %v8932_v54  ;;  %5283 = vmatprep.mubr.msk.f32.mxu0 %vm8731_vm2, %v8735_v44  ;;  %v2418_v63 = vpop.f32.mrb[127].mxu1  ;;  %v8941_v34 = vsel %vm8887_vm9, %v8916_v58, 0.0  ;;  %v8951_v13 = vsel %vm681_vm4, %v8612_v52, %v3105_v49  ;;  %v3883_v54 = vld [vmem:[#allocation12 + $0x220] sm:$0xff] }
 0x2f4   : > { %v3202_v17 = vrot.slane %v8941_v34, 1  ;;  %6364 = vmatpush1.bf16.msra.mxu1 %v6363_v60  ;;  %v8945_v31 = vpop.f32.mrb[114].mxu0  ;;  %v3106_v63 = vrot.slane %v8803_v51, 7  ;;  %v3884_v60 = vld [vmem:[#allocation12 + $0x228] sm:$0xff] }
 0x2f5   : > { %v2738_v48 = vadd.f32 %v2632_v23, %v8558_v32  ;;  %6365 = vmatprep.subr.bf16.mxu1 %v10134_v33  ;;  %v8956_v36 = vpop.f32.mrb[115].mxu0 }
 0x2f6   : > { %v2421_v5 = vpop.f32.mrb[128].mxu1  ;;  %3506 = vmatmul.mubr.f32.gmra.mrb[138].mxu0 %v8951_v13  ;;  %v8961_v32 = vsel %vm790_vm1, %v3201_v55, %v3202_v17  ;;  %v8966_v62 = vsel %vm790_vm1, %v3202_v17, %v8608_v37  ;;  %v6369_v17 = vpack.c.bf16 %v3884_v60, %v3883_v54 }
 0x2f7   : > { %10234 = vst [vmem:[#allocation34_spill] sm:$0xff] %v8961_v32  ;;  %10235 = vst [vmem:[#allocation36_spill] sm:$0xff] %v8966_v62  ;;  %v2835_v51 = vadd.f32 %v8592_v46, %v2738_v48  ;;  %v2637_v23 = vadd.f32 %v8856_v47, %v2421_v5  ;;  %5868 = vmatmul.mubr.f32.gmra.mrb[164].mxu1 %v8961_v32  ;;  %5284 = vmatprep.mubr.msk.f32.mxu0 %vm8731_vm2, %v8776_v61  ;;  %v2423_v24 = vpop.f32.mrb[129].mxu1  ;;  %v3886_v32 = vld [vmem:[#allocation12 + $0x238] sm:$0xff] }
 0x2f8   : > { %5870 = vmatprep.mubr.f32.mxu1 %v8966_v62  ;;  %6367 = vmatpush1.bf16.msra.mxu1 %v6366_v20  ;;  %v8983_v47 = vpop.f32.mrb[116].mxu0  ;;  %v8990_v24 = vsel %vm681_vm4, %v3105_v49, %v3106_v63  ;;  %v3885_v62 = vld [vmem:[#allocation12 + $0x230] sm:$0xff] }
 0x2f9   : > { %v8985_v48 = vmax.f32 %v2835_v51, 0.0  ;;  %v2739_v5 = vadd.f32 %v2637_v23, %v8555_v8  ;;  %10239 = vst [vmem:[#allocation61_spill] sm:$0xff] %v8990_v24  ;;  %6368 = vmatprep.subr.bf16.mxu1 %v10134_v33  ;;  %v2671_v28 = vpop.f32.mrb[117].mxu0  ;;  %v6372_v60 = vpack.c.bf16 %v3886_v32, %v3885_v62  ;;  %v3887_v62 = vld [vmem:[#allocation12 + $0x240] sm:$0xff] }
 0x2fa   : > { %3511 = vmatmul.mubr.f32.gmra.mrb[140].mxu0 %v8990_v24  ;;  %v2426_v25 = vpop.f32.mrb[130].mxu1  ;;  %v3108_v28 = vrot.slane %v8842_v3, 7 }
 0x2fb   : > { %10238 = vst [vmem:[#allocation37_spill] sm:$0xff] %v8985_v48  ;;  %v2836_v54 = vadd.f32 %v8592_v46, %v2739_v5  ;;  %v2428_v20 = vpop.f32.mrb[131].mxu1  ;;  %3515 = vmatprep.mubr.f32.mxu0 %v10232_v21  ;;  %v8999_v8 = vsel %vm8979_vm13, %v8985_v48, 0.0  ;;  %v9007_v25 = vsel %vm681_vm4, %v3106_v63, %v8612_v52 }
 0x2fc   : > { %v3204_v49 = vrot.slane %v8999_v8, 1  ;;  %6370 = vmatpush1.bf16.msra.mxu1 %v6369_v17  ;;  %v5813_v51 = vpop.f32.mrb[118].mxu0  ;;  %10241 = vst [vmem:[#allocation62_spill] sm:$0xff] %v9007_v25  ;;  %v3888_v17 = vld [vmem:[#allocation12 + $0x248] sm:$0xff] }
 0x2fd   : > { %v9002_v23 = vmax.f32 %v2836_v54, 0.0  ;;  %6371 = vmatprep.subr.bf16.mxu1 %v10134_v33  ;;  %v9011_v5 = vpop.f32.mrb[119].mxu0 }
 0x2fe   : > { %v2431_v20 = vpop.f32.mrb[132].mxu1  ;;  %3516 = vmatmul.mubr.f32.gmra.mrb[142].mxu0 %v9007_v25  ;;  %v9017_v32 = vsel %vm790_vm1, %v8608_v37, %v3204_v49  ;;  %v3890_v25 = vld [vmem:[#allocation12 + $0x258] sm:$0xff] }
 0x2ff   : > { %10240 = vst [vmem:[#allocation45_spill] sm:$0xff] %v9002_v23  ;;  %10242 = vst [vmem:[#allocation47_spill] sm:$0xff] %v9017_v32  ;;  %v2647_v54 = vadd.f32 %v8891_v56, %v2431_v20  ;;  %5871 = vmatmul.mubr.f32.gmra.mrb[166].mxu1 %v9017_v32  ;;  %5285 = vmatprep.mubr.msk.f32.mxu0 %vm8813_vm6, %v8817_v15  ;;  %v2433_v3 = vpop.f32.mrb[133].mxu1  ;;  %v9027_v63 = vsel %vm8979_vm13, %v9002_v23, 0.0  ;;  %v9036_v20 = vsel %vm681_vm4, %v8612_v52, %v3108_v28 }
 0x300   : > { %v3205_v51 = vrot.slane %v9027_v63, 1  ;;  %6373 = vmatpush1.bf16.msra.mxu1 %v6372_v60  ;;  %10243 = vst [vmem:[#allocation39_spill] sm:$0xff] %v9036_v20  ;;  %v3109_v3 = vrot.slane %v8852_v14, 7  ;;  %v6375_v32 = vpack.c.bf16 %v3888_v17, %v3887_v62 }
 0x301   : > { %v2741_v56 = vadd.f32 %v2647_v54, %v8562_v18  ;;  %6374 = vmatprep.subr.bf16.mxu1 %v10134_v33  ;;  %v3889_v54 = vld [vmem:[#allocation12 + $0x250] sm:$0xff] }
 0x302   : > { %v2436_v15 = vpop.f32.mrb[134].mxu1  ;;  %3521 = vmatmul.mubr.f32.gmra.mrb[144].mxu0 %v9036_v20  ;;  %v9043_v60 = vsel %vm790_vm1, %v3204_v49, %v3205_v51  ;;  %v9048_v18 = vsel %vm790_vm1, %v3205_v51, %v8608_v37  ;;  %v6378_v51 = vpack.c.bf16 %v3890_v25, %v3889_v54 }
 0x303   : > { %10244 = vst [vmem:[#allocation63_spill] sm:$0xff] %v9043_v60  ;;  %10245 = vst [vmem:[#allocation51_spill] sm:$0xff] %v9048_v18  ;;  %v2838_v24 = vadd.f32 %v8592_v46, %v2741_v56  ;;  %v2652_v14 = vadd.f32 %v8925_v41, %v2436_v15  ;;  %5873 = vmatprep.mubr.f32.mxu1 %v9043_v60  ;;  %5286 = vmatprep.mubr.msk.f32.mxu0 %vm8813_vm6, %v8824_v59  ;;  %v2438_v62 = vpop.f32.mrb[135].mxu1 }
 0x304   : > { %5874 = vmatmul.mubr.f32.gmra.mrb[168].mxu1 %v9048_v18  ;;  %v9070_v41 = vsel %vm681_vm4, %v3108_v28, %v3109_v3  ;;  %v3891_v62 = vld [vmem:[#allocation12 + $0x260] sm:$0xff]  ;;  %v3892_v18 = vld [vmem:[#allocation12 + $0x268] sm:$0xff]  ;;  %v9087_v28 = vsel %vm681_vm4, %v3109_v3, %v8612_v52 }
 0x305   : > { %v9065_v17 = vmax.f32 %v2838_v24, 0.0  ;;  %v2742_v15 = vadd.f32 %v2652_v14, %v8566_v10  ;;  %10248 = vst [vmem:[#allocation32_spill] sm:$0xff] %v9070_v41  ;;  %6376 = vmatpush1.bf16.msra.mxu1 %v6375_v32  ;;  %10249 = vst [vmem:[#allocation64_spill] sm:$0xff] %v9087_v28  ;;  %v3111_v32 = vrot.slane %v8913_v53, 7 }
 0x306   : > { %3526 = vmatmul.mubr.f32.gmra.mrb[146].mxu0 %v9070_v41  ;;  %v2441_v56 = vpop.f32.mrb[136].mxu1  ;;  %6377 = vmatprep.subr.bf16.mxu1 %v10134_v33 }
 0x307   : > { %v2839_v60 = vadd.f32 %v8592_v46, %v2742_v15  ;;  %v2443_v59 = vpop.f32.mrb[137].mxu1  ;;  %3530 = vmatprep.mubr.f32.mxu0 %v10232_v21  ;;  %v9079_v10 = vsel %vm9061_vm3, %v9065_v17, 0.0  ;;  %v3894_v15 = vld [vmem:[#allocation12 + $0x278] sm:$0xff] }
 0x308   : > { %v3207_v24 = vrot.slane %v9079_v10, 1  ;;  %v6381_v59 = vpack.c.bf16 %v3892_v18, %v3891_v62  ;;  %v4458_v18 = vld [vmem:[#allocation12 + $0x400] sm:$0xff] }
 0x309   : > { %v9082_v25 = vmax.f32 %v2839_v60, 0.0  ;;  %6379 = vmatpush1.bf16.msra.mxu1 %v6378_v51  ;;  %v3893_v60 = vld [vmem:[#allocation12 + $0x270] sm:$0xff]  ;;  %v4459_v51 = vld [vmem:[#allocation12 + $0x408] sm:$0xff] }
 0x30a   : > { %v2446_v54 = vpop.f32.mrb[138].mxu1  ;;  %3531 = vmatmul.mubr.f32.gmra.mrb[148].mxu0 %v9087_v28  ;;  %v9094_v14 = vsel %vm790_vm1, %v8608_v37, %v3207_v24  ;;  %6380 = vmatprep.subr.bf16.mxu1 %v10134_v33 }
 0x30b   : > { %10250 = vst [vmem:[#allocation53_spill] sm:$0xff] %v9094_v14  ;;  %v2662_v56 = vadd.f32 %v8956_v36, %v2446_v54  ;;  %5876 = vmatprep.mubr.f32.mxu1 %v9094_v14  ;;  %5287 = vmatprep.mubr.msk.f32.mxu0 %vm8887_vm9, %v8893_v35  ;;  %v2448_v53 = vpop.f32.mrb[139].mxu1  ;;  %v9105_v3 = vsel %vm9061_vm3, %v9082_v25, 0.0  ;;  %v9114_v54 = vsel %vm681_vm4, %v8612_v52, %v3111_v32 }
 0x30c   : > { %v3208_v62 = vrot.slane %v9105_v3, 1  ;;  %v3112_v53 = vrot.slane %v8941_v34, 7  ;;  %v6384_v14 = vpack.c.bf16 %v3894_v15, %v3893_v60  ;;  %v10294_v40 = vld [vmem:[#allocation32_spill] sm:$0xff] }
 0x30d   : > { %v2744_v36 = vadd.f32 %v2662_v56, %v8573_v2  ;;  %6382 = vmatpush1.bf16.msra.mxu1 %v6381_v59  ;;  %v6466_v56 = vpack.c.bf16 %v4459_v51, %v4458_v18 }
 0x30e   : > { %v2451_v35 = vpop.f32.mrb[140].mxu1  ;;  %3536 = vmatmul.mubr.f32.gmra.mrb[150].mxu0 %v9114_v54  ;;  %v9120_v28 = vsel %vm790_vm1, %v3207_v24, %v3208_v62  ;;  %v9125_v2 = vsel %vm790_vm1, %v3208_v62, %v8608_v37  ;;  %6383 = vmatprep.subr.bf16.mxu1 %v10134_v33 }
 0x30f   : > { %v2841_v41 = vadd.f32 %v8592_v46, %v2744_v36  ;;  %v2667_v34 = vadd.f32 %v8945_v31, %v2451_v35  ;;  %5877 = vmatmul.mubr.f32.gmra.mrb[170].mxu1 %v9120_v28  ;;  %5288 = vmatprep.mubr.msk.f32.mxu0 %vm8887_vm9, %v8916_v58  ;;  %v2453_v24 = vpop.f32.mrb[141].mxu1  ;;  %v9150_v31 = vsel %vm681_vm4, %v3111_v32, %v3112_v53  ;;  %v4460_v36 = vld [vmem:[#allocation12 + $0x410] sm:$0xff] }
 0x310   : > { %5879 = vmatprep.mubr.f32.mxu1 %v9125_v2  ;;  %10254 = vst [vmem:[#allocation55_spill] sm:$0xff] %v9150_v31  ;;  %v9163_v32 = vsel %vm681_vm4, %v3112_v53, %v8612_v52 }
 0x311   : > { %v9143_v60 = vmax.f32 %v2841_v41, 0.0  ;;  %v9146_v35 = vadd.f32 %v2667_v34, %v8570_v50  ;;  %6385 = vmatpush1.bf16.msra.mxu1 %v6384_v14  ;;  %10255 = vst [vmem:[#allocation66_spill] sm:$0xff] %v9163_v32  ;;  %v3114_v14 = vrot.slane %v8999_v8, 7  ;;  %v4461_v34 = vld [vmem:[#allocation12 + $0x418] sm:$0xff] }
 0x312   : > { %3541 = vmatmul.mubr.f32.gmra.mrb[152].mxu0 %v9150_v31  ;;  %v2456_v15 = vpop.f32.mrb[142].mxu1  ;;  %6467 = vmatprep.subr.bf16.mxu1 %v6466_v56 }
 0x313   : > { %10253 = vst [vmem:[#allocation65_spill] sm:$0xff] %v9143_v60  ;;  %v2458_v18 = vpop.f32.mrb[143].mxu1  ;;  %3545 = vmatprep.mubr.f32.mxu0 %v10232_v21  ;;  %v9157_v41 = vsel %vm9139_vm8, %v9143_v60, 0.0  ;;  %v9186_v15 = vsel %vm681_vm4, %v8612_v52, %v3114_v14  ;;  %v4463_v60 = vld [vmem:[#allocation12 + $0x428] sm:$0xff] }
 0x314   : > { %v10037_v50 = vrot.slane %v9157_v41, 1  ;;  %v6470_v18 = vpack.c.bf16 %v4461_v34, %v4460_v36  ;;  %v4465_v34 = vld [vmem:[#allocation12 + $0x438] sm:$0xff] }
 0x316   : > { %v2461_v51 = vpop.f32.mrb[144].mxu1  ;;  %3546 = vmatmul.mubr.f32.gmra.mrb[154].mxu0 %v9163_v32  ;;  %v9172_v62 = vsel %vm790_vm1, %v8608_v37, %v10037_v50  ;;  %v4462_v50 = vld [vmem:[#allocation12 + $0x420] sm:$0xff] }
 0x317   : > { %v2677_v24 = vadd.f32 %v8983_v47, %v2461_v51  ;;  %5880 = vmatmul.mubr.f32.gmra.mrb[172].mxu1 %v9172_v62  ;;  %5289 = vmatprep.mubr.msk.f32.mxu0 %vm8979_vm13, %v8985_v48  ;;  %v2463_v8 = vpop.f32.mrb[145].mxu1  ;;  %v3115_v47 = vrot.slane %v9027_v63, 7  ;;  %v10297_v29 = vld [vmem:[#allocation55_spill] sm:$0xff] }
 0x318   : > { %5293 = vmatprep.mubr.msk.f32.mxu1 %vm8629_vm11, %v8634_v6 }
 0x319   : > { %v2747_v53 = vadd.f32 %v2677_v24, %v8576_v19  ;;  %v9207_v16 = vsel %vm681_vm4, %v3114_v14, %v3115_v47  ;;  %v10257_v24 = vmov 0 }
 0x31a   : > { %v2466_v51 = vpop.f32.mrb[146].mxu1  ;;  %3551 = vmatmul.mubr.f32.gmra.mrb[156].mxu0 %v9186_v15  ;;  %v10258_v24 = vsel %vm9211_vm15, 4294967295, %v10257_v24 }
 0x31b   : > { %v9191_v8 = vadd.f32 %v8592_v46, %v2747_v53  ;;  %v2682_v19 = vadd.f32 %v9011_v5, %v2466_v51  ;;  %3976 = vmatmul.mubr.f32.vlgmr.msra.gmra.mrb[174].mxu1 %v8748_v7  ;;  %5290 = vmatprep.mubr.msk.f32.mxu0 %vm8979_vm13, %v9002_v23  ;;  %v2468_v6 = vpop.f32.mrb[147].mxu1  ;;  %v6474_v7 = vpack.c.bf16 %v4463_v60, %v4462_v50  ;;  %v4464_v5 = vld [vmem:[#allocation12 + $0x430] sm:$0xff]  ;;  %v4467_v60 = vld [vmem:[#allocation12 + $0x448] sm:$0xff] }
 0x31c   : > { %5294 = vmatprep.mubr.msk.f32.mxu1 %vm8629_vm11, %v8666_v11  ;;  %6469 = vmatpush3.bf16.msra.mxu1 %v6466_v56  ;;  %10259 = vst [vmem:[#allocation67_spill] sm:$0xff] %v10258_v24  ;;  %v4466_v56 = vld [vmem:[#allocation12 + $0x440] sm:$0xff] }
 0x31d   : > { %10256 = vst [vmem:[#allocation57_spill] sm:$0xff] %v9191_v8  ;;  %v10043_v63 = vmax.f32 %v9191_v8, 0.0  ;;  %v2748_v36 = vadd.f32 %v2682_v19, %v8587_v12  ;;  %6471 = vmatprep.subr.bf16.mxu1 %v6470_v18  ;;  %v6478_v12 = vpack.c.bf16 %v4465_v34, %v4464_v5  ;;  %v3118_v19 = vrot.slane %v9105_v3, 7  ;;  %v10278_v24 = vld [vmem:[#allocation60_spill] sm:$0xff] }
 0x31e   : > { %3556 = vmatmul.mubr.f32.gmra.mrb[158].mxu0 %v9207_v16  ;;  %v6482_v6 = vpack.c.bf16 %v4467_v60, %v4466_v56  ;;  %v4470_v60 = vld [vmem:[#allocation12 + $0x460] sm:$0xff] }
 0x31f   : > { %v9217_v38 = vadd.f32 %v8592_v46, %v2748_v36  ;;  %3981 = vmatmul.mubr.f32.gmra.mrb[176].mxu1 %v8784_v43  ;;  %3560 = vmatprep.mubr.f32.mxu0 %v10232_v21  ;;  %v9226_v42 = vsel %vm9211_vm15, %v10043_v63, 0.0  ;;  %v9232_v46 = vsel %vm681_vm4, %v3115_v47, %v8612_v52  ;;  %v3117_v43 = vrot.slane %v9079_v10, 7  ;;  %v4468_v36 = vld [vmem:[#allocation12 + $0x450] sm:$0xff]  ;;  %v10273_v63 = vld [vmem:[#allocation52_spill] sm:$0xff] }
 0x320   : > { %3985 = vmatprep.mubr.f32.mxu1 %v10232_v21  ;;  %6473 = vmatpush3.bf16.msra.mxu1 %v6470_v18  ;;  %10261 = vst [vmem:[#allocation38_spill] sm:$0xff] %v9226_v42  ;;  %v10045_v10 = vrot.slane %v9226_v42, 1  ;;  %v10042_v18 = vrot.slane %v9226_v42, 7  ;;  %v10280_v8 = vld [vmem:[#allocation64_spill] sm:$0xff] }
 0x321   : > { %10260 = vst [vmem:[#allocation58_spill] sm:$0xff] %v9217_v38  ;;  %v10041_v11 = vmax.f32 %v9217_v38, 0.0  ;;  %6475 = vmatprep.subr.bf16.mxu1 %v6474_v7  ;;  %v2471_v14 = vpop.f32.mrb[148].mxu1  ;;  %v9285_v34 = vsel %vm681_vm4, %v3117_v43, %v3118_v19 }
 0x322   : > { %3561 = vmatmul.mubr.f32.gmra.mrb[160].mxu0 %v9232_v46  ;;  %v2473_v47 = vpop.f32.mrb[149].mxu1  ;;  %v4471_v14 = vld [vmem:[#allocation12 + $0x468] sm:$0xff] }
 0x323   : > { %v9240_v50 = vsel %vm9211_vm15, %v10041_v11, 0.0  ;;  %3986 = vmatmul.mubr.f32.gmra.mrb[178].mxu1 %v8822_v9  ;;  %5291 = vmatprep.mubr.msk.f32.mxu0 %vm9061_vm3, %v9065_v17  ;;  %v9256_v9 = vsel %vm681_vm4, %v8612_v52, %v3117_v43  ;;  %v4426_v47 = vld [vmem:[#allocation12 + $0x300] sm:$0xff]  ;;  %v6490_v43 = vpack.c.bf16 %v4471_v14, %v4470_v60  ;;  %v4473_v11 = vld [vmem:[#allocation12 + $0x478] sm:$0xff]  ;;  %v4431_v14 = vld [vmem:[#allocation12 + $0x328] sm:$0xff] }
 0x324   : > { %10262 = vst [vmem:[#allocation40_spill] sm:$0xff] %v9240_v50  ;;  %5295 = vmatprep.mubr.msk.f32.mxu1 %vm8685_vm14, %v8696_v1  ;;  %6477 = vmatpush3.bf16.msra.mxu1 %v6474_v7  ;;  %v10044_v53 = vrot.slane %v9240_v50, 1  ;;  %v10040_v51 = vrot.slane %v9240_v50, 7  ;;  %v4469_v7 = vld [vmem:[#allocation12 + $0x458] sm:$0xff]  ;;  %v10306_v59 = vld [vmem:[#allocation57_spill] sm:$0xff] }
 0x325   : > { %6479 = vmatprep.subr.bf16.mxu1 %v6478_v12  ;;  %v6486_v56 = vpack.c.bf16 %v4469_v7, %v4468_v36  ;;  %v4472_v7 = vld [vmem:[#allocation12 + $0x470] sm:$0xff] }
 0x326   : > { %3566 = vmatmul.mubr.f32.gmra.mrb[162].mxu0 %v9256_v9  ;;  %v9266_v5 = vsel %vm790_vm1, %v10045_v10, %v10044_v53  ;;  %v9274_v3 = vsel %vm681_vm4, %v10042_v18, %v10040_v51  ;;  %v4427_v51 = vld [vmem:[#allocation12 + $0x308] sm:$0xff]  ;;  %v4429_v18 = vld [vmem:[#allocation12 + $0x318] sm:$0xff]  ;;  %v10276_v10 = vld [vmem:[#allocation56_spill] sm:$0xff] }
 0x327   : > { %10263 = vst [vmem:[#allocation35_spill] sm:$0xff] %v9266_v5  ;;  %10264 = vst [vmem:[#allocation68_spill] sm:$0xff] %v9274_v3  ;;  %3991 = vmatmul.mubr.f32.gmra.mrb[180].mxu1 %v8863_v30  ;;  %5292 = vmatprep.mubr.msk.f32.mxu0 %vm9061_vm3, %v9082_v25  ;;  %v6419_v36 = vpack.c.bf16 %v4427_v51, %v4426_v47  ;;  %v4430_v51 = vld [vmem:[#allocation12 + $0x320] sm:$0xff]  ;;  %v10274_v53 = vld [vmem:[#allocation49_spill] sm:$0xff] }
 0x328   : > { %5296 = vmatprep.mubr.msk.f32.mxu1 %vm8685_vm14, %v8691_v22  ;;  %6481 = vmatpush3.bf16.msra.mxu1 %v6478_v12  ;;  %v9294_v12 = vsel %vm681_vm4, %v3118_v19, %v8612_v52  ;;  %v6494_v19 = vpack.c.bf16 %v4473_v11, %v4472_v7  ;;  %v6425_v11 = vpack.c.bf16 %v4431_v14, %v4430_v51  ;;  %v10268_v47 = vld [vmem:[#allocation44_spill] sm:$0xff]  ;;  %v10269_v7 = vld [vmem:[#allocation46_spill] sm:$0xff]  ;;  %v4435_v14 = vld [vmem:[#allocation12 + $0x348] sm:$0xff] }
 0x329   : > { %6483 = vmatprep.subr.bf16.mxu1 %v6482_v6  ;;  %v4434_v51 = vld [vmem:[#allocation12 + $0x340] sm:$0xff]  ;;  %v10281_v5 = vld [vmem:[#allocation59_spill] sm:$0xff] }
 0x32a   : > { %3571 = vmatmul.mubr.f32.gmra.mrb[164].mxu0 %v9285_v34  ;;  %v10277_v3 = vld [vmem:[#allocation32_spill] sm:$0xff] }
 0x32b   : > { %3996 = vmatmul.mubr.f32.gmra.mrb[182].mxu1 %v8898_v4  ;;  %3575 = vmatprep.mubr.f32.mxu0 %v10232_v21 }
 0x32c   : > { %4000 = vmatprep.mubr.f32.mxu1 %v10232_v21  ;;  %6485 = vmatpush3.bf16.msra.mxu1 %v6482_v6  ;;  %v4428_v6 = vld [vmem:[#allocation12 + $0x310] sm:$0xff] }
 0x32d   : > { %6487 = vmatprep.subr.bf16.mxu1 %v6486_v56  ;;  %v6422_v60 = vpack.c.bf16 %v4429_v18, %v4428_v6  ;;  %v4432_v18 = vld [vmem:[#allocation12 + $0x330] sm:$0xff] }
 0x32e   : > { %3576 = vmatmul.mubr.f32.gmra.mrb[166].mxu0 %v9294_v12  ;;  %v10270_v6 = vld [vmem:[#allocation62_spill] sm:$0xff]  ;;  %v10301_v26 = vld [vmem:[#allocation35_spill] sm:$0xff] }
 0x32f   : > { %4001 = vmatmul.mubr.f32.gmra.mrb[184].mxu1 %v8921_v39  ;;  %5914 = vmatprep.mubr.f32.mxu0 %v8707_v57  ;;  %v10265_v57 = vld [vmem:[#allocation42_spill] sm:$0xff] }
 0x330   : > { %5297 = vmatprep.mubr.msk.f32.mxu1 %vm8731_vm2, %v8735_v44  ;;  %6489 = vmatpush3.bf16.msra.mxu1 %v6486_v56  ;;  %v10266_v56 = vld [vmem:[#allocation43_spill] sm:$0xff] }
 0x331   : > { %6491 = vmatprep.subr.bf16.mxu1 %v6490_v43 }
 0x332   : > { %5915 = vmatmul.mubr.f32.vlgmr.msra.gmra.mrb[168].mxu0 %v8712_v0  ;;  %v10267_v0 = vld [vmem:[#allocation61_spill] sm:$0xff] }
 0x333   : > { %4006 = vmatmul.mubr.f32.gmra.mrb[186].mxu1 %v8951_v13  ;;  %6420 = vmatpush1.bf16.msra.mxu0 %v6419_v36  ;;  %v4433_v36 = vld [vmem:[#allocation12 + $0x338] sm:$0xff] }
 0x334   : > { %5298 = vmatprep.mubr.msk.f32.mxu1 %vm8731_vm2, %v8776_v61  ;;  %5917 = vmatprep.mubr.f32.mxu0 %v10265_v57  ;;  %v10271_v57 = vld [vmem:[#allocation48_spill] sm:$0xff] }
 0x335   : > { %6421 = vmatprep.subr.bf16.mxu0 %v10134_v33  ;;  %6493 = vmatpush3.bf16.msra.mxu1 %v6490_v43  ;;  %v6428_v43 = vpack.c.bf16 %v4433_v36, %v4432_v18  ;;  %v4436_v18 = vld [vmem:[#allocation12 + $0x350] sm:$0xff]  ;;  %v4437_v36 = vld [vmem:[#allocation12 + $0x358] sm:$0xff] }
 0x336   : > { %5918 = vmatmul.mubr.f32.gmra.mrb[170].mxu0 %v10266_v56  ;;  %6495 = vmatprep.subr.bf16.mxu1 %v6494_v19  ;;  %v6434_v38 = vpack.c.bf16 %v4437_v36, %v4436_v18  ;;  %v4440_v18 = vld [vmem:[#allocation12 + $0x370] sm:$0xff]  ;;  %v4441_v36 = vld [vmem:[#allocation12 + $0x378] sm:$0xff] }
 0x337   : > { %4011 = vmatmul.mubr.f32.gmra.mrb[188].mxu1 %v10267_v0  ;;  %6423 = vmatpush1.bf16.msra.mxu0 %v6422_v60  ;;  %v10272_v60 = vld [vmem:[#allocation50_spill] sm:$0xff] }
 0x338   : > { %5920 = vmatprep.mubr.f32.mxu0 %v10268_v47  ;;  %4015 = vmatprep.mubr.f32.mxu1 %v10232_v21 }
 0x339   : > { %6424 = vmatprep.subr.bf16.mxu0 %v10134_v33  ;;  %6497 = vmatpush3.bf16.msra.mxu1 %v6494_v19  ;;  %v6431_v19 = vpack.c.bf16 %v4435_v14, %v4434_v51  ;;  %v4439_v51 = vld [vmem:[#allocation12 + $0x368] sm:$0xff] }
 0x33a   : > { %5921 = vmatmul.mubr.f32.gmra.mrb[172].mxu0 %v10269_v7  ;;  %v10279_v14 = vld [vmem:[#allocation33_spill] sm:$0xff] }
 0x33b   : > { %4016 = vmatmul.mubr.f32.gmra.mrb[190].mxu1 %v10270_v6  ;;  %6426 = vmatpush1.bf16.msra.mxu0 %v6425_v11  ;;  %v10275_v11 = vld [vmem:[#allocation54_spill] sm:$0xff] }
 0x33c   : > { %5299 = vmatprep.mubr.msk.f32.mxu1 %vm8813_vm6, %v10271_v57  ;;  %5923 = vmatprep.mubr.f32.mxu0 %v10272_v60 }
 0x33d   : > { %6427 = vmatprep.subr.bf16.mxu0 %v10134_v33 }
 0x33e   : > { %5924 = vmatmul.mubr.f32.gmra.mrb[174].mxu0 %v10273_v63 }
 0x33f   : > { %4021 = vmatmul.mubr.f32.gmra.mrb[192].mxu1 %v9036_v20  ;;  %6429 = vmatpush1.bf16.msra.mxu0 %v6428_v43  ;;  %v4438_v43 = vld [vmem:[#allocation12 + $0x360] sm:$0xff] }
 0x340   : > { %5300 = vmatprep.mubr.msk.f32.mxu1 %vm8813_vm6, %v10274_v53  ;;  %5926 = vmatprep.mubr.f32.mxu0 %v10275_v11  ;;  %v6437_v50 = vpack.c.bf16 %v4439_v51, %v4438_v43  ;;  %v10283_v20 = vld [vmem:[#allocation36_spill] sm:$0xff]  ;;  %v10284_v43 = vld [vmem:[#allocation47_spill] sm:$0xff] }
 0x341   : > { %6430 = vmatprep.subr.bf16.mxu0 %v10134_v33  ;;  %v4442_v51 = vld [vmem:[#allocation12 + $0x380] sm:$0xff] }
 0x342   : > { %5927 = vmatmul.mubr.f32.gmra.mrb[176].mxu0 %v10276_v10 }
 0x343   : > { %4026 = vmatmul.mubr.f32.gmra.mrb[194].mxu1 %v10277_v3  ;;  %6432 = vmatpush1.bf16.msra.mxu0 %v6431_v19  ;;  %v10282_v19 = vld [vmem:[#allocation34_spill] sm:$0xff]  ;;  %v6675_v3 = vld [vmem:[%s10206_s2] ss:$0 sm:$0xff] }
 0x344   : > { %5929 = vmatprep.mubr.f32.mxu0 %v10278_v24  ;;  %4030 = vmatprep.mubr.f32.mxu1 %v10232_v21  ;;  %v2842_v53 = vadd.f32 %v6675_v3, %v9146_v35  ;;  %v4444_v3 = vld [vmem:[#allocation12 + $0x390] sm:$0xff] }
 0x345   : > { %6433 = vmatprep.subr.bf16.mxu0 %v10134_v33 }
 0x346   : > { %5930 = vmatmul.mubr.f32.gmra.mrb[178].mxu0 %v10279_v14 }
 0x347   : > { %4031 = vmatmul.mubr.f32.gmra.mrb[196].mxu1 %v10280_v8  ;;  %6435 = vmatpush1.bf16.msra.mxu0 %v6434_v38  ;;  %v6440_v38 = vpack.c.bf16 %v4441_v36, %v4440_v18  ;;  %v9351_v8 = vmax.f32 %v2842_v53, 0.0  ;;  %v4445_v18 = vld [vmem:[#allocation12 + $0x398] sm:$0xff]  ;;  %v10287_v36 = vld [vmem:[#allocation53_spill] sm:$0xff] }
 0x348   : > { %5301 = vmatprep.mubr.msk.f32.mxu1 %vm8887_vm9, %v10281_v5  ;;  %5932 = vmatprep.mubr.f32.mxu0 %v10282_v19  ;;  %v4443_v5 = vld [vmem:[#allocation12 + $0x388] sm:$0xff]  ;;  %v10285_v19 = vld [vmem:[#allocation63_spill] sm:$0xff] }
 0x349   : > { %6436 = vmatprep.subr.bf16.mxu0 %v10134_v33  ;;  %v6443_v35 = vpack.c.bf16 %v4443_v5, %v4442_v51  ;;  %v9362_v53 = vsel %vm9139_vm8, %v9351_v8, 0.0  ;;  %v4446_v5 = vld [vmem:[#allocation12 + $0x3a0] sm:$0xff]  ;;  %v4447_v51 = vld [vmem:[#allocation12 + $0x3a8] sm:$0xff] }
 0x34a   : > { %5933 = vmatmul.mubr.f32.gmra.mrb[180].mxu0 %v10283_v20 }
 0x34b   : > { %4036 = vmatmul.mubr.f32.gmra.mrb[198].mxu1 %v9114_v54  ;;  %6438 = vmatpush1.bf16.msra.mxu0 %v6437_v50  ;;  %v10286_v50 = vld [vmem:[#allocation51_spill] sm:$0xff] }
 0x34c   : > { %5302 = vmatprep.mubr.msk.f32.mxu1 %vm8887_vm9, %v8916_v58  ;;  %5935 = vmatprep.mubr.f32.mxu0 %v10284_v43 }
 0x34d   : > { %6439 = vmatprep.subr.bf16.mxu0 %v10134_v33 }
 0x34e   : > { %5936 = vmatmul.mubr.f32.gmra.mrb[182].mxu0 %v10285_v19 }
 0x34f   : > { %4041 = vmatmul.mubr.f32.gmra.mrb[200].mxu1 %v9150_v31  ;;  %6441 = vmatpush1.bf16.msra.mxu0 %v6440_v38  ;;  %v6446_v38 = vpack.c.bf16 %v4445_v18, %v4444_v3  ;;  %v3211_v31 = vrot.slane %v9362_v53, 1  ;;  %v4449_v3 = vld [vmem:[#allocation12 + $0x3b8] sm:$0xff]  ;;  %v10288_v18 = vrot.slane %v9157_v41, 1 }
 0x350   : > { %5938 = vmatprep.mubr.f32.mxu0 %v10286_v50  ;;  %4045 = vmatprep.mubr.f32.mxu1 %v10232_v21 }
 0x351   : > { %6442 = vmatprep.subr.bf16.mxu0 %v10134_v33 }
 0x352   : > { %5939 = vmatmul.mubr.f32.gmra.mrb[184].mxu0 %v10287_v36 }
 0x353   : > { %4046 = vmatmul.mubr.f32.gmra.mrb[202].mxu1 %v9163_v32  ;;  %6444 = vmatpush1.bf16.msra.mxu0 %v6443_v35  ;;  %v6449_v32 = vpack.c.bf16 %v4447_v51, %v4446_v5  ;;  %v4448_v35 = vld [vmem:[#allocation12 + $0x3b0] sm:$0xff]  ;;  %v4450_v51 = vld [vmem:[#allocation12 + $0x3c0] sm:$0xff] }
 0x354   : > { %5303 = vmatprep.mubr.msk.f32.mxu1 %vm8979_vm13, %v8985_v48  ;;  %5941 = vmatprep.mubr.f32.mxu0 %v9120_v28  ;;  %v9382_v48 = vsel %vm790_vm1, %v10288_v18, %v3211_v31  ;;  %v6452_v5 = vpack.c.bf16 %v4449_v3, %v4448_v35  ;;  %v10289_v18 = vrot.slane %v9226_v42, 1  ;;  %v4452_v35 = vld [vmem:[#allocation12 + $0x3d0] sm:$0xff]  ;;  %v4453_v3 = vld [vmem:[#allocation12 + $0x3d8] sm:$0xff] }
 0x355   : > { %6445 = vmatprep.subr.bf16.mxu0 %v10134_v33  ;;  %v4457_v42 = vld [vmem:[#allocation12 + $0x3f8] sm:$0xff] }
 0x356   : > { %5942 = vmatmul.mubr.f32.gmra.mrb[186].mxu0 %v9125_v2 }
 0x357   : > { %4051 = vmatmul.mubr.f32.gmra.mrb[204].mxu1 %v9186_v15  ;;  %6447 = vmatpush1.bf16.msra.mxu0 %v6446_v38  ;;  %v9389_v38 = vsel %vm790_vm1, %v3211_v31, %v8608_v37 }
 0x358   : > { %5304 = vmatprep.mubr.msk.f32.mxu1 %vm8979_vm13, %v9002_v23  ;;  %5944 = vmatprep.mubr.f32.mxu0 %v9172_v62  ;;  %v4451_v23 = vld [vmem:[#allocation12 + $0x3c8] sm:$0xff] }
 0x359   : > { %6448 = vmatprep.subr.bf16.mxu0 %v10134_v33  ;;  %v6455_v31 = vpack.c.bf16 %v4451_v23, %v4450_v51  ;;  %v4454_v23 = vld [vmem:[#allocation12 + $0x3e0] sm:$0xff]  ;;  %v4456_v51 = vld [vmem:[#allocation12 + $0x3f0] sm:$0xff] }
 0x35a   : > { %5945 = vmatmul.mubr.f32.gmra.mrb[188].mxu0 %v9382_v48 }
 0x35b   : > { %4056 = vmatmul.mubr.f32.gmra.mrb[206].mxu1 %v9207_v16  ;;  %6450 = vmatpush1.bf16.msra.mxu0 %v6449_v32  ;;  %v9399_v32 = vsel %vm790_vm1, %v8608_v37, %v10289_v18  ;;  %v6458_v18 = vpack.c.bf16 %v4453_v3, %v4452_v35  ;;  %v6464_v35 = vpack.c.bf16 %v4457_v42, %v4456_v51  ;;  %v10290_v3 = vld [vmem:[#allocation65_spill] sm:$0xff] }
 0x35c   : > { %5947 = vmatprep.mubr.f32.mxu0 %v9389_v38  ;;  %4060 = vmatprep.mubr.f32.mxu1 %v10232_v21 }
 0x35d   : > { %6451 = vmatprep.subr.bf16.mxu0 %v10134_v33 }
 0x35e   : > { %5948 = vmatmul.mubr.f32.gmra.mrb[190].mxu0 %v9399_v32 }
 0x35f   : > { %4061 = vmatmul.mubr.f32.gmra.mrb[208].mxu1 %v9232_v46  ;;  %6453 = vmatpush1.bf16.msra.mxu0 %v6452_v5  ;;  %v4455_v5 = vld [vmem:[#allocation12 + $0x3e8] sm:$0xff] }
 0x360   : > { %5305 = vmatprep.mubr.msk.f32.mxu1 %vm9061_vm3, %v9065_v17  ;;  %5309 = vmatprep.mubr.msk.f32.mxu0 %vm8685_vm14, %v8696_v1  ;;  %v6461_v1 = vpack.c.bf16 %v4455_v5, %v4454_v23  ;;  %v3121_v23 = vrot.slane %v9362_v53, 7 }
 0x361   : > { %6454 = vmatprep.subr.bf16.mxu0 %v10134_v33 }
 0x363   : > { %4066 = vmatmul.mubr.f32.gmra.mrb[210].mxu1 %v9256_v9  ;;  %6456 = vmatpush1.bf16.msra.mxu0 %v6455_v31  ;;  %v3120_v31 = vrot.slane %v9157_v41, 7 }
 0x364   : > { %5306 = vmatprep.mubr.msk.f32.mxu1 %vm9061_vm3, %v9082_v25  ;;  %6457 = vmatprep.subr.bf16.mxu0 %v10134_v33 }
 0x365   : > { %v9437_v41 = vsel %vm681_vm4, %v3120_v31, %v3121_v23 }
 0x367   : > { %4071 = vmatmul.mubr.f32.gmra.mrb[212].mxu1 %v9285_v34  ;;  %6459 = vmatpush1.bf16.msra.mxu0 %v6458_v18  ;;  %v9427_v18 = vsel %vm681_vm4, %v8612_v52, %v3120_v31 }
 0x368   : > { %4075 = vmatprep.mubr.f32.mxu1 %v10232_v21  ;;  %6460 = vmatprep.subr.bf16.mxu0 %v10134_v33 }
 0x36b   : > { %4076 = vmatmul.mubr.f32.gmra.mrb[214].mxu1 %v9294_v12  ;;  %6462 = vmatpush1.bf16.msra.mxu0 %v6461_v1 }
 0x36c   : > { %5307 = vmatprep.mubr.msk.f32.mxu1 %vm9139_vm8, %v10290_v3  ;;  %6463 = vmatprep.subr.bf16.mxu0 %v10134_v33  ;;  %v9448_v33 = vsel %vm681_vm4, %v3121_v23, %v8612_v52 }
 0x36f   : > { %4081 = vmatmul.mubr.f32.gmra.mrb[216].mxu1 %v9427_v18  ;;  %6465 = vmatpush1.bf16.msra.mxu0 %v6464_v35 }
 0x370   : > { %5308 = vmatprep.mubr.msk.f32.mxu1 %vm9139_vm8, %v9351_v8 }
 0x372   : > { %4539 = vmatmul.mubr.f32.vlgmr.msra.gmra.mrb[192].mxu0 %v8863_v30  ;;  %v10291_v30 = vld [vmem:[#allocation39_spill] sm:$0xff] }
 0x373   : > { %4086 = vmatmul.mubr.f32.gmra.mrb[218].mxu1 %v9437_v41  ;;  %5310 = vmatprep.mubr.msk.f32.mxu0 %vm8685_vm14, %v8691_v22  ;;  %v10293_v22 = vld [vmem:[#allocation34_spill] sm:$0xff] }
 0x374   : > { %4090 = vmatprep.mubr.f32.mxu1 %v10232_v21 }
 0x376   : > { %4544 = vmatmul.mubr.f32.gmra.mrb[194].mxu0 %v8898_v4  ;;  %v10298_v4 = vld [vmem:[#allocation66_spill] sm:$0xff] }
 0x377   : > { %4091 = vmatmul.mubr.f32.gmra.mrb[220].mxu1 %v9448_v33  ;;  %4548 = vmatprep.mubr.f32.mxu0 %v10232_v21 }
 0x378   : > { %5982 = vmatprep.mubr.f32.mxu1 %v10266_v56 }
 0x37a   : > { %4549 = vmatmul.mubr.f32.gmra.mrb[196].mxu0 %v8921_v39  ;;  %v10299_v39 = vld [vmem:[#allocation37_spill] sm:$0xff] }
 0x37b   : > { %5311 = vmatprep.mubr.msk.f32.mxu0 %vm8731_vm2, %v8735_v44  ;;  %5983 = vmatmul.mubr.f32.vlgmr.msra.gmra.mrb[222].mxu1 %v10268_v47  ;;  %v10295_v44 = vld [vmem:[#allocation64_spill] sm:$0xff] }
 0x37c   : > { %5985 = vmatprep.mubr.f32.mxu1 %v10269_v7 }
 0x37e   : > { %4554 = vmatmul.mubr.f32.gmra.mrb[198].mxu0 %v8951_v13  ;;  %v10302_v13 = vld [vmem:[#allocation40_spill] sm:$0xff] }
 0x37f   : > { %5312 = vmatprep.mubr.msk.f32.mxu0 %vm8731_vm2, %v8776_v61  ;;  %5986 = vmatmul.mubr.f32.gmra.mrb[224].mxu1 %v10272_v60  ;;  %v10296_v61 = vld [vmem:[#allocation59_spill] sm:$0xff] }
 0x380   : > { %5988 = vmatprep.mubr.f32.mxu1 %v10273_v63 }
 0x382   : > { %4559 = vmatmul.mubr.f32.gmra.mrb[200].mxu0 %v10267_v0 }
 0x383   : > { %5989 = vmatmul.mubr.f32.gmra.mrb[226].mxu1 %v10275_v11  ;;  %4563 = vmatprep.mubr.f32.mxu0 %v10232_v21 }
 0x384   : > { %5991 = vmatprep.mubr.f32.mxu1 %v10276_v10 }
 0x386   : > { %4564 = vmatmul.mubr.f32.gmra.mrb[202].mxu0 %v10270_v6 }
 0x387   : > { %5313 = vmatprep.mubr.msk.f32.mxu0 %vm8813_vm6, %v10271_v57  ;;  %5992 = vmatmul.mubr.f32.gmra.mrb[228].mxu1 %v10278_v24 }
 0x388   : > { %5994 = vmatprep.mubr.f32.mxu1 %v10279_v14 }
 0x38a   : > { %4569 = vmatmul.mubr.f32.gmra.mrb[204].mxu0 %v10291_v30  ;;  %v10309_v30 = vld [vmem:[#allocation38_spill] sm:$0xff] }
 0x38b   : > { %5314 = vmatprep.mubr.msk.f32.mxu0 %vm8813_vm6, %v10292_v45  ;;  %5995 = vmatmul.mubr.f32.gmra.mrb[230].mxu1 %v10293_v22 }
 0x38c   : > { %5997 = vmatprep.mubr.f32.mxu1 %v10283_v20 }
 0x38e   : > { %4574 = vmatmul.mubr.f32.gmra.mrb[206].mxu0 %v10294_v40 }
 0x38f   : > { %5998 = vmatmul.mubr.f32.gmra.mrb[232].mxu1 %v10284_v43  ;;  %4578 = vmatprep.mubr.f32.mxu0 %v10232_v21 }
 0x390   : > { %6000 = vmatprep.mubr.f32.mxu1 %v10285_v19 }
 0x392   : > { %4579 = vmatmul.mubr.f32.gmra.mrb[208].mxu0 %v10295_v44  ;;  %v10311_v44 = vld [vmem:[#allocation58_spill] sm:$0xff] }
 0x393   : > { %5315 = vmatprep.mubr.msk.f32.mxu0 %vm8887_vm9, %v10296_v61  ;;  %6001 = vmatmul.mubr.f32.gmra.mrb[234].mxu1 %v10286_v50 }
 0x394   : > { %6003 = vmatprep.mubr.f32.mxu1 %v10287_v36 }
 0x396   : > { %4584 = vmatmul.mubr.f32.gmra.mrb[210].mxu0 %v9114_v54 }
 0x397   : > { %5316 = vmatprep.mubr.msk.f32.mxu0 %vm8887_vm9, %v8916_v58  ;;  %6004 = vmatmul.mubr.f32.gmra.mrb[236].mxu1 %v9120_v28  ;;  %v10300_v58 = vld [vmem:[#allocation45_spill] sm:$0xff] }
 0x398   : > { %6006 = vmatprep.mubr.f32.mxu1 %v9125_v2 }
 0x39a   : > { %4589 = vmatmul.mubr.f32.gmra.mrb[212].mxu0 %v10297_v29 }
 0x39b   : > { %6007 = vmatmul.mubr.f32.gmra.mrb[238].mxu1 %v9172_v62  ;;  %4593 = vmatprep.mubr.f32.mxu0 %v10232_v21  ;;  %v10304_v62 = vld [vmem:[#allocation41_spill] sm:$0xff] }
 0x39c   : > { %6009 = vmatprep.mubr.f32.mxu1 %v9382_v48  ;;  %v10303_v48 = vrot.slane %v10302_v13, 1 }
 0x39e   : > { %4594 = vmatmul.mubr.f32.gmra.mrb[214].mxu0 %v10298_v4  ;;  %v3216_v20 = vsel %vm790_vm1, %v10303_v48, %v8608_v37 }
 0x39f   : > { %5317 = vmatprep.mubr.msk.f32.mxu0 %vm8979_vm13, %v10299_v39  ;;  %6010 = vmatmul.mubr.f32.gmra.mrb[240].mxu1 %v9389_v38  ;;  %v10313_v39 = vld [vmem:[#allocation68_spill] sm:$0xff] }
 0x3a0   : > { %6012 = vmatprep.mubr.f32.mxu1 %v9399_v32 }
 0x3a2   : > { %4599 = vmatmul.mubr.f32.gmra.mrb[216].mxu0 %v9186_v15  ;;  %v10305_v15 = vrot.slane %v10304_v62, 1 }
 0x3a3   : > { %5318 = vmatprep.mubr.msk.f32.mxu0 %vm8979_vm13, %v10300_v58  ;;  %6013 = vmatmul.mubr.f32.gmra.mrb[242].mxu1 %v10301_v26 }
 0x3a4   : > { %6015 = vmatprep.mubr.f32.mxu1 %v3216_v20  ;;  %v3245_v55 = vsel %vm790_vm1, %v8608_v37, %v10305_v15  ;;  %v10314_v20 = vrot.slane %v10302_v13, 7 }
 0x3a5   : > { %v3462_v28 = vpop.f32.mrb[120].mxu0 }
 0x3a6   : > { %4604 = vmatmul.mubr.f32.gmra.mrb[218].mxu0 %v9207_v16  ;;  %v3464_v54 = vpop.f32.mrb[121].mxu0  ;;  %v5848_v2 = vpop.f32.mrb[150].mxu1 }
 0x3a7   : > { %6016 = vmatmul.mubr.f32.gmra.mrb[244].mxu1 %v3245_v55  ;;  %v3647_v63 = vpop.f32.mrb[151].mxu1  ;;  %4608 = vmatprep.mubr.f32.mxu0 %v10232_v21 }
 0x3a8   : > { %v9524_v24 = vadd.f32 %v3647_v63, %v3462_v28  ;;  %v3126_v28 = vsel %vm681_vm4, %v10314_v20, %v8612_v52 }
 0x3a9   : > { %v3467_v42 = vpop.f32.mrb[122].mxu0 }
 0x3aa   : > { %v9526_v10 = vadd.f32 %v5848_v2, %v3467_v42  ;;  %4609 = vmatmul.mubr.f32.gmra.mrb[220].mxu0 %v9232_v46  ;;  %v3469_v16 = vpop.f32.mrb[123].mxu0 }
 0x3ab   : > { %5319 = vmatprep.mubr.msk.f32.mxu0 %vm9061_vm3, %v9065_v17 }
 0x3ad   : > { %v3472_v56 = vpop.f32.mrb[124].mxu0  ;;  %v5851_v0 = vpop.f32.mrb[152].mxu1 }
 0x3ae   : > { %4614 = vmatmul.mubr.f32.gmra.mrb[222].mxu0 %v9256_v9  ;;  %v3474_v37 = vpop.f32.mrb[125].mxu0  ;;  %v3657_v47 = vpop.f32.mrb[153].mxu1 }
 0x3af   : > { %v9533_v7 = vadd.f32 %v3657_v47, %v3472_v56  ;;  %5320 = vmatprep.mubr.msk.f32.mxu0 %vm9061_vm3, %v9082_v25 }
 0x3b1   : > { %v3477_v6 = vpop.f32.mrb[126].mxu0  ;;  %v5854_v57 = vpop.f32.mrb[154].mxu1 }
 0x3b2   : > { %v9538_v46 = vadd.f32 %v5851_v0, %v3477_v6  ;;  %4619 = vmatmul.mubr.f32.gmra.mrb[224].mxu0 %v9285_v34  ;;  %v3479_v60 = vpop.f32.mrb[127].mxu0  ;;  %v3667_v17 = vpop.f32.mrb[155].mxu1 }
 0x3b3   : > { %4623 = vmatprep.mubr.f32.mxu0 %v10232_v21 }
 0x3b5   : > { %v3482_v11 = vpop.f32.mrb[128].mxu0  ;;  %v5857_v9 = vpop.f32.mrb[156].mxu1 }
 0x3b6   : > { %v9542_v14 = vadd.f32 %v3667_v17, %v3482_v11  ;;  %4624 = vmatmul.mubr.f32.gmra.mrb[226].mxu0 %v9294_v12  ;;  %v3484_v19 = vpop.f32.mrb[129].mxu0  ;;  %v3677_v43 = vpop.f32.mrb[157].mxu1 }
 0x3b7   : > { %5321 = vmatprep.mubr.msk.f32.mxu0 %vm9139_vm8, %v10290_v3 }
 0x3b9   : > { %v3487_v49 = vpop.f32.mrb[130].mxu0  ;;  %v5860_v25 = vpop.f32.mrb[158].mxu1 }
 0x3ba   : > { %v9548_v50 = vadd.f32 %v5854_v57, %v3487_v49  ;;  %4629 = vmatmul.mubr.f32.gmra.mrb[228].mxu0 %v9427_v18  ;;  %v3489_v34 = vpop.f32.mrb[131].mxu0  ;;  %v3687_v36 = vpop.f32.mrb[159].mxu1 }
 0x3bb   : > { %5322 = vmatprep.mubr.msk.f32.mxu0 %vm9139_vm8, %v9351_v8  ;;  %v10307_v8 = vmax.f32 %v10306_v59, 0.0 }
 0x3bd   : > { %v3492_v53 = vpop.f32.mrb[132].mxu0  ;;  %v5863_v12 = vpop.f32.mrb[160].mxu1 }
 0x3be   : > { %v9554_v38 = vadd.f32 %v3677_v43, %v3492_v53  ;;  %4634 = vmatmul.mubr.f32.gmra.mrb[230].mxu0 %v9437_v41  ;;  %v3494_v32 = vpop.f32.mrb[133].mxu0  ;;  %v3697_v5 = vpop.f32.mrb[161].mxu1  ;;  %v10310_v41 = vrot.slane %v10309_v30, 7 }
 0x3bf   : > { %4638 = vmatprep.mubr.f32.mxu0 %v10232_v21 }
 0x3c0   : > { %v3128_v45 = vsel %vm681_vm4, %v8612_v52, %v10310_v41 }
 0x3c1   : > { %v3497_v1 = vpop.f32.mrb[134].mxu0  ;;  %v5866_v51 = vpop.f32.mrb[162].mxu1 }
 0x3c2   : > { %v9558_v31 = vadd.f32 %v5857_v9, %v3497_v1  ;;  %4639 = vmatmul.mubr.f32.gmra.mrb[232].mxu0 %v9448_v33  ;;  %v3499_v35 = vpop.f32.mrb[135].mxu0  ;;  %v3707_v3 = vpop.f32.mrb[163].mxu1  ;;  %v10312_v33 = vmax.f32 %v10311_v44, 0.0 }
 0x3c3   : > { %5323 = vmatprep.mubr.msk.f32.mxu0 %vm9211_vm15, %v10307_v8 }
 0x3c5   : > { %v3502_v23 = vpop.f32.mrb[136].mxu0 }
 0x3c6   : > { %v9570_v22 = vadd.f32 %v3687_v36, %v3502_v23  ;;  %4644 = vmatmul.mubr.f32.gmra.mrb[234].mxu0 %v3128_v45  ;;  %v3504_v40 = vpop.f32.mrb[137].mxu0 }
 0x3c7   : > { %5324 = vmatprep.mubr.msk.f32.mxu0 %vm9211_vm15, %v10312_v33 }
 0x3c9   : > { %v3507_v61 = vpop.f32.mrb[138].mxu0 }
 0x3ca   : > { %v9576_v29 = vadd.f32 %v5860_v25, %v3507_v61  ;;  %v5869_v4 = vpop.f32.mrb[164].mxu1  ;;  %4649 = vmatmul.mubr.f32.gmra.mrb[236].mxu0 %v10313_v39  ;;  %v3509_v58 = vpop.f32.mrb[139].mxu0 }
 0x3cb   : > { %v3717_v26 = vpop.f32.mrb[165].mxu1  ;;  %4653 = vmatprep.mubr.f32.mxu0 %v10232_v21 }
 0x3cd   : > { %v3512_v48 = vpop.f32.mrb[140].mxu0 }
 0x3ce   : > { %v9585_v54 = vadd.f32 %v3697_v5, %v3512_v48  ;;  %4654 = vmatmul.mubr.f32.gmra.mrb[238].mxu0 %v3126_v28  ;;  %v3514_v2 = vpop.f32.mrb[141].mxu0 }
 0x3d1   : > { %v3517_v62 = vpop.f32.mrb[142].mxu0 }
 0x3d2   : > { %v9587_v15 = vadd.f32 %v5863_v12, %v3517_v62  ;;  %v5872_v55 = vpop.f32.mrb[166].mxu1  ;;  %v3519_v63 = vpop.f32.mrb[143].mxu0 }
 0x3d3   : > { %v3727_v42 = vpop.f32.mrb[167].mxu1 }
 0x3d5   : > { %v3522_v16 = vpop.f32.mrb[144].mxu0 }
 0x3d6   : > { %v9589_v56 = vadd.f32 %v3707_v3, %v3522_v16  ;;  %v3524_v21 = vpop.f32.mrb[145].mxu0 }
 0x3d7   : > { %v5875_v0 = vpop.f32.mrb[168].mxu1 }
 0x3d8   : > { %v3737_v37 = vpop.f32.mrb[169].mxu1 }
 0x3d9   : > { %v3527_v13 = vpop.f32.mrb[146].mxu0 }
 0x3da   : > { %v9591_v47 = vadd.f32 %v5866_v51, %v3527_v13  ;;  %v3529_v27 = vpop.f32.mrb[147].mxu0 }
 0x3dd   : > { %v3532_v52 = vpop.f32.mrb[148].mxu0 }
 0x3de   : > { %v9593_v6 = vadd.f32 %v3717_v26, %v3532_v52  ;;  %v3534_v57 = vpop.f32.mrb[149].mxu0 }
 0x3e1   : > { %v3537_v60 = vpop.f32.mrb[150].mxu0 }
 0x3e2   : > { %v9595_v17 = vadd.f32 %v5869_v4, %v3537_v60  ;;  %v5878_v11 = vpop.f32.mrb[170].mxu1  ;;  %v3539_v9 = vpop.f32.mrb[151].mxu0 }
 0x3e3   : > { %v3747_v19 = vpop.f32.mrb[171].mxu1 }
 0x3e5   : > { %v3542_v43 = vpop.f32.mrb[152].mxu0 }
 0x3e6   : > { %v9597_v49 = vadd.f32 %v3727_v42, %v3542_v43  ;;  %v3544_v25 = vpop.f32.mrb[153].mxu0 }
 0x3e9   : > { %v3547_v34 = vpop.f32.mrb[154].mxu0 }
 0x3ea   : > { %v9599_v36 = vadd.f32 %v5872_v55, %v3547_v34  ;;  %v5881_v53 = vpop.f32.mrb[172].mxu1  ;;  %v3549_v12 = vpop.f32.mrb[155].mxu0 }
 0x3eb   : > { %v3757_v32 = vpop.f32.mrb[173].mxu1 }
 0x3ed   : > { %v3552_v5 = vpop.f32.mrb[156].mxu0 }
 0x3ee   : > { %v9601_v1 = vadd.f32 %v3737_v37, %v3552_v5  ;;  %v3977_v51 = vpop.f32.mrb[174].mxu1  ;;  %v3554_v35 = vpop.f32.mrb[157].mxu0 }
 0x3ef   : > { %v3979_v3 = vpop.f32.mrb[175].mxu1 }
 0x3f1   : > { %v3557_v59 = vpop.f32.mrb[158].mxu0 }
 0x3f2   : > { %v9603_v8 = vadd.f32 %v5875_v0, %v3557_v59  ;;  %v3982_v18 = vpop.f32.mrb[176].mxu1  ;;  %v3559_v23 = vpop.f32.mrb[159].mxu0 }
 0x3f3   : > { %v3984_v30 = vpop.f32.mrb[177].mxu1 }
 0x3f5   : > { %v3562_v41 = vpop.f32.mrb[160].mxu0 }
 0x3f6   : > { %v9605_v45 = vadd.f32 %v3747_v19, %v3562_v41  ;;  %v3987_v40 = vpop.f32.mrb[178].mxu1  ;;  %v3564_v44 = vpop.f32.mrb[161].mxu0 }
 0x3f7   : > { %v3989_v33 = vpop.f32.mrb[179].mxu1 }
 0x3f9   : > { %v3567_v61 = vpop.f32.mrb[162].mxu0 }
 0x3fa   : > { %v9607_v4 = vadd.f32 %v5878_v11, %v3567_v61  ;;  %v3992_v39 = vpop.f32.mrb[180].mxu1  ;;  %v3569_v58 = vpop.f32.mrb[163].mxu0 }
 0x3fb   : > { %v3994_v26 = vpop.f32.mrb[181].mxu1 }
 0x3fd   : > { %v3572_v48 = vpop.f32.mrb[164].mxu0 }
 0x3fe   : > { %v9609_v20 = vadd.f32 %v3757_v32, %v3572_v48  ;;  %v3997_v28 = vpop.f32.mrb[182].mxu1  ;;  %v3574_v2 = vpop.f32.mrb[165].mxu0 }
 0x3ff   : > { %v3999_v62 = vpop.f32.mrb[183].mxu1 }
 0x401   : > { %v3577_v55 = vpop.f32.mrb[166].mxu0 }
 0x402   : > { %v9611_v63 = vadd.f32 %v5881_v53, %v3577_v55  ;;  %v4002_v42 = vpop.f32.mrb[184].mxu1  ;;  %v3579_v16 = vpop.f32.mrb[167].mxu0 }
 0x403   : > { %v4004_v21 = vpop.f32.mrb[185].mxu1 }
 0x405   : > { %v5916_v0 = vpop.f32.mrb[168].mxu0 }
 0x406   : > { %v4007_v37 = vpop.f32.mrb[186].mxu1  ;;  %v4168_v13 = vadd.f32 %v5916_v0, %v3982_v18  ;;  %v4162_v27 = vpop.f32.mrb[169].mxu0 }
 0x407   : > { %v4009_v52 = vpop.f32.mrb[187].mxu1  ;;  %v4163_v57 = vadd.f32 %v4162_v27, %v3977_v51 }
 0x408   : > { %v9614_v60 = vadd.f32 %v4168_v13, %v9526_v10 }
 0x409   : > { %v9617_v11 = vadd.f32 %v4163_v57, %v9524_v24  ;;  %v5919_v9 = vpop.f32.mrb[170].mxu0 }
 0x40a   : > { %v4012_v19 = vpop.f32.mrb[188].mxu1  ;;  %v4178_v43 = vadd.f32 %v5919_v9, %v3992_v39  ;;  %v4172_v25 = vpop.f32.mrb[171].mxu0 }
 0x40b   : > { %v4014_v34 = vpop.f32.mrb[189].mxu1  ;;  %v4173_v53 = vadd.f32 %v4172_v25, %v3987_v40 }
 0x40c   : > { %v9620_v12 = vadd.f32 %v4178_v43, %v9538_v46 }
 0x40d   : > { %v9623_v32 = vadd.f32 %v4173_v53, %v9533_v7  ;;  %v5922_v5 = vpop.f32.mrb[172].mxu0 }
 0x40e   : > { %v4017_v51 = vpop.f32.mrb[190].mxu1  ;;  %v4188_v35 = vadd.f32 %v5922_v5, %v4002_v42  ;;  %v4182_v10 = vpop.f32.mrb[173].mxu0 }
 0x40f   : > { %v4019_v3 = vpop.f32.mrb[191].mxu1  ;;  %v4183_v59 = vadd.f32 %v4182_v10, %v3997_v28 }
 0x410   : > { %v9626_v24 = vadd.f32 %v4188_v35, %v9548_v50 }
 0x411   : > { %v9629_v18 = vadd.f32 %v4183_v59, %v9542_v14  ;;  %v5925_v23 = vpop.f32.mrb[174].mxu0 }
 0x412   : > { %v4022_v30 = vpop.f32.mrb[192].mxu1  ;;  %v4198_v41 = vadd.f32 %v5925_v23, %v4012_v19  ;;  %v4192_v46 = vpop.f32.mrb[175].mxu0 }
 0x413   : > { %v4024_v40 = vpop.f32.mrb[193].mxu1  ;;  %v4193_v44 = vadd.f32 %v4192_v46, %v4007_v37 }
 0x414   : > { %v9632_v7 = vadd.f32 %v4198_v41, %v9558_v31 }
 0x415   : > { %v9635_v33 = vadd.f32 %v4193_v44, %v9554_v38  ;;  %v5928_v61 = vpop.f32.mrb[176].mxu0 }
 0x416   : > { %v4027_v39 = vpop.f32.mrb[194].mxu1  ;;  %v4208_v58 = vadd.f32 %v5928_v61, %v4022_v30  ;;  %v4202_v50 = vpop.f32.mrb[177].mxu0 }
 0x417   : > { %v4029_v26 = vpop.f32.mrb[195].mxu1  ;;  %v4203_v48 = vadd.f32 %v4202_v50, %v4017_v51 }
 0x418   : > { %v9638_v14 = vadd.f32 %v4208_v58, %v9576_v29 }
 0x419   : > { %v9641_v28 = vadd.f32 %v4203_v48, %v9570_v22  ;;  %v5931_v2 = vpop.f32.mrb[178].mxu0 }
 0x41a   : > { %v4032_v62 = vpop.f32.mrb[196].mxu1  ;;  %v4212_v55 = vpop.f32.mrb[179].mxu0 }
 0x41b   : > { %v4218_v31 = vadd.f32 %v5931_v2, %v4032_v62  ;;  %v4034_v42 = vpop.f32.mrb[197].mxu1  ;;  %v4213_v16 = vadd.f32 %v4212_v55, %v4027_v39 }
 0x41d   : > { %v9644_v38 = vadd.f32 %v4218_v31, %v9587_v15  ;;  %v9647_v21 = vadd.f32 %v4213_v16, %v9585_v54  ;;  %v5934_v0 = vpop.f32.mrb[180].mxu0 }
 0x41e   : > { %v4037_v37 = vpop.f32.mrb[198].mxu1  ;;  %v4222_v13 = vpop.f32.mrb[181].mxu0 }
 0x41f   : > { %v4039_v29 = vpop.f32.mrb[199].mxu1  ;;  %v4223_v27 = vadd.f32 %v4222_v13, %v4037_v37 }
 0x421   : > { %v9650_v22 = vadd.f32 %v4223_v27, %v9589_v56  ;;  %v5937_v52 = vpop.f32.mrb[182].mxu0 }
 0x422   : > { %v4042_v57 = vpop.f32.mrb[200].mxu1  ;;  %v4232_v9 = vpop.f32.mrb[183].mxu0 }
 0x423   : > { %v4228_v19 = vadd.f32 %v5934_v0, %v4042_v57  ;;  %v4044_v43 = vpop.f32.mrb[201].mxu1 }
 0x425   : > { %v9653_v25 = vadd.f32 %v4228_v19, %v9591_v47  ;;  %v5940_v15 = vpop.f32.mrb[184].mxu0 }
 0x426   : > { %v4047_v34 = vpop.f32.mrb[202].mxu1  ;;  %v4242_v54 = vpop.f32.mrb[185].mxu0 }
 0x427   : > { %v4233_v53 = vadd.f32 %v4232_v9, %v4047_v34  ;;  %v4049_v5 = vpop.f32.mrb[203].mxu1 }
 0x429   : > { %v9656_v51 = vadd.f32 %v4233_v53, %v9593_v6  ;;  %v5943_v35 = vpop.f32.mrb[186].mxu0 }
 0x42a   : > { %v4052_v10 = vpop.f32.mrb[204].mxu1  ;;  %v4252_v56 = vpop.f32.mrb[187].mxu0 }
 0x42b   : > { %v4238_v3 = vadd.f32 %v5937_v52, %v4052_v10  ;;  %v4054_v59 = vpop.f32.mrb[205].mxu1 }
 0x42d   : > { %v9659_v23 = vadd.f32 %v4238_v3, %v9595_v17  ;;  %v5946_v30 = vpop.f32.mrb[188].mxu0 }
 0x42e   : > { %v4057_v41 = vpop.f32.mrb[206].mxu1  ;;  %v4262_v47 = vpop.f32.mrb[189].mxu0 }
 0x42f   : > { %v4243_v46 = vadd.f32 %v4242_v54, %v4057_v41  ;;  %v4059_v40 = vpop.f32.mrb[207].mxu1 }
 0x431   : > { %v9662_v44 = vadd.f32 %v4243_v46, %v9597_v49  ;;  %v5949_v61 = vpop.f32.mrb[190].mxu0 }
 0x432   : > { %v4062_v39 = vpop.f32.mrb[208].mxu1  ;;  %v4272_v6 = vpop.f32.mrb[191].mxu0 }
 0x433   : > { %v4248_v58 = vadd.f32 %v5940_v15, %v4062_v39  ;;  %v4064_v50 = vpop.f32.mrb[209].mxu1  ;;  %v4971_v39 = vld [vmem:[%s7426_s16] sm:$0xff] }
 0x435   : > { %v9665_v26 = vadd.f32 %v4248_v58, %v9599_v36 }
 0x436   : > { %v4067_v48 = vpop.f32.mrb[210].mxu1 }
 0x437   : > { %v4253_v2 = vadd.f32 %v4252_v56, %v4067_v48  ;;  %v4069_v17 = vpop.f32.mrb[211].mxu1 }
 0x439   : > { %v9668_v62 = vadd.f32 %v4253_v2, %v9601_v1 }
 0x43a   : > { %v4072_v55 = vpop.f32.mrb[212].mxu1 }
 0x43b   : > { %v4258_v31 = vadd.f32 %v5943_v35, %v4072_v55  ;;  %v4074_v42 = vpop.f32.mrb[213].mxu1 }
 0x43d   : > { %v9671_v49 = vadd.f32 %v4258_v31, %v9603_v8  ;;  %v4974_v31 = vld [vmem:[%s7426_s16 + $0x18] sm:$0xff] }
 0x43e   : > { %v4077_v16 = vpop.f32.mrb[214].mxu1 }
 0x43f   : > { %v4263_v0 = vadd.f32 %v4262_v47, %v4077_v16  ;;  %v4079_v37 = vpop.f32.mrb[215].mxu1  ;;  %v4972_v47 = vld [vmem:[%s7426_s16 + $0x8] sm:$0xff] }
 0x440   : > { %v4973_v37 = vld [vmem:[%s7426_s16 + $0x10] sm:$0xff] }
 0x441   : > { %v9674_v13 = vadd.f32 %v4263_v0, %v9605_v45 }
 0x442   : > { %v4082_v36 = vpop.f32.mrb[216].mxu1 }
 0x443   : > { %v4268_v29 = vadd.f32 %v5946_v30, %v4082_v36  ;;  %v4084_v27 = vpop.f32.mrb[217].mxu1 }
 0x445   : > { %v9677_v52 = vadd.f32 %v4268_v29, %v9607_v4  ;;  %v4540_v1 = vpop.f32.mrb[192].mxu0 }
 0x446   : > { %v4087_v57 = vpop.f32.mrb[218].mxu1  ;;  %v4542_v9 = vpop.f32.mrb[193].mxu0 }
 0x447   : > { %v4273_v19 = vadd.f32 %v4272_v6, %v4087_v57  ;;  %v4089_v43 = vpop.f32.mrb[219].mxu1 }
 0x449   : > { %v9680_v8 = vadd.f32 %v4273_v19, %v9609_v20  ;;  %v4545_v15 = vpop.f32.mrb[194].mxu0  ;;  %v9688_v20 = vld [vmem:[%s10315_s21] ss:$0 sm:$0xff] }
 0x44a   : > { %v4092_v34 = vpop.f32.mrb[220].mxu1  ;;  %v4547_v54 = vpop.f32.mrb[195].mxu0 }
 0x44b   : > { %v4278_v45 = vadd.f32 %v5949_v61, %v4092_v34  ;;  %v4094_v53 = vpop.f32.mrb[221].mxu1 }
 0x44c   : > { %v4976_v53 = vld [vmem:[%s7426_s16 + $0x28] sm:$0xff] }
 0x44d   : > { %v9683_v5 = vadd.f32 %v4278_v45, %v9611_v63  ;;  %v4550_v4 = vpop.f32.mrb[196].mxu0 }
 0x44e   : > { %v4552_v35 = vpop.f32.mrb[197].mxu0  ;;  %v5984_v10 = vpop.f32.mrb[222].mxu1 }
 0x44f   : > { %v4731_v56 = vadd.f32 %v5984_v10, %v4545_v15  ;;  %v4725_v3 = vpop.f32.mrb[223].mxu1  ;;  %v4975_v15 = vld [vmem:[%s7426_s16 + $0x20] sm:$0xff] }
 0x450   : > { %v4726_v59 = vadd.f32 %v4725_v3, %v4540_v1 }
 0x451   : > { %v4869_v30 = vadd.f32 %v4731_v56, %v9614_v60  ;;  %v4555_v41 = vpop.f32.mrb[198].mxu0 }
 0x452   : > { %v4868_v46 = vadd.f32 %v4726_v59, %v9617_v11  ;;  %v4557_v63 = vpop.f32.mrb[199].mxu0  ;;  %v5987_v40 = vpop.f32.mrb[224].mxu1 }
 0x453   : > { %v4948_v61 = vadd.f32 %v9688_v20, %v4869_v30  ;;  %v4741_v6 = vadd.f32 %v5987_v40, %v4555_v41  ;;  %v4735_v58 = vpop.f32.mrb[225].mxu1 }
 0x454   : > { %v4947_v50 = vadd.f32 %v9688_v20, %v4868_v46  ;;  %v4736_v48 = vadd.f32 %v4735_v58, %v4550_v4 }
 0x455   : > { %v4996_v2 = vadd.f32 %v4972_v47, %v4948_v61  ;;  %v4871_v60 = vadd.f32 %v4741_v6, %v9620_v12  ;;  %v4560_v17 = vpop.f32.mrb[200].mxu0  ;;  %v4977_v47 = vld [vmem:[%s7426_s16 + $0x30] sm:$0xff] }
 0x456   : > { %v4995_v55 = vadd.f32 %v4971_v39, %v4947_v50  ;;  %v4870_v11 = vadd.f32 %v4736_v48, %v9623_v32  ;;  %v4562_v42 = vpop.f32.mrb[201].mxu0  ;;  %v5990_v16 = vpop.f32.mrb[226].mxu1  ;;  %v4978_v50 = vld [vmem:[%s7426_s16 + $0x38] sm:$0xff] }
 0x457   : > { %5020 = vst [vmem:[%s9701_s7 + $0x8] sm:$0xff] %v4996_v2  ;;  %v4950_v0 = vadd.f32 %v9688_v20, %v4871_v60  ;;  %v4745_v12 = vpop.f32.mrb[227].mxu1  ;;  %v4979_v42 = vld [vmem:[%s7426_s16 + $0x40] sm:$0xff] }
 0x458   : > { %5019 = vst [vmem:[%s9701_s7] sm:$0xff] %v4995_v55  ;;  %v4949_v36 = vadd.f32 %v9688_v20, %v4870_v11  ;;  %v4746_v32 = vadd.f32 %v4745_v12, %v4560_v17 }
 0x459   : > { %v4998_v29 = vadd.f32 %v4974_v31, %v4950_v0  ;;  %v4565_v27 = vpop.f32.mrb[202].mxu0 }
 0x45a   : > { %v4997_v1 = vadd.f32 %v4973_v37, %v4949_v36  ;;  %v4872_v57 = vadd.f32 %v4746_v32, %v9629_v18  ;;  %v4751_v9 = vadd.f32 %v5990_v16, %v4565_v27  ;;  %v4567_v19 = vpop.f32.mrb[203].mxu0  ;;  %v5993_v43 = vpop.f32.mrb[228].mxu1  ;;  %v4980_v27 = vld [vmem:[%s7426_s16 + $0x48] sm:$0xff] }
 0x45b   : > { %5022 = vst [vmem:[%s9701_s7 + $0x18] sm:$0xff] %v4998_v29  ;;  %v4755_v34 = vpop.f32.mrb[229].mxu1 }
 0x45c   : > { %5021 = vst [vmem:[%s9701_s7 + $0x10] sm:$0xff] %v4997_v1  ;;  %v4951_v54 = vadd.f32 %v9688_v20, %v4872_v57  ;;  %v4873_v45 = vadd.f32 %v4751_v9, %v9626_v24 }
 0x45d   : > { %v4570_v4 = vpop.f32.mrb[204].mxu0 }
 0x45e   : > { %v4999_v35 = vadd.f32 %v4975_v15, %v4951_v54  ;;  %v4952_v10 = vadd.f32 %v9688_v20, %v4873_v45  ;;  %v4756_v18 = vadd.f32 %v4755_v34, %v4570_v4  ;;  %v4572_v56 = vpop.f32.mrb[205].mxu0  ;;  %v5996_v3 = vpop.f32.mrb[230].mxu1  ;;  %v4981_v54 = vld [vmem:[%s7426_s16 + $0x50] sm:$0xff] }
 0x45f   : > { %v4765_v59 = vpop.f32.mrb[231].mxu1 }
 0x460   : > { %5023 = vst [vmem:[%s9701_s7 + $0x20] sm:$0xff] %v4999_v35  ;;  %v5000_v30 = vadd.f32 %v4976_v53, %v4952_v10  ;;  %v4874_v41 = vadd.f32 %v4756_v18, %v9635_v33 }
 0x461   : > { %v4575_v46 = vpop.f32.mrb[206].mxu0 }
 0x462   : > { %5024 = vst [vmem:[%s9701_s7 + $0x28] sm:$0xff] %v5000_v30  ;;  %v4953_v24 = vadd.f32 %v9688_v20, %v4874_v41  ;;  %v4761_v63 = vadd.f32 %v5993_v43, %v4575_v46  ;;  %v4577_v40 = vpop.f32.mrb[207].mxu0  ;;  %v5999_v61 = vpop.f32.mrb[232].mxu1 }
 0x463   : > { %v4775_v39 = vpop.f32.mrb[233].mxu1  ;;  %v4983_v40 = vld [vmem:[%s7426_s16 + $0x60] sm:$0xff] }
 0x464   : > { %v5001_v6 = vadd.f32 %v4977_v47, %v4953_v24  ;;  %v4875_v58 = vadd.f32 %v4761_v63, %v9632_v7 }
 0x465   : > { %v4580_v48 = vpop.f32.mrb[208].mxu0 }
 0x466   : > { %5025 = vst [vmem:[%s9701_s7 + $0x30] sm:$0xff] %v5001_v6  ;;  %v4954_v2 = vadd.f32 %v9688_v20, %v4875_v58  ;;  %v4766_v33 = vadd.f32 %v4765_v59, %v4580_v48  ;;  %v4582_v60 = vpop.f32.mrb[209].mxu0  ;;  %v6002_v17 = vpop.f32.mrb[234].mxu1 }
 0x467   : > { %v4785_v55 = vpop.f32.mrb[235].mxu1 }
 0x468   : > { %v5002_v31 = vadd.f32 %v4978_v50, %v4954_v2  ;;  %v4876_v11 = vadd.f32 %v4766_v33, %v9641_v28  ;;  %v4984_v33 = vld [vmem:[%s7426_s16 + $0x68] sm:$0xff] }
 0x469   : > { %v4585_v16 = vpop.f32.mrb[210].mxu0 }
 0x46a   : > { %5026 = vst [vmem:[%s9701_s7 + $0x38] sm:$0xff] %v5002_v31  ;;  %v4955_v0 = vadd.f32 %v9688_v20, %v4876_v11  ;;  %v4771_v7 = vadd.f32 %v5996_v3, %v4585_v16  ;;  %v4587_v37 = vpop.f32.mrb[211].mxu0  ;;  %v6005_v12 = vpop.f32.mrb[236].mxu1  ;;  %v4982_v3 = vld [vmem:[%s7426_s16 + $0x58] sm:$0xff] }
 0x46b   : > { %v4795_v36 = vpop.f32.mrb[237].mxu1 }
 0x46c   : > { %v5003_v32 = vadd.f32 %v4979_v42, %v4955_v0  ;;  %v4877_v29 = vadd.f32 %v4771_v7, %v9638_v14  ;;  %v4985_v42 = vld [vmem:[%s7426_s16 + $0x70] sm:$0xff] }
 0x46d   : > { %v4590_v1 = vpop.f32.mrb[212].mxu0 }
 0x46e   : > { %5027 = vst [vmem:[%s9701_s7 + $0x40] sm:$0xff] %v5003_v32  ;;  %v4956_v57 = vadd.f32 %v9688_v20, %v4877_v29  ;;  %v4776_v28 = vadd.f32 %v4775_v39, %v4590_v1  ;;  %v4592_v9 = vpop.f32.mrb[213].mxu0  ;;  %v6008_v19 = vpop.f32.mrb[238].mxu1  ;;  %v4986_v29 = vld [vmem:[%s7426_s16 + $0x78] sm:$0xff] }
 0x46f   : > { %v4805_v43 = vpop.f32.mrb[239].mxu1  ;;  %v4987_v9 = vld [vmem:[%s7426_s16 + $0x80] sm:$0xff] }
 0x470   : > { %v5004_v15 = vadd.f32 %v4980_v27, %v4956_v57  ;;  %v4878_v34 = vadd.f32 %v4776_v28, %v9647_v21 }
 0x471   : > { %v4595_v45 = vpop.f32.mrb[214].mxu0 }
 0x472   : > { %5028 = vst [vmem:[%s9701_s7 + $0x48] sm:$0xff] %v5004_v15  ;;  %v4957_v53 = vadd.f32 %v9688_v20, %v4878_v34  ;;  %v4781_v14 = vadd.f32 %v5999_v61, %v4595_v45  ;;  %v4597_v4 = vpop.f32.mrb[215].mxu0  ;;  %v9737_v35 = vpop.f32.mrb[240].mxu1 }
 0x473   : > { %v4815_v10 = vpop.f32.mrb[241].mxu1 }
 0x474   : > { %v5005_v18 = vadd.f32 %v4981_v54, %v4957_v53  ;;  %v4879_v56 = vadd.f32 %v4781_v14, %v9644_v38  ;;  %v4988_v53 = vld [vmem:[%s7426_s16 + $0x88] sm:$0xff] }
 0x475   : > { %v4600_v59 = vpop.f32.mrb[216].mxu0 }
 0x476   : > { %5029 = vst [vmem:[%s9701_s7 + $0x50] sm:$0xff] %v5005_v18  ;;  %v4958_v21 = vadd.f32 %v9688_v20, %v4879_v56  ;;  %v4786_v30 = vadd.f32 %v4785_v55, %v4600_v59  ;;  %v4602_v41 = vpop.f32.mrb[217].mxu0  ;;  %v9743_v47 = vpop.f32.mrb[242].mxu1 }
 0x477   : > { %v9745_v46 = vpop.f32.mrb[243].mxu1 }
 0x478   : > { %v5006_v24 = vadd.f32 %v4982_v3, %v4958_v21  ;;  %v4880_v63 = vadd.f32 %v4786_v30, %v9650_v22  ;;  %v4989_v3 = vld [vmem:[%s7426_s16 + $0x90] sm:$0xff] }
 0x479   : > { %v4605_v61 = vpop.f32.mrb[218].mxu0 }
 0x47a   : > { %5030 = vst [vmem:[%s9701_s7 + $0x58] sm:$0xff] %v5006_v24  ;;  %v4959_v38 = vadd.f32 %v9688_v20, %v4880_v63  ;;  %v4791_v39 = vadd.f32 %v6002_v17, %v4605_v61  ;;  %v4607_v6 = vpop.f32.mrb[219].mxu0  ;;  %v9751_v58 = vpop.f32.mrb[244].mxu1  ;;  %v4990_v24 = vld [vmem:[%s7426_s16 + $0x98] sm:$0xff] }
 0x47b   : > { %v9753_v50 = vpop.f32.mrb[245].mxu1 }
 0x47c   : > { %v5007_v48 = vadd.f32 %v4983_v40, %v4959_v38  ;;  %v4881_v2 = vadd.f32 %v4791_v39, %v9653_v25 }
 0x47d   : > { %v4610_v60 = vpop.f32.mrb[220].mxu0 }
 0x47e   : > { %5031 = vst [vmem:[%s9701_s7 + $0x60] sm:$0xff] %v5007_v48  ;;  %v4960_v22 = vadd.f32 %v9688_v20, %v4881_v2  ;;  %v4796_v55 = vadd.f32 %v4795_v36, %v4610_v60  ;;  %v4612_v31 = vpop.f32.mrb[221].mxu0  ;;  %v4992_v60 = vld [vmem:[%s7426_s16 + $0xa8] sm:$0xff] }
 0x480   : > { %v5008_v11 = vadd.f32 %v4984_v33, %v4960_v22  ;;  %v4882_v17 = vadd.f32 %v4796_v55, %v9656_v51 }
 0x481   : > { %v4615_v16 = vpop.f32.mrb[222].mxu0 }
 0x482   : > { %5032 = vst [vmem:[%s9701_s7 + $0x68] sm:$0xff] %v5008_v11  ;;  %v4961_v0 = vadd.f32 %v9688_v20, %v4882_v17  ;;  %v4801_v25 = vadd.f32 %v6005_v12, %v4615_v16  ;;  %v4617_v7 = vpop.f32.mrb[223].mxu0  ;;  %v4993_v11 = vld [vmem:[%s7426_s16 + $0xb0] sm:$0xff] }
 0x484   : > { %v5009_v37 = vadd.f32 %v4985_v42, %v4961_v0  ;;  %v4883_v32 = vadd.f32 %v4801_v25, %v9659_v23  ;;  %v4994_v25 = vld [vmem:[%s7426_s16 + $0xb8] sm:$0xff] }
 0x485   : > { %v4620_v27 = vpop.f32.mrb[224].mxu0 }
 0x486   : > { %5033 = vst [vmem:[%s9701_s7 + $0x70] sm:$0xff] %v5009_v37  ;;  %v4962_v36 = vadd.f32 %v9688_v20, %v4883_v32  ;;  %v4806_v51 = vadd.f32 %v4805_v43, %v4620_v27  ;;  %v4622_v1 = vpop.f32.mrb[225].mxu0 }
 0x488   : > { %v5010_v57 = vadd.f32 %v4986_v29, %v4962_v36  ;;  %v4884_v28 = vadd.f32 %v4806_v51, %v9662_v44 }
 0x489   : > { %v4625_v15 = vpop.f32.mrb[226].mxu0 }
 0x48a   : > { %5034 = vst [vmem:[%s9701_s7 + $0x78] sm:$0xff] %v5010_v57  ;;  %v4963_v12 = vadd.f32 %v9688_v20, %v4884_v28  ;;  %v4811_v23 = vadd.f32 %v6008_v19, %v4625_v15  ;;  %v4627_v34 = vpop.f32.mrb[227].mxu0 }
 0x48c   : > { %v5011_v54 = vadd.f32 %v4987_v9, %v4963_v12  ;;  %v4885_v45 = vadd.f32 %v4811_v23, %v9665_v26 }
 0x48d   : > { %v4630_v14 = vpop.f32.mrb[228].mxu0 }
 0x48e   : > { %5035 = vst [vmem:[%s9701_s7 + $0x80] sm:$0xff] %v5011_v54  ;;  %v4964_v43 = vadd.f32 %v9688_v20, %v4885_v45  ;;  %v4816_v44 = vadd.f32 %v4815_v10, %v4630_v14  ;;  %v4632_v4 = vpop.f32.mrb[229].mxu0 }
 0x490   : > { %v5012_v18 = vadd.f32 %v4988_v53, %v4964_v43  ;;  %v4886_v56 = vadd.f32 %v4816_v44, %v9668_v62 }
 0x491   : > { %v4635_v59 = vpop.f32.mrb[230].mxu0 }
 0x492   : > { %5036 = vst [vmem:[%s9701_s7 + $0x88] sm:$0xff] %v5012_v18  ;;  %v4965_v19 = vadd.f32 %v9688_v20, %v4886_v56  ;;  %v4821_v26 = vadd.f32 %v9737_v35, %v4635_v59  ;;  %v4637_v21 = vpop.f32.mrb[231].mxu0  ;;  %v4991_v35 = vld [vmem:[%s7426_s16 + $0xa0] sm:$0xff]  ;;  %s6991_s16 = smov [#allocation13]  }
 0x493   : > { %s6826_s11 = sshll.u32 %s6991_s16, 4  ;;  %s6827_s11 = int_to_ptr.vmem [resolvable:$false] %s6826_s11 }
 0x494   : > { %v5013_v30 = vadd.f32 %v4989_v3, %v4965_v19  ;;  %v4887_v41 = vadd.f32 %v4821_v26, %v9671_v49  ;;  %s6828_s21 = scalar_lea.vmem %s6827_s11, 6144  ;;  %p6829_p12 = scmp.lt.s32.totalorder %s9807_s15, %s6827_s11 }
 0x495   : > { %v4640_v10 = vpop.f32.mrb[232].mxu0  ;;  %p6830_p3 = scmp.lt.s32.totalorder %s6828_s21, %s6822_s19 }
 0x496   : > { %5037 = vst [vmem:[%s9701_s7 + $0x90] sm:$0xff] %v5013_v30  ;;  %v4966_v62 = vadd.f32 %v9688_v20, %v4887_v41  ;;  %v4826_v63 = vadd.f32 %v9745_v46, %v4640_v10  ;;  %v4642_v40 = vpop.f32.mrb[233].mxu0 }
 0x497   : > { %p6831_p8 = por %p6830_p3, %p6829_p12 }
 0x498   : > { %v5014_v61 = vadd.f32 %v4990_v24, %v4966_v62  ;;  %v4888_v38 = vadd.f32 %v4826_v63, %v9674_v13 }
 0x499   : > { %v4645_v39 = vpop.f32.mrb[234].mxu0  ;;  %p6832_p5 = pnand %p6831_p8, %p6825_p0 }
 0x49a   : > { %5038 = vst [vmem:[%s9701_s7 + $0x98] sm:$0xff] %v5014_v61  ;;  %v4967_v49 = vadd.f32 %v9688_v20, %v4888_v38  ;;  %v4831_v6 = vadd.f32 %v9743_v47, %v4645_v39  ;;  %v4647_v48 = vpop.f32.mrb[235].mxu0 }
 0x49c   : > { %v5015_v2 = vadd.f32 %v4991_v35, %v4967_v49  ;;  %v4889_v33 = vadd.f32 %v4831_v6, %v9677_v52 }
 0x49d   : > { %v4650_v46 = vpop.f32.mrb[236].mxu0 }
 0x49e   : > { %5039 = vst [vmem:[%s9701_s7 + $0xa0] sm:$0xff] %v5015_v2  ;;  %v4968_v13 = vadd.f32 %v9688_v20, %v4889_v33  ;;  %v4836_v22 = vadd.f32 %v9753_v50, %v4650_v46  ;;  %v4652_v55 = vpop.f32.mrb[237].mxu0 }
 0x4a0   : > { %v5016_v31 = vadd.f32 %v4992_v60, %v4968_v13  ;;  %v4890_v47 = vadd.f32 %v4836_v22, %v9680_v8 }
 0x4a1   : > { %v4655_v17 = vpop.f32.mrb[238].mxu0 }
 0x4a2   : > { %5040 = vst [vmem:[%s9701_s7 + $0xa8] sm:$0xff] %v5016_v31  ;;  %v4969_v52 = vadd.f32 %v9688_v20, %v4890_v47  ;;  %v4841_v42 = vadd.f32 %v9751_v58, %v4655_v17  ;;  %v4657_v16 = vpop.f32.mrb[239].mxu0 }
 0x4a4   : > { %v5017_v0 = vadd.f32 %v4993_v11, %v4969_v52  ;;  %v4891_v50 = vadd.f32 %v4841_v42, %v9683_v5 }
 0x4a6   : > { %5041 = vst [vmem:[%s9701_s7 + $0xb0] sm:$0xff] %v5017_v0  ;;  %v4970_v8 = vadd.f32 %v9688_v20, %v4891_v50 }
 0x4a8   : > { %v5018_v7 = vadd.f32 %v4994_v25, %v4970_v8 }
 0x4aa   : > { %5042 = vst [vmem:[%s9701_s7 + $0xb8] sm:$0xff] %v5018_v7 }
 0x4ab   : > { %6835 = shalt.err (!%p6832_p5)
}
 0x4ac   : > { %s6836_s7 = scalar_lea.hbm %s9812_s10, 3072  ;;  %s6840_s6 = scalar_lea.hbm %s10318_s18, 12288 }
 0x4ad   : > { %p6837_p10 = scmp.ne.s32.totalorder %s9812_s10, %s6836_s7  ;;  %p6841_p4 = scmp.lt.u32.totalorder %s9812_s10, %s10318_s18 }
 0x4ae   : > { %p6842_p7 = scmp.lt.u32.totalorder %s6840_s6, %s6836_s7  ;;  %p6844_p13 = scmp.lt.u32.totalorder %s6836_s7, %s9812_s10 }
 0x4af   : > { %p6838_p9 = pnand %p6837_p10, %p10319_p1 }
 0x4b0   : > { %p6843_p6 = por %p6842_p7, %p6841_p4 }
 0x4b1   : > { %p6839_p11 = pneg %p6838_p9 }
 0x4b2   : > { %p6845_p2 = por %p6844_p13, %p6843_p6 }
 0x4b4   : > { %p6846_p0 = pnand %p6845_p2, %p6839_p11 }
 0x4b6   : > { %6849 = shalt.err (!%p6846_p0)
}
 0x4b7   : > { %s6992_s27 = smov 128   ;;  %s6993_s1 = smov 8  }
 0x4b8   : > { %6526 = dma.vmem_to_hbm [thread:$0]  (%p10319_p1), %s9807_s15, 3072, %s9812_s10, %s5044_s20, %s6992_s27, %s6992_s27, %s6993_s1  }
 0x4b9 PF: > { %p6554_p12 = scmp.ge.s32.totalorder %s6980_s14, 2  ;;  %s5075_s24 = sand.u32 1, %s6952_s30  }
 0x4ba   : > { %p10320_p3 = scmp.ne.s32.totalorder %s10097_s17, 0  ;;  %s5076_s19 = scalar_lea.sflag [#allocation6], %s5075_s24 }
 0x4bc   : > { %p6546_p8 = pnand %p6554_p12, %p10320_p3 }
 0x4be   : > { %6923 = dma.done.wait (!%p6546_p8), %s5076_s19, 3072  }
 0x4bf   : > { %6925 = vsyncadd (!%p6546_p8), %s5076_s19, 4294964224  ;;  %s27_s14 = sadd.s32 1, %s6980_s14   ;;  %s10322_s27 = sld [smem:[#allocation20_spill]] }
 0x4c0   : > { %p9844_p5 = scmp.ge.s32.totalorder %s27_s14, 6   ;;  %s10323_s28 = sld [smem:[#allocation21_spill]] }
 0x4c1   : > { %s10324_s29 = sld [smem:[#allocation30_spill]]  ;;  %s10325_s13 = sld [smem:[#allocation31_spill]] }
 0x4c2   : > { %s10326_s11 = sld [smem:[#allocation24_spill]]  ;;  %s10327_s17 = sld [smem:[#allocation26_spill]] }
 0x4c3   : > { %s10328_s15 = sld [smem:[#allocation27_spill]]  ;;  %s10329_s24 = smov %s6932_s25 }
 0x4c4   : > { %s10330_s25 = smov %s6936_s26  ;;  %s10331_s26 = smov %s7372_s5 }
 0x4c5   : > { %s10332_s30 = smov %s6956_s8  ;;  %s10333_s8 = smov %s6960_s9 }
 0x4c6   : > { %s10335_s10 = smov %s6972_s12  ;;  %26 = sbr.rel (!%p9844_p5) target bundleno = 21 (0x15), region = 132 }
 0x4c7   : > { %s10334_s9 = smov %s10325_s13 }
 0x4c8   : > { %s10336_s12 = smov %s10327_s17 }
 0x4c9   : > { %s10337_s13 = smov %s10328_s15 }
 0x4cd   :  { %5081 = vsyncpa [#allocation5], 1 }
 0x4ce   :  { %5083 = vsyncpa [#allocation5 + $0x1], 1 }
 0x4cf   :  { %5084 = vsyncpa [#allocation8], 1 }
 0x4d0   :  { %5086 = vsyncpa [#allocation8 + $0x1], 1 }
 0x4d1   :  { %5087 = vsyncpa [#allocation11], 1 }
 0x4d2   :  { %5088 = vsyncpa [#allocation6], 1 }
 0x4d3   :  { %5090 = vsyncpa [#allocation6 + $0x1], 1 }

</bundles_post_ra>
